<compile_context>
chip_gen: v7x
topology: tpu7x:2x2x1
jax: 0.10.0
libtpu: 0.0.40
codegen_flags: <defaults>
</compile_context>

<pallas_src>
import functools

import jax
import jax.numpy as jnp
import numpy as np
from jax import lax
from jax.experimental import pallas as pl
from jax.experimental.pallas import tpu as pltpu


# --------------------------------------------------------------------------- #
# Parameter setup (host-side numpy; mirrors GaussianFilter2D.__init__)
# --------------------------------------------------------------------------- #
def _gaussian_window_1d(window_size: int, sigma: float) -> np.ndarray:
    half = window_size // 2
    x = np.arange(-half, half + 1, dtype=np.float64)
    w = np.exp(-0.5 * x * x / (sigma * sigma))
    return (w / w.sum()).astype(np.float32)


def _band_matrix(n: int, w1: np.ndarray, pad: int) -> np.ndarray:
    """G[i, k] = w1[k - i + pad] if |k - i| <= pad else 0 (symmetric).

    (X @ G) is the zero-padded 1D Gaussian conv along the last axis of X and
    (G @ X) the conv along the first axis, matching F.conv2d(padding=win//2)
    with the separable Gaussian window.
    """
    idx = np.arange(n)
    diff = idx[None, :] - idx[:, None]
    valid = np.abs(diff) <= pad
    widx = np.clip(diff + pad, 0, w1.shape[0] - 1)
    return np.where(valid, w1[widx], 0.0).astype(np.float32)


# --------------------------------------------------------------------------- #
# Shared SSIM epilogue (elementwise math + per-image spatial sums)
# --------------------------------------------------------------------------- #
def _ssim_epilogue(r, o_ref, *, C1, C2, TB, TBP):
    """`r` holds the 5 blurred fields stacked along axis 0 in TB chunks:
    [x, y, x^2, y^2, x*y].  The per-image spatial layout of r may be transposed
    (dense path); the math and the sum over the last two axes are layout-agnostic.
    """
    mu_x = r[0 * TB:1 * TB]
    mu_y = r[1 * TB:2 * TB]
    e_xx = r[2 * TB:3 * TB]
    e_yy = r[3 * TB:4 * TB]
    e_xy = r[4 * TB:5 * TB]

    sigma2_x = e_xx - mu_x * mu_x
    sigma2_y = e_yy - mu_y * mu_y
    sigma_xy = e_xy - mu_x * mu_y

    A1 = 2.0 * mu_x * mu_y + C1
    A2 = 2.0 * sigma_xy + C2
    B1 = mu_x * mu_x + mu_y * mu_y + C1
    B2 = sigma2_x + sigma2_y + C2
    S = (A1 * A2) / (B1 * B2)          # exact divide: keeps the 1e-4/1e-5 tolerance

    # Per-image spatial sums (mean scaling happens in the wrapper).
    sums = jnp.sum(jnp.sum(S, axis=-1), axis=-1).reshape(1, 1, TB)
    if TBP == TB:
        o_ref[...] = sums
    else:
        # Lane-dense (1, 1, TBP) output block: the HBM writeback DMA is a full
        # 128-lane-aligned row; only the first TB lanes are meaningful and the
        # wrapper slices them out.
        o_ref[:, :, pl.ds(0, TB)] = sums


# --------------------------------------------------------------------------- #
# Small-image path: 11-tap separable conv via shifted static slices (VPU only)
# --------------------------------------------------------------------------- #
def _conv1d_taps(a, taps, pad, axis):
    """Zero-padded window_size-tap conv along `axis` (exactly len(taps) FMAs per
    output element; no dense band matrix, no MXU)."""
    n = a.shape[axis]
    zshape = list(a.shape)
    zshape[axis] = pad
    z = jnp.zeros(tuple(zshape), a.dtype)
    ap = jnp.concatenate([z, a, z], axis=axis)
    out = None
    for k, wk in enumerate(taps):
        term = wk * lax.slice_in_dim(ap, k, k + n, axis=axis)
        out = term if out is None else out + term
    return out


def _ssim_small_kernel(x_ref, y_ref, o_ref, *, C1, C2, TB, TBP, taps, pad):
    x = x_ref[...].astype(jnp.float32)          # (TB, H, W); upcast in-kernel
    y = y_ref[...].astype(jnp.float32)
    fields = jnp.concatenate([x, y, x * x, y * y, x * y], axis=0)   # (5*TB, H, W)
    t = _conv1d_taps(fields, taps, pad, axis=2)  # blur along W (lane axis)
    r = _conv1d_taps(t, taps, pad, axis=1)       # blur along H (sublane axis)
    _ssim_epilogue(r, o_ref, C1=C1, C2=C2, TB=TB, TBP=TBP)


# --------------------------------------------------------------------------- #
# Dense path: banded-G MXU matmuls with a shared stationary RHS
# --------------------------------------------------------------------------- #
def _ssim_dense_body(x_ref, y_ref, gh, gw, o_ref, fields_ref, *, C1, C2, TB, TBP):
    H = x_ref.shape[1]
    W = x_ref.shape[2]
    x = x_ref[...].astype(jnp.float32)
    y = y_ref[...].astype(jnp.float32)
    n = TB * H
    # Stage the five fields directly into the (5*TB*H, W) VMEM staging scratch
    # (no concatenate / reshape copies).
    fields_ref[pl.ds(0 * n, n), :] = x.reshape(n, W)
    fields_ref[pl.ds(1 * n, n), :] = y.reshape(n, W)
    fields_ref[pl.ds(2 * n, n), :] = (x * x).reshape(n, W)
    fields_ref[pl.ds(3 * n, n), :] = (y * y).reshape(n, W)
    fields_ref[pl.ds(4 * n, n), :] = (x * y).reshape(n, W)

    # W-direction blur: ONE fat MXU matmul (M = 5*TB*H), stationary RHS = G_W.
    tw = jnp.dot(fields_ref[...], gw, preferred_element_type=jnp.float32)
    # H-direction blur: one per-image minor-dim transpose, then ONE fat MXU
    # matmul (M = 5*TB*W) with stationary RHS G_H (symmetric), leaving the
    # result per-image transposed.  Epilogue is layout-agnostic: never transpose
    # back.  (Replaces the old broadcast-G_H batched einsum.)
    tw_t = jnp.swapaxes(tw.reshape(5 * TB, H, W), 1, 2)             # (5*TB, W, H)
    r = jnp.dot(tw_t.reshape(5 * TB * W, H), gh,
                preferred_element_type=jnp.float32).reshape(5 * TB, W, H)
    _ssim_epilogue(r, o_ref, C1=C1, C2=C2, TB=TB, TBP=TBP)


def _ssim_dense_rect_kernel(x_ref, y_ref, gh_ref, gw_ref, o_ref, fields_ref, *,
                            C1, C2, TB, TBP):
    _ssim_dense_body(x_ref, y_ref, gh_ref[...], gw_ref[...], o_ref, fields_ref,
                     C1=C1, C2=C2, TB=TB, TBP=TBP)


def _ssim_dense_square_kernel(x_ref, y_ref, g_ref, o_ref, fields_ref, *,
                              C1, C2, TB, TBP):
    # H == W: single Gaussian band matrix reused for both directions.
    g = g_ref[...]
    _ssim_dense_body(x_ref, y_ref, g, g, o_ref, fields_ref,
                     C1=C1, C2=C2, TB=TB, TBP=TBP)


# --------------------------------------------------------------------------- #
# Generation-aware VMEM budget and TB selection
# --------------------------------------------------------------------------- #
def _vmem_budget():
    """(working-set budget, scoped vmem limit) in bytes, per chip generation."""
    cap = 64 * 1024 * 1024                    # conservative default (v7x per-TC)
    try:
        info = pltpu.get_tpu_info()
        cap_attr = getattr(info, "vmem_capacity_bytes", None)
        if cap_attr:
            cap = int(cap_attr)
    except Exception:
        pass
    budget = min((3 * cap) // 8, 48 * 1024 * 1024)   # ~24 MiB v7x, ~48 MiB v5e/v6e
    limit = min((3 * cap) // 4, 96 * 1024 * 1024)    # ~48 MiB v7x, ~96 MiB v5e/v6e
    return int(budget), int(limit)


def _choose_tb(BC, per_img_bytes, const_bytes, budget):
    tb_max = max(1, (budget - const_bytes) // max(per_img_bytes, 1))
    tb_max = int(min(tb_max, BC, 256))
    best_even, best_any = None, 1
    for d in range(1, tb_max + 1):
        if BC % d == 0:
            best_any = d
            if (BC // d) % 2 == 0:
                best_even = d
    # Divisors of BC only (no zero-padded HBM copy of the inputs); prefer an
    # even number of grid steps so both v7x TensorCores get work.
    # TODO(synk): for large prime BC fall back to an in-kernel masked tail block
    # instead of TB=1.
    return best_even if best_even is not None else best_any


# --------------------------------------------------------------------------- #
# Wrapper (glue): parameter construction, pallas_call, final mean
# --------------------------------------------------------------------------- #
def ssim_pallas(x, y, *, window_size=11, sigma=1.5, K1=0.01, K2=0.03, L=1,
                keep_batch_dim=False, small_image_max=64):
    assert x.shape == y.shape and x.ndim == 4
    B, C, H, W = x.shape
    pad = window_size // 2
    C1 = float((K1 * L) ** 2)
    C2 = float((K2 * L) ** 2)
    w1 = _gaussian_window_1d(window_size, sigma)

    BC = B * C
    budget, vmem_limit = _vmem_budget()
    itemsize = int(x.dtype.itemsize)
    small = max(H, W) <= small_image_max      # roll/slice crossover vs MXU fill

    if small:
        # 4 pipelined input planes (native dtype) + ~36 f32 padded temporaries.
        per_img = 4 * itemsize * H * W + 36 * 4 * (H + 2 * pad) * (W + 2 * pad)
        const = 0
    else:
        g_bytes = (H * H if H == W else H * H + W * W) * 4
        const = 2 * g_bytes                   # double-buffered band matrices
        per_img = 4 * itemsize * H * W + 37 * 4 * H * W   # temporaries + staging

    TB = _choose_tb(BC, per_img, const, budget)
    nblk = BC // TB
    TBP = ((TB + 127) // 128) * 128           # lane-dense output row width

    xr = x.reshape(BC, H, W)                  # native dtype; upcast in-kernel
    yr = y.reshape(BC, H, W)

    img_spec = pl.BlockSpec((TB, H, W), lambda i: (i, 0, 0))
    out_spec = pl.BlockSpec((1, 1, TBP), lambda i: (i, 0, 0))
    out_shape = jax.ShapeDtypeStruct((nblk, 1, TBP), jnp.float32)
    cparams = pltpu.CompilerParams(
        dimension_semantics=("parallel",),
        vmem_limit_bytes=int(vmem_limit))

    if small:
        taps = tuple(float(v) for v in w1)
        kernel = functools.partial(_ssim_small_kernel, C1=C1, C2=C2,
                                   TB=TB, TBP=TBP, taps=taps, pad=pad)
        grid_spec = pltpu.PrefetchScalarGridSpec(
            num_scalar_prefetch=0, grid=(nblk,),
            in_specs=[img_spec, img_spec],
            out_specs=out_spec)
        sums3 = pl.pallas_call(kernel, out_shape=out_shape, grid_spec=grid_spec,
                               compiler_params=cparams)(xr, yr)
    else:
        gh = jnp.asarray(_band_matrix(H, w1, pad))
        # TODO(synk): mark the (grid-invariant) G BlockSpecs single-buffered
        # via pipeline_mode=pl.Buffered(1) once verified on all generations.
        if H == W:
            kernel = functools.partial(_ssim_dense_square_kernel, C1=C1, C2=C2,
                                       TB=TB, TBP=TBP)
            g_specs = [pl.BlockSpec((H, H), lambda i: (0, 0))]
            operands = (xr, yr, gh)
        else:
            gw = jnp.asarray(_band_matrix(W, w1, pad))
            kernel = functools.partial(_ssim_dense_rect_kernel, C1=C1, C2=C2,
                                       TB=TB, TBP=TBP)
            g_specs = [pl.BlockSpec((H, H), lambda i: (0, 0)),
                       pl.BlockSpec((W, W), lambda i: (0, 0))]
            operands = (xr, yr, gh, gw)
        grid_spec = pltpu.PrefetchScalarGridSpec(
            num_scalar_prefetch=0, grid=(nblk,),
            in_specs=[img_spec, img_spec] + g_specs,
            out_specs=out_spec,
            scratch_shapes=[pltpu.VMEM((5 * TB * H, W), jnp.float32)])
        sums3 = pl.pallas_call(kernel, out_shape=out_shape, grid_spec=grid_spec,
                               compiler_params=cparams)(*operands)

    per_image = sums3.reshape(nblk, TBP)[:, :TB].reshape(BC)
    # TODO(synk): return_log=True needs a global min/max over the full SSIM map
    # (second pass over S); not implemented (module default is return_log=False).
    if keep_batch_dim:
        return jnp.sum(per_image.reshape(B, C), axis=1) / float(C * H * W)
    return jnp.sum(per_image) / float(BC * H * W)


# --------------------------------------------------------------------------- #
# Pure-JAX reference (matches the PyTorch module) for a correctness check
# --------------------------------------------------------------------------- #
def _ssim_reference(x, y, *, window_size=11, sigma=1.5, K1=0.01, K2=0.03, L=1):
    B, C, H, W = x.shape
    pad = window_size // 2
    C1 = (K1 * L) ** 2
    C2 = (K2 * L) ** 2
    w1 = jnp.asarray(_gaussian_window_1d(window_size, sigma))
    w2d = jnp.outer(w1, w1).reshape(1, 1, window_size, window_size)
    w2d = jnp.tile(w2d, (C, 1, 1, 1))                        # (C,1,win,win)

    def blur(a):
        return lax.conv_general_dilated(
            a, w2d, window_strides=(1, 1),
            padding=[(pad, pad), (pad, pad)],
            dimension_numbers=('NCHW', 'OIHW', 'NCHW'),
            feature_group_count=C)

    x = x.astype(jnp.float32)
    y = y.astype(jnp.float32)
    mu_x, mu_y = blur(x), blur(y)
    sigma2_x = blur(x * x) - mu_x * mu_x
    sigma2_y = blur(y * y) - mu_y * mu_y
    sigma_xy = blur(x * y) - mu_x * mu_y
    A1 = 2 * mu_x * mu_y + C1
    A2 = 2 * sigma_xy + C2
    B1 = mu_x * mu_x + mu_y * mu_y + C1
    B2 = sigma2_x + sigma2_y + C2
    S = A1 * A2 / (B1 * B2)
    return jnp.mean(S)


if __name__ == "__main__":
    key = jax.random.PRNGKey(0)
    kx, ky = jax.random.split(key)
    B, C, H, W = 2, 4, 16, 16                     # SSIM(in_channels=4) setting
    x = jax.random.normal(kx, (B, C, H, W), dtype=jnp.float32)
    y = jax.random.normal(ky, (B, C, H, W), dtype=jnp.float32)

    out = jax.block_until_ready(ssim_pallas(x, y))

    ref = jax.block_until_ready(_ssim_reference(x, y))
    np.testing.assert_allclose(np.asarray(out), np.asarray(ref),
                               rtol=1e-4, atol=1e-5)
    print("KERNEL_OK")
</pallas_src>

<mosaic_0001>
module attributes {stable_mosaic.version = 11 : i64} {
  func.func @_ssim_small_kernel(%arg0: i32, %arg1: memref<4x16x16xf32, #tpu.memory_space<vmem>>, %arg2: memref<4x16x16xf32, #tpu.memory_space<vmem>>, %arg3: memref<1x1x128xf32, #tpu.memory_space<vmem>>) attributes {dimension_semantics = [#tpu.dimension_semantics<parallel>], iteration_bounds = array<i64: 2>, scalar_prefetch = 0 : i64, scratch_operands = 0 : i64, tpu.core_type = #tpu.core_type<tc>, window_params = [{transform_indices = @transform_0, window_bounds = array<i64: 4, 16, 16>}, {transform_indices = @transform_1, window_bounds = array<i64: 4, 16, 16>}, {transform_indices = @transform_2, window_bounds = array<i64: 1, 1, 128>}]} {
    %c0 = arith.constant 0 : index
    %c0_0 = arith.constant 0 : index
    %c0_1 = arith.constant 0 : index
    %0 = vector.load %arg1[%c0, %c0_0, %c0_1] : memref<4x16x16xf32, #tpu.memory_space<vmem>>, vector<4x16x16xf32>
    %c0_2 = arith.constant 0 : index
    %c0_3 = arith.constant 0 : index
    %c0_4 = arith.constant 0 : index
    %1 = vector.load %arg2[%c0_2, %c0_3, %c0_4] : memref<4x16x16xf32, #tpu.memory_space<vmem>>, vector<4x16x16xf32>
    %2 = arith.mulf %0, %0 : vector<4x16x16xf32>
    %3 = arith.mulf %1, %1 : vector<4x16x16xf32>
    %4 = arith.mulf %0, %1 : vector<4x16x16xf32>
    %5 = tpu.concatenate %0, %1, %2, %3, %4 in 0 : vector<4x16x16xf32>, vector<4x16x16xf32>, vector<4x16x16xf32>, vector<4x16x16xf32>, vector<4x16x16xf32> -> vector<20x16x16xf32>
    %cst = arith.constant 0.000000e+00 : f32
    %6 = vector.broadcast %cst : f32 to vector<20x16x5xf32>
    %7 = tpu.concatenate %6, %5, %6 in 2 : vector<20x16x5xf32>, vector<20x16x16xf32>, vector<20x16x5xf32> -> vector<20x16x26xf32>
    %8 = vector.extract_strided_slice %7 {offsets = [0, 0, 0], sizes = [20, 16, 16], strides = [1, 1, 1]} : vector<20x16x26xf32> to vector<20x16x16xf32>
    %cst_5 = arith.constant 0.00102838012 : f32
    %9 = vector.broadcast %cst_5 : f32 to vector<20x16x16xf32>
    %10 = arith.mulf %9, %8 : vector<20x16x16xf32>
    %11 = vector.extract_strided_slice %7 {offsets = [0, 0, 1], sizes = [20, 16, 16], strides = [1, 1, 1]} : vector<20x16x26xf32> to vector<20x16x16xf32>
    %cst_6 = arith.constant 0.00759875821 : f32
    %12 = vector.broadcast %cst_6 : f32 to vector<20x16x16xf32>
    %13 = arith.mulf %12, %11 : vector<20x16x16xf32>
    %14 = arith.addf %10, %13 : vector<20x16x16xf32>
    %15 = vector.extract_strided_slice %7 {offsets = [0, 0, 2], sizes = [20, 16, 16], strides = [1, 1, 1]} : vector<20x16x26xf32> to vector<20x16x16xf32>
    %cst_7 = arith.constant 0.0360007733 : f32
    %16 = vector.broadcast %cst_7 : f32 to vector<20x16x16xf32>
    %17 = arith.mulf %16, %15 : vector<20x16x16xf32>
    %18 = arith.addf %14, %17 : vector<20x16x16xf32>
    %19 = vector.extract_strided_slice %7 {offsets = [0, 0, 3], sizes = [20, 16, 16], strides = [1, 1, 1]} : vector<20x16x26xf32> to vector<20x16x16xf32>
    %cst_8 = arith.constant 0.109360687 : f32
    %20 = vector.broadcast %cst_8 : f32 to vector<20x16x16xf32>
    %21 = arith.mulf %20, %19 : vector<20x16x16xf32>
    %22 = arith.addf %18, %21 : vector<20x16x16xf32>
    %23 = vector.extract_strided_slice %7 {offsets = [0, 0, 4], sizes = [20, 16, 16], strides = [1, 1, 1]} : vector<20x16x26xf32> to vector<20x16x16xf32>
    %cst_9 = arith.constant 0.213005543 : f32
    %24 = vector.broadcast %cst_9 : f32 to vector<20x16x16xf32>
    %25 = arith.mulf %24, %23 : vector<20x16x16xf32>
    %26 = arith.addf %22, %25 : vector<20x16x16xf32>
    %27 = vector.extract_strided_slice %7 {offsets = [0, 0, 5], sizes = [20, 16, 16], strides = [1, 1, 1]} : vector<20x16x26xf32> to vector<20x16x16xf32>
    %cst_10 = arith.constant 0.266011715 : f32
    %28 = vector.broadcast %cst_10 : f32 to vector<20x16x16xf32>
    %29 = arith.mulf %28, %27 : vector<20x16x16xf32>
    %30 = arith.addf %26, %29 : vector<20x16x16xf32>
    %31 = vector.extract_strided_slice %7 {offsets = [0, 0, 6], sizes = [20, 16, 16], strides = [1, 1, 1]} : vector<20x16x26xf32> to vector<20x16x16xf32>
    %cst_11 = arith.constant 0.213005543 : f32
    %32 = vector.broadcast %cst_11 : f32 to vector<20x16x16xf32>
    %33 = arith.mulf %32, %31 : vector<20x16x16xf32>
    %34 = arith.addf %30, %33 : vector<20x16x16xf32>
    %35 = vector.extract_strided_slice %7 {offsets = [0, 0, 7], sizes = [20, 16, 16], strides = [1, 1, 1]} : vector<20x16x26xf32> to vector<20x16x16xf32>
    %cst_12 = arith.constant 0.109360687 : f32
    %36 = vector.broadcast %cst_12 : f32 to vector<20x16x16xf32>
    %37 = arith.mulf %36, %35 : vector<20x16x16xf32>
    %38 = arith.addf %34, %37 : vector<20x16x16xf32>
    %39 = vector.extract_strided_slice %7 {offsets = [0, 0, 8], sizes = [20, 16, 16], strides = [1, 1, 1]} : vector<20x16x26xf32> to vector<20x16x16xf32>
    %cst_13 = arith.constant 0.0360007733 : f32
    %40 = vector.broadcast %cst_13 : f32 to vector<20x16x16xf32>
    %41 = arith.mulf %40, %39 : vector<20x16x16xf32>
    %42 = arith.addf %38, %41 : vector<20x16x16xf32>
    %43 = vector.extract_strided_slice %7 {offsets = [0, 0, 9], sizes = [20, 16, 16], strides = [1, 1, 1]} : vector<20x16x26xf32> to vector<20x16x16xf32>
    %cst_14 = arith.constant 0.00759875821 : f32
    %44 = vector.broadcast %cst_14 : f32 to vector<20x16x16xf32>
    %45 = arith.mulf %44, %43 : vector<20x16x16xf32>
    %46 = arith.addf %42, %45 : vector<20x16x16xf32>
    %47 = vector.extract_strided_slice %7 {offsets = [0, 0, 10], sizes = [20, 16, 16], strides = [1, 1, 1]} : vector<20x16x26xf32> to vector<20x16x16xf32>
    %cst_15 = arith.constant 0.00102838012 : f32
    %48 = vector.broadcast %cst_15 : f32 to vector<20x16x16xf32>
    %49 = arith.mulf %48, %47 : vector<20x16x16xf32>
    %50 = arith.addf %46, %49 : vector<20x16x16xf32>
    %cst_16 = arith.constant 0.000000e+00 : f32
    %51 = vector.broadcast %cst_16 : f32 to vector<20x5x16xf32>
    %52 = tpu.concatenate %51, %50, %51 in 1 : vector<20x5x16xf32>, vector<20x16x16xf32>, vector<20x5x16xf32> -> vector<20x26x16xf32>
    %53 = vector.extract_strided_slice %52 {offsets = [0, 0, 0], sizes = [20, 16, 16], strides = [1, 1, 1]} : vector<20x26x16xf32> to vector<20x16x16xf32>
    %cst_17 = arith.constant 0.00102838012 : f32
    %54 = vector.broadcast %cst_17 : f32 to vector<20x16x16xf32>
    %55 = arith.mulf %54, %53 : vector<20x16x16xf32>
    %56 = vector.extract_strided_slice %52 {offsets = [0, 1, 0], sizes = [20, 16, 16], strides = [1, 1, 1]} : vector<20x26x16xf32> to vector<20x16x16xf32>
    %cst_18 = arith.constant 0.00759875821 : f32
    %57 = vector.broadcast %cst_18 : f32 to vector<20x16x16xf32>
    %58 = arith.mulf %57, %56 : vector<20x16x16xf32>
    %59 = arith.addf %55, %58 : vector<20x16x16xf32>
    %60 = vector.extract_strided_slice %52 {offsets = [0, 2, 0], sizes = [20, 16, 16], strides = [1, 1, 1]} : vector<20x26x16xf32> to vector<20x16x16xf32>
    %cst_19 = arith.constant 0.0360007733 : f32
    %61 = vector.broadcast %cst_19 : f32 to vector<20x16x16xf32>
    %62 = arith.mulf %61, %60 : vector<20x16x16xf32>
    %63 = arith.addf %59, %62 : vector<20x16x16xf32>
    %64 = vector.extract_strided_slice %52 {offsets = [0, 3, 0], sizes = [20, 16, 16], strides = [1, 1, 1]} : vector<20x26x16xf32> to vector<20x16x16xf32>
    %cst_20 = arith.constant 0.109360687 : f32
    %65 = vector.broadcast %cst_20 : f32 to vector<20x16x16xf32>
    %66 = arith.mulf %65, %64 : vector<20x16x16xf32>
    %67 = arith.addf %63, %66 : vector<20x16x16xf32>
    %68 = vector.extract_strided_slice %52 {offsets = [0, 4, 0], sizes = [20, 16, 16], strides = [1, 1, 1]} : vector<20x26x16xf32> to vector<20x16x16xf32>
    %cst_21 = arith.constant 0.213005543 : f32
    %69 = vector.broadcast %cst_21 : f32 to vector<20x16x16xf32>
    %70 = arith.mulf %69, %68 : vector<20x16x16xf32>
    %71 = arith.addf %67, %70 : vector<20x16x16xf32>
    %72 = vector.extract_strided_slice %52 {offsets = [0, 5, 0], sizes = [20, 16, 16], strides = [1, 1, 1]} : vector<20x26x16xf32> to vector<20x16x16xf32>
    %cst_22 = arith.constant 0.266011715 : f32
    %73 = vector.broadcast %cst_22 : f32 to vector<20x16x16xf32>
    %74 = arith.mulf %73, %72 : vector<20x16x16xf32>
    %75 = arith.addf %71, %74 : vector<20x16x16xf32>
    %76 = vector.extract_strided_slice %52 {offsets = [0, 6, 0], sizes = [20, 16, 16], strides = [1, 1, 1]} : vector<20x26x16xf32> to vector<20x16x16xf32>
    %cst_23 = arith.constant 0.213005543 : f32
    %77 = vector.broadcast %cst_23 : f32 to vector<20x16x16xf32>
    %78 = arith.mulf %77, %76 : vector<20x16x16xf32>
    %79 = arith.addf %75, %78 : vector<20x16x16xf32>
    %80 = vector.extract_strided_slice %52 {offsets = [0, 7, 0], sizes = [20, 16, 16], strides = [1, 1, 1]} : vector<20x26x16xf32> to vector<20x16x16xf32>
    %cst_24 = arith.constant 0.109360687 : f32
    %81 = vector.broadcast %cst_24 : f32 to vector<20x16x16xf32>
    %82 = arith.mulf %81, %80 : vector<20x16x16xf32>
    %83 = arith.addf %79, %82 : vector<20x16x16xf32>
    %84 = vector.extract_strided_slice %52 {offsets = [0, 8, 0], sizes = [20, 16, 16], strides = [1, 1, 1]} : vector<20x26x16xf32> to vector<20x16x16xf32>
    %cst_25 = arith.constant 0.0360007733 : f32
    %85 = vector.broadcast %cst_25 : f32 to vector<20x16x16xf32>
    %86 = arith.mulf %85, %84 : vector<20x16x16xf32>
    %87 = arith.addf %83, %86 : vector<20x16x16xf32>
    %88 = vector.extract_strided_slice %52 {offsets = [0, 9, 0], sizes = [20, 16, 16], strides = [1, 1, 1]} : vector<20x26x16xf32> to vector<20x16x16xf32>
    %cst_26 = arith.constant 0.00759875821 : f32
    %89 = vector.broadcast %cst_26 : f32 to vector<20x16x16xf32>
    %90 = arith.mulf %89, %88 : vector<20x16x16xf32>
    %91 = arith.addf %87, %90 : vector<20x16x16xf32>
    %92 = vector.extract_strided_slice %52 {offsets = [0, 10, 0], sizes = [20, 16, 16], strides = [1, 1, 1]} : vector<20x26x16xf32> to vector<20x16x16xf32>
    %cst_27 = arith.constant 0.00102838012 : f32
    %93 = vector.broadcast %cst_27 : f32 to vector<20x16x16xf32>
    %94 = arith.mulf %93, %92 : vector<20x16x16xf32>
    %95 = arith.addf %91, %94 : vector<20x16x16xf32>
    %96 = vector.extract_strided_slice %95 {offsets = [0, 0, 0], sizes = [4, 16, 16], strides = [1, 1, 1]} : vector<20x16x16xf32> to vector<4x16x16xf32>
    %97 = vector.extract_strided_slice %95 {offsets = [4, 0, 0], sizes = [4, 16, 16], strides = [1, 1, 1]} : vector<20x16x16xf32> to vector<4x16x16xf32>
    %98 = vector.extract_strided_slice %95 {offsets = [8, 0, 0], sizes = [4, 16, 16], strides = [1, 1, 1]} : vector<20x16x16xf32> to vector<4x16x16xf32>
    %99 = vector.extract_strided_slice %95 {offsets = [12, 0, 0], sizes = [4, 16, 16], strides = [1, 1, 1]} : vector<20x16x16xf32> to vector<4x16x16xf32>
    %100 = vector.extract_strided_slice %95 {offsets = [16, 0, 0], sizes = [4, 16, 16], strides = [1, 1, 1]} : vector<20x16x16xf32> to vector<4x16x16xf32>
    %101 = arith.mulf %96, %96 : vector<4x16x16xf32>
    %102 = arith.subf %98, %101 : vector<4x16x16xf32>
    %103 = arith.mulf %97, %97 : vector<4x16x16xf32>
    %104 = arith.subf %99, %103 : vector<4x16x16xf32>
    %105 = arith.mulf %96, %97 : vector<4x16x16xf32>
    %106 = arith.subf %100, %105 : vector<4x16x16xf32>
    %cst_28 = arith.constant 2.000000e+00 : f32
    %107 = vector.broadcast %cst_28 : f32 to vector<4x16x16xf32>
    %108 = arith.mulf %107, %96 : vector<4x16x16xf32>
    %109 = arith.mulf %108, %97 : vector<4x16x16xf32>
    %cst_29 = arith.constant 9.99999974E-5 : f32
    %110 = vector.broadcast %cst_29 : f32 to vector<4x16x16xf32>
    %111 = arith.addf %109, %110 : vector<4x16x16xf32>
    %cst_30 = arith.constant 2.000000e+00 : f32
    %112 = vector.broadcast %cst_30 : f32 to vector<4x16x16xf32>
    %113 = arith.mulf %112, %106 : vector<4x16x16xf32>
    %cst_31 = arith.constant 8.99999984E-4 : f32
    %114 = vector.broadcast %cst_31 : f32 to vector<4x16x16xf32>
    %115 = arith.addf %113, %114 : vector<4x16x16xf32>
    %116 = arith.mulf %96, %96 : vector<4x16x16xf32>
    %117 = arith.mulf %97, %97 : vector<4x16x16xf32>
    %118 = arith.addf %116, %117 : vector<4x16x16xf32>
    %cst_32 = arith.constant 9.99999974E-5 : f32
    %119 = vector.broadcast %cst_32 : f32 to vector<4x16x16xf32>
    %120 = arith.addf %118, %119 : vector<4x16x16xf32>
    %121 = arith.addf %102, %104 : vector<4x16x16xf32>
    %cst_33 = arith.constant 8.99999984E-4 : f32
    %122 = vector.broadcast %cst_33 : f32 to vector<4x16x16xf32>
    %123 = arith.addf %121, %122 : vector<4x16x16xf32>
    %124 = arith.mulf %111, %115 : vector<4x16x16xf32>
    %125 = arith.mulf %120, %123 : vector<4x16x16xf32>
    %126 = arith.divf %124, %125 : vector<4x16x16xf32>
    %cst_34 = arith.constant dense<0.000000e+00> : vector<4x16xf32>
    %127 = vector.multi_reduction <add>, %126, %cst_34 [2] : vector<4x16x16xf32> to vector<4x16xf32>
    %cst_35 = arith.constant dense<0.000000e+00> : vector<4xf32>
    %128 = vector.multi_reduction <add>, %127, %cst_35 [1] : vector<4x16xf32> to vector<4xf32>
    %129 = vector.shape_cast %128 : vector<4xf32> to vector<1x1x4xf32>
    %c0_36 = arith.constant 0 : index
    %c0_37 = arith.constant 0 : index
    %c0_38 = arith.constant 0 : index
    %130 = vector.load %arg3[%c0_36, %c0_37, %c0_38] : memref<1x1x128xf32, #tpu.memory_space<vmem>>, vector<1x1x4xf32>
    tpu.vector_store %arg3[%c0_36, %c0_37, %c0_38], %129 {strides = array<i32>} : memref<1x1x128xf32, #tpu.memory_space<vmem>>, vector<1x1x4xf32>,
    return
  }
  func.func @transform_0(%arg0: i32) -> (i32, i32, i32) {
    %c0_i32 = arith.constant 0 : i32
    %c0_i32_0 = arith.constant 0 : i32
    %c0_i32_1 = arith.constant 0 : i32
    return %arg0, %c0_i32, %c0_i32_0 : i32, i32, i32
  }
  func.func @transform_1(%arg0: i32) -> (i32, i32, i32) {
    %c0_i32 = arith.constant 0 : i32
    %c0_i32_0 = arith.constant 0 : i32
    %c0_i32_1 = arith.constant 0 : i32
    return %arg0, %c0_i32, %c0_i32_0 : i32, i32, i32
  }
  func.func @transform_2(%arg0: i32) -> (i32, i32, i32) {
    %c0_i32 = arith.constant 0 : i32
    %c0_i32_0 = arith.constant 0 : i32
    %c0_i32_1 = arith.constant 0 : i32
    return %arg0, %c0_i32, %c0_i32_0 : i32, i32, i32
  }
}

</mosaic_0001>

<bundles_post_ra>
// kernel: tpu_custom_call.1
= control target key start
LH: loop header
LB: loop body
LE: loop exit
PB: predicated region body
PF: predicated region fallthrough
CT: control target
= control target key end

     0   :  { %7 = vsyncpa [#allocation3], 0  ;;  %s10431_s0 = inlined_call_operand.hbm [shape: f32[8,16,16], index: 0, kind: input, shape index: {}]   ;;  %s10432_s1 = inlined_call_operand.hbm [shape: f32[8,16,16], index: 1, kind: input, shape index: {}]   ;;  %s10433_s2 = inlined_call_operand.hbm [shape: f32[2,1,128], index: 2, kind: output, shape index: {}]  }
   0x1   :  { %9 = vsyncpa [#allocation3 + $0x1], 0 }
   0x2   :  { %10 = vsyncpa [#allocation6], 0 }
   0x3   :  { %12 = vsyncpa [#allocation6 + $0x1], 0 }
   0x4   :  { %13 = vsyncpa [#allocation4], 0 }
   0x5   :  { %15 = vsyncpa [#allocation4 + $0x1], 0  ;;  %s5629_s9 = smov 0   ;;  %s5631_s10 = smov 0  }
   0x6   :  { %s5633_s11 = smov 0   ;;  %s5635_s12 = smov 0  }
   0x7 LB: > { %s5650_s13 = sadd.s32 4294967295, %s5595_s12   ;;  %s5363_s14 = sadd.s32 4294967294, %s5595_s12   ;;  %s5595_s12 = sphi %s5635_s12, %s11966_s12   ;;  %s5591_s11 = sphi %s5633_s11, %s11965_s11   ;;  %s5587_s10 = sphi %s5631_s10, %s11964_s10   ;;  %s5583_s9 = sphi %s5629_s9, %s11963_s9  }
   0x8   : > { %s5654_s15 = sadd.s32 1, %s5595_s12   ;;  %s28_s16 = sadd.s32 1, %s5591_s11 }
   0x9   : > { %s25_s17 = ssub.s32 %s5595_s12, %s5654_s15  ;;  %p35_p0 = scmp.ne.s32.totalorder %s5591_s11, %s5587_s10 }
   0xa   : > { %p26_p1 = scmp.eq.s32.totalorder %s25_s17, 0  ;;  %p36_p2 = scmp.eq.s32.totalorder %s5595_s12, 0 }
   0xb   : > { %p41_p3 = scmp.ne.s32.totalorder %s5587_s10, %s5583_s9  ;;  %p42_p4 = scmp.eq.s32.totalorder %s5650_s13, 0 }
   0xc   : > { %s5666_s18 = scalar_select %p26_p1, %s5591_s11, %s28_s16  }
   0xd   : > { %p5668_p5 = por %p36_p2, %p35_p0  ;;  %p5672_p6 = por %p42_p4, %p41_p3 }
   0xe   : > { %p91_p7 = scmp.eq.s32.totalorder %s5650_s13, 1  ;;  %p97_p8 = scmp.eq.s32.totalorder %s5363_s14, 1 }
   0xf   : > { %s10686_s20 = scalar_select %p5672_p6, 1, 0 }
  0x10   : > { %p5401_p10 = scmp.lt.s32.totalorder %s5595_s12, 2  ;;  %p5679_p11 = por %p91_p7, %p35_p0 }
  0x11   : > { %p5683_p12 = por %p97_p8, %p41_p3  ;;  %s5688_s23 = sand.u32 1, %s5591_s11  }
  0x12   : > { %s10687_s21 = scalar_select %p5679_p11, 1, 0 }
  0x13   : > { %s10688_s22 = scalar_select %p5683_p12, 1, 0 }
  0x14   : > { %s5381_s24 = sshll.u32 %s5595_s12, 10  ;;  %s5366_s25 = sshll.u32 %s5688_s23, 6 }
  0x15   : > { %s5697_s28 = scalar_lea.hbm %s10431_s0, %s5381_s24  ;;  %s121_s29 = scalar_lea.vmem [#allocation2], %s5366_s25 }
  0x16   : > { %s129_s30 = sshll.u32 %s121_s29, 4  ;;  %p5703_p13 = pnand %p5401_p10, %p5668_p5  ;;  %s5707_s30 = int_to_ptr.vmem [resolvable:$true] %s129_s30 }
  0x17   : > { %s118_s4 = scalar_lea.sflag [#allocation3], %s5688_s23  ;;  %s5465_s5 = scalar_lea.hbm %s5697_s28, 1024 }
  0x18   : > { %p5466_p0 = scmp.ne.s32.totalorder %s5697_s28, %s5465_s5  ;;  %p5467_p1 = pneg %p5703_p13 }
  0x19   : > { %s5470_s8 = scalar_lea.hbm %s10431_s0, 2048  ;;  %p5471_p4 = scmp.lt.u32.totalorder %s5697_s28, %s10431_s0 }
  0x1a   : > { %p5468_p2 = pnand %p5467_p1, %p5466_p0  ;;  %p5472_p5 = scmp.lt.u32.totalorder %s5470_s8, %s5465_s5 }
  0x1b   : > { %p5474_p8 = scmp.lt.u32.totalorder %s5465_s5, %s5697_s28 }
  0x1c   : > { %p5469_p3 = pneg %p5468_p2  ;;  %p5473_p7 = por %p5472_p5, %p5471_p4 }
  0x1e   : > { %p5475_p10 = por %p5474_p8, %p5473_p7 }
  0x20   : > { %p5476_p9 = pnand %p5475_p10, %p5469_p3 }
  0x22   : > { %5479 = shalt.err (!%p5476_p9)
}
  0x23   : > { %s5480_s17 = scalar_lea.vmem %s5707_s30, 1024  ;;  %s5597_s19 = smov [#allocation2]  }
  0x24   : > { %p5481_p0 = scmp.ne.s32.totalorder %s5707_s30, %s5480_s17  ;;  %s5485_s26 = sshll.u32 %s5597_s19, 4  ;;  %s5486_s26 = int_to_ptr.vmem [resolvable:$false] %s5485_s26 }
  0x25   : > { %s5487_s27 = scalar_lea.vmem %s5486_s26, 2048  ;;  %p5488_p11 = scmp.lt.s32.totalorder %s5707_s30, %s5486_s26 }
  0x26   : > { %p5483_p2 = pnand %p5481_p0, %p5467_p1  ;;  %p5489_p4 = scmp.lt.s32.totalorder %s5487_s27, %s5480_s17 }
  0x28   : > { %p5484_p12 = pneg %p5483_p2  ;;  %p5490_p5 = por %p5489_p4, %p5488_p11 }
  0x2a   : > { %p5491_p7 = pnand %p5490_p5, %p5484_p12 }
  0x2c   : > { %5494 = shalt.err (!%p5491_p7)
}
  0x2d   : > { %s5598_s29 = smov 128   ;;  %s5599_s5 = smov 8  }
  0x2e   : > { %5393 = dma.hbm_to_vmem [thread:$0]  (!%p5703_p13), %s5697_s28, 1024, %s5707_s30, %s118_s4, %s5598_s29, %s5598_s29, %s5599_s5  }
  0x2f   : > { %p5374_p9 = scmp.ge.s32.totalorder %s5595_s12, 1  ;;  %p159_p11 = scmp.lt.s32.totalorder %s5595_s12, 3 }
  0x30   : > { %s5751_s14 = scalar_lea.hbm %s10432_s1, %s5381_s24  ;;  %s143_s16 = scalar_lea.vmem [#allocation5], %s5366_s25 }
  0x31   : > { %p5742_p12 = pnand %p5374_p9, %p159_p11  ;;  %s151_s17 = sshll.u32 %s143_s16, 4  ;;  %s5755_s17 = int_to_ptr.vmem [resolvable:$true] %s151_s17 }
  0x32   : > { %s140_s28 = scalar_lea.sflag [#allocation6], %s5688_s23  ;;  %s5495_s30 = scalar_lea.hbm %s5751_s14, 1024 }
  0x33   : > { %p5496_p3 = scmp.ne.s32.totalorder %s5751_s14, %s5495_s30  ;;  %s5500_s24 = scalar_lea.hbm %s10432_s1, 2048 }
  0x34   : > { %p5501_p0 = scmp.lt.u32.totalorder %s5751_s14, %s10432_s1  ;;  %p5502_p2 = scmp.lt.u32.totalorder %s5500_s24, %s5495_s30 }
  0x35   : > { %p5498_p8 = pnand %p5496_p3, %p5467_p1  ;;  %p5504_p5 = scmp.lt.u32.totalorder %s5495_s30, %s5751_s14 }
  0x36   : > { %p5503_p4 = por %p5502_p2, %p5501_p0 }
  0x37   : > { %p5499_p10 = pneg %p5498_p8 }
  0x38   : > { %p5505_p7 = por %p5504_p5, %p5503_p4 }
  0x3a   : > { %p5506_p9 = pnand %p5505_p7, %p5499_p10 }
  0x3c   : > { %5509 = shalt.err (!%p5506_p9)
}
  0x3d   : > { %s5510_s25 = scalar_lea.vmem %s5755_s17, 1024  ;;  %s5600_s7 = smov [#allocation5]  }
  0x3e   : > { %p5511_p11 = scmp.ne.s32.totalorder %s5755_s17, %s5510_s25  ;;  %s5515_s8 = sshll.u32 %s5600_s7, 4  ;;  %s5516_s8 = int_to_ptr.vmem [resolvable:$false] %s5515_s8 }
  0x3f   : > { %s5517_s16 = scalar_lea.vmem %s5516_s8, 2048  ;;  %p5518_p6 = scmp.lt.s32.totalorder %s5755_s17, %s5516_s8 }
  0x40   : > { %p5513_p3 = pnand %p5511_p11, %p5467_p1  ;;  %p5519_p0 = scmp.lt.s32.totalorder %s5517_s16, %s5510_s25 }
  0x42   : > { %p5514_p8 = pneg %p5513_p3  ;;  %p5520_p2 = por %p5519_p0, %p5518_p6 }
  0x44   : > { %p5521_p4 = pnand %p5520_p2, %p5514_p8 }
  0x46   : > { %5524 = shalt.err (!%p5521_p4)
}
  0x47   : > { %5396 = dma.hbm_to_vmem [thread:$0]  (!%p5703_p13), %s5751_s14, 1024, %s5755_s17, %s140_s28, %s5598_s29, %s5598_s29, %s5599_s5  }
  0x48   : > { %163 = sbr.rel (%p5742_p12) target bundleno = 1857 (0x741), region = 28 }
  0x4f   : > { %s5789_s30 = sand.u32 1, %s5587_s10   ;;  %p10691_p6 = scmp.ne.s32.totalorder %s10686_s20, 0 }
  0x50   : > { %s5375_s4 = sshll.u32 %s5789_s30, 6  ;;  %s166_s19 = scalar_lea.sflag [#allocation3], %s5789_s30 }
  0x51   : > { %s169_s3 = scalar_lea.vmem [#allocation2], %s5375_s4 }
  0x52   : > { %5570 = dma.done.wait (%p10691_p6), %s166_s19, 1024  }
  0x53   : > { %5572 = vsyncadd (%p10691_p6), %s166_s19, 4294966272  ;;  %s175_s23 = scalar_lea.sflag [#allocation6], %s5789_s30  ;;  %s5798_s29 = scalar_lea.vmem [#allocation5], %s5375_s4 }
  0x54   : > { %5574 = dma.done.wait (%p10691_p6), %s175_s23, 1024  }
  0x55   : > { %5576 = vsyncadd (%p10691_p6), %s175_s23, 4294966272  ;;  %v5804_v0 = vld [vmem:[%s169_s3] sm:$0xff]  ;;  %v5806_v1 = vld [vmem:[%s169_s3 + $0x10] sm:$0xff]  ;;  %s5601_s5 = smov 5   ;;  %vm405_vm0 = vcmask 39936   ;;  %vm446_vm1 = vcmask 171008  }
  0x56   : > { %285 = vrot.lane.b32.xlu0 %v5804_v0, %s5601_s5  ;;  %289 = vrot.lane.b32.xlu1 %v5806_v1, %s5601_s5  ;;  %v206_v2 = vld [vmem:[%s169_s3 + $0x8] sm:$0xff]  ;;  %v5812_v3 = vld [vmem:[%s169_s3 + $0x18] sm:$0xff]  ;;  %v221_v16 = vmul.f32 %v5804_v0, %v5804_v0  ;;  %v223_v18 = vmul.f32 %v5806_v1, %v5806_v1  ;;  %s5602_s20 = smov 127   ;;  %s5603_s6 = smov 126   ;;  %vm2607_vm2 = vcmask 1044480   ;;  %vm2928_vm3 = vcmask 1046528  }
  0x57   : > { %v5817_v4 = vld [vmem:[%s169_s3 + $0x20] sm:$0xff]  ;;  %v5819_v5 = vld [vmem:[%s169_s3 + $0x28] sm:$0xff]  ;;  %v5825_v6 = vld [vmem:[%s169_s3 + $0x30] sm:$0xff]  ;;  %v222_v17 = vmul.f32 %v206_v2, %v206_v2  ;;  %v224_v19 = vmul.f32 %v5812_v3, %v5812_v3  ;;  %s5604_s14 = smov 125   ;;  %s5605_s17 = smov 124   ;;  %vm3229_vm4 = vcmask 1045504  }
  0x58   : > { %v5827_v7 = vld [vmem:[%s169_s3 + $0x38] sm:$0xff]  ;;  %v213_v8 = vld [vmem:[%s5798_s29] sm:$0xff]  ;;  %v214_v9 = vld [vmem:[%s5798_s29 + $0x8] sm:$0xff]  ;;  %v225_v20 = vmul.f32 %v5817_v4, %v5817_v4  ;;  %v226_v21 = vmul.f32 %v5819_v5, %v5819_v5  ;;  %v227_v22 = vmul.f32 %v5825_v6, %v5825_v6  ;;  %s5606_s28 = smov 123   ;;  %s5607_s24 = smov 122   ;;  %vm3830_vm5 = vcmask 1043456  }
  0x59   : > { %v215_v10 = vld [vmem:[%s5798_s29 + $0x10] sm:$0xff]  ;;  %v216_v11 = vld [vmem:[%s5798_s29 + $0x18] sm:$0xff]  ;;  %v217_v12 = vld [vmem:[%s5798_s29 + $0x20] sm:$0xff]  ;;  %v228_v23 = vmul.f32 %v5827_v7, %v5827_v7  ;;  %v229_v24 = vmul.f32 %v213_v8, %v213_v8  ;;  %v230_v25 = vmul.f32 %v214_v9, %v214_v9  ;;  %v237_v32 = vmul.f32 %v213_v8, %v5804_v0  ;;  %s5608_s26 = smov 121   ;;  %s5609_s27 = smov 120  }
  0x5a   : > { %287 = vrot.lane.b32.xlu0 %v206_v2, %s5601_s5  ;;  %291 = vrot.lane.b32.xlu1 %v5812_v3, %s5601_s5  ;;  %v218_v13 = vld [vmem:[%s5798_s29 + $0x28] sm:$0xff]  ;;  %v219_v14 = vld [vmem:[%s5798_s29 + $0x30] sm:$0xff]  ;;  %v231_v26 = vmul.f32 %v215_v10, %v215_v10  ;;  %v232_v27 = vmul.f32 %v216_v11, %v216_v11  ;;  %v233_v28 = vmul.f32 %v217_v12, %v217_v12  ;;  %s5610_s25 = smov 119   ;;  %s5611_s7 = smov 118   ;;  %vm4312_vm6 = vcmask 1041408  }
  0x5b   : > { %v220_v15 = vld [vmem:[%s5798_s29 + $0x38] sm:$0xff]  ;;  %v234_v29 = vmul.f32 %v218_v13, %v218_v13  ;;  %v235_v30 = vmul.f32 %v219_v14, %v219_v14  ;;  %v238_v33 = vmul.f32 %v214_v9, %v206_v2  ;;  %v239_v34 = vmul.f32 %v215_v10, %v5806_v1  ;;  %s5377_s8 = sshll.u32 %s5650_s13, 4  ;;  %s202_s16 = scalar_lea.vmem [#allocation7], %s5789_s30 }
  0x5c   : > { %v236_v31 = vmul.f32 %v220_v15, %v220_v15  ;;  %v240_v35 = vmul.f32 %v216_v11, %v5812_v3  ;;  %v241_v36 = vmul.f32 %v217_v12, %v5817_v4  ;;  %v242_v37 = vmul.f32 %v218_v13, %v5819_v5  ;;  %s5274_s4 = sshll.u32 %s202_s16, 4  ;;  %s10387_s23 = scalar_lea.hbm %s10433_s2, %s5377_s8  ;;  %s10389_s4 = int_to_ptr.vmem [resolvable:$true] %s5274_s4 }
  0x5d   : > { %v243_v38 = vmul.f32 %v219_v14, %v5825_v6  ;;  %v244_v39 = vmul.f32 %v220_v15, %v5827_v7  ;;  %vm4493_vm7 = vcmask 1040384   ;;  %vm4131_vm8 = vcmask 1042432   ;;  %s5262_s29 = scalar_lea.sflag [#allocation4], %s5789_s30  ;;  %p11960_p1 = scmp.ne.s32.totalorder %s10687_s21, 0 }
  0x5e   : > { %293 = vrot.lane.b32.xlu0 %v5817_v4, %s5601_s5  ;;  %295 = vrot.lane.b32.xlu1 %v5819_v5, %s5601_s5  ;;  %vm5169_vm9 = vcmask 130048   ;;  %vm5213_vm10 = vcmask 130112   ;;  %vm5242_vm11 = vcmask 1041409   ;;  %vm5244_vm12 = vcmask 1042434   ;;  %s5613_s13 = smov [#allocation7]  }
  0x5f   : > { %vm5246_vm13 = vcmask 1043459   ;;  %vm5249_vm14 = vcmask 125952   ;;  %vm5259_vm15 = vcmask 24576  }
  0x62   : > { %297 = vrot.lane.b32.xlu0 %v5825_v6, %s5601_s5  ;;  %299 = vrot.lane.b32.xlu1 %v5827_v7, %s5601_s5 }
  0x66   : > { %301 = vrot.lane.b32.xlu0 %v213_v8, %s5601_s5  ;;  %303 = vrot.lane.b32.xlu1 %v214_v9, %s5601_s5 }
  0x6a   : > { %305 = vrot.lane.b32.xlu0 %v215_v10, %s5601_s5  ;;  %307 = vrot.lane.b32.xlu1 %v216_v11, %s5601_s5 }
  0x6e   : > { %309 = vrot.lane.b32.xlu0 %v217_v12, %s5601_s5  ;;  %311 = vrot.lane.b32.xlu1 %v218_v13, %s5601_s5 }
  0x72   : > { %313 = vrot.lane.b32.xlu0 %v219_v14, %s5601_s5  ;;  %315 = vrot.lane.b32.xlu1 %v220_v15, %s5601_s5 }
  0x76   : > { %317 = vrot.lane.b32.xlu0 %v221_v16, %s5601_s5  ;;  %319 = vrot.lane.b32.xlu1 %v222_v17, %s5601_s5 }
  0x7a   : > { %321 = vrot.lane.b32.xlu0 %v223_v18, %s5601_s5  ;;  %323 = vrot.lane.b32.xlu1 %v224_v19, %s5601_s5 }
  0x7e   : > { %325 = vrot.lane.b32.xlu0 %v225_v20, %s5601_s5  ;;  %327 = vrot.lane.b32.xlu1 %v226_v21, %s5601_s5 }
  0x82   : > { %329 = vrot.lane.b32.xlu0 %v227_v22, %s5601_s5  ;;  %331 = vrot.lane.b32.xlu1 %v228_v23, %s5601_s5 }
  0x86   : > { %333 = vrot.lane.b32.xlu0 %v229_v24, %s5601_s5  ;;  %335 = vrot.lane.b32.xlu1 %v230_v25, %s5601_s5 }
  0x8a   : > { %337 = vrot.lane.b32.xlu0 %v231_v26, %s5601_s5  ;;  %339 = vrot.lane.b32.xlu1 %v232_v27, %s5601_s5 }
  0x8e   : > { %341 = vrot.lane.b32.xlu0 %v233_v28, %s5601_s5  ;;  %343 = vrot.lane.b32.xlu1 %v234_v29, %s5601_s5 }
  0x92   : > { %345 = vrot.lane.b32.xlu0 %v235_v30, %s5601_s5  ;;  %347 = vrot.lane.b32.xlu1 %v236_v31, %s5601_s5 }
  0x96   : > { %349 = vrot.lane.b32.xlu0 %v237_v32, %s5601_s5  ;;  %351 = vrot.lane.b32.xlu1 %v238_v33, %s5601_s5 }
  0x9a   : > { %353 = vrot.lane.b32.xlu0 %v239_v34, %s5601_s5  ;;  %355 = vrot.lane.b32.xlu1 %v240_v35, %s5601_s5 }
  0x9e   : > { %357 = vrot.lane.b32.xlu0 %v241_v36, %s5601_s5  ;;  %359 = vrot.lane.b32.xlu1 %v242_v37, %s5601_s5 }
  0xa2   : > { %361 = vrot.lane.b32.xlu0 %v243_v38, %s5601_s5  ;;  %363 = vrot.lane.b32.xlu1 %v244_v39, %s5601_s5  ;;  %s5525_s5 = scalar_lea.vmem %s10389_s4, 16 }
  0xa3   : > { %p5526_p13 = scmp.ne.s32.totalorder %s10389_s4, %s5525_s5 }
  0xa5   : > { %p5527_p12 = pnand %p5526_p13, %p11960_p1 }
  0xa7   : > { %p5528_p10 = pneg %p5527_p12 }
  0xc8   : > { %v286_v40 = vpop.permute.xlu0 %285  ;;  %v290_v41 = vpop.permute.xlu1 %289 }
  0xc9   : > { %v406_v42 = vsel %vm405_vm0, 0.0, %v286_v40  ;;  %v408_v43 = vsel %vm405_vm0, 0.0, %v290_v41 }
  0xca   : > { %v5897_v44 = vsel %vm446_vm1, %v406_v42, 0.0  ;;  %v5900_v45 = vsel %vm446_vm1, %v408_v43, 0.0 }
  0xcb   : > { %10692 = vst [vmem:[#allocation11_spill] sm:$0xff] %v5897_v44  ;;  %v5903_v46 = vmul.f32 0.007598758, %v5897_v44  ;;  %v5910_v51 = vmul.f32 0.007598758, %v5900_v45 }
  0xcc   : > { %v288_v47 = vpop.permute.xlu0 %287  ;;  %v292_v48 = vpop.permute.xlu1 %291 }
  0xcd   : > { %10693 = vst [vmem:[#allocation12_spill] sm:$0xff] %v5903_v46  ;;  %v407_v49 = vsel %vm405_vm0, 0.0, %v288_v47  ;;  %607 = vrot.lane.b32.xlu0 %v5903_v46, %s5602_s20  ;;  %v409_v50 = vsel %vm405_vm0, 0.0, %v292_v48  ;;  %10694 = vst [vmem:[#allocation13_spill] sm:$0xff] %v5910_v51 }
  0xce   : > { %v5913_v52 = vsel %vm446_vm1, %v407_v49, 0.0  ;;  %v5916_v53 = vsel %vm446_vm1, %v409_v50, 0.0 }
  0xcf   : > { %v5919_v54 = vmul.f32 0.007598758, %v5913_v52  ;;  %v5928_v59 = vmul.f32 0.007598758, %v5916_v53 }
  0xd0   : > { %v294_v55 = vpop.permute.xlu0 %293  ;;  %v296_v56 = vpop.permute.xlu1 %295 }
  0xd1   : > { %10695 = vst [vmem:[#allocation14_spill] sm:$0xff] %v5919_v54  ;;  %v410_v57 = vsel %vm405_vm0, 0.0, %v294_v55  ;;  %609 = vrot.lane.b32.xlu1 %v5919_v54, %s5602_s20  ;;  %611 = vrot.lane.b32.xlu0 %v5910_v51, %s5602_s20  ;;  %v411_v58 = vsel %vm405_vm0, 0.0, %v296_v56  ;;  %10696 = vst [vmem:[#allocation15_spill] sm:$0xff] %v5928_v59 }
  0xd2   : > { %v5931_v60 = vsel %vm446_vm1, %v410_v57, 0.0  ;;  %v5934_v61 = vsel %vm446_vm1, %v411_v58, 0.0 }
  0xd3   : > { %v5937_v62 = vmul.f32 0.007598758, %v5931_v60  ;;  %v5946_v3 = vmul.f32 0.007598758, %v5934_v61 }
  0xd4   : > { %v298_v63 = vpop.permute.xlu0 %297  ;;  %v300_v0 = vpop.permute.xlu1 %299 }
  0xd5   : > { %10697 = vst [vmem:[#allocation16_spill] sm:$0xff] %v5937_v62  ;;  %v412_v1 = vsel %vm405_vm0, 0.0, %v298_v63  ;;  %613 = vrot.lane.b32.xlu1 %v5928_v59, %s5602_s20  ;;  %615 = vrot.lane.b32.xlu0 %v5937_v62, %s5602_s20  ;;  %v413_v2 = vsel %vm405_vm0, 0.0, %v300_v0  ;;  %10698 = vst [vmem:[#allocation17_spill] sm:$0xff] %v5946_v3 }
  0xd6   : > { %v5949_v4 = vsel %vm446_vm1, %v412_v1, 0.0  ;;  %v5952_v5 = vsel %vm446_vm1, %v413_v2, 0.0 }
  0xd7   : > { %v5955_v6 = vmul.f32 0.007598758, %v5949_v4  ;;  %v5964_v11 = vmul.f32 0.007598758, %v5952_v5 }
  0xd8   : > { %v302_v7 = vpop.permute.xlu0 %301  ;;  %v304_v8 = vpop.permute.xlu1 %303 }
  0xd9   : > { %10699 = vst [vmem:[#allocation18_spill] sm:$0xff] %v5955_v6  ;;  %v414_v9 = vsel %vm405_vm0, 0.0, %v302_v7  ;;  %617 = vrot.lane.b32.xlu1 %v5946_v3, %s5602_s20  ;;  %619 = vrot.lane.b32.xlu0 %v5955_v6, %s5602_s20  ;;  %v415_v10 = vsel %vm405_vm0, 0.0, %v304_v8  ;;  %10700 = vst [vmem:[#allocation19_spill] sm:$0xff] %v5964_v11 }
  0xda   : > { %v5967_v12 = vsel %vm446_vm1, %v414_v9, 0.0  ;;  %v5970_v13 = vsel %vm446_vm1, %v415_v10, 0.0 }
  0xdb   : > { %v5973_v14 = vmul.f32 0.007598758, %v5967_v12  ;;  %v5982_v19 = vmul.f32 0.007598758, %v5970_v13 }
  0xdc   : > { %v306_v15 = vpop.permute.xlu0 %305  ;;  %v308_v16 = vpop.permute.xlu1 %307 }
  0xdd   : > { %10701 = vst [vmem:[#allocation20_spill] sm:$0xff] %v5973_v14  ;;  %v416_v17 = vsel %vm405_vm0, 0.0, %v306_v15  ;;  %621 = vrot.lane.b32.xlu1 %v5964_v11, %s5602_s20  ;;  %623 = vrot.lane.b32.xlu0 %v5973_v14, %s5602_s20  ;;  %v417_v18 = vsel %vm405_vm0, 0.0, %v308_v16  ;;  %10702 = vst [vmem:[#allocation21_spill] sm:$0xff] %v5982_v19 }
  0xde   : > { %v5985_v20 = vsel %vm446_vm1, %v416_v17, 0.0  ;;  %v5988_v21 = vsel %vm446_vm1, %v417_v18, 0.0 }
  0xdf   : > { %v5991_v22 = vmul.f32 0.007598758, %v5985_v20  ;;  %v6000_v27 = vmul.f32 0.007598758, %v5988_v21  ;;  %v6303_v11 = vmul.f32 0.036000773, %v5985_v20 }
  0xe0   : > { %v310_v23 = vpop.permute.xlu0 %309  ;;  %v312_v24 = vpop.permute.xlu1 %311  ;;  %v6310_v6 = vmul.f32 0.036000773, %v5988_v21 }
  0xe1   : > { %10703 = vst [vmem:[#allocation22_spill] sm:$0xff] %v5991_v22  ;;  %v418_v25 = vsel %vm405_vm0, 0.0, %v310_v23  ;;  %625 = vrot.lane.b32.xlu1 %v5982_v19, %s5602_s20  ;;  %627 = vrot.lane.b32.xlu0 %v5991_v22, %s5602_s20  ;;  %v419_v26 = vsel %vm405_vm0, 0.0, %v312_v24  ;;  %10704 = vst [vmem:[#allocation23_spill] sm:$0xff] %v6000_v27 }
  0xe2   : > { %v6003_v28 = vsel %vm446_vm1, %v418_v25, 0.0  ;;  %v6006_v29 = vsel %vm446_vm1, %v419_v26, 0.0  ;;  %10743 = vst [vmem:[#allocation62_spill] sm:$0xff] %v6303_v11  ;;  %10744 = vst [vmem:[#allocation63_spill] sm:$0xff] %v6310_v6 }
  0xe3   : > { %v6009_v30 = vmul.f32 0.007598758, %v6003_v28  ;;  %v6018_v35 = vmul.f32 0.007598758, %v6006_v29 }
  0xe4   : > { %v314_v31 = vpop.permute.xlu0 %313  ;;  %v316_v32 = vpop.permute.xlu1 %315 }
  0xe5   : > { %10705 = vst [vmem:[#allocation24_spill] sm:$0xff] %v6009_v30  ;;  %v420_v33 = vsel %vm405_vm0, 0.0, %v314_v31  ;;  %629 = vrot.lane.b32.xlu1 %v6000_v27, %s5602_s20  ;;  %631 = vrot.lane.b32.xlu0 %v6009_v30, %s5602_s20  ;;  %v421_v34 = vsel %vm405_vm0, 0.0, %v316_v32  ;;  %10706 = vst [vmem:[#allocation25_spill] sm:$0xff] %v6018_v35  ;;  %v6320_v30 = vmul.f32 0.036000773, %v6006_v29 }
  0xe6   : > { %v6021_v36 = vsel %vm446_vm1, %v420_v33, 0.0  ;;  %v6024_v37 = vsel %vm446_vm1, %v421_v34, 0.0 }
  0xe7   : > { %v6027_v38 = vmul.f32 0.007598758, %v6021_v36  ;;  %v6036_v43 = vmul.f32 0.007598758, %v6024_v37  ;;  %10746 = vst [vmem:[#allocation65_spill] sm:$0xff] %v6320_v30 }
  0xe8   : > { %v318_v39 = vpop.permute.xlu0 %317  ;;  %v320_v40 = vpop.permute.xlu1 %319  ;;  %v6323_v3 = vmul.f32 0.036000773, %v6021_v36  ;;  %v6330_v62 = vmul.f32 0.036000773, %v6024_v37 }
  0xe9   : > { %10707 = vst [vmem:[#allocation26_spill] sm:$0xff] %v6027_v38  ;;  %v422_v41 = vsel %vm405_vm0, 0.0, %v318_v39  ;;  %633 = vrot.lane.b32.xlu1 %v6018_v35, %s5602_s20  ;;  %635 = vrot.lane.b32.xlu0 %v6027_v38, %s5602_s20  ;;  %v423_v42 = vsel %vm405_vm0, 0.0, %v320_v40  ;;  %10708 = vst [vmem:[#allocation27_spill] sm:$0xff] %v6036_v43  ;;  %v6300_v38 = vmul.f32 0.036000773, %v5970_v13 }
  0xea   : > { %v6039_v47 = vsel %vm446_vm1, %v422_v41, 0.0  ;;  %v6042_v48 = vsel %vm446_vm1, %v423_v42, 0.0  ;;  %v6313_v35 = vmul.f32 0.036000773, %v6003_v28  ;;  %10747 = vst [vmem:[#allocation66_spill] sm:$0xff] %v6323_v3  ;;  %10748 = vst [vmem:[#allocation67_spill] sm:$0xff] %v6330_v62 }
  0xeb   : > { %v6045_v49 = vmul.f32 0.007598758, %v6039_v47  ;;  %v6054_v58 = vmul.f32 0.007598758, %v6042_v48  ;;  %10742 = vst [vmem:[#allocation61_spill] sm:$0xff] %v6300_v38 }
  0xec   : > { %v322_v50 = vpop.permute.xlu0 %321  ;;  %v324_v55 = vpop.permute.xlu1 %323  ;;  %10745 = vst [vmem:[#allocation64_spill] sm:$0xff] %v6313_v35  ;;  %v6333_v27 = vmul.f32 0.036000773, %v6039_v47  ;;  %v6342_v19 = vmul.f32 0.036000773, %v6042_v48 }
  0xed   : > { %10709 = vst [vmem:[#allocation28_spill] sm:$0xff] %v6045_v49  ;;  %v424_v56 = vsel %vm405_vm0, 0.0, %v322_v50  ;;  %637 = vrot.lane.b32.xlu1 %v6036_v43, %s5602_s20  ;;  %639 = vrot.lane.b32.xlu0 %v6045_v49, %s5602_s20  ;;  %v425_v57 = vsel %vm405_vm0, 0.0, %v324_v55  ;;  %10710 = vst [vmem:[#allocation29_spill] sm:$0xff] %v6054_v58  ;;  %v6293_v43 = vmul.f32 0.036000773, %v5967_v12 }
  0xee   : > { %v6057_v63 = vsel %vm446_vm1, %v424_v56, 0.0  ;;  %v6060_v0 = vsel %vm446_vm1, %v425_v57, 0.0  ;;  %10749 = vst [vmem:[#allocation68_spill] sm:$0xff] %v6333_v27  ;;  %10751 = vst [vmem:[#allocation70_spill] sm:$0xff] %v6342_v19 }
  0xef   : > { %v6063_v1 = vmul.f32 0.007598758, %v6057_v63  ;;  %v6072_v10 = vmul.f32 0.007598758, %v6060_v0  ;;  %10741 = vst [vmem:[#allocation60_spill] sm:$0xff] %v6293_v43 }
  0xf0   : > { %v326_v2 = vpop.permute.xlu0 %325  ;;  %v328_v7 = vpop.permute.xlu1 %327  ;;  %v6345_v14 = vmul.f32 0.036000773, %v6057_v63  ;;  %v6356_v54 = vmul.f32 0.036000773, %v6060_v0 }
  0xf1   : > { %10711 = vst [vmem:[#allocation30_spill] sm:$0xff] %v6063_v1  ;;  %v426_v8 = vsel %vm405_vm0, 0.0, %v326_v2  ;;  %641 = vrot.lane.b32.xlu1 %v6054_v58, %s5602_s20  ;;  %643 = vrot.lane.b32.xlu0 %v6063_v1, %s5602_s20  ;;  %v427_v9 = vsel %vm405_vm0, 0.0, %v328_v7  ;;  %10712 = vst [vmem:[#allocation31_spill] sm:$0xff] %v6072_v10 }
  0xf2   : > { %v6075_v15 = vsel %vm446_vm1, %v426_v8, 0.0  ;;  %v6078_v16 = vsel %vm446_vm1, %v427_v9, 0.0  ;;  %10752 = vst [vmem:[#allocation71_spill] sm:$0xff] %v6345_v14  ;;  %10755 = vst [vmem:[#allocation74_spill] sm:$0xff] %v6356_v54 }
  0xf3   : > { %v6081_v17 = vmul.f32 0.007598758, %v6075_v15  ;;  %v6090_v26 = vmul.f32 0.007598758, %v6078_v16 }
  0xf4   : > { %v330_v18 = vpop.permute.xlu0 %329  ;;  %v332_v23 = vpop.permute.xlu1 %331 }
  0xf5   : > { %10713 = vst [vmem:[#allocation32_spill] sm:$0xff] %v6081_v17  ;;  %v428_v24 = vsel %vm405_vm0, 0.0, %v330_v18  ;;  %645 = vrot.lane.b32.xlu1 %v6072_v10, %s5602_s20  ;;  %647 = vrot.lane.b32.xlu0 %v6081_v17, %s5602_s20  ;;  %v429_v25 = vsel %vm405_vm0, 0.0, %v332_v23  ;;  %10714 = vst [vmem:[#allocation33_spill] sm:$0xff] %v6090_v26 }
  0xf6   : > { %v6093_v31 = vsel %vm446_vm1, %v428_v24, 0.0  ;;  %v6096_v32 = vsel %vm446_vm1, %v429_v25, 0.0 }
  0xf7   : > { %v6099_v33 = vmul.f32 0.007598758, %v6093_v31  ;;  %v6108_v42 = vmul.f32 0.007598758, %v6096_v32 }
  0xf8   : > { %v334_v34 = vpop.permute.xlu0 %333  ;;  %v336_v39 = vpop.permute.xlu1 %335 }
  0xf9   : > { %10715 = vst [vmem:[#allocation34_spill] sm:$0xff] %v6099_v33  ;;  %v430_v40 = vsel %vm405_vm0, 0.0, %v334_v34  ;;  %649 = vrot.lane.b32.xlu1 %v6090_v26, %s5602_s20  ;;  %651 = vrot.lane.b32.xlu0 %v6099_v33, %s5602_s20  ;;  %v431_v41 = vsel %vm405_vm0, 0.0, %v336_v39  ;;  %10716 = vst [vmem:[#allocation35_spill] sm:$0xff] %v6108_v42 }
  0xfa   : > { %v6111_v50 = vsel %vm446_vm1, %v430_v40, 0.0  ;;  %v6114_v55 = vsel %vm446_vm1, %v431_v41, 0.0 }
  0xfb   : > { %v6117_v56 = vmul.f32 0.007598758, %v6111_v50  ;;  %v6126_v9 = vmul.f32 0.007598758, %v6114_v55 }
  0xfc   : > { %v338_v57 = vpop.permute.xlu0 %337  ;;  %v340_v2 = vpop.permute.xlu1 %339 }
  0xfd   : > { %10717 = vst [vmem:[#allocation36_spill] sm:$0xff] %v6117_v56  ;;  %v432_v7 = vsel %vm405_vm0, 0.0, %v338_v57  ;;  %653 = vrot.lane.b32.xlu1 %v6108_v42, %s5602_s20  ;;  %655 = vrot.lane.b32.xlu0 %v6117_v56, %s5602_s20  ;;  %v433_v8 = vsel %vm405_vm0, 0.0, %v340_v2  ;;  %10718 = vst [vmem:[#allocation37_spill] sm:$0xff] %v6126_v9 }
  0xfe   : > { %v6129_v18 = vsel %vm446_vm1, %v432_v7, 0.0  ;;  %v6132_v23 = vsel %vm446_vm1, %v433_v8, 0.0 }
  0xff   : > { %v6135_v24 = vmul.f32 0.007598758, %v6129_v18  ;;  %v6144_v41 = vmul.f32 0.007598758, %v6132_v23 }
 0x100   : > { %v342_v25 = vpop.permute.xlu0 %341  ;;  %v344_v34 = vpop.permute.xlu1 %343 }
 0x101   : > { %10719 = vst [vmem:[#allocation38_spill] sm:$0xff] %v6135_v24  ;;  %v434_v39 = vsel %vm405_vm0, 0.0, %v342_v25  ;;  %657 = vrot.lane.b32.xlu1 %v6126_v9, %s5602_s20  ;;  %659 = vrot.lane.b32.xlu0 %v6135_v24, %s5602_s20  ;;  %v435_v40 = vsel %vm405_vm0, 0.0, %v344_v34  ;;  %10720 = vst [vmem:[#allocation39_spill] sm:$0xff] %v6144_v41 }
 0x102   : > { %v6147_v57 = vsel %vm446_vm1, %v434_v39, 0.0  ;;  %v6150_v2 = vsel %vm446_vm1, %v435_v40, 0.0 }
 0x103   : > { %v6153_v7 = vmul.f32 0.007598758, %v6147_v57  ;;  %v6162_v39 = vmul.f32 0.007598758, %v6150_v2 }
 0x104   : > { %v346_v8 = vpop.permute.xlu0 %345  ;;  %v348_v25 = vpop.permute.xlu1 %347 }
 0x105   : > { %10721 = vst [vmem:[#allocation40_spill] sm:$0xff] %v6153_v7  ;;  %v436_v42 = vsel %vm405_vm0, 0.0, %v346_v8  ;;  %661 = vrot.lane.b32.xlu1 %v6144_v41, %s5602_s20  ;;  %663 = vrot.lane.b32.xlu0 %v6153_v7, %s5602_s20  ;;  %v437_v34 = vsel %vm405_vm0, 0.0, %v348_v25  ;;  %10722 = vst [vmem:[#allocation41_spill] sm:$0xff] %v6162_v39 }
 0x106   : > { %v6165_v40 = vsel %vm446_vm1, %v436_v42, 0.0  ;;  %v6168_v33 = vsel %vm446_vm1, %v437_v34, 0.0 }
 0x107   : > { %v6171_v26 = vmul.f32 0.007598758, %v6165_v40  ;;  %v6180_v42 = vmul.f32 0.007598758, %v6168_v33 }
 0x108   : > { %v350_v8 = vpop.permute.xlu0 %349  ;;  %v352_v17 = vpop.permute.xlu1 %351 }
 0x109   : > { %10723 = vst [vmem:[#allocation42_spill] sm:$0xff] %v6171_v26  ;;  %v438_v41 = vsel %vm405_vm0, 0.0, %v350_v8  ;;  %665 = vrot.lane.b32.xlu1 %v6162_v39, %s5602_s20  ;;  %667 = vrot.lane.b32.xlu0 %v6171_v26, %s5602_s20  ;;  %v439_v25 = vsel %vm405_vm0, 0.0, %v352_v17  ;;  %10724 = vst [vmem:[#allocation43_spill] sm:$0xff] %v6180_v42 }
 0x10a   : > { %v6183_v34 = vsel %vm446_vm1, %v438_v41, 0.0  ;;  %v6186_v7 = vsel %vm446_vm1, %v439_v25, 0.0 }
 0x10b   : > { %v6189_v24 = vmul.f32 0.007598758, %v6183_v34  ;;  %v6198_v41 = vmul.f32 0.007598758, %v6186_v7 }
 0x10c   : > { %v354_v8 = vpop.permute.xlu0 %353  ;;  %v356_v9 = vpop.permute.xlu1 %355 }
 0x10d   : > { %10725 = vst [vmem:[#allocation44_spill] sm:$0xff] %v6189_v24  ;;  %v440_v39 = vsel %vm405_vm0, 0.0, %v354_v8  ;;  %669 = vrot.lane.b32.xlu1 %v6180_v42, %s5602_s20  ;;  %671 = vrot.lane.b32.xlu0 %v6189_v24, %s5602_s20  ;;  %v441_v17 = vsel %vm405_vm0, 0.0, %v356_v9  ;;  %10726 = vst [vmem:[#allocation45_spill] sm:$0xff] %v6198_v41 }
 0x10e   : > { %v6201_v25 = vsel %vm446_vm1, %v440_v39, 0.0  ;;  %v6204_v26 = vsel %vm446_vm1, %v441_v17, 0.0 }
 0x10f   : > { %v6207_v56 = vmul.f32 0.007598758, %v6201_v25  ;;  %v6216_v39 = vmul.f32 0.007598758, %v6204_v26 }
 0x110   : > { %v358_v8 = vpop.permute.xlu0 %357  ;;  %v360_v10 = vpop.permute.xlu1 %359 }
 0x111   : > { %10727 = vst [vmem:[#allocation46_spill] sm:$0xff] %v6207_v56  ;;  %v442_v42 = vsel %vm405_vm0, 0.0, %v358_v8  ;;  %673 = vrot.lane.b32.xlu1 %v6198_v41, %s5602_s20  ;;  %675 = vrot.lane.b32.xlu0 %v6207_v56, %s5602_s20  ;;  %v443_v9 = vsel %vm405_vm0, 0.0, %v360_v10  ;;  %10728 = vst [vmem:[#allocation47_spill] sm:$0xff] %v6216_v39 }
 0x112   : > { %v6219_v17 = vsel %vm446_vm1, %v442_v42, 0.0  ;;  %v6222_v24 = vsel %vm446_vm1, %v443_v9, 0.0 }
 0x113   : > { %v6225_v1 = vmul.f32 0.007598758, %v6219_v17  ;;  %v6234_v42 = vmul.f32 0.007598758, %v6222_v24 }
 0x114   : > { %v362_v8 = vpop.permute.xlu0 %361  ;;  %v364_v58 = vpop.permute.xlu1 %363 }
 0x115   : > { %10729 = vst [vmem:[#allocation48_spill] sm:$0xff] %v6225_v1  ;;  %v444_v41 = vsel %vm405_vm0, 0.0, %v362_v8  ;;  %677 = vrot.lane.b32.xlu1 %v6216_v39, %s5602_s20  ;;  %679 = vrot.lane.b32.xlu0 %v6225_v1, %s5602_s20  ;;  %v445_v10 = vsel %vm405_vm0, 0.0, %v364_v58  ;;  %10730 = vst [vmem:[#allocation49_spill] sm:$0xff] %v6234_v42  ;;  %v6253_v8 = vmul.f32 0.036000773, %v5897_v44 }
 0x116   : > { %v6237_v9 = vsel %vm446_vm1, %v444_v41, 0.0  ;;  %v6240_v56 = vsel %vm446_vm1, %v445_v10, 0.0  ;;  %v6260_v41 = vmul.f32 0.036000773, %v5913_v52  ;;  %v6263_v10 = vmul.f32 0.036000773, %v5900_v45 }
 0x117   : > { %v6243_v49 = vmul.f32 0.007598758, %v6237_v9  ;;  %v6250_v58 = vmul.f32 0.007598758, %v6240_v56  ;;  %10733 = vst [vmem:[#allocation52_spill] sm:$0xff] %v6253_v8 }
 0x118   : > { %10734 = vst [vmem:[#allocation53_spill] sm:$0xff] %v6260_v41  ;;  %10735 = vst [vmem:[#allocation54_spill] sm:$0xff] %v6263_v10  ;;  %v6283_v1 = vmul.f32 0.036000773, %v5949_v4  ;;  %v6290_v39 = vmul.f32 0.036000773, %v5952_v5 }
 0x119   : > { %10731 = vst [vmem:[#allocation50_spill] sm:$0xff] %v6243_v49  ;;  %681 = vrot.lane.b32.xlu1 %v6234_v42, %s5602_s20  ;;  %683 = vrot.lane.b32.xlu0 %v6243_v49, %s5602_s20  ;;  %10732 = vst [vmem:[#allocation51_spill] sm:$0xff] %v6250_v58  ;;  %v6270_v49 = vmul.f32 0.036000773, %v5916_v53  ;;  %v6280_v42 = vmul.f32 0.036000773, %v5934_v61 }
 0x11a   : > { %10739 = vst [vmem:[#allocation58_spill] sm:$0xff] %v6283_v1  ;;  %10740 = vst [vmem:[#allocation59_spill] sm:$0xff] %v6290_v39 }
 0x11b   : > { %10736 = vst [vmem:[#allocation55_spill] sm:$0xff] %v6270_v49  ;;  %10738 = vst [vmem:[#allocation57_spill] sm:$0xff] %v6280_v42 }
 0x11d   : > { %685 = vrot.lane.b32.xlu1 %v6250_v58, %s5602_s20  ;;  %847 = vrot.lane.b32.xlu0 %v6253_v8, %s5603_s6  ;;  %v6273_v58 = vmul.f32 0.036000773, %v5931_v60  ;;  %s5529_s20 = sshll.u32 %s5613_s13, 4  ;;  %s5530_s20 = int_to_ptr.vmem [resolvable:$false] %s5529_s20 }
 0x11e   : > { %p5532_p5 = scmp.lt.s32.totalorder %s10389_s4, %s5530_s20 }
 0x11f   : > { %10737 = vst [vmem:[#allocation56_spill] sm:$0xff] %v6273_v58 }
 0x121   : > { %849 = vrot.lane.b32.xlu1 %v6260_v41, %s5603_s6  ;;  %851 = vrot.lane.b32.xlu0 %v6263_v10, %s5603_s6 }
 0x125   : > { %853 = vrot.lane.b32.xlu1 %v6270_v49, %s5603_s6  ;;  %855 = vrot.lane.b32.xlu0 %v6273_v58, %s5603_s6 }
 0x129   : > { %857 = vrot.lane.b32.xlu1 %v6280_v42, %s5603_s6  ;;  %859 = vrot.lane.b32.xlu0 %v6283_v1, %s5603_s6 }
 0x12d   : > { %861 = vrot.lane.b32.xlu1 %v6290_v39, %s5603_s6  ;;  %863 = vrot.lane.b32.xlu0 %v6293_v43, %s5603_s6 }
 0x131   : > { %865 = vrot.lane.b32.xlu1 %v6300_v38, %s5603_s6  ;;  %867 = vrot.lane.b32.xlu0 %v6303_v11, %s5603_s6 }
 0x135   : > { %869 = vrot.lane.b32.xlu1 %v6310_v6, %s5603_s6  ;;  %871 = vrot.lane.b32.xlu0 %v6313_v35, %s5603_s6 }
 0x139   : > { %873 = vrot.lane.b32.xlu1 %v6320_v30, %s5603_s6  ;;  %875 = vrot.lane.b32.xlu0 %v6323_v3, %s5603_s6 }
 0x13d   : > { %877 = vrot.lane.b32.xlu1 %v6330_v62, %s5603_s6  ;;  %879 = vrot.lane.b32.xlu0 %v6333_v27, %s5603_s6 }
 0x13f   : > { %v6339_v22 = vpop.permute.xlu0 %607 }
 0x140   : > { %10750 = vst [vmem:[#allocation69_spill] sm:$0xff] %v6339_v22  ;;  %v6359_v22 = vmul.f32 0.036000773, %v6075_v15 }
 0x141   : > { %881 = vrot.lane.b32.xlu1 %v6342_v19, %s5603_s6  ;;  %883 = vrot.lane.b32.xlu0 %v6345_v14, %s5603_s6 }
 0x142   : > { %10756 = vst [vmem:[#allocation75_spill] sm:$0xff] %v6359_v22 }
 0x143   : > { %v6351_v59 = vpop.permute.xlu1 %609  ;;  %v6353_v51 = vpop.permute.xlu0 %611 }
 0x144   : > { %10753 = vst [vmem:[#allocation72_spill] sm:$0xff] %v6351_v59  ;;  %10754 = vst [vmem:[#allocation73_spill] sm:$0xff] %v6353_v51  ;;  %v6370_v59 = vmul.f32 0.036000773, %v6078_v16  ;;  %v6373_v51 = vmul.f32 0.036000773, %v6093_v31 }
 0x145   : > { %885 = vrot.lane.b32.xlu1 %v6356_v54, %s5603_s6  ;;  %887 = vrot.lane.b32.xlu0 %v6359_v22, %s5603_s6 }
 0x146   : > { %10759 = vst [vmem:[#allocation78_spill] sm:$0xff] %v6370_v59  ;;  %10760 = vst [vmem:[#allocation79_spill] sm:$0xff] %v6373_v51 }
 0x147   : > { %v6365_v46 = vpop.permute.xlu1 %613  ;;  %v6367_v19 = vpop.permute.xlu0 %615 }
 0x148   : > { %10757 = vst [vmem:[#allocation76_spill] sm:$0xff] %v6365_v46  ;;  %10758 = vst [vmem:[#allocation77_spill] sm:$0xff] %v6367_v19  ;;  %v6384_v46 = vmul.f32 0.036000773, %v6096_v32  ;;  %v6387_v19 = vmul.f32 0.036000773, %v6111_v50 }
 0x149   : > { %889 = vrot.lane.b32.xlu1 %v6370_v59, %s5603_s6  ;;  %891 = vrot.lane.b32.xlu0 %v6373_v51, %s5603_s6 }
 0x14a   : > { %10763 = vst [vmem:[#allocation82_spill] sm:$0xff] %v6384_v46  ;;  %10764 = vst [vmem:[#allocation83_spill] sm:$0xff] %v6387_v19 }
 0x14b   : > { %v6379_v54 = vpop.permute.xlu1 %617  ;;  %v6381_v14 = vpop.permute.xlu0 %619 }
 0x14c   : > { %10761 = vst [vmem:[#allocation80_spill] sm:$0xff] %v6379_v54  ;;  %10762 = vst [vmem:[#allocation81_spill] sm:$0xff] %v6381_v14  ;;  %v6398_v54 = vmul.f32 0.036000773, %v6114_v55  ;;  %v6401_v14 = vmul.f32 0.036000773, %v6129_v18 }
 0x14d   : > { %893 = vrot.lane.b32.xlu1 %v6384_v46, %s5603_s6  ;;  %895 = vrot.lane.b32.xlu0 %v6387_v19, %s5603_s6 }
 0x14e   : > { %10767 = vst [vmem:[#allocation86_spill] sm:$0xff] %v6398_v54  ;;  %10768 = vst [vmem:[#allocation87_spill] sm:$0xff] %v6401_v14 }
 0x14f   : > { %v6393_v59 = vpop.permute.xlu1 %621  ;;  %v6395_v22 = vpop.permute.xlu0 %623 }
 0x150   : > { %10765 = vst [vmem:[#allocation84_spill] sm:$0xff] %v6393_v59  ;;  %10766 = vst [vmem:[#allocation85_spill] sm:$0xff] %v6395_v22  ;;  %v6412_v59 = vmul.f32 0.036000773, %v6132_v23  ;;  %v6415_v22 = vmul.f32 0.036000773, %v6147_v57 }
 0x151   : > { %897 = vrot.lane.b32.xlu1 %v6398_v54, %s5603_s6  ;;  %899 = vrot.lane.b32.xlu0 %v6401_v14, %s5603_s6 }
 0x152   : > { %10771 = vst [vmem:[#allocation90_spill] sm:$0xff] %v6412_v59  ;;  %10772 = vst [vmem:[#allocation91_spill] sm:$0xff] %v6415_v22 }
 0x153   : > { %v6407_v46 = vpop.permute.xlu1 %625  ;;  %v6409_v51 = vpop.permute.xlu0 %627 }
 0x154   : > { %10769 = vst [vmem:[#allocation88_spill] sm:$0xff] %v6407_v46  ;;  %10770 = vst [vmem:[#allocation89_spill] sm:$0xff] %v6409_v51  ;;  %v6426_v46 = vmul.f32 0.036000773, %v6150_v2  ;;  %v6429_v51 = vmul.f32 0.036000773, %v6165_v40 }
 0x155   : > { %901 = vrot.lane.b32.xlu1 %v6412_v59, %s5603_s6  ;;  %903 = vrot.lane.b32.xlu0 %v6415_v22, %s5603_s6 }
 0x156   : > { %10775 = vst [vmem:[#allocation94_spill] sm:$0xff] %v6426_v46  ;;  %10776 = vst [vmem:[#allocation95_spill] sm:$0xff] %v6429_v51 }
 0x157   : > { %v6421_v54 = vpop.permute.xlu1 %629  ;;  %v6423_v19 = vpop.permute.xlu0 %631 }
 0x158   : > { %10773 = vst [vmem:[#allocation92_spill] sm:$0xff] %v6421_v54  ;;  %10774 = vst [vmem:[#allocation93_spill] sm:$0xff] %v6423_v19  ;;  %v6440_v54 = vmul.f32 0.036000773, %v6168_v33  ;;  %v6443_v19 = vmul.f32 0.036000773, %v6183_v34 }
 0x159   : > { %905 = vrot.lane.b32.xlu1 %v6426_v46, %s5603_s6  ;;  %907 = vrot.lane.b32.xlu0 %v6429_v51, %s5603_s6 }
 0x15a   : > { %10779 = vst [vmem:[#allocation98_spill] sm:$0xff] %v6440_v54  ;;  %10780 = vst [vmem:[#allocation99_spill] sm:$0xff] %v6443_v19 }
 0x15b   : > { %v6435_v59 = vpop.permute.xlu1 %633  ;;  %v6437_v14 = vpop.permute.xlu0 %635 }
 0x15c   : > { %10777 = vst [vmem:[#allocation96_spill] sm:$0xff] %v6435_v59  ;;  %10778 = vst [vmem:[#allocation97_spill] sm:$0xff] %v6437_v14  ;;  %v6454_v59 = vmul.f32 0.036000773, %v6186_v7  ;;  %v6457_v14 = vmul.f32 0.036000773, %v6201_v25 }
 0x15d   : > { %909 = vrot.lane.b32.xlu1 %v6440_v54, %s5603_s6  ;;  %911 = vrot.lane.b32.xlu0 %v6443_v19, %s5603_s6  ;;  %v6468_v19 = vmul.f32 0.036000773, %v6204_v26 }
 0x15e   : > { %10783 = vst [vmem:[#allocation102_spill] sm:$0xff] %v6454_v59  ;;  %10784 = vst [vmem:[#allocation103_spill] sm:$0xff] %v6457_v14 }
 0x15f   : > { %v6449_v46 = vpop.permute.xlu1 %637  ;;  %v6451_v22 = vpop.permute.xlu0 %639  ;;  %10787 = vst [vmem:[#allocation106_spill] sm:$0xff] %v6468_v19 }
 0x160   : > { %10781 = vst [vmem:[#allocation100_spill] sm:$0xff] %v6449_v46  ;;  %10782 = vst [vmem:[#allocation101_spill] sm:$0xff] %v6451_v22  ;;  %v6471_v22 = vmul.f32 0.036000773, %v6219_v17 }
 0x161   : > { %913 = vrot.lane.b32.xlu1 %v6454_v59, %s5603_s6  ;;  %915 = vrot.lane.b32.xlu0 %v6457_v14, %s5603_s6  ;;  %v6482_v14 = vmul.f32 0.036000773, %v6222_v24 }
 0x162   : > { %10788 = vst [vmem:[#allocation107_spill] sm:$0xff] %v6471_v22 }
 0x163   : > { %v6463_v54 = vpop.permute.xlu1 %641  ;;  %v6465_v51 = vpop.permute.xlu0 %643  ;;  %10791 = vst [vmem:[#allocation110_spill] sm:$0xff] %v6482_v14 }
 0x164   : > { %10785 = vst [vmem:[#allocation104_spill] sm:$0xff] %v6463_v54  ;;  %10786 = vst [vmem:[#allocation105_spill] sm:$0xff] %v6465_v51  ;;  %v6485_v51 = vmul.f32 0.036000773, %v6237_v9 }
 0x165   : > { %917 = vrot.lane.b32.xlu1 %v6468_v19, %s5603_s6  ;;  %919 = vrot.lane.b32.xlu0 %v6471_v22, %s5603_s6  ;;  %v6496_v22 = vmul.f32 0.036000773, %v6240_v56 }
 0x166   : > { %10792 = vst [vmem:[#allocation111_spill] sm:$0xff] %v6485_v51 }
 0x167   : > { %v6477_v59 = vpop.permute.xlu1 %645  ;;  %v6479_v46 = vpop.permute.xlu0 %647  ;;  %10795 = vst [vmem:[#allocation114_spill] sm:$0xff] %v6496_v22 }
 0x168   : > { %10789 = vst [vmem:[#allocation108_spill] sm:$0xff] %v6477_v59  ;;  %10790 = vst [vmem:[#allocation109_spill] sm:$0xff] %v6479_v46  ;;  %v6499_v46 = vmul.f32 0.10936069, %v5897_v44 }
 0x169   : > { %921 = vrot.lane.b32.xlu1 %v6482_v14, %s5603_s6  ;;  %923 = vrot.lane.b32.xlu0 %v6485_v51, %s5603_s6 }
 0x16a   : > { %10796 = vst [vmem:[#allocation115_spill] sm:$0xff] %v6499_v46 }
 0x16b   : > { %v6491_v19 = vpop.permute.xlu1 %649  ;;  %v6493_v54 = vpop.permute.xlu0 %651 }
 0x16c   : > { %10793 = vst [vmem:[#allocation112_spill] sm:$0xff] %v6491_v19  ;;  %10794 = vst [vmem:[#allocation113_spill] sm:$0xff] %v6493_v54  ;;  %v6510_v19 = vmul.f32 0.10936069, %v5913_v52  ;;  %v6513_v54 = vmul.f32 0.10936069, %v5900_v45 }
 0x16d   : > { %925 = vrot.lane.b32.xlu1 %v6496_v22, %s5603_s6  ;;  %1087 = vrot.lane.b32.xlu0 %v6499_v46, %s5604_s14  ;;  %s5531_s6 = scalar_lea.vmem %s5530_s20, 32 }
 0x16e   : > { %10799 = vst [vmem:[#allocation118_spill] sm:$0xff] %v6510_v19  ;;  %10800 = vst [vmem:[#allocation119_spill] sm:$0xff] %v6513_v54  ;;  %p5533_p7 = scmp.lt.s32.totalorder %s5531_s6, %s5525_s5 }
 0x16f   : > { %v6505_v14 = vpop.permute.xlu1 %653  ;;  %v6507_v51 = vpop.permute.xlu0 %655 }
 0x170   : > { %10797 = vst [vmem:[#allocation116_spill] sm:$0xff] %v6505_v14  ;;  %10798 = vst [vmem:[#allocation117_spill] sm:$0xff] %v6507_v51  ;;  %v6524_v14 = vmul.f32 0.10936069, %v5916_v53  ;;  %v6527_v51 = vmul.f32 0.10936069, %v5931_v60  ;;  %p5534_p9 = por %p5533_p7, %p5532_p5 }
 0x171   : > { %1089 = vrot.lane.b32.xlu1 %v6510_v19, %s5604_s14  ;;  %1091 = vrot.lane.b32.xlu0 %v6513_v54, %s5604_s14 }
 0x172   : > { %10803 = vst [vmem:[#allocation122_spill] sm:$0xff] %v6524_v14  ;;  %10804 = vst [vmem:[#allocation123_spill] sm:$0xff] %v6527_v51  ;;  %p5535_p11 = pnand %p5534_p9, %p5528_p10 }
 0x173   : > { %v6519_v22 = vpop.permute.xlu1 %657  ;;  %v6521_v59 = vpop.permute.xlu0 %659 }
 0x174   : > { %10801 = vst [vmem:[#allocation120_spill] sm:$0xff] %v6519_v22  ;;  %10802 = vst [vmem:[#allocation121_spill] sm:$0xff] %v6521_v59  ;;  %v6538_v22 = vmul.f32 0.10936069, %v5934_v61  ;;  %v6541_v59 = vmul.f32 0.10936069, %v5949_v4 }
 0x175   : > { %1093 = vrot.lane.b32.xlu1 %v6524_v14, %s5604_s14  ;;  %1095 = vrot.lane.b32.xlu0 %v6527_v51, %s5604_s14 }
 0x176   : > { %10807 = vst [vmem:[#allocation126_spill] sm:$0xff] %v6538_v22  ;;  %10808 = vst [vmem:[#allocation127_spill] sm:$0xff] %v6541_v59 }
 0x177   : > { %v6533_v27 = vpop.permute.xlu1 %661  ;;  %v6535_v62 = vpop.permute.xlu0 %663 }
 0x178   : > { %10805 = vst [vmem:[#allocation124_spill] sm:$0xff] %v6533_v27  ;;  %10806 = vst [vmem:[#allocation125_spill] sm:$0xff] %v6535_v62  ;;  %v6552_v27 = vmul.f32 0.10936069, %v5952_v5  ;;  %v6555_v62 = vmul.f32 0.10936069, %v5967_v12 }
 0x179   : > { %1097 = vrot.lane.b32.xlu1 %v6538_v22, %s5604_s14  ;;  %1099 = vrot.lane.b32.xlu0 %v6541_v59, %s5604_s14 }
 0x17a   : > { %10811 = vst [vmem:[#allocation130_spill] sm:$0xff] %v6552_v27  ;;  %10812 = vst [vmem:[#allocation131_spill] sm:$0xff] %v6555_v62 }
 0x17b   : > { %v6547_v3 = vpop.permute.xlu1 %665  ;;  %v6549_v39 = vpop.permute.xlu0 %667 }
 0x17c   : > { %10809 = vst [vmem:[#allocation128_spill] sm:$0xff] %v6547_v3  ;;  %10810 = vst [vmem:[#allocation129_spill] sm:$0xff] %v6549_v39  ;;  %v6566_v3 = vmul.f32 0.10936069, %v5970_v13  ;;  %v6569_v39 = vmul.f32 0.10936069, %v5985_v20 }
 0x17d   : > { %1101 = vrot.lane.b32.xlu1 %v6552_v27, %s5604_s14  ;;  %1103 = vrot.lane.b32.xlu0 %v6555_v62, %s5604_s14 }
 0x17e   : > { %10815 = vst [vmem:[#allocation134_spill] sm:$0xff] %v6566_v3  ;;  %10816 = vst [vmem:[#allocation135_spill] sm:$0xff] %v6569_v39 }
 0x17f   : > { %v6561_v1 = vpop.permute.xlu1 %669  ;;  %v6563_v30 = vpop.permute.xlu0 %671 }
 0x180   : > { %10813 = vst [vmem:[#allocation132_spill] sm:$0xff] %v6561_v1  ;;  %10814 = vst [vmem:[#allocation133_spill] sm:$0xff] %v6563_v30  ;;  %v6580_v1 = vmul.f32 0.10936069, %v5988_v21  ;;  %v6583_v30 = vmul.f32 0.10936069, %v6003_v28 }
 0x181   : > { %1105 = vrot.lane.b32.xlu1 %v6566_v3, %s5604_s14  ;;  %1107 = vrot.lane.b32.xlu0 %v6569_v39, %s5604_s14 }
 0x182   : > { %10819 = vst [vmem:[#allocation138_spill] sm:$0xff] %v6580_v1  ;;  %10820 = vst [vmem:[#allocation139_spill] sm:$0xff] %v6583_v30 }
 0x183   : > { %v6575_v35 = vpop.permute.xlu1 %673  ;;  %v6577_v42 = vpop.permute.xlu0 %675 }
 0x184   : > { %10817 = vst [vmem:[#allocation136_spill] sm:$0xff] %v6575_v35  ;;  %10818 = vst [vmem:[#allocation137_spill] sm:$0xff] %v6577_v42  ;;  %v6594_v35 = vmul.f32 0.10936069, %v6006_v29  ;;  %v6597_v42 = vmul.f32 0.10936069, %v6021_v36 }
 0x185   : > { %1109 = vrot.lane.b32.xlu1 %v6580_v1, %s5604_s14  ;;  %1111 = vrot.lane.b32.xlu0 %v6583_v30, %s5604_s14 }
 0x186   : > { %10823 = vst [vmem:[#allocation142_spill] sm:$0xff] %v6594_v35  ;;  %10824 = vst [vmem:[#allocation143_spill] sm:$0xff] %v6597_v42 }
 0x187   : > { %v6589_v58 = vpop.permute.xlu1 %677  ;;  %v6591_v6 = vpop.permute.xlu0 %679 }
 0x188   : > { %10821 = vst [vmem:[#allocation140_spill] sm:$0xff] %v6589_v58  ;;  %10822 = vst [vmem:[#allocation141_spill] sm:$0xff] %v6591_v6  ;;  %v6608_v58 = vmul.f32 0.10936069, %v6024_v37  ;;  %v6611_v6 = vmul.f32 0.10936069, %v6039_v47 }
 0x189   : > { %1113 = vrot.lane.b32.xlu1 %v6594_v35, %s5604_s14  ;;  %1115 = vrot.lane.b32.xlu0 %v6597_v42, %s5604_s14 }
 0x18a   : > { %10827 = vst [vmem:[#allocation146_spill] sm:$0xff] %v6608_v58  ;;  %10828 = vst [vmem:[#allocation147_spill] sm:$0xff] %v6611_v6 }
 0x18b   : > { %v6603_v11 = vpop.permute.xlu1 %681  ;;  %v6605_v38 = vpop.permute.xlu0 %683 }
 0x18c   : > { %10825 = vst [vmem:[#allocation144_spill] sm:$0xff] %v6603_v11  ;;  %10826 = vst [vmem:[#allocation145_spill] sm:$0xff] %v6605_v38  ;;  %v6622_v11 = vmul.f32 0.10936069, %v6042_v48  ;;  %v6625_v38 = vmul.f32 0.10936069, %v6057_v63 }
 0x18d   : > { %1117 = vrot.lane.b32.xlu1 %v6608_v58, %s5604_s14  ;;  %1119 = vrot.lane.b32.xlu0 %v6611_v6, %s5604_s14 }
 0x18e   : > { %10831 = vst [vmem:[#allocation150_spill] sm:$0xff] %v6622_v11  ;;  %10832 = vst [vmem:[#allocation151_spill] sm:$0xff] %v6625_v38 }
 0x18f   : > { %v6617_v43 = vpop.permute.xlu1 %685  ;;  %v6619_v49 = vpop.permute.xlu0 %847 }
 0x190   : > { %10829 = vst [vmem:[#allocation148_spill] sm:$0xff] %v6617_v43  ;;  %10830 = vst [vmem:[#allocation149_spill] sm:$0xff] %v6619_v49  ;;  %v6636_v43 = vmul.f32 0.10936069, %v6060_v0  ;;  %v6639_v49 = vmul.f32 0.10936069, %v6075_v15 }
 0x191   : > { %1121 = vrot.lane.b32.xlu1 %v6622_v11, %s5604_s14  ;;  %1123 = vrot.lane.b32.xlu0 %v6625_v38, %s5604_s14 }
 0x192   : > { %10835 = vst [vmem:[#allocation154_spill] sm:$0xff] %v6636_v43  ;;  %10836 = vst [vmem:[#allocation155_spill] sm:$0xff] %v6639_v49 }
 0x193   : > { %v6631_v10 = vpop.permute.xlu1 %849  ;;  %v6633_v41 = vpop.permute.xlu0 %851 }
 0x194   : > { %10833 = vst [vmem:[#allocation152_spill] sm:$0xff] %v6631_v10  ;;  %10834 = vst [vmem:[#allocation153_spill] sm:$0xff] %v6633_v41  ;;  %v6650_v10 = vmul.f32 0.10936069, %v6078_v16  ;;  %v6653_v41 = vmul.f32 0.10936069, %v6093_v31 }
 0x195   : > { %1125 = vrot.lane.b32.xlu1 %v6636_v43, %s5604_s14  ;;  %1127 = vrot.lane.b32.xlu0 %v6639_v49, %s5604_s14 }
 0x196   : > { %10839 = vst [vmem:[#allocation158_spill] sm:$0xff] %v6650_v10  ;;  %10840 = vst [vmem:[#allocation159_spill] sm:$0xff] %v6653_v41 }
 0x197   : > { %v6645_v8 = vpop.permute.xlu1 %853  ;;  %v6647_v11 = vpop.permute.xlu0 %855 }
 0x198   : > { %10837 = vst [vmem:[#allocation156_spill] sm:$0xff] %v6645_v8  ;;  %10838 = vst [vmem:[#allocation157_spill] sm:$0xff] %v6647_v11  ;;  %v6664_v8 = vmul.f32 0.10936069, %v6096_v32  ;;  %v6667_v11 = vmul.f32 0.10936069, %v6111_v50 }
 0x199   : > { %1129 = vrot.lane.b32.xlu1 %v6650_v10, %s5604_s14  ;;  %1131 = vrot.lane.b32.xlu0 %v6653_v41, %s5604_s14 }
 0x19a   : > { %10843 = vst [vmem:[#allocation162_spill] sm:$0xff] %v6664_v8  ;;  %10844 = vst [vmem:[#allocation163_spill] sm:$0xff] %v6667_v11 }
 0x19b   : > { %v6659_v43 = vpop.permute.xlu1 %857  ;;  %v6661_v38 = vpop.permute.xlu0 %859 }
 0x19c   : > { %10841 = vst [vmem:[#allocation160_spill] sm:$0xff] %v6659_v43  ;;  %10842 = vst [vmem:[#allocation161_spill] sm:$0xff] %v6661_v38  ;;  %v6678_v43 = vmul.f32 0.10936069, %v6114_v55  ;;  %v6681_v38 = vmul.f32 0.10936069, %v6129_v18 }
 0x19d   : > { %1133 = vrot.lane.b32.xlu1 %v6664_v8, %s5604_s14  ;;  %1135 = vrot.lane.b32.xlu0 %v6667_v11, %s5604_s14 }
 0x19e   : > { %10847 = vst [vmem:[#allocation166_spill] sm:$0xff] %v6678_v43  ;;  %10848 = vst [vmem:[#allocation167_spill] sm:$0xff] %v6681_v38 }
 0x19f   : > { %v6673_v10 = vpop.permute.xlu1 %861  ;;  %v6675_v49 = vpop.permute.xlu0 %863 }
 0x1a0   : > { %10845 = vst [vmem:[#allocation164_spill] sm:$0xff] %v6673_v10  ;;  %10846 = vst [vmem:[#allocation165_spill] sm:$0xff] %v6675_v49  ;;  %v6692_v10 = vmul.f32 0.10936069, %v6132_v23  ;;  %v6695_v49 = vmul.f32 0.10936069, %v6147_v57 }
 0x1a1   : > { %1137 = vrot.lane.b32.xlu1 %v6678_v43, %s5604_s14  ;;  %1139 = vrot.lane.b32.xlu0 %v6681_v38, %s5604_s14 }
 0x1a2   : > { %10851 = vst [vmem:[#allocation170_spill] sm:$0xff] %v6692_v10  ;;  %10852 = vst [vmem:[#allocation171_spill] sm:$0xff] %v6695_v49 }
 0x1a3   : > { %v6687_v8 = vpop.permute.xlu1 %865  ;;  %v6689_v41 = vpop.permute.xlu0 %867 }
 0x1a4   : > { %10849 = vst [vmem:[#allocation168_spill] sm:$0xff] %v6687_v8  ;;  %10850 = vst [vmem:[#allocation169_spill] sm:$0xff] %v6689_v41  ;;  %v6706_v8 = vmul.f32 0.10936069, %v6150_v2  ;;  %v6709_v41 = vmul.f32 0.10936069, %v6165_v40 }
 0x1a5   : > { %1141 = vrot.lane.b32.xlu1 %v6692_v10, %s5604_s14  ;;  %1143 = vrot.lane.b32.xlu0 %v6695_v49, %s5604_s14 }
 0x1a6   : > { %10855 = vst [vmem:[#allocation174_spill] sm:$0xff] %v6706_v8  ;;  %10856 = vst [vmem:[#allocation175_spill] sm:$0xff] %v6709_v41 }
 0x1a7   : > { %v6701_v43 = vpop.permute.xlu1 %869  ;;  %v6703_v11 = vpop.permute.xlu0 %871 }
 0x1a8   : > { %10853 = vst [vmem:[#allocation172_spill] sm:$0xff] %v6701_v43  ;;  %10854 = vst [vmem:[#allocation173_spill] sm:$0xff] %v6703_v11  ;;  %v6720_v43 = vmul.f32 0.10936069, %v6168_v33  ;;  %v6723_v11 = vmul.f32 0.10936069, %v6183_v34 }
 0x1a9   : > { %1145 = vrot.lane.b32.xlu1 %v6706_v8, %s5604_s14  ;;  %1147 = vrot.lane.b32.xlu0 %v6709_v41, %s5604_s14 }
 0x1aa   : > { %10859 = vst [vmem:[#allocation178_spill] sm:$0xff] %v6720_v43  ;;  %10860 = vst [vmem:[#allocation179_spill] sm:$0xff] %v6723_v11 }
 0x1ab   : > { %v6715_v10 = vpop.permute.xlu1 %873  ;;  %v6717_v38 = vpop.permute.xlu0 %875 }
 0x1ac   : > { %10857 = vst [vmem:[#allocation176_spill] sm:$0xff] %v6715_v10  ;;  %10858 = vst [vmem:[#allocation177_spill] sm:$0xff] %v6717_v38  ;;  %v6734_v10 = vmul.f32 0.10936069, %v6186_v7  ;;  %v6737_v38 = vmul.f32 0.10936069, %v6201_v25 }
 0x1ad   : > { %1149 = vrot.lane.b32.xlu1 %v6720_v43, %s5604_s14  ;;  %1151 = vrot.lane.b32.xlu0 %v6723_v11, %s5604_s14 }
 0x1ae   : > { %10863 = vst [vmem:[#allocation182_spill] sm:$0xff] %v6734_v10  ;;  %10864 = vst [vmem:[#allocation183_spill] sm:$0xff] %v6737_v38 }
 0x1af   : > { %v6729_v8 = vpop.permute.xlu1 %877  ;;  %v6731_v49 = vpop.permute.xlu0 %879 }
 0x1b0   : > { %10861 = vst [vmem:[#allocation180_spill] sm:$0xff] %v6729_v8  ;;  %10862 = vst [vmem:[#allocation181_spill] sm:$0xff] %v6731_v49  ;;  %v6748_v8 = vmul.f32 0.10936069, %v6204_v26  ;;  %v6751_v49 = vmul.f32 0.10936069, %v6219_v17 }
 0x1b1   : > { %1153 = vrot.lane.b32.xlu1 %v6734_v10, %s5604_s14  ;;  %1155 = vrot.lane.b32.xlu0 %v6737_v38, %s5604_s14 }
 0x1b2   : > { %10867 = vst [vmem:[#allocation186_spill] sm:$0xff] %v6748_v8  ;;  %10868 = vst [vmem:[#allocation187_spill] sm:$0xff] %v6751_v49 }
 0x1b3   : > { %v6743_v43 = vpop.permute.xlu1 %881  ;;  %v6745_v41 = vpop.permute.xlu0 %883 }
 0x1b4   : > { %10865 = vst [vmem:[#allocation184_spill] sm:$0xff] %v6743_v43  ;;  %10866 = vst [vmem:[#allocation185_spill] sm:$0xff] %v6745_v41  ;;  %v6762_v43 = vmul.f32 0.10936069, %v6222_v24  ;;  %v6765_v41 = vmul.f32 0.10936069, %v6237_v9 }
 0x1b5   : > { %1157 = vrot.lane.b32.xlu1 %v6748_v8, %s5604_s14  ;;  %1159 = vrot.lane.b32.xlu0 %v6751_v49, %s5604_s14 }
 0x1b6   : > { %10871 = vst [vmem:[#allocation190_spill] sm:$0xff] %v6762_v43  ;;  %10872 = vst [vmem:[#allocation191_spill] sm:$0xff] %v6765_v41 }
 0x1b7   : > { %v6757_v10 = vpop.permute.xlu1 %885  ;;  %v6759_v11 = vpop.permute.xlu0 %887 }
 0x1b8   : > { %10869 = vst [vmem:[#allocation188_spill] sm:$0xff] %v6757_v10  ;;  %10870 = vst [vmem:[#allocation189_spill] sm:$0xff] %v6759_v11  ;;  %v6776_v10 = vmul.f32 0.10936069, %v6240_v56  ;;  %v6779_v11 = vmul.f32 0.21300554, %v5897_v44 }
 0x1b9   : > { %1161 = vrot.lane.b32.xlu1 %v6762_v43, %s5604_s14  ;;  %1163 = vrot.lane.b32.xlu0 %v6765_v41, %s5604_s14 }
 0x1ba   : > { %10875 = vst [vmem:[#allocation194_spill] sm:$0xff] %v6776_v10 }
 0x1bb   : > { %v6771_v8 = vpop.permute.xlu1 %889  ;;  %v6773_v38 = vpop.permute.xlu0 %891 }
 0x1bc   : > { %10873 = vst [vmem:[#allocation192_spill] sm:$0xff] %v6771_v8  ;;  %10874 = vst [vmem:[#allocation193_spill] sm:$0xff] %v6773_v38  ;;  %v6790_v8 = vmul.f32 0.21300554, %v5913_v52  ;;  %v6793_v38 = vmul.f32 0.21300554, %v5900_v45 }
 0x1bd   : > { %1165 = vrot.lane.b32.xlu1 %v6776_v10, %s5604_s14  ;;  %1327 = vrot.lane.b32.xlu0 %v6779_v11, %s5605_s17 }
 0x1bf   : > { %v6785_v43 = vpop.permute.xlu1 %893  ;;  %v6787_v41 = vpop.permute.xlu0 %895 }
 0x1c0   : > { %10876 = vst [vmem:[#allocation195_spill] sm:$0xff] %v6785_v43  ;;  %10877 = vst [vmem:[#allocation196_spill] sm:$0xff] %v6787_v41  ;;  %v6804_v43 = vmul.f32 0.21300554, %v5916_v53  ;;  %v6807_v41 = vmul.f32 0.21300554, %v5931_v60 }
 0x1c1   : > { %1329 = vrot.lane.b32.xlu1 %v6790_v8, %s5605_s17  ;;  %1331 = vrot.lane.b32.xlu0 %v6793_v38, %s5605_s17 }
 0x1c3   : > { %v6799_v10 = vpop.permute.xlu1 %897  ;;  %v6801_v49 = vpop.permute.xlu0 %899 }
 0x1c4   : > { %10878 = vst [vmem:[#allocation197_spill] sm:$0xff] %v6799_v10  ;;  %10879 = vst [vmem:[#allocation198_spill] sm:$0xff] %v6801_v49  ;;  %v6818_v10 = vmul.f32 0.21300554, %v5934_v61  ;;  %v6821_v49 = vmul.f32 0.21300554, %v5949_v4 }
 0x1c5   : > { %1333 = vrot.lane.b32.xlu1 %v6804_v43, %s5605_s17  ;;  %1335 = vrot.lane.b32.xlu0 %v6807_v41, %s5605_s17 }
 0x1c7   : > { %v6813_v6 = vpop.permute.xlu1 %901  ;;  %v6815_v58 = vpop.permute.xlu0 %903 }
 0x1c8   : > { %10880 = vst [vmem:[#allocation199_spill] sm:$0xff] %v6813_v6  ;;  %10881 = vst [vmem:[#allocation200_spill] sm:$0xff] %v6815_v58  ;;  %v6832_v6 = vmul.f32 0.21300554, %v5952_v5  ;;  %v6835_v58 = vmul.f32 0.21300554, %v5967_v12 }
 0x1c9   : > { %1337 = vrot.lane.b32.xlu1 %v6818_v10, %s5605_s17  ;;  %1339 = vrot.lane.b32.xlu0 %v6821_v49, %s5605_s17 }
 0x1cb   : > { %v6827_v42 = vpop.permute.xlu1 %905  ;;  %v6829_v35 = vpop.permute.xlu0 %907 }
 0x1cc   : > { %10882 = vst [vmem:[#allocation201_spill] sm:$0xff] %v6827_v42  ;;  %10883 = vst [vmem:[#allocation202_spill] sm:$0xff] %v6829_v35  ;;  %v6846_v42 = vmul.f32 0.21300554, %v5970_v13  ;;  %v6849_v35 = vmul.f32 0.21300554, %v5985_v20 }
 0x1cd   : > { %1341 = vrot.lane.b32.xlu1 %v6832_v6, %s5605_s17  ;;  %1343 = vrot.lane.b32.xlu0 %v6835_v58, %s5605_s17 }
 0x1cf   : > { %v6841_v30 = vpop.permute.xlu1 %909  ;;  %v6843_v1 = vpop.permute.xlu0 %911 }
 0x1d0   : > { %10884 = vst [vmem:[#allocation203_spill] sm:$0xff] %v6841_v30  ;;  %10885 = vst [vmem:[#allocation204_spill] sm:$0xff] %v6843_v1  ;;  %v6860_v30 = vmul.f32 0.21300554, %v5988_v21  ;;  %v6863_v1 = vmul.f32 0.21300554, %v6003_v28 }
 0x1d1   : > { %1345 = vrot.lane.b32.xlu1 %v6846_v42, %s5605_s17  ;;  %1347 = vrot.lane.b32.xlu0 %v6849_v35, %s5605_s17 }
 0x1d3   : > { %v6855_v39 = vpop.permute.xlu1 %913  ;;  %v6857_v3 = vpop.permute.xlu0 %915 }
 0x1d4   : > { %10886 = vst [vmem:[#allocation205_spill] sm:$0xff] %v6855_v39  ;;  %10887 = vst [vmem:[#allocation206_spill] sm:$0xff] %v6857_v3  ;;  %v6874_v39 = vmul.f32 0.21300554, %v6006_v29  ;;  %v6877_v3 = vmul.f32 0.21300554, %v6021_v36 }
 0x1d5   : > { %1349 = vrot.lane.b32.xlu1 %v6860_v30, %s5605_s17  ;;  %1351 = vrot.lane.b32.xlu0 %v6863_v1, %s5605_s17 }
 0x1d7   : > { %v6869_v62 = vpop.permute.xlu1 %917  ;;  %v6871_v27 = vpop.permute.xlu0 %919 }
 0x1d8   : > { %10888 = vst [vmem:[#allocation207_spill] sm:$0xff] %v6869_v62  ;;  %10889 = vst [vmem:[#allocation208_spill] sm:$0xff] %v6871_v27  ;;  %v6888_v62 = vmul.f32 0.21300554, %v6024_v37  ;;  %v6891_v27 = vmul.f32 0.21300554, %v6039_v47 }
 0x1d9   : > { %1353 = vrot.lane.b32.xlu1 %v6874_v39, %s5605_s17  ;;  %1355 = vrot.lane.b32.xlu0 %v6877_v3, %s5605_s17 }
 0x1db   : > { %v6883_v59 = vpop.permute.xlu1 %921  ;;  %v6885_v22 = vpop.permute.xlu0 %923 }
 0x1dc   : > { %10890 = vst [vmem:[#allocation209_spill] sm:$0xff] %v6883_v59  ;;  %10891 = vst [vmem:[#allocation210_spill] sm:$0xff] %v6885_v22  ;;  %v6902_v59 = vmul.f32 0.21300554, %v6042_v48  ;;  %v6905_v22 = vmul.f32 0.21300554, %v6057_v63 }
 0x1dd   : > { %1357 = vrot.lane.b32.xlu1 %v6888_v62, %s5605_s17  ;;  %1359 = vrot.lane.b32.xlu0 %v6891_v27, %s5605_s17 }
 0x1de   : > { %10894 = vst [vmem:[#allocation213_spill] sm:$0xff] %v6902_v59  ;;  %10895 = vst [vmem:[#allocation214_spill] sm:$0xff] %v6905_v22 }
 0x1df   : > { %v6897_v51 = vpop.permute.xlu1 %925  ;;  %v6899_v14 = vpop.permute.xlu0 %1087 }
 0x1e0   : > { %10892 = vst [vmem:[#allocation211_spill] sm:$0xff] %v6897_v51  ;;  %10893 = vst [vmem:[#allocation212_spill] sm:$0xff] %v6899_v14  ;;  %v6916_v51 = vmul.f32 0.21300554, %v6060_v0  ;;  %v6919_v14 = vmul.f32 0.21300554, %v6075_v15 }
 0x1e1   : > { %1361 = vrot.lane.b32.xlu1 %v6902_v59, %s5605_s17  ;;  %1363 = vrot.lane.b32.xlu0 %v6905_v22, %s5605_s17 }
 0x1e2   : > { %10898 = vst [vmem:[#allocation217_spill] sm:$0xff] %v6916_v51  ;;  %10899 = vst [vmem:[#allocation218_spill] sm:$0xff] %v6919_v14 }
 0x1e3   : > { %v6911_v54 = vpop.permute.xlu1 %1089  ;;  %v6913_v19 = vpop.permute.xlu0 %1091 }
 0x1e4   : > { %10896 = vst [vmem:[#allocation215_spill] sm:$0xff] %v6911_v54  ;;  %10897 = vst [vmem:[#allocation216_spill] sm:$0xff] %v6913_v19  ;;  %v6930_v54 = vmul.f32 0.21300554, %v6078_v16  ;;  %v6933_v19 = vmul.f32 0.21300554, %v6093_v31 }
 0x1e5   : > { %1365 = vrot.lane.b32.xlu1 %v6916_v51, %s5605_s17  ;;  %1367 = vrot.lane.b32.xlu0 %v6919_v14, %s5605_s17 }
 0x1e6   : > { %10902 = vst [vmem:[#allocation221_spill] sm:$0xff] %v6930_v54  ;;  %10903 = vst [vmem:[#allocation222_spill] sm:$0xff] %v6933_v19 }
 0x1e7   : > { %v6925_v46 = vpop.permute.xlu1 %1093  ;;  %v6927_v59 = vpop.permute.xlu0 %1095 }
 0x1e8   : > { %10900 = vst [vmem:[#allocation219_spill] sm:$0xff] %v6925_v46  ;;  %10901 = vst [vmem:[#allocation220_spill] sm:$0xff] %v6927_v59  ;;  %v6944_v46 = vmul.f32 0.21300554, %v6096_v32  ;;  %v6947_v59 = vmul.f32 0.21300554, %v6111_v50 }
 0x1e9   : > { %1369 = vrot.lane.b32.xlu1 %v6930_v54, %s5605_s17  ;;  %1371 = vrot.lane.b32.xlu0 %v6933_v19, %s5605_s17 }
 0x1ea   : > { %10906 = vst [vmem:[#allocation225_spill] sm:$0xff] %v6944_v46  ;;  %10907 = vst [vmem:[#allocation226_spill] sm:$0xff] %v6947_v59 }
 0x1eb   : > { %v6939_v51 = vpop.permute.xlu1 %1097  ;;  %v6941_v22 = vpop.permute.xlu0 %1099 }
 0x1ec   : > { %10904 = vst [vmem:[#allocation223_spill] sm:$0xff] %v6939_v51  ;;  %10905 = vst [vmem:[#allocation224_spill] sm:$0xff] %v6941_v22  ;;  %v6958_v51 = vmul.f32 0.21300554, %v6114_v55  ;;  %v6961_v22 = vmul.f32 0.21300554, %v6129_v18 }
 0x1ed   : > { %1373 = vrot.lane.b32.xlu1 %v6944_v46, %s5605_s17  ;;  %1375 = vrot.lane.b32.xlu0 %v6947_v59, %s5605_s17 }
 0x1ee   : > { %10910 = vst [vmem:[#allocation229_spill] sm:$0xff] %v6958_v51  ;;  %10911 = vst [vmem:[#allocation230_spill] sm:$0xff] %v6961_v22 }
 0x1ef   : > { %v6953_v54 = vpop.permute.xlu1 %1101  ;;  %v6955_v14 = vpop.permute.xlu0 %1103 }
 0x1f0   : > { %10908 = vst [vmem:[#allocation227_spill] sm:$0xff] %v6953_v54  ;;  %10909 = vst [vmem:[#allocation228_spill] sm:$0xff] %v6955_v14  ;;  %v6972_v54 = vmul.f32 0.21300554, %v6132_v23  ;;  %v6975_v14 = vmul.f32 0.21300554, %v6147_v57 }
 0x1f1   : > { %1377 = vrot.lane.b32.xlu1 %v6958_v51, %s5605_s17  ;;  %1379 = vrot.lane.b32.xlu0 %v6961_v22, %s5605_s17 }
 0x1f2   : > { %10914 = vst [vmem:[#allocation233_spill] sm:$0xff] %v6972_v54  ;;  %10915 = vst [vmem:[#allocation234_spill] sm:$0xff] %v6975_v14 }
 0x1f3   : > { %v6967_v46 = vpop.permute.xlu1 %1105  ;;  %v6969_v19 = vpop.permute.xlu0 %1107 }
 0x1f4   : > { %10912 = vst [vmem:[#allocation231_spill] sm:$0xff] %v6967_v46  ;;  %10913 = vst [vmem:[#allocation232_spill] sm:$0xff] %v6969_v19  ;;  %v6986_v46 = vmul.f32 0.21300554, %v6150_v2  ;;  %v6989_v19 = vmul.f32 0.21300554, %v6165_v40 }
 0x1f5   : > { %1381 = vrot.lane.b32.xlu1 %v6972_v54, %s5605_s17  ;;  %1383 = vrot.lane.b32.xlu0 %v6975_v14, %s5605_s17 }
 0x1f6   : > { %10918 = vst [vmem:[#allocation237_spill] sm:$0xff] %v6986_v46  ;;  %10919 = vst [vmem:[#allocation238_spill] sm:$0xff] %v6989_v19 }
 0x1f7   : > { %v6981_v51 = vpop.permute.xlu1 %1109  ;;  %v6983_v59 = vpop.permute.xlu0 %1111 }
 0x1f8   : > { %10916 = vst [vmem:[#allocation235_spill] sm:$0xff] %v6981_v51  ;;  %10917 = vst [vmem:[#allocation236_spill] sm:$0xff] %v6983_v59  ;;  %v7000_v51 = vmul.f32 0.21300554, %v6168_v33  ;;  %v7003_v59 = vmul.f32 0.21300554, %v6183_v34 }
 0x1f9   : > { %1385 = vrot.lane.b32.xlu1 %v6986_v46, %s5605_s17  ;;  %1387 = vrot.lane.b32.xlu0 %v6989_v19, %s5605_s17 }
 0x1fa   : > { %10922 = vst [vmem:[#allocation241_spill] sm:$0xff] %v7000_v51  ;;  %10923 = vst [vmem:[#allocation242_spill] sm:$0xff] %v7003_v59 }
 0x1fb   : > { %v6995_v54 = vpop.permute.xlu1 %1113  ;;  %v6997_v22 = vpop.permute.xlu0 %1115 }
 0x1fc   : > { %10920 = vst [vmem:[#allocation239_spill] sm:$0xff] %v6995_v54  ;;  %10921 = vst [vmem:[#allocation240_spill] sm:$0xff] %v6997_v22  ;;  %v7014_v54 = vmul.f32 0.21300554, %v6186_v7  ;;  %v7017_v22 = vmul.f32 0.21300554, %v6201_v25 }
 0x1fd   : > { %1389 = vrot.lane.b32.xlu1 %v7000_v51, %s5605_s17  ;;  %1391 = vrot.lane.b32.xlu0 %v7003_v59, %s5605_s17 }
 0x1fe   : > { %10926 = vst [vmem:[#allocation245_spill] sm:$0xff] %v7014_v54  ;;  %10927 = vst [vmem:[#allocation246_spill] sm:$0xff] %v7017_v22 }
 0x1ff   : > { %v7009_v46 = vpop.permute.xlu1 %1117  ;;  %v7011_v14 = vpop.permute.xlu0 %1119 }
 0x200   : > { %10924 = vst [vmem:[#allocation243_spill] sm:$0xff] %v7009_v46  ;;  %10925 = vst [vmem:[#allocation244_spill] sm:$0xff] %v7011_v14  ;;  %v7028_v46 = vmul.f32 0.21300554, %v6204_v26  ;;  %v7031_v14 = vmul.f32 0.21300554, %v6219_v17 }
 0x201   : > { %1393 = vrot.lane.b32.xlu1 %v7014_v54, %s5605_s17  ;;  %1395 = vrot.lane.b32.xlu0 %v7017_v22, %s5605_s17 }
 0x202   : > { %10930 = vst [vmem:[#allocation249_spill] sm:$0xff] %v7028_v46  ;;  %10931 = vst [vmem:[#allocation250_spill] sm:$0xff] %v7031_v14 }
 0x203   : > { %v7023_v51 = vpop.permute.xlu1 %1121  ;;  %v7025_v19 = vpop.permute.xlu0 %1123 }
 0x204   : > { %10928 = vst [vmem:[#allocation247_spill] sm:$0xff] %v7023_v51  ;;  %10929 = vst [vmem:[#allocation248_spill] sm:$0xff] %v7025_v19  ;;  %v7042_v51 = vmul.f32 0.21300554, %v6222_v24  ;;  %v7045_v19 = vmul.f32 0.21300554, %v6237_v9 }
 0x205   : > { %1397 = vrot.lane.b32.xlu1 %v7028_v46, %s5605_s17  ;;  %1399 = vrot.lane.b32.xlu0 %v7031_v14, %s5605_s17 }
 0x206   : > { %10934 = vst [vmem:[#allocation253_spill] sm:$0xff] %v7042_v51  ;;  %10935 = vst [vmem:[#allocation254_spill] sm:$0xff] %v7045_v19 }
 0x207   : > { %v7037_v54 = vpop.permute.xlu1 %1125  ;;  %v7039_v59 = vpop.permute.xlu0 %1127 }
 0x208   : > { %10932 = vst [vmem:[#allocation251_spill] sm:$0xff] %v7037_v54  ;;  %10933 = vst [vmem:[#allocation252_spill] sm:$0xff] %v7039_v59  ;;  %v7056_v54 = vmul.f32 0.21300554, %v6240_v56  ;;  %v1487_v59 = vmul.f32 0.26601171, %v5897_v44 }
 0x209   : > { %1401 = vrot.lane.b32.xlu1 %v7042_v51, %s5605_s17  ;;  %1403 = vrot.lane.b32.xlu0 %v7045_v19, %s5605_s17  ;;  %v1488_v19 = vmul.f32 0.26601171, %v5913_v52 }
 0x20a   : > { %10938 = vst [vmem:[#allocation257_spill] sm:$0xff] %v7056_v54 }
 0x20b   : > { %v7051_v46 = vpop.permute.xlu1 %1129  ;;  %v7053_v22 = vpop.permute.xlu0 %1131 }
 0x20c   : > { %10936 = vst [vmem:[#allocation255_spill] sm:$0xff] %v7051_v46  ;;  %10937 = vst [vmem:[#allocation256_spill] sm:$0xff] %v7053_v22  ;;  %v1489_v46 = vmul.f32 0.26601171, %v5900_v45 }
 0x20d   : > { %1405 = vrot.lane.b32.xlu1 %v7056_v54, %s5605_s17  ;;  %1567 = vrot.lane.b32.xlu0 %v1487_v59, %s5606_s28  ;;  %v1490_v54 = vmul.f32 0.26601171, %v5916_v53  ;;  %v1491_v59 = vmul.f32 0.26601171, %v5931_v60 }
 0x20f   : > { %v7062_v14 = vpop.permute.xlu1 %1133  ;;  %v7064_v51 = vpop.permute.xlu0 %1135 }
 0x210   : > { %10939 = vst [vmem:[#allocation258_spill] sm:$0xff] %v7062_v14  ;;  %10940 = vst [vmem:[#allocation259_spill] sm:$0xff] %v7064_v51 }
 0x211   : > { %1569 = vrot.lane.b32.xlu1 %v1488_v19, %s5606_s28  ;;  %1571 = vrot.lane.b32.xlu0 %v1489_v46, %s5606_s28  ;;  %v1492_v19 = vmul.f32 0.26601171, %v5934_v61  ;;  %v1493_v46 = vmul.f32 0.26601171, %v5949_v4 }
 0x213   : > { %v7070_v22 = vpop.permute.xlu1 %1137  ;;  %v7072_v44 = vpop.permute.xlu0 %1139 }
 0x214   : > { %10941 = vst [vmem:[#allocation260_spill] sm:$0xff] %v7070_v22  ;;  %10942 = vst [vmem:[#allocation261_spill] sm:$0xff] %v7072_v44 }
 0x215   : > { %1573 = vrot.lane.b32.xlu1 %v1490_v54, %s5606_s28  ;;  %1575 = vrot.lane.b32.xlu0 %v1491_v59, %s5606_s28  ;;  %v1494_v54 = vmul.f32 0.26601171, %v5952_v5  ;;  %v1495_v59 = vmul.f32 0.26601171, %v5967_v12 }
 0x217   : > { %v7078_v51 = vpop.permute.xlu1 %1141  ;;  %v7080_v14 = vpop.permute.xlu0 %1143 }
 0x218   : > { %10943 = vst [vmem:[#allocation262_spill] sm:$0xff] %v7078_v51  ;;  %10944 = vst [vmem:[#allocation263_spill] sm:$0xff] %v7080_v14 }
 0x219   : > { %1577 = vrot.lane.b32.xlu1 %v1492_v19, %s5606_s28  ;;  %1579 = vrot.lane.b32.xlu0 %v1493_v46, %s5606_s28  ;;  %v1496_v19 = vmul.f32 0.26601171, %v5970_v13  ;;  %v1497_v46 = vmul.f32 0.26601171, %v5985_v20 }
 0x21b   : > { %v7086_v44 = vpop.permute.xlu1 %1145  ;;  %v7088_v22 = vpop.permute.xlu0 %1147 }
 0x21c   : > { %10945 = vst [vmem:[#allocation264_spill] sm:$0xff] %v7086_v44  ;;  %10946 = vst [vmem:[#allocation265_spill] sm:$0xff] %v7088_v22 }
 0x21d   : > { %1581 = vrot.lane.b32.xlu1 %v1494_v54, %s5606_s28  ;;  %1583 = vrot.lane.b32.xlu0 %v1495_v59, %s5606_s28  ;;  %v1498_v54 = vmul.f32 0.26601171, %v5988_v21  ;;  %v1499_v59 = vmul.f32 0.26601171, %v6003_v28 }
 0x21f   : > { %v7094_v14 = vpop.permute.xlu1 %1149  ;;  %v7096_v51 = vpop.permute.xlu0 %1151 }
 0x220   : > { %10947 = vst [vmem:[#allocation266_spill] sm:$0xff] %v7094_v14  ;;  %10948 = vst [vmem:[#allocation267_spill] sm:$0xff] %v7096_v51 }
 0x221   : > { %1585 = vrot.lane.b32.xlu1 %v1496_v19, %s5606_s28  ;;  %1587 = vrot.lane.b32.xlu0 %v1497_v46, %s5606_s28  ;;  %v1500_v19 = vmul.f32 0.26601171, %v6006_v29  ;;  %v1501_v46 = vmul.f32 0.26601171, %v6021_v36 }
 0x223   : > { %v7102_v22 = vpop.permute.xlu1 %1153  ;;  %v7104_v44 = vpop.permute.xlu0 %1155 }
 0x224   : > { %10949 = vst [vmem:[#allocation268_spill] sm:$0xff] %v7102_v22  ;;  %10950 = vst [vmem:[#allocation269_spill] sm:$0xff] %v7104_v44 }
 0x225   : > { %1589 = vrot.lane.b32.xlu1 %v1498_v54, %s5606_s28  ;;  %1591 = vrot.lane.b32.xlu0 %v1499_v59, %s5606_s28  ;;  %v1502_v54 = vmul.f32 0.26601171, %v6024_v37  ;;  %v1503_v59 = vmul.f32 0.26601171, %v6039_v47 }
 0x227   : > { %v7110_v51 = vpop.permute.xlu1 %1157  ;;  %v7112_v14 = vpop.permute.xlu0 %1159 }
 0x228   : > { %10951 = vst [vmem:[#allocation270_spill] sm:$0xff] %v7110_v51  ;;  %10952 = vst [vmem:[#allocation271_spill] sm:$0xff] %v7112_v14 }
 0x229   : > { %1593 = vrot.lane.b32.xlu1 %v1500_v19, %s5606_s28  ;;  %1595 = vrot.lane.b32.xlu0 %v1501_v46, %s5606_s28  ;;  %v1504_v19 = vmul.f32 0.26601171, %v6042_v48  ;;  %v1505_v46 = vmul.f32 0.26601171, %v6057_v63 }
 0x22b   : > { %v7118_v44 = vpop.permute.xlu1 %1161  ;;  %v7120_v22 = vpop.permute.xlu0 %1163 }
 0x22c   : > { %10953 = vst [vmem:[#allocation272_spill] sm:$0xff] %v7118_v44  ;;  %10954 = vst [vmem:[#allocation273_spill] sm:$0xff] %v7120_v22 }
 0x22d   : > { %1597 = vrot.lane.b32.xlu1 %v1502_v54, %s5606_s28  ;;  %1599 = vrot.lane.b32.xlu0 %v1503_v59, %s5606_s28  ;;  %v1506_v54 = vmul.f32 0.26601171, %v6060_v0  ;;  %v1507_v59 = vmul.f32 0.26601171, %v6075_v15 }
 0x22f   : > { %v7126_v14 = vpop.permute.xlu1 %1165  ;;  %v7128_v51 = vpop.permute.xlu0 %1327 }
 0x230   : > { %10955 = vst [vmem:[#allocation274_spill] sm:$0xff] %v7126_v14  ;;  %10956 = vst [vmem:[#allocation275_spill] sm:$0xff] %v7128_v51 }
 0x231   : > { %1601 = vrot.lane.b32.xlu1 %v1504_v19, %s5606_s28  ;;  %1603 = vrot.lane.b32.xlu0 %v1505_v46, %s5606_s28  ;;  %v1508_v19 = vmul.f32 0.26601171, %v6078_v16  ;;  %v1509_v46 = vmul.f32 0.26601171, %v6093_v31 }
 0x233   : > { %v7134_v22 = vpop.permute.xlu1 %1329  ;;  %v7136_v44 = vpop.permute.xlu0 %1331 }
 0x234   : > { %10957 = vst [vmem:[#allocation276_spill] sm:$0xff] %v7134_v22  ;;  %10958 = vst [vmem:[#allocation277_spill] sm:$0xff] %v7136_v44 }
 0x235   : > { %1605 = vrot.lane.b32.xlu1 %v1506_v54, %s5606_s28  ;;  %1607 = vrot.lane.b32.xlu0 %v1507_v59, %s5606_s28  ;;  %v1510_v54 = vmul.f32 0.26601171, %v6096_v32  ;;  %v1511_v59 = vmul.f32 0.26601171, %v6111_v50 }
 0x237   : > { %v7142_v51 = vpop.permute.xlu1 %1333  ;;  %v7144_v14 = vpop.permute.xlu0 %1335 }
 0x238   : > { %10959 = vst [vmem:[#allocation278_spill] sm:$0xff] %v7142_v51  ;;  %10960 = vst [vmem:[#allocation279_spill] sm:$0xff] %v7144_v14 }
 0x239   : > { %1609 = vrot.lane.b32.xlu1 %v1508_v19, %s5606_s28  ;;  %1611 = vrot.lane.b32.xlu0 %v1509_v46, %s5606_s28  ;;  %v1512_v19 = vmul.f32 0.26601171, %v6114_v55  ;;  %v1513_v46 = vmul.f32 0.26601171, %v6129_v18 }
 0x23b   : > { %v7150_v44 = vpop.permute.xlu1 %1337  ;;  %v7152_v22 = vpop.permute.xlu0 %1339 }
 0x23c   : > { %10961 = vst [vmem:[#allocation280_spill] sm:$0xff] %v7150_v44  ;;  %10962 = vst [vmem:[#allocation281_spill] sm:$0xff] %v7152_v22 }
 0x23d   : > { %1613 = vrot.lane.b32.xlu1 %v1510_v54, %s5606_s28  ;;  %1615 = vrot.lane.b32.xlu0 %v1511_v59, %s5606_s28  ;;  %v1514_v54 = vmul.f32 0.26601171, %v6132_v23  ;;  %v1515_v59 = vmul.f32 0.26601171, %v6147_v57 }
 0x23f   : > { %v7158_v14 = vpop.permute.xlu1 %1341  ;;  %v7160_v51 = vpop.permute.xlu0 %1343 }
 0x240   : > { %10963 = vst [vmem:[#allocation282_spill] sm:$0xff] %v7158_v14  ;;  %10964 = vst [vmem:[#allocation283_spill] sm:$0xff] %v7160_v51 }
 0x241   : > { %1617 = vrot.lane.b32.xlu1 %v1512_v19, %s5606_s28  ;;  %1619 = vrot.lane.b32.xlu0 %v1513_v46, %s5606_s28  ;;  %v1516_v19 = vmul.f32 0.26601171, %v6150_v2  ;;  %v1517_v46 = vmul.f32 0.26601171, %v6165_v40 }
 0x243   : > { %v7166_v22 = vpop.permute.xlu1 %1345  ;;  %v7168_v44 = vpop.permute.xlu0 %1347 }
 0x244   : > { %10965 = vst [vmem:[#allocation284_spill] sm:$0xff] %v7166_v22  ;;  %10966 = vst [vmem:[#allocation285_spill] sm:$0xff] %v7168_v44 }
 0x245   : > { %1621 = vrot.lane.b32.xlu1 %v1514_v54, %s5606_s28  ;;  %1623 = vrot.lane.b32.xlu0 %v1515_v59, %s5606_s28  ;;  %v1518_v54 = vmul.f32 0.26601171, %v6168_v33  ;;  %v1519_v59 = vmul.f32 0.26601171, %v6183_v34 }
 0x247   : > { %v7174_v51 = vpop.permute.xlu1 %1349  ;;  %v7176_v14 = vpop.permute.xlu0 %1351 }
 0x248   : > { %10967 = vst [vmem:[#allocation286_spill] sm:$0xff] %v7174_v51  ;;  %10968 = vst [vmem:[#allocation287_spill] sm:$0xff] %v7176_v14 }
 0x249   : > { %1625 = vrot.lane.b32.xlu1 %v1516_v19, %s5606_s28  ;;  %1627 = vrot.lane.b32.xlu0 %v1517_v46, %s5606_s28  ;;  %v1520_v19 = vmul.f32 0.26601171, %v6186_v7  ;;  %v1521_v46 = vmul.f32 0.26601171, %v6201_v25 }
 0x24b   : > { %v7182_v44 = vpop.permute.xlu1 %1353  ;;  %v7184_v22 = vpop.permute.xlu0 %1355 }
 0x24c   : > { %10969 = vst [vmem:[#allocation288_spill] sm:$0xff] %v7182_v44  ;;  %10970 = vst [vmem:[#allocation289_spill] sm:$0xff] %v7184_v22 }
 0x24d   : > { %1629 = vrot.lane.b32.xlu1 %v1518_v54, %s5606_s28  ;;  %1631 = vrot.lane.b32.xlu0 %v1519_v59, %s5606_s28  ;;  %v1522_v54 = vmul.f32 0.26601171, %v6204_v26  ;;  %v1523_v59 = vmul.f32 0.26601171, %v6219_v17 }
 0x24f   : > { %v7190_v14 = vpop.permute.xlu1 %1357  ;;  %v7192_v51 = vpop.permute.xlu0 %1359 }
 0x250   : > { %10971 = vst [vmem:[#allocation290_spill] sm:$0xff] %v7190_v14  ;;  %10972 = vst [vmem:[#allocation291_spill] sm:$0xff] %v7192_v51 }
 0x251   : > { %1633 = vrot.lane.b32.xlu1 %v1520_v19, %s5606_s28  ;;  %1635 = vrot.lane.b32.xlu0 %v1521_v46, %s5606_s28  ;;  %v1524_v19 = vmul.f32 0.26601171, %v6222_v24  ;;  %v1525_v46 = vmul.f32 0.26601171, %v6237_v9 }
 0x253   : > { %v7198_v22 = vpop.permute.xlu1 %1361  ;;  %v7200_v44 = vpop.permute.xlu0 %1363 }
 0x254   : > { %10973 = vst [vmem:[#allocation292_spill] sm:$0xff] %v7198_v22  ;;  %10974 = vst [vmem:[#allocation293_spill] sm:$0xff] %v7200_v44 }
 0x255   : > { %1637 = vrot.lane.b32.xlu1 %v1522_v54, %s5606_s28  ;;  %1639 = vrot.lane.b32.xlu0 %v1523_v59, %s5606_s28  ;;  %v1526_v54 = vmul.f32 0.26601171, %v6240_v56 }
 0x257   : > { %v7206_v51 = vpop.permute.xlu1 %1365  ;;  %v7208_v14 = vpop.permute.xlu0 %1367 }
 0x258   : > { %10975 = vst [vmem:[#allocation294_spill] sm:$0xff] %v7206_v51  ;;  %10976 = vst [vmem:[#allocation295_spill] sm:$0xff] %v7208_v14 }
 0x259   : > { %1641 = vrot.lane.b32.xlu1 %v1524_v19, %s5606_s28  ;;  %1643 = vrot.lane.b32.xlu0 %v1525_v46, %s5606_s28 }
 0x25b   : > { %v7214_v44 = vpop.permute.xlu1 %1369  ;;  %v7216_v22 = vpop.permute.xlu0 %1371 }
 0x25c   : > { %10977 = vst [vmem:[#allocation296_spill] sm:$0xff] %v7214_v44  ;;  %10978 = vst [vmem:[#allocation297_spill] sm:$0xff] %v7216_v22 }
 0x25d   : > { %1645 = vrot.lane.b32.xlu1 %v1526_v54, %s5606_s28  ;;  %1727 = vrot.lane.b32.xlu0 %v6779_v11, %s5607_s24 }
 0x25f   : > { %v7222_v59 = vpop.permute.xlu1 %1373  ;;  %v7224_v14 = vpop.permute.xlu0 %1375 }
 0x260   : > { %10979 = vst [vmem:[#allocation298_spill] sm:$0xff] %v7222_v59  ;;  %10980 = vst [vmem:[#allocation299_spill] sm:$0xff] %v7224_v14 }
 0x261   : > { %1729 = vrot.lane.b32.xlu1 %v6790_v8, %s5607_s24  ;;  %1731 = vrot.lane.b32.xlu0 %v6793_v38, %s5607_s24 }
 0x263   : > { %v7230_v19 = vpop.permute.xlu1 %1377  ;;  %v7232_v46 = vpop.permute.xlu0 %1379 }
 0x264   : > { %10981 = vst [vmem:[#allocation300_spill] sm:$0xff] %v7230_v19  ;;  %10982 = vst [vmem:[#allocation301_spill] sm:$0xff] %v7232_v46 }
 0x265   : > { %1733 = vrot.lane.b32.xlu1 %v6804_v43, %s5607_s24  ;;  %1735 = vrot.lane.b32.xlu0 %v6807_v41, %s5607_s24 }
 0x267   : > { %v7238_v11 = vpop.permute.xlu1 %1381  ;;  %v7240_v54 = vpop.permute.xlu0 %1383 }
 0x268   : > { %10983 = vst [vmem:[#allocation302_spill] sm:$0xff] %v7238_v11  ;;  %10984 = vst [vmem:[#allocation303_spill] sm:$0xff] %v7240_v54 }
 0x269   : > { %1737 = vrot.lane.b32.xlu1 %v6818_v10, %s5607_s24  ;;  %1739 = vrot.lane.b32.xlu0 %v6821_v49, %s5607_s24 }
 0x26b   : > { %v7246_v38 = vpop.permute.xlu1 %1385  ;;  %v7248_v8 = vpop.permute.xlu0 %1387 }
 0x26c   : > { %10985 = vst [vmem:[#allocation304_spill] sm:$0xff] %v7246_v38  ;;  %10986 = vst [vmem:[#allocation305_spill] sm:$0xff] %v7248_v8 }
 0x26d   : > { %1741 = vrot.lane.b32.xlu1 %v6832_v6, %s5607_s24  ;;  %1743 = vrot.lane.b32.xlu0 %v6835_v58, %s5607_s24 }
 0x26f   : > { %v7254_v43 = vpop.permute.xlu1 %1389  ;;  %v7256_v41 = vpop.permute.xlu0 %1391 }
 0x270   : > { %10987 = vst [vmem:[#allocation306_spill] sm:$0xff] %v7254_v43  ;;  %10988 = vst [vmem:[#allocation307_spill] sm:$0xff] %v7256_v41  ;;  %v11279_v41 = vld [vmem:[#allocation77_spill] sm:$0xff] }
 0x271   : > { %1745 = vrot.lane.b32.xlu1 %v6846_v42, %s5607_s24  ;;  %1747 = vrot.lane.b32.xlu0 %v6849_v35, %s5607_s24 }
 0x273   : > { %v7262_v49 = vpop.permute.xlu1 %1393  ;;  %v7264_v10 = vpop.permute.xlu0 %1395 }
 0x274   : > { %10989 = vst [vmem:[#allocation308_spill] sm:$0xff] %v7262_v49  ;;  %10990 = vst [vmem:[#allocation309_spill] sm:$0xff] %v7264_v10  ;;  %v11277_v10 = vld [vmem:[#allocation73_spill] sm:$0xff]  ;;  %v11278_v49 = vld [vmem:[#allocation76_spill] sm:$0xff] }
 0x275   : > { %1749 = vrot.lane.b32.xlu1 %v6860_v30, %s5607_s24  ;;  %1751 = vrot.lane.b32.xlu0 %v6863_v1, %s5607_s24 }
 0x277   : > { %v7270_v6 = vpop.permute.xlu1 %1397  ;;  %v7272_v58 = vpop.permute.xlu0 %1399 }
 0x278   : > { %10991 = vst [vmem:[#allocation310_spill] sm:$0xff] %v7270_v6  ;;  %10992 = vst [vmem:[#allocation311_spill] sm:$0xff] %v7272_v58  ;;  %v10997_v58 = vld [vmem:[#allocation213_spill] sm:$0xff] }
 0x279   : > { %1753 = vrot.lane.b32.xlu1 %v6874_v39, %s5607_s24  ;;  %1755 = vrot.lane.b32.xlu0 %v6877_v3, %s5607_s24  ;;  %v10998_v39 = vld [vmem:[#allocation214_spill] sm:$0xff] }
 0x27b   : > { %v7278_v35 = vpop.permute.xlu1 %1401  ;;  %v7280_v42 = vpop.permute.xlu0 %1403 }
 0x27c   : > { %10993 = vst [vmem:[#allocation312_spill] sm:$0xff] %v7278_v35  ;;  %10994 = vst [vmem:[#allocation313_spill] sm:$0xff] %v7280_v42  ;;  %v11001_v42 = vld [vmem:[#allocation217_spill] sm:$0xff] }
 0x27d   : > { %1757 = vrot.lane.b32.xlu1 %v6888_v62, %s5607_s24  ;;  %1759 = vrot.lane.b32.xlu0 %v6891_v27, %s5607_s24  ;;  %v11002_v62 = vld [vmem:[#allocation218_spill] sm:$0xff] }
 0x27f   : > { %v7286_v30 = vpop.permute.xlu1 %1405  ;;  %v7288_v1 = vpop.permute.xlu0 %1567 }
 0x280   : > { %10995 = vst [vmem:[#allocation314_spill] sm:$0xff] %v7286_v30  ;;  %10996 = vst [vmem:[#allocation315_spill] sm:$0xff] %v7288_v1  ;;  %v11005_v1 = vld [vmem:[#allocation221_spill] sm:$0xff] }
 0x281   : > { %1761 = vrot.lane.b32.xlu1 %v10997_v58, %s5607_s24  ;;  %1763 = vrot.lane.b32.xlu0 %v10998_v39, %s5607_s24  ;;  %v11006_v58 = vld [vmem:[#allocation222_spill] sm:$0xff] }
 0x283   : > { %v7294_v3 = vpop.permute.xlu1 %1569  ;;  %v7296_v35 = vpop.permute.xlu0 %1571 }
 0x284   : > { %10999 = vst [vmem:[#allocation213_spill] sm:$0xff] %v7294_v3  ;;  %11000 = vst [vmem:[#allocation214_spill] sm:$0xff] %v7296_v35  ;;  %v11009_v35 = vld [vmem:[#allocation225_spill] sm:$0xff] }
 0x285   : > { %1765 = vrot.lane.b32.xlu1 %v11001_v42, %s5607_s24  ;;  %1767 = vrot.lane.b32.xlu0 %v11002_v62, %s5607_s24  ;;  %v11010_v42 = vld [vmem:[#allocation226_spill] sm:$0xff] }
 0x287   : > { %v7302_v27 = vpop.permute.xlu1 %1573  ;;  %v7304_v30 = vpop.permute.xlu0 %1575 }
 0x288   : > { %11003 = vst [vmem:[#allocation217_spill] sm:$0xff] %v7302_v27  ;;  %11004 = vst [vmem:[#allocation218_spill] sm:$0xff] %v7304_v30  ;;  %v11013_v30 = vld [vmem:[#allocation229_spill] sm:$0xff] }
 0x289   : > { %1769 = vrot.lane.b32.xlu1 %v11005_v1, %s5607_s24  ;;  %1771 = vrot.lane.b32.xlu0 %v11006_v58, %s5607_s24  ;;  %v11014_v1 = vld [vmem:[#allocation230_spill] sm:$0xff] }
 0x28b   : > { %v7310_v39 = vpop.permute.xlu1 %1577  ;;  %v7312_v3 = vpop.permute.xlu0 %1579 }
 0x28c   : > { %11007 = vst [vmem:[#allocation221_spill] sm:$0xff] %v7310_v39  ;;  %11008 = vst [vmem:[#allocation222_spill] sm:$0xff] %v7312_v3  ;;  %v11017_v3 = vld [vmem:[#allocation233_spill] sm:$0xff] }
 0x28d   : > { %1773 = vrot.lane.b32.xlu1 %v11009_v35, %s5607_s24  ;;  %1775 = vrot.lane.b32.xlu0 %v11010_v42, %s5607_s24  ;;  %v11018_v35 = vld [vmem:[#allocation234_spill] sm:$0xff] }
 0x28f   : > { %v7318_v62 = vpop.permute.xlu1 %1581  ;;  %v7320_v27 = vpop.permute.xlu0 %1583 }
 0x290   : > { %11011 = vst [vmem:[#allocation225_spill] sm:$0xff] %v7318_v62  ;;  %11012 = vst [vmem:[#allocation226_spill] sm:$0xff] %v7320_v27  ;;  %v11021_v27 = vld [vmem:[#allocation237_spill] sm:$0xff] }
 0x291   : > { %1777 = vrot.lane.b32.xlu1 %v11013_v30, %s5607_s24  ;;  %1779 = vrot.lane.b32.xlu0 %v11014_v1, %s5607_s24  ;;  %v11022_v30 = vld [vmem:[#allocation238_spill] sm:$0xff] }
 0x293   : > { %v7326_v58 = vpop.permute.xlu1 %1585  ;;  %v7328_v39 = vpop.permute.xlu0 %1587 }
 0x294   : > { %11015 = vst [vmem:[#allocation229_spill] sm:$0xff] %v7326_v58  ;;  %11016 = vst [vmem:[#allocation230_spill] sm:$0xff] %v7328_v39  ;;  %v11025_v39 = vld [vmem:[#allocation241_spill] sm:$0xff] }
 0x295   : > { %1781 = vrot.lane.b32.xlu1 %v11017_v3, %s5607_s24  ;;  %1783 = vrot.lane.b32.xlu0 %v11018_v35, %s5607_s24  ;;  %v11026_v3 = vld [vmem:[#allocation242_spill] sm:$0xff] }
 0x297   : > { %v7334_v42 = vpop.permute.xlu1 %1589  ;;  %v7336_v62 = vpop.permute.xlu0 %1591 }
 0x298   : > { %11019 = vst [vmem:[#allocation233_spill] sm:$0xff] %v7334_v42  ;;  %11020 = vst [vmem:[#allocation234_spill] sm:$0xff] %v7336_v62  ;;  %v11029_v62 = vld [vmem:[#allocation245_spill] sm:$0xff] }
 0x299   : > { %1785 = vrot.lane.b32.xlu1 %v11021_v27, %s5607_s24  ;;  %1787 = vrot.lane.b32.xlu0 %v11022_v30, %s5607_s24  ;;  %v11030_v27 = vld [vmem:[#allocation246_spill] sm:$0xff] }
 0x29b   : > { %v7342_v1 = vpop.permute.xlu1 %1593  ;;  %v7344_v58 = vpop.permute.xlu0 %1595 }
 0x29c   : > { %11023 = vst [vmem:[#allocation237_spill] sm:$0xff] %v7342_v1  ;;  %11024 = vst [vmem:[#allocation238_spill] sm:$0xff] %v7344_v58  ;;  %v11033_v58 = vld [vmem:[#allocation249_spill] sm:$0xff] }
 0x29d   : > { %1789 = vrot.lane.b32.xlu1 %v11025_v39, %s5607_s24  ;;  %1791 = vrot.lane.b32.xlu0 %v11026_v3, %s5607_s24  ;;  %v11034_v39 = vld [vmem:[#allocation250_spill] sm:$0xff] }
 0x29f   : > { %v7350_v35 = vpop.permute.xlu1 %1597  ;;  %v7352_v42 = vpop.permute.xlu0 %1599 }
 0x2a0   : > { %11027 = vst [vmem:[#allocation241_spill] sm:$0xff] %v7350_v35  ;;  %11028 = vst [vmem:[#allocation242_spill] sm:$0xff] %v7352_v42  ;;  %v11037_v42 = vld [vmem:[#allocation253_spill] sm:$0xff] }
 0x2a1   : > { %1793 = vrot.lane.b32.xlu1 %v11029_v62, %s5607_s24  ;;  %1795 = vrot.lane.b32.xlu0 %v11030_v27, %s5607_s24  ;;  %v11038_v62 = vld [vmem:[#allocation254_spill] sm:$0xff] }
 0x2a3   : > { %v7358_v30 = vpop.permute.xlu1 %1601  ;;  %v7360_v1 = vpop.permute.xlu0 %1603 }
 0x2a4   : > { %11031 = vst [vmem:[#allocation245_spill] sm:$0xff] %v7358_v30  ;;  %11032 = vst [vmem:[#allocation246_spill] sm:$0xff] %v7360_v1  ;;  %v11041_v1 = vld [vmem:[#allocation257_spill] sm:$0xff] }
 0x2a5   : > { %1797 = vrot.lane.b32.xlu1 %v11033_v58, %s5607_s24  ;;  %1799 = vrot.lane.b32.xlu0 %v11034_v39, %s5607_s24  ;;  %v11042_v58 = vld [vmem:[#allocation115_spill] sm:$0xff] }
 0x2a7   : > { %v7366_v3 = vpop.permute.xlu1 %1605  ;;  %v7368_v35 = vpop.permute.xlu0 %1607 }
 0x2a8   : > { %11035 = vst [vmem:[#allocation249_spill] sm:$0xff] %v7366_v3  ;;  %11036 = vst [vmem:[#allocation250_spill] sm:$0xff] %v7368_v35  ;;  %v11050_v3 = vld [vmem:[#allocation123_spill] sm:$0xff] }
 0x2a9   : > { %1801 = vrot.lane.b32.xlu1 %v11037_v42, %s5607_s24  ;;  %1803 = vrot.lane.b32.xlu0 %v11038_v62, %s5607_s24  ;;  %v11045_v42 = vld [vmem:[#allocation118_spill] sm:$0xff]  ;;  %v11046_v62 = vld [vmem:[#allocation119_spill] sm:$0xff] }
 0x2ab   : > { %v7374_v27 = vpop.permute.xlu1 %1609  ;;  %v7376_v30 = vpop.permute.xlu0 %1611 }
 0x2ac   : > { %11039 = vst [vmem:[#allocation253_spill] sm:$0xff] %v7374_v27  ;;  %11040 = vst [vmem:[#allocation254_spill] sm:$0xff] %v7376_v30 }
 0x2ad   : > { %1805 = vrot.lane.b32.xlu1 %v11041_v1, %s5607_s24  ;;  %1887 = vrot.lane.b32.xlu0 %v11042_v58, %s5608_s26  ;;  %v11049_v1 = vld [vmem:[#allocation122_spill] sm:$0xff] }
 0x2af   : > { %v7382_v39 = vpop.permute.xlu1 %1613  ;;  %v7384_v35 = vpop.permute.xlu0 %1615 }
 0x2b0   : > { %11043 = vst [vmem:[#allocation257_spill] sm:$0xff] %v7382_v39  ;;  %11044 = vst [vmem:[#allocation115_spill] sm:$0xff] %v7384_v35  ;;  %v11053_v35 = vld [vmem:[#allocation126_spill] sm:$0xff] }
 0x2b1   : > { %1889 = vrot.lane.b32.xlu1 %v11045_v42, %s5608_s26  ;;  %1891 = vrot.lane.b32.xlu0 %v11046_v62, %s5608_s26  ;;  %v11054_v42 = vld [vmem:[#allocation127_spill] sm:$0xff] }
 0x2b3   : > { %v7390_v27 = vpop.permute.xlu1 %1617  ;;  %v7392_v30 = vpop.permute.xlu0 %1619 }
 0x2b4   : > { %11047 = vst [vmem:[#allocation118_spill] sm:$0xff] %v7390_v27  ;;  %11048 = vst [vmem:[#allocation119_spill] sm:$0xff] %v7392_v30  ;;  %v11057_v30 = vld [vmem:[#allocation130_spill] sm:$0xff] }
 0x2b5   : > { %1893 = vrot.lane.b32.xlu1 %v11049_v1, %s5608_s26  ;;  %1895 = vrot.lane.b32.xlu0 %v11050_v3, %s5608_s26  ;;  %v11058_v1 = vld [vmem:[#allocation131_spill] sm:$0xff] }
 0x2b7   : > { %v7398_v58 = vpop.permute.xlu1 %1621  ;;  %v7400_v39 = vpop.permute.xlu0 %1623 }
 0x2b8   : > { %11051 = vst [vmem:[#allocation122_spill] sm:$0xff] %v7398_v58  ;;  %11052 = vst [vmem:[#allocation123_spill] sm:$0xff] %v7400_v39  ;;  %v11061_v39 = vld [vmem:[#allocation134_spill] sm:$0xff] }
 0x2b9   : > { %1897 = vrot.lane.b32.xlu1 %v11053_v35, %s5608_s26  ;;  %1899 = vrot.lane.b32.xlu0 %v11054_v42, %s5608_s26  ;;  %v11062_v35 = vld [vmem:[#allocation135_spill] sm:$0xff] }
 0x2bb   : > { %v7406_v62 = vpop.permute.xlu1 %1625  ;;  %v7408_v27 = vpop.permute.xlu0 %1627 }
 0x2bc   : > { %11055 = vst [vmem:[#allocation126_spill] sm:$0xff] %v7406_v62  ;;  %11056 = vst [vmem:[#allocation127_spill] sm:$0xff] %v7408_v27  ;;  %v11065_v27 = vld [vmem:[#allocation138_spill] sm:$0xff] }
 0x2bd   : > { %1901 = vrot.lane.b32.xlu1 %v11057_v30, %s5608_s26  ;;  %1903 = vrot.lane.b32.xlu0 %v11058_v1, %s5608_s26  ;;  %v11066_v30 = vld [vmem:[#allocation139_spill] sm:$0xff] }
 0x2bf   : > { %v7414_v3 = vpop.permute.xlu1 %1629  ;;  %v7416_v58 = vpop.permute.xlu0 %1631 }
 0x2c0   : > { %11059 = vst [vmem:[#allocation130_spill] sm:$0xff] %v7414_v3  ;;  %11060 = vst [vmem:[#allocation131_spill] sm:$0xff] %v7416_v58  ;;  %v11069_v58 = vld [vmem:[#allocation142_spill] sm:$0xff] }
 0x2c1   : > { %1905 = vrot.lane.b32.xlu1 %v11061_v39, %s5608_s26  ;;  %1907 = vrot.lane.b32.xlu0 %v11062_v35, %s5608_s26  ;;  %v11070_v39 = vld [vmem:[#allocation143_spill] sm:$0xff] }
 0x2c3   : > { %v7422_v42 = vpop.permute.xlu1 %1633  ;;  %v7424_v62 = vpop.permute.xlu0 %1635 }
 0x2c4   : > { %11063 = vst [vmem:[#allocation134_spill] sm:$0xff] %v7422_v42  ;;  %11064 = vst [vmem:[#allocation135_spill] sm:$0xff] %v7424_v62  ;;  %v11073_v62 = vld [vmem:[#allocation146_spill] sm:$0xff] }
 0x2c5   : > { %1909 = vrot.lane.b32.xlu1 %v11065_v27, %s5608_s26  ;;  %1911 = vrot.lane.b32.xlu0 %v11066_v30, %s5608_s26  ;;  %v11074_v27 = vld [vmem:[#allocation147_spill] sm:$0xff] }
 0x2c7   : > { %v7430_v1 = vpop.permute.xlu1 %1637  ;;  %v7432_v3 = vpop.permute.xlu0 %1639 }
 0x2c8   : > { %11067 = vst [vmem:[#allocation138_spill] sm:$0xff] %v7430_v1  ;;  %11068 = vst [vmem:[#allocation139_spill] sm:$0xff] %v7432_v3  ;;  %v11077_v3 = vld [vmem:[#allocation150_spill] sm:$0xff] }
 0x2c9   : > { %1913 = vrot.lane.b32.xlu1 %v11069_v58, %s5608_s26  ;;  %1915 = vrot.lane.b32.xlu0 %v11070_v39, %s5608_s26  ;;  %v11078_v58 = vld [vmem:[#allocation151_spill] sm:$0xff] }
 0x2cb   : > { %v7438_v35 = vpop.permute.xlu1 %1641  ;;  %v7440_v42 = vpop.permute.xlu0 %1643 }
 0x2cc   : > { %11071 = vst [vmem:[#allocation142_spill] sm:$0xff] %v7438_v35  ;;  %11072 = vst [vmem:[#allocation143_spill] sm:$0xff] %v7440_v42  ;;  %v11081_v42 = vld [vmem:[#allocation154_spill] sm:$0xff] }
 0x2cd   : > { %1917 = vrot.lane.b32.xlu1 %v11073_v62, %s5608_s26  ;;  %1919 = vrot.lane.b32.xlu0 %v11074_v27, %s5608_s26  ;;  %v11082_v62 = vld [vmem:[#allocation155_spill] sm:$0xff] }
 0x2cf   : > { %v7446_v30 = vpop.permute.xlu1 %1645  ;;  %v7448_v1 = vpop.permute.xlu0 %1727 }
 0x2d0   : > { %11075 = vst [vmem:[#allocation146_spill] sm:$0xff] %v7446_v30  ;;  %11076 = vst [vmem:[#allocation147_spill] sm:$0xff] %v7448_v1  ;;  %v11085_v1 = vld [vmem:[#allocation158_spill] sm:$0xff] }
 0x2d1   : > { %1921 = vrot.lane.b32.xlu1 %v11077_v3, %s5608_s26  ;;  %1923 = vrot.lane.b32.xlu0 %v11078_v58, %s5608_s26  ;;  %v11086_v3 = vld [vmem:[#allocation159_spill] sm:$0xff] }
 0x2d3   : > { %v7454_v39 = vpop.permute.xlu1 %1729  ;;  %v7456_v35 = vpop.permute.xlu0 %1731 }
 0x2d4   : > { %11079 = vst [vmem:[#allocation150_spill] sm:$0xff] %v7454_v39  ;;  %11080 = vst [vmem:[#allocation151_spill] sm:$0xff] %v7456_v35  ;;  %v11089_v35 = vld [vmem:[#allocation162_spill] sm:$0xff] }
 0x2d5   : > { %1925 = vrot.lane.b32.xlu1 %v11081_v42, %s5608_s26  ;;  %1927 = vrot.lane.b32.xlu0 %v11082_v62, %s5608_s26  ;;  %v11090_v42 = vld [vmem:[#allocation163_spill] sm:$0xff] }
 0x2d7   : > { %v7462_v27 = vpop.permute.xlu1 %1733  ;;  %v7464_v30 = vpop.permute.xlu0 %1735 }
 0x2d8   : > { %11083 = vst [vmem:[#allocation154_spill] sm:$0xff] %v7462_v27  ;;  %11084 = vst [vmem:[#allocation155_spill] sm:$0xff] %v7464_v30  ;;  %v11093_v30 = vld [vmem:[#allocation166_spill] sm:$0xff] }
 0x2d9   : > { %1929 = vrot.lane.b32.xlu1 %v11085_v1, %s5608_s26  ;;  %1931 = vrot.lane.b32.xlu0 %v11086_v3, %s5608_s26  ;;  %v11094_v1 = vld [vmem:[#allocation167_spill] sm:$0xff] }
 0x2db   : > { %v7470_v58 = vpop.permute.xlu1 %1737  ;;  %v7472_v39 = vpop.permute.xlu0 %1739 }
 0x2dc   : > { %11087 = vst [vmem:[#allocation158_spill] sm:$0xff] %v7470_v58  ;;  %11088 = vst [vmem:[#allocation159_spill] sm:$0xff] %v7472_v39  ;;  %v11097_v39 = vld [vmem:[#allocation170_spill] sm:$0xff] }
 0x2dd   : > { %1933 = vrot.lane.b32.xlu1 %v11089_v35, %s5608_s26  ;;  %1935 = vrot.lane.b32.xlu0 %v11090_v42, %s5608_s26  ;;  %v11098_v35 = vld [vmem:[#allocation171_spill] sm:$0xff] }
 0x2df   : > { %v7478_v62 = vpop.permute.xlu1 %1741  ;;  %v7480_v27 = vpop.permute.xlu0 %1743 }
 0x2e0   : > { %11091 = vst [vmem:[#allocation162_spill] sm:$0xff] %v7478_v62  ;;  %11092 = vst [vmem:[#allocation163_spill] sm:$0xff] %v7480_v27  ;;  %v11101_v27 = vld [vmem:[#allocation174_spill] sm:$0xff] }
 0x2e1   : > { %1937 = vrot.lane.b32.xlu1 %v11093_v30, %s5608_s26  ;;  %1939 = vrot.lane.b32.xlu0 %v11094_v1, %s5608_s26  ;;  %v11102_v30 = vld [vmem:[#allocation175_spill] sm:$0xff] }
 0x2e3   : > { %v7486_v3 = vpop.permute.xlu1 %1745  ;;  %v7488_v58 = vpop.permute.xlu0 %1747 }
 0x2e4   : > { %11095 = vst [vmem:[#allocation166_spill] sm:$0xff] %v7486_v3  ;;  %11096 = vst [vmem:[#allocation167_spill] sm:$0xff] %v7488_v58  ;;  %v11105_v58 = vld [vmem:[#allocation178_spill] sm:$0xff] }
 0x2e5   : > { %1941 = vrot.lane.b32.xlu1 %v11097_v39, %s5608_s26  ;;  %1943 = vrot.lane.b32.xlu0 %v11098_v35, %s5608_s26  ;;  %v11106_v39 = vld [vmem:[#allocation179_spill] sm:$0xff] }
 0x2e7   : > { %v7494_v42 = vpop.permute.xlu1 %1749  ;;  %v7496_v62 = vpop.permute.xlu0 %1751 }
 0x2e8   : > { %11099 = vst [vmem:[#allocation170_spill] sm:$0xff] %v7494_v42  ;;  %11100 = vst [vmem:[#allocation171_spill] sm:$0xff] %v7496_v62  ;;  %v11109_v62 = vld [vmem:[#allocation182_spill] sm:$0xff] }
 0x2e9   : > { %1945 = vrot.lane.b32.xlu1 %v11101_v27, %s5608_s26  ;;  %1947 = vrot.lane.b32.xlu0 %v11102_v30, %s5608_s26  ;;  %v11110_v27 = vld [vmem:[#allocation183_spill] sm:$0xff] }
 0x2eb   : > { %v7502_v1 = vpop.permute.xlu1 %1753  ;;  %v7504_v3 = vpop.permute.xlu0 %1755 }
 0x2ec   : > { %11103 = vst [vmem:[#allocation174_spill] sm:$0xff] %v7502_v1  ;;  %11104 = vst [vmem:[#allocation175_spill] sm:$0xff] %v7504_v3  ;;  %v11113_v3 = vld [vmem:[#allocation186_spill] sm:$0xff] }
 0x2ed   : > { %1949 = vrot.lane.b32.xlu1 %v11105_v58, %s5608_s26  ;;  %1951 = vrot.lane.b32.xlu0 %v11106_v39, %s5608_s26  ;;  %v11114_v58 = vld [vmem:[#allocation187_spill] sm:$0xff] }
 0x2ef   : > { %v7510_v35 = vpop.permute.xlu1 %1757  ;;  %v7512_v42 = vpop.permute.xlu0 %1759 }
 0x2f0   : > { %11107 = vst [vmem:[#allocation178_spill] sm:$0xff] %v7510_v35  ;;  %11108 = vst [vmem:[#allocation179_spill] sm:$0xff] %v7512_v42  ;;  %v11117_v42 = vld [vmem:[#allocation190_spill] sm:$0xff] }
 0x2f1   : > { %1953 = vrot.lane.b32.xlu1 %v11109_v62, %s5608_s26  ;;  %1955 = vrot.lane.b32.xlu0 %v11110_v27, %s5608_s26  ;;  %v11118_v62 = vld [vmem:[#allocation191_spill] sm:$0xff] }
 0x2f3   : > { %v7518_v30 = vpop.permute.xlu1 %1761  ;;  %v7520_v1 = vpop.permute.xlu0 %1763 }
 0x2f4   : > { %11111 = vst [vmem:[#allocation182_spill] sm:$0xff] %v7518_v30  ;;  %11112 = vst [vmem:[#allocation183_spill] sm:$0xff] %v7520_v1  ;;  %v11121_v1 = vld [vmem:[#allocation194_spill] sm:$0xff] }
 0x2f5   : > { %1957 = vrot.lane.b32.xlu1 %v11113_v3, %s5608_s26  ;;  %1959 = vrot.lane.b32.xlu0 %v11114_v58, %s5608_s26  ;;  %v11122_v3 = vld [vmem:[#allocation52_spill] sm:$0xff] }
 0x2f7   : > { %v7526_v39 = vpop.permute.xlu1 %1765  ;;  %v7528_v35 = vpop.permute.xlu0 %1767 }
 0x2f8   : > { %11115 = vst [vmem:[#allocation186_spill] sm:$0xff] %v7526_v39  ;;  %11116 = vst [vmem:[#allocation187_spill] sm:$0xff] %v7528_v35  ;;  %v11130_v39 = vld [vmem:[#allocation60_spill] sm:$0xff] }
 0x2f9   : > { %1961 = vrot.lane.b32.xlu1 %v11117_v42, %s5608_s26  ;;  %1963 = vrot.lane.b32.xlu0 %v11118_v62, %s5608_s26  ;;  %v11125_v42 = vld [vmem:[#allocation53_spill] sm:$0xff]  ;;  %v11126_v62 = vld [vmem:[#allocation54_spill] sm:$0xff] }
 0x2fb   : > { %v7534_v27 = vpop.permute.xlu1 %1769  ;;  %v7536_v30 = vpop.permute.xlu0 %1771 }
 0x2fc   : > { %11119 = vst [vmem:[#allocation190_spill] sm:$0xff] %v7534_v27  ;;  %11120 = vst [vmem:[#allocation191_spill] sm:$0xff] %v7536_v30 }
 0x2fd   : > { %1965 = vrot.lane.b32.xlu1 %v11121_v1, %s5608_s26  ;;  %2047 = vrot.lane.b32.xlu0 %v11122_v3, %s5609_s27  ;;  %v11129_v1 = vld [vmem:[#allocation55_spill] sm:$0xff] }
 0x2ff   : > { %v7542_v58 = vpop.permute.xlu1 %1773  ;;  %v7544_v35 = vpop.permute.xlu0 %1775 }
 0x300   : > { %11123 = vst [vmem:[#allocation194_spill] sm:$0xff] %v7542_v58  ;;  %11124 = vst [vmem:[#allocation52_spill] sm:$0xff] %v7544_v35  ;;  %v11133_v35 = vld [vmem:[#allocation61_spill] sm:$0xff] }
 0x301   : > { %2049 = vrot.lane.b32.xlu1 %v11125_v42, %s5609_s27  ;;  %2051 = vrot.lane.b32.xlu0 %v11126_v62, %s5609_s27  ;;  %v11134_v42 = vld [vmem:[#allocation62_spill] sm:$0xff] }
 0x303   : > { %v7550_v27 = vpop.permute.xlu1 %1777  ;;  %v7552_v30 = vpop.permute.xlu0 %1779 }
 0x304   : > { %11127 = vst [vmem:[#allocation53_spill] sm:$0xff] %v7550_v27  ;;  %11128 = vst [vmem:[#allocation54_spill] sm:$0xff] %v7552_v30  ;;  %v11137_v30 = vld [vmem:[#allocation63_spill] sm:$0xff] }
 0x305   : > { %2053 = vrot.lane.b32.xlu1 %v11129_v1, %s5609_s27  ;;  %2063 = vrot.lane.b32.xlu0 %v11130_v39, %s5609_s27  ;;  %v11138_v1 = vld [vmem:[#allocation56_spill] sm:$0xff] }
 0x307   : > { %v7558_v3 = vpop.permute.xlu1 %1781  ;;  %v7560_v58 = vpop.permute.xlu0 %1783 }
 0x308   : > { %11131 = vst [vmem:[#allocation55_spill] sm:$0xff] %v7558_v3  ;;  %11132 = vst [vmem:[#allocation60_spill] sm:$0xff] %v7560_v58  ;;  %v11141_v58 = vld [vmem:[#allocation57_spill] sm:$0xff] }
 0x309   : > { %2065 = vrot.lane.b32.xlu1 %v11133_v35, %s5609_s27  ;;  %2067 = vrot.lane.b32.xlu0 %v11134_v42, %s5609_s27  ;;  %v11142_v35 = vld [vmem:[#allocation64_spill] sm:$0xff] }
 0x30b   : > { %v7566_v62 = vpop.permute.xlu1 %1785  ;;  %v7568_v27 = vpop.permute.xlu0 %1787 }
 0x30c   : > { %11135 = vst [vmem:[#allocation61_spill] sm:$0xff] %v7566_v62  ;;  %11136 = vst [vmem:[#allocation62_spill] sm:$0xff] %v7568_v27  ;;  %v11145_v27 = vld [vmem:[#allocation65_spill] sm:$0xff] }
 0x30d   : > { %2069 = vrot.lane.b32.xlu1 %v11137_v30, %s5609_s27  ;;  %2055 = vrot.lane.b32.xlu0 %v11138_v1, %s5609_s27  ;;  %v11146_v30 = vld [vmem:[#allocation58_spill] sm:$0xff] }
 0x30f   : > { %v7574_v39 = vpop.permute.xlu1 %1789  ;;  %v7576_v3 = vpop.permute.xlu0 %1791 }
 0x310   : > { %11139 = vst [vmem:[#allocation63_spill] sm:$0xff] %v7574_v39  ;;  %11140 = vst [vmem:[#allocation56_spill] sm:$0xff] %v7576_v3  ;;  %v11149_v3 = vld [vmem:[#allocation59_spill] sm:$0xff] }
 0x311   : > { %2057 = vrot.lane.b32.xlu1 %v11141_v58, %s5609_s27  ;;  %2071 = vrot.lane.b32.xlu0 %v11142_v35, %s5609_s27  ;;  %v11150_v58 = vld [vmem:[#allocation66_spill] sm:$0xff] }
 0x313   : > { %v7582_v42 = vpop.permute.xlu1 %1793  ;;  %v7584_v62 = vpop.permute.xlu0 %1795 }
 0x314   : > { %11143 = vst [vmem:[#allocation57_spill] sm:$0xff] %v7582_v42  ;;  %11144 = vst [vmem:[#allocation64_spill] sm:$0xff] %v7584_v62  ;;  %v11153_v62 = vld [vmem:[#allocation67_spill] sm:$0xff] }
 0x315   : > { %2073 = vrot.lane.b32.xlu1 %v11145_v27, %s5609_s27  ;;  %2059 = vrot.lane.b32.xlu0 %v11146_v30, %s5609_s27  ;;  %v11154_v27 = vld [vmem:[#allocation68_spill] sm:$0xff] }
 0x317   : > { %v7590_v1 = vpop.permute.xlu1 %1797  ;;  %v7592_v39 = vpop.permute.xlu0 %1799 }
 0x318   : > { %11147 = vst [vmem:[#allocation65_spill] sm:$0xff] %v7590_v1  ;;  %11148 = vst [vmem:[#allocation58_spill] sm:$0xff] %v7592_v39  ;;  %v11157_v39 = vld [vmem:[#allocation70_spill] sm:$0xff] }
 0x319   : > { %2061 = vrot.lane.b32.xlu1 %v11149_v3, %s5609_s27  ;;  %2075 = vrot.lane.b32.xlu0 %v11150_v58, %s5609_s27  ;;  %v11158_v3 = vld [vmem:[#allocation71_spill] sm:$0xff] }
 0x31b   : > { %v7598_v35 = vpop.permute.xlu1 %1801  ;;  %v7600_v42 = vpop.permute.xlu0 %1803 }
 0x31c   : > { %11151 = vst [vmem:[#allocation59_spill] sm:$0xff] %v7598_v35  ;;  %11152 = vst [vmem:[#allocation66_spill] sm:$0xff] %v7600_v42  ;;  %v11161_v42 = vld [vmem:[#allocation74_spill] sm:$0xff] }
 0x31d   : > { %2077 = vrot.lane.b32.xlu1 %v11153_v62, %s5609_s27  ;;  %2079 = vrot.lane.b32.xlu0 %v11154_v27, %s5609_s27  ;;  %v11162_v62 = vld [vmem:[#allocation83_spill] sm:$0xff] }
 0x31f   : > { %v7606_v30 = vpop.permute.xlu1 %1805  ;;  %v7608_v1 = vpop.permute.xlu0 %1887 }
 0x320   : > { %11155 = vst [vmem:[#allocation67_spill] sm:$0xff] %v7606_v30  ;;  %11156 = vst [vmem:[#allocation68_spill] sm:$0xff] %v7608_v1  ;;  %v11165_v1 = vld [vmem:[#allocation86_spill] sm:$0xff] }
 0x321   : > { %2081 = vrot.lane.b32.xlu1 %v11157_v39, %s5609_s27  ;;  %2083 = vrot.lane.b32.xlu0 %v11158_v3, %s5609_s27  ;;  %v11166_v39 = vld [vmem:[#allocation87_spill] sm:$0xff] }
 0x323   : > { %v7614_v58 = vpop.permute.xlu1 %1889  ;;  %v7616_v35 = vpop.permute.xlu0 %1891 }
 0x324   : > { %11159 = vst [vmem:[#allocation70_spill] sm:$0xff] %v7614_v58  ;;  %11160 = vst [vmem:[#allocation71_spill] sm:$0xff] %v7616_v35  ;;  %v11169_v35 = vld [vmem:[#allocation90_spill] sm:$0xff] }
 0x325   : > { %2085 = vrot.lane.b32.xlu1 %v11161_v42, %s5609_s27  ;;  %2095 = vrot.lane.b32.xlu0 %v11162_v62, %s5609_s27  ;;  %v11170_v42 = vld [vmem:[#allocation12_spill] sm:$0xff] }
 0x327   : > { %v7622_v27 = vpop.permute.xlu1 %1893  ;;  %v7624_v30 = vpop.permute.xlu0 %1895 }
 0x328   : > { %11163 = vst [vmem:[#allocation74_spill] sm:$0xff] %v7622_v27  ;;  %11164 = vst [vmem:[#allocation83_spill] sm:$0xff] %v7624_v30  ;;  %v11178_v27 = vld [vmem:[#allocation20_spill] sm:$0xff] }
 0x329   : > { %2097 = vrot.lane.b32.xlu1 %v11165_v1, %s5609_s27  ;;  %2099 = vrot.lane.b32.xlu0 %v11166_v39, %s5609_s27  ;;  %v11173_v1 = vld [vmem:[#allocation14_spill] sm:$0xff]  ;;  %v11174_v39 = vld [vmem:[#allocation13_spill] sm:$0xff] }
 0x32b   : > { %v7630_v3 = vpop.permute.xlu1 %1897  ;;  %v7632_v58 = vpop.permute.xlu0 %1899 }
 0x32c   : > { %11167 = vst [vmem:[#allocation86_spill] sm:$0xff] %v7630_v3  ;;  %11168 = vst [vmem:[#allocation87_spill] sm:$0xff] %v7632_v58 }
 0x32d   : > { %2101 = vrot.lane.b32.xlu1 %v11169_v35, %s5609_s27  ;;  %2207 = vrot.lane.b32.xlu0 %v11170_v42, %s5610_s25  ;;  %v11177_v35 = vld [vmem:[#allocation15_spill] sm:$0xff] }
 0x32f   : > { %v7638_v62 = vpop.permute.xlu1 %1901  ;;  %v7640_v30 = vpop.permute.xlu0 %1903 }
 0x330   : > { %11171 = vst [vmem:[#allocation90_spill] sm:$0xff] %v7638_v62  ;;  %11172 = vst [vmem:[#allocation12_spill] sm:$0xff] %v7640_v30  ;;  %v11181_v30 = vld [vmem:[#allocation21_spill] sm:$0xff] }
 0x331   : > { %2209 = vrot.lane.b32.xlu1 %v11173_v1, %s5610_s25  ;;  %2211 = vrot.lane.b32.xlu0 %v11174_v39, %s5610_s25  ;;  %v11182_v1 = vld [vmem:[#allocation22_spill] sm:$0xff] }
 0x333   : > { %v7646_v3 = vpop.permute.xlu1 %1905  ;;  %v7648_v58 = vpop.permute.xlu0 %1907 }
 0x334   : > { %11175 = vst [vmem:[#allocation14_spill] sm:$0xff] %v7646_v3  ;;  %11176 = vst [vmem:[#allocation13_spill] sm:$0xff] %v7648_v58  ;;  %v11185_v58 = vld [vmem:[#allocation23_spill] sm:$0xff] }
 0x335   : > { %2213 = vrot.lane.b32.xlu1 %v11177_v35, %s5610_s25  ;;  %2223 = vrot.lane.b32.xlu0 %v11178_v27, %s5610_s25  ;;  %v11186_v35 = vld [vmem:[#allocation75_spill] sm:$0xff] }
 0x337   : > { %v7654_v42 = vpop.permute.xlu1 %1909  ;;  %v7656_v62 = vpop.permute.xlu0 %1911 }
 0x338   : > { %11179 = vst [vmem:[#allocation15_spill] sm:$0xff] %v7654_v42  ;;  %11180 = vst [vmem:[#allocation20_spill] sm:$0xff] %v7656_v62  ;;  %v11189_v62 = vld [vmem:[#allocation78_spill] sm:$0xff] }
 0x339   : > { %2225 = vrot.lane.b32.xlu1 %v11181_v30, %s5610_s25  ;;  %2227 = vrot.lane.b32.xlu0 %v11182_v1, %s5610_s25  ;;  %v11190_v30 = vld [vmem:[#allocation91_spill] sm:$0xff] }
 0x33b   : > { %v7662_v39 = vpop.permute.xlu1 %1913  ;;  %v7664_v3 = vpop.permute.xlu0 %1915 }
 0x33c   : > { %11183 = vst [vmem:[#allocation21_spill] sm:$0xff] %v7662_v39  ;;  %11184 = vst [vmem:[#allocation22_spill] sm:$0xff] %v7664_v3  ;;  %v11193_v3 = vld [vmem:[#allocation94_spill] sm:$0xff] }
 0x33d   : > { %2229 = vrot.lane.b32.xlu1 %v11185_v58, %s5610_s25  ;;  %2087 = vrot.lane.b32.xlu0 %v11186_v35, %s5609_s27  ;;  %v11194_v58 = vld [vmem:[#allocation16_spill] sm:$0xff] }
 0x33f   : > { %v7670_v27 = vpop.permute.xlu1 %1917  ;;  %v7672_v42 = vpop.permute.xlu0 %1919 }
 0x340   : > { %11187 = vst [vmem:[#allocation23_spill] sm:$0xff] %v7670_v27  ;;  %11188 = vst [vmem:[#allocation75_spill] sm:$0xff] %v7672_v42  ;;  %v11197_v42 = vld [vmem:[#allocation17_spill] sm:$0xff] }
 0x341   : > { %2089 = vrot.lane.b32.xlu1 %v11189_v62, %s5609_s27  ;;  %2103 = vrot.lane.b32.xlu0 %v11190_v30, %s5609_s27  ;;  %v11198_v62 = vld [vmem:[#allocation24_spill] sm:$0xff] }
 0x343   : > { %v7678_v1 = vpop.permute.xlu1 %1921  ;;  %v7680_v39 = vpop.permute.xlu0 %1923 }
 0x344   : > { %11191 = vst [vmem:[#allocation78_spill] sm:$0xff] %v7678_v1  ;;  %11192 = vst [vmem:[#allocation91_spill] sm:$0xff] %v7680_v39  ;;  %v11201_v39 = vld [vmem:[#allocation25_spill] sm:$0xff] }
 0x345   : > { %2105 = vrot.lane.b32.xlu1 %v11193_v3, %s5609_s27  ;;  %2215 = vrot.lane.b32.xlu0 %v11194_v58, %s5610_s25  ;;  %v11202_v3 = vld [vmem:[#allocation79_spill] sm:$0xff] }
 0x347   : > { %v7686_v35 = vpop.permute.xlu1 %1925  ;;  %v7688_v27 = vpop.permute.xlu0 %1927 }
 0x348   : > { %11195 = vst [vmem:[#allocation94_spill] sm:$0xff] %v7686_v35  ;;  %11196 = vst [vmem:[#allocation16_spill] sm:$0xff] %v7688_v27  ;;  %v11205_v27 = vld [vmem:[#allocation82_spill] sm:$0xff] }
 0x349   : > { %2217 = vrot.lane.b32.xlu1 %v11197_v42, %s5610_s25  ;;  %2231 = vrot.lane.b32.xlu0 %v11198_v62, %s5610_s25  ;;  %v11206_v42 = vld [vmem:[#allocation95_spill] sm:$0xff] }
 0x34b   : > { %v7694_v30 = vpop.permute.xlu1 %1929  ;;  %v7696_v1 = vpop.permute.xlu0 %1931 }
 0x34c   : > { %11199 = vst [vmem:[#allocation17_spill] sm:$0xff] %v7694_v30  ;;  %11200 = vst [vmem:[#allocation24_spill] sm:$0xff] %v7696_v1  ;;  %v11209_v1 = vld [vmem:[#allocation98_spill] sm:$0xff] }
 0x34d   : > { %2233 = vrot.lane.b32.xlu1 %v11201_v39, %s5610_s25  ;;  %2091 = vrot.lane.b32.xlu0 %v11202_v3, %s5609_s27  ;;  %v11210_v39 = vld [vmem:[#allocation18_spill] sm:$0xff] }
 0x34f   : > { %v7702_v58 = vpop.permute.xlu1 %1933  ;;  %v7704_v35 = vpop.permute.xlu0 %1935 }
 0x350   : > { %11203 = vst [vmem:[#allocation25_spill] sm:$0xff] %v7702_v58  ;;  %11204 = vst [vmem:[#allocation79_spill] sm:$0xff] %v7704_v35  ;;  %v11213_v35 = vld [vmem:[#allocation19_spill] sm:$0xff] }
 0x351   : > { %2093 = vrot.lane.b32.xlu1 %v11205_v27, %s5609_s27  ;;  %2107 = vrot.lane.b32.xlu0 %v11206_v42, %s5609_s27  ;;  %v11214_v27 = vld [vmem:[#allocation26_spill] sm:$0xff] }
 0x353   : > { %v7710_v62 = vpop.permute.xlu1 %1937  ;;  %v7712_v30 = vpop.permute.xlu0 %1939 }
 0x354   : > { %11207 = vst [vmem:[#allocation82_spill] sm:$0xff] %v7710_v62  ;;  %11208 = vst [vmem:[#allocation95_spill] sm:$0xff] %v7712_v30  ;;  %v11217_v30 = vld [vmem:[#allocation27_spill] sm:$0xff] }
 0x355   : > { %2109 = vrot.lane.b32.xlu1 %v11209_v1, %s5609_s27  ;;  %2219 = vrot.lane.b32.xlu0 %v11210_v39, %s5610_s25  ;;  %v11218_v1 = vld [vmem:[#allocation28_spill] sm:$0xff] }
 0x357   : > { %v7718_v3 = vpop.permute.xlu1 %1941  ;;  %v7720_v58 = vpop.permute.xlu0 %1943 }
 0x358   : > { %11211 = vst [vmem:[#allocation98_spill] sm:$0xff] %v7718_v3  ;;  %11212 = vst [vmem:[#allocation18_spill] sm:$0xff] %v7720_v58  ;;  %v11221_v58 = vld [vmem:[#allocation29_spill] sm:$0xff] }
 0x359   : > { %2221 = vrot.lane.b32.xlu1 %v11213_v35, %s5610_s25  ;;  %2235 = vrot.lane.b32.xlu0 %v11214_v27, %s5610_s25  ;;  %v11222_v35 = vld [vmem:[#allocation30_spill] sm:$0xff] }
 0x35b   : > { %v7726_v42 = vpop.permute.xlu1 %1945  ;;  %v7728_v62 = vpop.permute.xlu0 %1947 }
 0x35c   : > { %11215 = vst [vmem:[#allocation19_spill] sm:$0xff] %v7726_v42  ;;  %11216 = vst [vmem:[#allocation26_spill] sm:$0xff] %v7728_v62  ;;  %v11225_v62 = vld [vmem:[#allocation31_spill] sm:$0xff] }
 0x35d   : > { %2237 = vrot.lane.b32.xlu1 %v11217_v30, %s5610_s25  ;;  %2239 = vrot.lane.b32.xlu0 %v11218_v1, %s5610_s25  ;;  %v11226_v30 = vld [vmem:[#allocation36_spill] sm:$0xff] }
 0x35f   : > { %v7734_v39 = vpop.permute.xlu1 %1949  ;;  %v7736_v3 = vpop.permute.xlu0 %1951 }
 0x360   : > { %11219 = vst [vmem:[#allocation27_spill] sm:$0xff] %v7734_v39  ;;  %11220 = vst [vmem:[#allocation28_spill] sm:$0xff] %v7736_v3  ;;  %v11229_v3 = vld [vmem:[#allocation37_spill] sm:$0xff] }
 0x361   : > { %2241 = vrot.lane.b32.xlu1 %v11221_v58, %s5610_s25  ;;  %2243 = vrot.lane.b32.xlu0 %v11222_v35, %s5610_s25  ;;  %v11230_v58 = vld [vmem:[#allocation38_spill] sm:$0xff]  ;;  %v11231_v35 = vld [vmem:[#allocation11_spill] sm:$0xff] }
 0x363   : > { %v7742_v27 = vpop.permute.xlu1 %1953  ;;  %v7744_v42 = vpop.permute.xlu0 %1955 }
 0x364   : > { %11223 = vst [vmem:[#allocation29_spill] sm:$0xff] %v7742_v27  ;;  %11224 = vst [vmem:[#allocation30_spill] sm:$0xff] %v7744_v42  ;;  %v7759_v27 = vmul.f32 0.0010283801, %v11231_v35 }
 0x365   : > { %2245 = vrot.lane.b32.xlu1 %v11225_v62, %s5610_s25  ;;  %2255 = vrot.lane.b32.xlu0 %v11226_v30, %s5610_s25  ;;  %v11234_v62 = vld [vmem:[#allocation39_spill] sm:$0xff]  ;;  %v7770_v30 = vmul.f32 0.0010283801, %v5913_v52 }
 0x367   : > { %v7750_v1 = vpop.permute.xlu1 %1957  ;;  %v7752_v39 = vpop.permute.xlu0 %1959 }
 0x368   : > { %11227 = vst [vmem:[#allocation31_spill] sm:$0xff] %v7750_v1  ;;  %11228 = vst [vmem:[#allocation36_spill] sm:$0xff] %v7752_v39  ;;  %v7833_v39 = vmul.f32 0.0010283801, %v5949_v4  ;;  %v7836_v1 = vmul.f32 0.0010283801, %v5952_v5 }
 0x369   : > { %2257 = vrot.lane.b32.xlu1 %v11229_v3, %s5610_s25  ;;  %2259 = vrot.lane.b32.xlu0 %v11230_v58, %s5610_s25  ;;  %v7773_v3 = vmul.f32 0.0010283801, %v5900_v45  ;;  %v7854_v4 = vmul.f32 0.0010283801, %v6042_v48  ;;  %v7857_v5 = vmul.f32 0.0010283801, %v6057_v63 }
 0x36a   : > { %v7875_v48 = vmul.f32 0.0010283801, %v6096_v32  ;;  %v7878_v63 = vmul.f32 0.0010283801, %v6111_v50  ;;  %v7897_v32 = vmul.f32 0.0010283801, %v6150_v2 }
 0x36b   : > { %v7761_v42 = vpop.permute.xlu1 %1961  ;;  %v7763_v6 = vpop.permute.xlu0 %1963  ;;  %11250 = vst [vmem:[#allocation323_spill] sm:$0xff] %v7857_v5  ;;  %v7900_v50 = vmul.f32 0.0010283801, %v6165_v40  ;;  %v7917_v2 = vmul.f32 0.0010283801, %v6204_v26  ;;  %v729_v26 = vadd.f32 %v11277_v10, %v7773_v3  ;;  %v11284_v10 = vld [vmem:[#allocation84_spill] sm:$0xff] }
 0x36c   : > { %11232 = vst [vmem:[#allocation37_spill] sm:$0xff] %v7761_v42  ;;  %11233 = vst [vmem:[#allocation38_spill] sm:$0xff] %v7763_v6  ;;  %v7787_v6 = vmul.f32 0.0010283801, %v5967_v12  ;;  %v11246_v42 = vld [vmem:[#allocation33_spill] sm:$0xff] }
 0x36d   : > { %2261 = vrot.lane.b32.xlu1 %v11234_v62, %s5610_s25  ;;  %2407 = vrot.lane.b32.xlu0 %v7759_v27, %s5611_s7  ;;  %v7784_v62 = vmul.f32 0.0010283801, %v5916_v53  ;;  %11256 = vst [vmem:[#allocation327_spill] sm:$0xff] %v7875_v48  ;;  %11257 = vst [vmem:[#allocation328_spill] sm:$0xff] %v7878_v63  ;;  %v7920_v40 = vmul.f32 0.0010283801, %v6219_v17 }
 0x36e   : > { %11264 = vst [vmem:[#allocation335_spill] sm:$0xff] %v7897_v32  ;;  %11265 = vst [vmem:[#allocation336_spill] sm:$0xff] %v7900_v50 }
 0x36f   : > { %v7775_v58 = vpop.permute.xlu1 %1965  ;;  %v7777_v35 = vpop.permute.xlu0 %2047  ;;  %11270 = vst [vmem:[#allocation341_spill] sm:$0xff] %v7917_v2  ;;  %11271 = vst [vmem:[#allocation342_spill] sm:$0xff] %v7920_v40  ;;  %v730_v17 = vadd.f32 %v11278_v49, %v7784_v62  ;;  %v11285_v49 = vld [vmem:[#allocation85_spill] sm:$0xff] }
 0x370   : > { %11235 = vst [vmem:[#allocation11_spill] sm:$0xff] %v7775_v58  ;;  %11236 = vst [vmem:[#allocation39_spill] sm:$0xff] %v7777_v35  ;;  %v7798_v35 = vmul.f32 0.0010283801, %v5970_v13  ;;  %v7801_v58 = vmul.f32 0.0010283801, %v5985_v20 }
 0x371   : > { %2409 = vrot.lane.b32.xlu1 %v7770_v30, %s5611_s7  ;;  %2411 = vrot.lane.b32.xlu0 %v7773_v3, %s5611_s7  ;;  %v11243_v20 = vld [vmem:[#allocation32_spill] sm:$0xff]  ;;  %v735_v3 = vadd.f32 %v11285_v49, %v7787_v6  ;;  %v11295_v49 = vld [vmem:[#allocation101_spill] sm:$0xff] }
 0x373   : > { %v7789_v52 = vpop.permute.xlu1 %2049  ;;  %v7791_v45 = vpop.permute.xlu0 %2051 }
 0x374   : > { %11237 = vst [vmem:[#allocation316_spill] sm:$0xff] %v7789_v52  ;;  %11238 = vst [vmem:[#allocation317_spill] sm:$0xff] %v7791_v45  ;;  %v7812_v45 = vmul.f32 0.0010283801, %v5988_v21  ;;  %v11247_v21 = vld [vmem:[#allocation40_spill] sm:$0xff] }
 0x375   : > { %2413 = vrot.lane.b32.xlu1 %v7784_v62, %s5611_s7  ;;  %2423 = vrot.lane.b32.xlu0 %v7787_v6, %s5611_s7  ;;  %v11294_v6 = vld [vmem:[#allocation100_spill] sm:$0xff] }
 0x377   : > { %v7803_v53 = vpop.permute.xlu1 %2053  ;;  %v7805_v12 = vpop.permute.xlu0 %2063 }
 0x378   : > { %11239 = vst [vmem:[#allocation318_spill] sm:$0xff] %v7803_v53  ;;  %11240 = vst [vmem:[#allocation319_spill] sm:$0xff] %v7805_v12 }
 0x379   : > { %2425 = vrot.lane.b32.xlu1 %v7798_v35, %s5611_s7  ;;  %2427 = vrot.lane.b32.xlu0 %v7801_v58, %s5611_s7 }
 0x37b   : > { %v7814_v52 = vpop.permute.xlu1 %2065  ;;  %v7816_v13 = vpop.permute.xlu0 %2067 }
 0x37c   : > { %11241 = vst [vmem:[#allocation320_spill] sm:$0xff] %v7814_v52  ;;  %11242 = vst [vmem:[#allocation321_spill] sm:$0xff] %v7816_v13  ;;  %v491_v52 = vmul.f32 0.0010283801, %v5931_v60  ;;  %v492_v13 = vmul.f32 0.0010283801, %v5934_v61 }
 0x37d   : > { %2429 = vrot.lane.b32.xlu1 %v7812_v45, %s5611_s7  ;;  %2247 = vrot.lane.b32.xlu0 %v11243_v20, %s5610_s25  ;;  %v499_v20 = vmul.f32 0.0010283801, %v6003_v28  ;;  %v7848_v60 = vmul.f32 0.0010283801, %v6024_v37  ;;  %v7851_v61 = vmul.f32 0.0010283801, %v6039_v47 }
 0x37e   : > { %v7860_v28 = vmul.f32 0.0010283801, %v6060_v0  ;;  %v7869_v37 = vmul.f32 0.0010283801, %v6078_v16  ;;  %v7872_v47 = vmul.f32 0.0010283801, %v6093_v31  ;;  %v731_v43 = vadd.f32 %v11279_v41, %v491_v52 }
 0x37f   : > { %v7822_v12 = vpop.permute.xlu1 %2069  ;;  %v7824_v53 = vpop.permute.xlu0 %2055  ;;  %v7881_v0 = vmul.f32 0.0010283801, %v6114_v55  ;;  %v7891_v16 = vmul.f32 0.0010283801, %v6132_v23  ;;  %v7894_v31 = vmul.f32 0.0010283801, %v6147_v57 }
 0x380   : > { %11244 = vst [vmem:[#allocation32_spill] sm:$0xff] %v7822_v12  ;;  %11245 = vst [vmem:[#allocation322_spill] sm:$0xff] %v7824_v53  ;;  %v500_v53 = vmul.f32 0.0010283801, %v6006_v29  ;;  %v11252_v29 = vld [vmem:[#allocation41_spill] sm:$0xff]  ;;  %v11286_v41 = vld [vmem:[#allocation88_spill] sm:$0xff] }
 0x381   : > { %2249 = vrot.lane.b32.xlu1 %v11246_v42, %s5610_s25  ;;  %2263 = vrot.lane.b32.xlu0 %v11247_v21, %s5610_s25  ;;  %v7845_v21 = vmul.f32 0.0010283801, %v6021_v36  ;;  %11251 = vst [vmem:[#allocation324_spill] sm:$0xff] %v7860_v28  ;;  %v7866_v36 = vmul.f32 0.0010283801, %v6075_v15  ;;  %11254 = vst [vmem:[#allocation325_spill] sm:$0xff] %v7869_v37  ;;  %v736_v62 = vadd.f32 %v11286_v41, %v7798_v35 }
 0x382   : > { %11255 = vst [vmem:[#allocation326_spill] sm:$0xff] %v7872_v47  ;;  %11258 = vst [vmem:[#allocation329_spill] sm:$0xff] %v7881_v0  ;;  %v7888_v15 = vmul.f32 0.0010283801, %v6129_v18  ;;  %v7903_v55 = vmul.f32 0.0010283801, %v6168_v33  ;;  %v742_v35 = vadd.f32 %v11294_v6, %v7848_v60 }
 0x383   : > { %v7840_v12 = vpop.permute.xlu1 %2057  ;;  %v7842_v42 = vpop.permute.xlu0 %2071  ;;  %11253 = vst [vmem:[#allocation41_spill] sm:$0xff] %v7866_v36  ;;  %11262 = vst [vmem:[#allocation333_spill] sm:$0xff] %v7891_v16  ;;  %v7908_v18 = vmul.f32 0.0010283801, %v6183_v34  ;;  %v7911_v23 = vmul.f32 0.0010283801, %v6186_v7 }
 0x384   : > { %11248 = vst [vmem:[#allocation33_spill] sm:$0xff] %v7840_v12  ;;  %11249 = vst [vmem:[#allocation40_spill] sm:$0xff] %v7842_v42  ;;  %v7914_v57 = vmul.f32 0.0010283801, %v6201_v25  ;;  %v7923_v33 = vmul.f32 0.0010283801, %v6222_v24 }
 0x385   : > { %2265 = vrot.lane.b32.xlu1 %v11252_v29, %s5610_s25  ;;  %2415 = vrot.lane.b32.xlu0 %v491_v52, %s5611_s7  ;;  %11261 = vst [vmem:[#allocation332_spill] sm:$0xff] %v7888_v15  ;;  %11263 = vst [vmem:[#allocation334_spill] sm:$0xff] %v7894_v31  ;;  %v11275_v34 = vld [vmem:[#allocation69_spill] sm:$0xff]  ;;  %v11276_v12 = vld [vmem:[#allocation72_spill] sm:$0xff]  ;;  %v7980_v6 = vmul.f32 0.0010283801, %v6240_v56 }
 0x386   : > { %11266 = vst [vmem:[#allocation337_spill] sm:$0xff] %v7903_v55  ;;  %11267 = vst [vmem:[#allocation338_spill] sm:$0xff] %v7908_v18  ;;  %v727_v7 = vadd.f32 %v11275_v34, %v7759_v27  ;;  %v728_v25 = vadd.f32 %v11276_v12, %v7770_v30  ;;  %v11280_v24 = vld [vmem:[#allocation80_spill] sm:$0xff]  ;;  %v11283_v27 = vld [vmem:[#allocation34_spill] sm:$0xff]  ;;  %v734_v30 = vadd.f32 %v11284_v10, %v7836_v1 }
 0x387   : > { %v7883_v29 = vpop.permute.xlu1 %2073  ;;  %v7885_v42 = vpop.permute.xlu0 %2059  ;;  %11268 = vst [vmem:[#allocation339_spill] sm:$0xff] %v7911_v23  ;;  %11269 = vst [vmem:[#allocation340_spill] sm:$0xff] %v7914_v57  ;;  %v732_v8 = vadd.f32 %v11280_v24, %v492_v13  ;;  %v11287_v52 = vld [vmem:[#allocation89_spill] sm:$0xff]  ;;  %v11290_v24 = vld [vmem:[#allocation96_spill] sm:$0xff] }
 0x388   : > { %11259 = vst [vmem:[#allocation330_spill] sm:$0xff] %v7883_v29  ;;  %11260 = vst [vmem:[#allocation331_spill] sm:$0xff] %v7885_v42  ;;  %v737_v12 = vadd.f32 %v11287_v52, %v7801_v58  ;;  %v740_v54 = vadd.f32 %v11290_v24, %v500_v53  ;;  %v743_v58 = vadd.f32 %v11295_v49, %v7851_v61  ;;  %v11296_v41 = vld [vmem:[#allocation104_spill] sm:$0xff]  ;;  %v11302_v49 = vld [vmem:[#allocation35_spill] sm:$0xff] }
 0x389   : > { %2417 = vrot.lane.b32.xlu1 %v492_v13, %s5611_s7  ;;  %2431 = vrot.lane.b32.xlu0 %v499_v20, %s5611_s7  ;;  %11272 = vst [vmem:[#allocation343_spill] sm:$0xff] %v7923_v33  ;;  %11301 = vst [vmem:[#allocation76_spill] sm:$0xff] %v7980_v6  ;;  %v11308_v56 = vld [vmem:[#allocation121_spill] sm:$0xff] }
 0x38a   : > { %v753_v22 = vadd.f32 %v11308_v56, %v7888_v15  ;;  %v11316_v56 = vld [vmem:[#allocation133_spill] sm:$0xff] }
 0x38b   : > { %v7925_v42 = vpop.permute.xlu1 %2061  ;;  %v7927_v29 = vpop.permute.xlu0 %2075  ;;  %v759_v15 = vadd.f32 %v11316_v56, %v7908_v18  ;;  %v11325_v18 = vld [vmem:[#allocation149_spill] sm:$0xff] }
 0x38c   : > { %11273 = vst [vmem:[#allocation344_spill] sm:$0xff] %v7925_v42  ;;  %11274 = vst [vmem:[#allocation345_spill] sm:$0xff] %v7927_v29  ;;  %v11281_v42 = vld [vmem:[#allocation81_spill] sm:$0xff]  ;;  %v7942_v29 = vmul.f32 0.0010283801, %v6237_v9  ;;  %v11288_v9 = vld [vmem:[#allocation92_spill] sm:$0xff] }
 0x38d   : > { %v733_v38 = vadd.f32 %v11281_v42, %v7833_v39  ;;  %2433 = vrot.lane.b32.xlu1 %v500_v53, %s5611_s7  ;;  %2251 = vrot.lane.b32.xlu0 %v11283_v27, %s5610_s25  ;;  %v738_v13 = vadd.f32 %v11288_v9, %v7812_v45  ;;  %v11289_v42 = vld [vmem:[#allocation93_spill] sm:$0xff]  ;;  %v744_v45 = vadd.f32 %v11296_v41, %v7854_v4  ;;  %v11298_v53 = vld [vmem:[#allocation108_spill] sm:$0xff]  ;;  %v11303_v41 = vld [vmem:[#allocation42_spill] sm:$0xff] }
 0x38e   : > { %11282 = vst [vmem:[#allocation69_spill] sm:$0xff] %v7942_v29  ;;  %v739_v34 = vadd.f32 %v11289_v42, %v499_v20  ;;  %v11291_v27 = vld [vmem:[#allocation97_spill] sm:$0xff]  ;;  %v746_v9 = vadd.f32 %v11298_v53, %v7860_v28  ;;  %v11305_v53 = vld [vmem:[#allocation116_spill] sm:$0xff] }
 0x38f   : > { %v741_v11 = vadd.f32 %v11291_v27, %v7845_v21  ;;  %v7961_v10 = vpop.permute.xlu1 %2077  ;;  %v7963_v46 = vpop.permute.xlu0 %2079  ;;  %v11297_v20 = vld [vmem:[#allocation105_spill] sm:$0xff]  ;;  %v11300_v27 = vld [vmem:[#allocation112_spill] sm:$0xff]  ;;  %v750_v19 = vadd.f32 %v11305_v53, %v7875_v48 }
 0x390   : > { %11292 = vst [vmem:[#allocation72_spill] sm:$0xff] %v7961_v10  ;;  %11293 = vst [vmem:[#allocation73_spill] sm:$0xff] %v7963_v46  ;;  %v745_v52 = vadd.f32 %v11297_v20, %v7857_v5  ;;  %v11299_v42 = vld [vmem:[#allocation109_spill] sm:$0xff]  ;;  %v748_v46 = vadd.f32 %v11300_v27, %v7869_v37  ;;  %v11307_v27 = vld [vmem:[#allocation120_spill] sm:$0xff] }
 0x391   : > { %v747_v24 = vadd.f32 %v11299_v42, %v7866_v36  ;;  %2253 = vrot.lane.b32.xlu1 %v11302_v49, %s5610_s25  ;;  %2267 = vrot.lane.b32.xlu0 %v11303_v41, %s5610_s25  ;;  %v11304_v20 = vld [vmem:[#allocation113_spill] sm:$0xff]  ;;  %v752_v59 = vadd.f32 %v11307_v27, %v7881_v0  ;;  %v11309_v49 = vld [vmem:[#allocation124_spill] sm:$0xff] }
 0x392   : > { %v749_v10 = vadd.f32 %v11304_v20, %v7872_v47  ;;  %v11306_v42 = vld [vmem:[#allocation117_spill] sm:$0xff]  ;;  %v754_v37 = vadd.f32 %v11309_v49, %v7891_v16  ;;  %v11311_v20 = vld [vmem:[#allocation128_spill] sm:$0xff] }
 0x393   : > { %v751_v14 = vadd.f32 %v11306_v42, %v7878_v63  ;;  %v11310_v41 = vld [vmem:[#allocation125_spill] sm:$0xff]  ;;  %v756_v47 = vadd.f32 %v11311_v20, %v7897_v32  ;;  %v8002_v51 = vpop.permute.xlu1 %2081  ;;  %v8004_v53 = vpop.permute.xlu0 %2083  ;;  %v11315_v27 = vld [vmem:[#allocation132_spill] sm:$0xff] }
 0x394   : > { %v755_v44 = vadd.f32 %v11310_v41, %v7894_v31  ;;  %11312 = vst [vmem:[#allocation77_spill] sm:$0xff] %v8002_v51  ;;  %11313 = vst [vmem:[#allocation80_spill] sm:$0xff] %v8004_v53  ;;  %v11314_v42 = vld [vmem:[#allocation129_spill] sm:$0xff]  ;;  %v758_v36 = vadd.f32 %v11315_v27, %v7903_v55  ;;  %v11317_v49 = vld [vmem:[#allocation136_spill] sm:$0xff] }
 0x395   : > { %v757_v48 = vadd.f32 %v11314_v42, %v7900_v50  ;;  %v760_v16 = vadd.f32 %v11317_v49, %v7911_v23  ;;  %v11318_v41 = vld [vmem:[#allocation137_spill] sm:$0xff]  ;;  %v11319_v20 = vld [vmem:[#allocation140_spill] sm:$0xff]  ;;  %v11321_v42 = vld [vmem:[#allocation43_spill] sm:$0xff]  ;;  %2419 = vrot.lane.b32.xlu0 %v7833_v39, %s5611_s7 }
 0x396   : > { %v761_v31 = vadd.f32 %v11318_v41, %v7914_v57  ;;  %v762_v51 = vadd.f32 %v11319_v20, %v7917_v2  ;;  %v11320_v53 = vld [vmem:[#allocation141_spill] sm:$0xff]  ;;  %2269 = vrot.lane.b32.xlu1 %v11321_v42, %s5610_s25  ;;  %v11322_v27 = vld [vmem:[#allocation144_spill] sm:$0xff]  ;;  %v967_v20 = vadd.f32 %v11325_v18, %v727_v7 }
 0x397   : > { %v763_v32 = vadd.f32 %v11320_v53, %v7920_v40  ;;  %v764_v56 = vadd.f32 %v11322_v27, %v7923_v33  ;;  %v11323_v49 = vld [vmem:[#allocation145_spill] sm:$0xff]  ;;  %v11324_v41 = vld [vmem:[#allocation148_spill] sm:$0xff]  ;;  %v8035_v39 = vpop.permute.xlu1 %2085  ;;  %v8037_v28 = vpop.permute.xlu0 %2095 }
 0x398   : > { %v765_v23 = vadd.f32 %v11323_v49, %v7942_v29  ;;  %v766_v57 = vadd.f32 %v11324_v41, %v7980_v6  ;;  %v11326_v2 = vld [vmem:[#allocation152_spill] sm:$0xff]  ;;  %v11327_v53 = vld [vmem:[#allocation153_spill] sm:$0xff] }
 0x399   : > { %v968_v55 = vadd.f32 %v11326_v2, %v728_v25  ;;  %v969_v40 = vadd.f32 %v11327_v53, %v729_v26  ;;  %v11328_v50 = vld [vmem:[#allocation156_spill] sm:$0xff]  ;;  %v11329_v0 = vld [vmem:[#allocation157_spill] sm:$0xff]  ;;  %2435 = vrot.lane.b32.xlu0 %v7845_v21, %s5611_s7 }
 0x39a   : > { %v970_v42 = vadd.f32 %v11328_v50, %v730_v17  ;;  %v971_v63 = vadd.f32 %v11329_v0, %v731_v43  ;;  %v11330_v27 = vld [vmem:[#allocation160_spill] sm:$0xff]  ;;  %v11331_v49 = vld [vmem:[#allocation161_spill] sm:$0xff]  ;;  %2421 = vrot.lane.b32.xlu1 %v7836_v1, %s5611_s7 }
 0x39b   : > { %v972_v33 = vadd.f32 %v11330_v27, %v732_v8  ;;  %v973_v29 = vadd.f32 %v11331_v49, %v733_v38  ;;  %v11332_v5 = vld [vmem:[#allocation164_spill] sm:$0xff]  ;;  %v11333_v6 = vld [vmem:[#allocation165_spill] sm:$0xff]  ;;  %v8058_v1 = vpop.permute.xlu1 %2097 }
 0x39c   : > { %v974_v41 = vadd.f32 %v11332_v5, %v734_v30  ;;  %v975_v18 = vadd.f32 %v11333_v6, %v735_v3  ;;  %v11334_v7 = vld [vmem:[#allocation168_spill] sm:$0xff]  ;;  %v11335_v25 = vld [vmem:[#allocation169_spill] sm:$0xff] }
 0x39d   : > { %v976_v2 = vadd.f32 %v11334_v7, %v736_v62  ;;  %v977_v26 = vadd.f32 %v11335_v25, %v737_v12  ;;  %v11336_v53 = vld [vmem:[#allocation172_spill] sm:$0xff]  ;;  %v11337_v43 = vld [vmem:[#allocation173_spill] sm:$0xff]  ;;  %2439 = vrot.lane.b32.xlu0 %v7851_v61, %s5611_s7  ;;  %v11361_v61 = vld [vmem:[#allocation207_spill] sm:$0xff] }
 0x39e   : > { %v978_v50 = vadd.f32 %v11336_v53, %v738_v13  ;;  %v979_v8 = vadd.f32 %v11337_v43, %v739_v34  ;;  %v11338_v0 = vld [vmem:[#allocation176_spill] sm:$0xff]  ;;  %v11339_v17 = vld [vmem:[#allocation177_spill] sm:$0xff]  ;;  %v8060_v53 = vpop.permute.xlu0 %2099  ;;  %2437 = vrot.lane.b32.xlu1 %v7848_v60, %s5611_s7 }
 0x39f   : > { %v980_v38 = vadd.f32 %v11338_v0, %v740_v54  ;;  %v981_v5 = vadd.f32 %v11339_v17, %v741_v11  ;;  %v11340_v30 = vld [vmem:[#allocation180_spill] sm:$0xff]  ;;  %v11341_v6 = vld [vmem:[#allocation181_spill] sm:$0xff]  ;;  %v11348_v17 = vld [vmem:[#allocation195_spill] sm:$0xff]  ;;  %v8081_v60 = vpop.permute.xlu1 %2101 }
 0x3a0   : > { %v982_v3 = vadd.f32 %v11340_v30, %v742_v35  ;;  %v983_v62 = vadd.f32 %v11341_v6, %v743_v58  ;;  %v11342_v27 = vld [vmem:[#allocation184_spill] sm:$0xff]  ;;  %v11343_v49 = vld [vmem:[#allocation185_spill] sm:$0xff]  ;;  %v990_v35 = vadd.f32 %v11348_v17, %v750_v19 }
 0x3a1   : > { %v984_v12 = vadd.f32 %v11342_v27, %v744_v45  ;;  %v985_v13 = vadd.f32 %v11343_v49, %v745_v52  ;;  %v11344_v7 = vld [vmem:[#allocation188_spill] sm:$0xff]  ;;  %v11345_v21 = vld [vmem:[#allocation189_spill] sm:$0xff]  ;;  %v11351_v27 = vld [vmem:[#allocation198_spill] sm:$0xff] }
 0x3a2   : > { %v986_v25 = vadd.f32 %v11344_v7, %v746_v9  ;;  %v987_v34 = vadd.f32 %v11345_v21, %v747_v24  ;;  %v11346_v43 = vld [vmem:[#allocation192_spill] sm:$0xff]  ;;  %v11347_v0 = vld [vmem:[#allocation193_spill] sm:$0xff]  ;;  %v993_v52 = vadd.f32 %v11351_v27, %v753_v22  ;;  %v11352_v9 = vld [vmem:[#allocation199_spill] sm:$0xff]  ;;  %v8083_v27 = vpop.permute.xlu0 %2207  ;;  %2441 = vrot.lane.b32.xlu1 %v7854_v4, %s5611_s7 }
 0x3a3   : > { %v988_v54 = vadd.f32 %v11346_v43, %v748_v46  ;;  %v989_v11 = vadd.f32 %v11347_v0, %v749_v10  ;;  %v11349_v30 = vld [vmem:[#allocation196_spill] sm:$0xff]  ;;  %v11350_v6 = vld [vmem:[#allocation197_spill] sm:$0xff]  ;;  %v994_v24 = vadd.f32 %v11352_v9, %v754_v37  ;;  %v11355_v21 = vld [vmem:[#allocation202_spill] sm:$0xff]  ;;  %11360 = vst [vmem:[#allocation81_spill] sm:$0xff] %v8083_v27  ;;  %v1002_v37 = vadd.f32 %v11361_v61, %v762_v51  ;;  %v8104_v4 = vpop.permute.xlu1 %2209 }
 0x3a4   : > { %v991_v58 = vadd.f32 %v11349_v30, %v751_v14  ;;  %v992_v45 = vadd.f32 %v11350_v6, %v752_v59  ;;  %v11353_v49 = vld [vmem:[#allocation200_spill] sm:$0xff]  ;;  %v11354_v7 = vld [vmem:[#allocation201_spill] sm:$0xff]  ;;  %v997_v19 = vadd.f32 %v11355_v21, %v757_v48  ;;  %v11356_v43 = vld [vmem:[#allocation203_spill] sm:$0xff]  ;;  %11377 = vst [vmem:[#allocation34_spill] sm:$0xff] %v8104_v4 }
 0x3a5   : > { %v995_v46 = vadd.f32 %v11353_v49, %v755_v44  ;;  %v996_v10 = vadd.f32 %v11354_v7, %v756_v47  ;;  %v998_v14 = vadd.f32 %v11356_v43, %v758_v36  ;;  %v11357_v0 = vld [vmem:[#allocation204_spill] sm:$0xff]  ;;  %v11358_v17 = vld [vmem:[#allocation205_spill] sm:$0xff]  ;;  %v11359_v30 = vld [vmem:[#allocation206_spill] sm:$0xff] }
 0x3a6   : > { %v999_v59 = vadd.f32 %v11357_v0, %v759_v15  ;;  %v1000_v22 = vadd.f32 %v11358_v17, %v760_v16  ;;  %v1001_v6 = vadd.f32 %v11359_v30, %v761_v31  ;;  %v11362_v9 = vld [vmem:[#allocation208_spill] sm:$0xff]  ;;  %v11363_v49 = vld [vmem:[#allocation209_spill] sm:$0xff]  ;;  %v11364_v7 = vld [vmem:[#allocation210_spill] sm:$0xff]  ;;  %v8106_v27 = vpop.permute.xlu0 %2211 }
 0x3a7   : > { %v1003_v44 = vadd.f32 %v11362_v9, %v763_v32  ;;  %v1004_v47 = vadd.f32 %v11363_v49, %v764_v56  ;;  %v1005_v48 = vadd.f32 %v11364_v7, %v765_v23  ;;  %v11365_v21 = vld [vmem:[#allocation211_spill] sm:$0xff]  ;;  %v11366_v43 = vld [vmem:[#allocation212_spill] sm:$0xff]  ;;  %11378 = vst [vmem:[#allocation84_spill] sm:$0xff] %v8106_v27 }
 0x3a8   : > { %v1006_v36 = vadd.f32 %v11365_v21, %v766_v57  ;;  %v1207_v15 = vadd.f32 %v11366_v43, %v967_v20  ;;  %v11367_v0 = vld [vmem:[#allocation215_spill] sm:$0xff]  ;;  %v11369_v17 = vld [vmem:[#allocation216_spill] sm:$0xff] }
 0x3a9   : > { %v1208_v16 = vadd.f32 %v11367_v0, %v968_v55  ;;  %v11368_v31 = vld [vmem:[#allocation323_spill] sm:$0xff]  ;;  %v1209_v51 = vadd.f32 %v11369_v17, %v969_v40  ;;  %v11371_v61 = vld [vmem:[#allocation220_spill] sm:$0xff] }
 0x3aa   : > { %2443 = vrot.lane.b32.xlu0 %v11368_v31, %s5611_s7  ;;  %v11370_v30 = vld [vmem:[#allocation219_spill] sm:$0xff]  ;;  %v1211_v56 = vadd.f32 %v11371_v61, %v971_v63  ;;  %v11373_v49 = vld [vmem:[#allocation224_spill] sm:$0xff]  ;;  %v8129_v4 = vpop.permute.xlu0 %2223 }
 0x3ab   : > { %v1210_v32 = vadd.f32 %v11370_v30, %v970_v42  ;;  %v11372_v9 = vld [vmem:[#allocation223_spill] sm:$0xff]  ;;  %v1213_v57 = vadd.f32 %v11373_v49, %v973_v29  ;;  %v11375_v21 = vld [vmem:[#allocation228_spill] sm:$0xff]  ;;  %11397 = vst [vmem:[#allocation88_spill] sm:$0xff] %v8129_v4 }
 0x3ac   : > { %v1212_v23 = vadd.f32 %v11372_v9, %v972_v33  ;;  %v11374_v7 = vld [vmem:[#allocation227_spill] sm:$0xff]  ;;  %v1215_v55 = vadd.f32 %v11375_v21, %v975_v18  ;;  %v11379_v31 = vld [vmem:[#allocation232_spill] sm:$0xff] }
 0x3ad   : > { %v1214_v20 = vadd.f32 %v11374_v7, %v974_v41  ;;  %v11376_v43 = vld [vmem:[#allocation231_spill] sm:$0xff]  ;;  %v1217_v40 = vadd.f32 %v11379_v31, %v977_v26  ;;  %v11381_v30 = vld [vmem:[#allocation236_spill] sm:$0xff] }
 0x3ae   : > { %v1216_v0 = vadd.f32 %v11376_v43, %v976_v2  ;;  %v11380_v17 = vld [vmem:[#allocation235_spill] sm:$0xff]  ;;  %v1219_v63 = vadd.f32 %v11381_v30, %v979_v8  ;;  %v11383_v9 = vld [vmem:[#allocation240_spill] sm:$0xff] }
 0x3af   : > { %v1218_v42 = vadd.f32 %v11380_v17, %v978_v50  ;;  %v11382_v61 = vld [vmem:[#allocation239_spill] sm:$0xff]  ;;  %v1221_v29 = vadd.f32 %v11383_v9, %v981_v5  ;;  %v11385_v7 = vld [vmem:[#allocation244_spill] sm:$0xff] }
 0x3b0   : > { %v1220_v33 = vadd.f32 %v11382_v61, %v980_v38  ;;  %v11384_v49 = vld [vmem:[#allocation243_spill] sm:$0xff]  ;;  %v1223_v18 = vadd.f32 %v11385_v7, %v983_v62  ;;  %v11386_v2 = vld [vmem:[#allocation324_spill] sm:$0xff] }
 0x3b1   : > { %v1222_v41 = vadd.f32 %v11384_v49, %v982_v3  ;;  %2445 = vrot.lane.b32.xlu1 %v11386_v2, %s5611_s7  ;;  %v11387_v21 = vld [vmem:[#allocation328_spill] sm:$0xff]  ;;  %v11388_v43 = vld [vmem:[#allocation247_spill] sm:$0xff]  ;;  %v11394_v49 = vld [vmem:[#allocation258_spill] sm:$0xff]  ;;  %v8127_v2 = vpop.permute.xlu1 %2213 }
 0x3b2   : > { %2455 = vrot.lane.b32.xlu0 %v11387_v21, %s5611_s7  ;;  %v1224_v26 = vadd.f32 %v11388_v43, %v984_v12  ;;  %v11389_v31 = vld [vmem:[#allocation248_spill] sm:$0xff]  ;;  %v11390_v17 = vld [vmem:[#allocation251_spill] sm:$0xff]  ;;  %v1230_v62 = vadd.f32 %v11394_v49, %v990_v35  ;;  %11396 = vst [vmem:[#allocation85_spill] sm:$0xff] %v8127_v2  ;;  %v11399_v43 = vld [vmem:[#allocation261_spill] sm:$0xff]  ;;  %v8152_v2 = vpop.permute.xlu0 %2227 }
 0x3b3   : > { %v1225_v50 = vadd.f32 %v11389_v31, %v985_v13  ;;  %v1226_v8 = vadd.f32 %v11390_v17, %v986_v25  ;;  %v11391_v30 = vld [vmem:[#allocation252_spill] sm:$0xff]  ;;  %v11392_v61 = vld [vmem:[#allocation255_spill] sm:$0xff]  ;;  %v1233_v13 = vadd.f32 %v11399_v43, %v993_v52  ;;  %v11400_v31 = vld [vmem:[#allocation262_spill] sm:$0xff]  ;;  %11416 = vst [vmem:[#allocation92_spill] sm:$0xff] %v8152_v2 }
 0x3b4   : > { %v1227_v38 = vadd.f32 %v11391_v30, %v987_v34  ;;  %v1228_v5 = vadd.f32 %v11392_v61, %v988_v54  ;;  %v11393_v9 = vld [vmem:[#allocation256_spill] sm:$0xff]  ;;  %v11395_v7 = vld [vmem:[#allocation259_spill] sm:$0xff]  ;;  %v1234_v25 = vadd.f32 %v11400_v31, %v994_v24  ;;  %v11403_v61 = vld [vmem:[#allocation265_spill] sm:$0xff] }
 0x3b5   : > { %v1229_v3 = vadd.f32 %v11393_v9, %v989_v11  ;;  %v1231_v27 = vadd.f32 %v11395_v7, %v991_v58  ;;  %v11398_v21 = vld [vmem:[#allocation260_spill] sm:$0xff]  ;;  %v11401_v17 = vld [vmem:[#allocation263_spill] sm:$0xff]  ;;  %v1237_v11 = vadd.f32 %v11403_v61, %v997_v19  ;;  %v11404_v9 = vld [vmem:[#allocation266_spill] sm:$0xff] }
 0x3b6   : > { %v1232_v12 = vadd.f32 %v11398_v21, %v992_v45  ;;  %v1235_v34 = vadd.f32 %v11401_v17, %v995_v46  ;;  %v11402_v30 = vld [vmem:[#allocation264_spill] sm:$0xff]  ;;  %v1238_v35 = vadd.f32 %v11404_v9, %v998_v14  ;;  %v11405_v58 = vld [vmem:[#allocation329_spill] sm:$0xff]  ;;  %v11407_v7 = vld [vmem:[#allocation267_spill] sm:$0xff] }
 0x3b7   : > { %v1236_v54 = vadd.f32 %v11402_v30, %v996_v10  ;;  %2457 = vrot.lane.b32.xlu1 %v11405_v58, %s5611_s7  ;;  %v11406_v49 = vld [vmem:[#allocation332_spill] sm:$0xff]  ;;  %v1239_v45 = vadd.f32 %v11407_v7, %v999_v59  ;;  %v11409_v43 = vld [vmem:[#allocation269_spill] sm:$0xff]  ;;  %v11410_v31 = vld [vmem:[#allocation270_spill] sm:$0xff]  ;;  %v8150_v58 = vpop.permute.xlu1 %2225 }
 0x3b8   : > { %2459 = vrot.lane.b32.xlu0 %v11406_v49, %s5611_s7  ;;  %v11408_v21 = vld [vmem:[#allocation268_spill] sm:$0xff]  ;;  %v1241_v24 = vadd.f32 %v11409_v43, %v1001_v6  ;;  %v1242_v46 = vadd.f32 %v11410_v31, %v1002_v37  ;;  %v11411_v17 = vld [vmem:[#allocation271_spill] sm:$0xff]  ;;  %v11413_v61 = vld [vmem:[#allocation273_spill] sm:$0xff]  ;;  %11415 = vst [vmem:[#allocation89_spill] sm:$0xff] %v8150_v58  ;;  %v8175_v58 = vpop.permute.xlu0 %2087 }
 0x3b9   : > { %v1240_v52 = vadd.f32 %v11408_v21, %v1000_v22  ;;  %v1243_v10 = vadd.f32 %v11411_v17, %v1003_v44  ;;  %v11412_v30 = vld [vmem:[#allocation272_spill] sm:$0xff]  ;;  %v1245_v14 = vadd.f32 %v11413_v61, %v1005_v48  ;;  %v11414_v9 = vld [vmem:[#allocation274_spill] sm:$0xff]  ;;  %v11417_v49 = vld [vmem:[#allocation275_spill] sm:$0xff]  ;;  %11435 = vst [vmem:[#allocation96_spill] sm:$0xff] %v8175_v58 }
 0x3ba   : > { %v1244_v19 = vadd.f32 %v11412_v30, %v1004_v47  ;;  %v1246_v4 = vadd.f32 %v11414_v9, %v1006_v36  ;;  %v1447_v59 = vadd.f32 %v11417_v49, %v1207_v15  ;;  %v11418_v7 = vld [vmem:[#allocation276_spill] sm:$0xff]  ;;  %v11419_v21 = vld [vmem:[#allocation277_spill] sm:$0xff]  ;;  %v11420_v43 = vld [vmem:[#allocation278_spill] sm:$0xff] }
 0x3bb   : > { %v1448_v22 = vadd.f32 %v11418_v7, %v1208_v16  ;;  %v1449_v6 = vadd.f32 %v11419_v21, %v1209_v51  ;;  %v1450_v37 = vadd.f32 %v11420_v43, %v1210_v32  ;;  %v11421_v31 = vld [vmem:[#allocation279_spill] sm:$0xff]  ;;  %v11422_v17 = vld [vmem:[#allocation280_spill] sm:$0xff]  ;;  %v11423_v30 = vld [vmem:[#allocation281_spill] sm:$0xff] }
 0x3bc   : > { %v1451_v44 = vadd.f32 %v11421_v31, %v1211_v56  ;;  %v1452_v47 = vadd.f32 %v11422_v17, %v1212_v23  ;;  %v1453_v48 = vadd.f32 %v11423_v30, %v1213_v57  ;;  %v11424_v36 = vld [vmem:[#allocation333_spill] sm:$0xff]  ;;  %v11426_v9 = vld [vmem:[#allocation282_spill] sm:$0xff]  ;;  %v11427_v49 = vld [vmem:[#allocation283_spill] sm:$0xff] }
 0x3bd   : > { %2461 = vrot.lane.b32.xlu1 %v11424_v36, %s5611_s7  ;;  %v11425_v61 = vld [vmem:[#allocation41_spill] sm:$0xff]  ;;  %v1454_v15 = vadd.f32 %v11426_v9, %v1214_v20  ;;  %v1455_v16 = vadd.f32 %v11427_v49, %v1215_v55  ;;  %v11428_v7 = vld [vmem:[#allocation284_spill] sm:$0xff]  ;;  %v11430_v43 = vld [vmem:[#allocation286_spill] sm:$0xff]  ;;  %v8173_v36 = vpop.permute.xlu1 %2229 }
 0x3be   : > { %2447 = vrot.lane.b32.xlu0 %v11425_v61, %s5611_s7  ;;  %v1456_v51 = vadd.f32 %v11428_v7, %v1216_v0  ;;  %v11429_v21 = vld [vmem:[#allocation285_spill] sm:$0xff]  ;;  %v1458_v56 = vadd.f32 %v11430_v43, %v1218_v42  ;;  %v11431_v31 = vld [vmem:[#allocation287_spill] sm:$0xff]  ;;  %v11432_v17 = vld [vmem:[#allocation288_spill] sm:$0xff]  ;;  %11434 = vst [vmem:[#allocation93_spill] sm:$0xff] %v8173_v36  ;;  %v8198_v36 = vpop.permute.xlu0 %2103 }
 0x3bf   : > { %v1457_v32 = vadd.f32 %v11429_v21, %v1217_v40  ;;  %v1459_v23 = vadd.f32 %v11431_v31, %v1219_v63  ;;  %v1460_v57 = vadd.f32 %v11432_v17, %v1220_v33  ;;  %v11433_v30 = vld [vmem:[#allocation289_spill] sm:$0xff]  ;;  %v11436_v61 = vld [vmem:[#allocation290_spill] sm:$0xff]  ;;  %v11437_v9 = vld [vmem:[#allocation291_spill] sm:$0xff]  ;;  %11454 = vst [vmem:[#allocation100_spill] sm:$0xff] %v8198_v36 }
 0x3c0   : > { %v1461_v2 = vadd.f32 %v11433_v30, %v1221_v29  ;;  %v1462_v20 = vadd.f32 %v11436_v61, %v1222_v41  ;;  %v1463_v55 = vadd.f32 %v11437_v9, %v1223_v18  ;;  %v11438_v49 = vld [vmem:[#allocation292_spill] sm:$0xff]  ;;  %v11439_v7 = vld [vmem:[#allocation293_spill] sm:$0xff]  ;;  %v11440_v21 = vld [vmem:[#allocation294_spill] sm:$0xff] }
 0x3c1   : > { %v1464_v0 = vadd.f32 %v11438_v49, %v1224_v26  ;;  %v1465_v40 = vadd.f32 %v11439_v7, %v1225_v50  ;;  %v1466_v42 = vadd.f32 %v11440_v21, %v1226_v8  ;;  %v11441_v43 = vld [vmem:[#allocation295_spill] sm:$0xff]  ;;  %v11442_v31 = vld [vmem:[#allocation296_spill] sm:$0xff]  ;;  %v11443_v29 = vld [vmem:[#allocation325_spill] sm:$0xff] }
 0x3c2   : > { %v1467_v63 = vadd.f32 %v11441_v43, %v1227_v38  ;;  %v1468_v33 = vadd.f32 %v11442_v31, %v1228_v5  ;;  %2449 = vrot.lane.b32.xlu1 %v11443_v29, %s5611_s7  ;;  %v11444_v17 = vld [vmem:[#allocation334_spill] sm:$0xff]  ;;  %v11445_v30 = vld [vmem:[#allocation297_spill] sm:$0xff]  ;;  %v11447_v9 = vld [vmem:[#allocation299_spill] sm:$0xff]  ;;  %v8196_v29 = vpop.permute.xlu1 %2089 }
 0x3c3   : > { %2463 = vrot.lane.b32.xlu0 %v11444_v17, %s5611_s7  ;;  %v1469_v41 = vadd.f32 %v11445_v30, %v1229_v3  ;;  %v11446_v61 = vld [vmem:[#allocation298_spill] sm:$0xff]  ;;  %v1471_v26 = vadd.f32 %v11447_v9, %v1231_v27  ;;  %v11448_v49 = vld [vmem:[#allocation300_spill] sm:$0xff]  ;;  %v11449_v7 = vld [vmem:[#allocation301_spill] sm:$0xff]  ;;  %11453 = vst [vmem:[#allocation97_spill] sm:$0xff] %v8196_v29  ;;  %v8221_v29 = vpop.permute.xlu0 %2215 }
 0x3c4   : > { %v1470_v18 = vadd.f32 %v11446_v61, %v1230_v62  ;;  %v1472_v50 = vadd.f32 %v11448_v49, %v1232_v12  ;;  %v1473_v8 = vadd.f32 %v11449_v7, %v1233_v13  ;;  %v11450_v21 = vld [vmem:[#allocation302_spill] sm:$0xff]  ;;  %v11451_v43 = vld [vmem:[#allocation303_spill] sm:$0xff]  ;;  %v11452_v31 = vld [vmem:[#allocation304_spill] sm:$0xff]  ;;  %11473 = vst [vmem:[#allocation104_spill] sm:$0xff] %v8221_v29 }
 0x3c5   : > { %v1474_v38 = vadd.f32 %v11450_v21, %v1234_v25  ;;  %v1475_v5 = vadd.f32 %v11451_v43, %v1235_v34  ;;  %v1476_v58 = vadd.f32 %v11452_v31, %v1236_v54  ;;  %v11455_v17 = vld [vmem:[#allocation305_spill] sm:$0xff]  ;;  %v11456_v30 = vld [vmem:[#allocation306_spill] sm:$0xff]  ;;  %v11457_v61 = vld [vmem:[#allocation307_spill] sm:$0xff] }
 0x3c6   : > { %v1477_v3 = vadd.f32 %v11455_v17, %v1237_v11  ;;  %v1478_v62 = vadd.f32 %v11456_v30, %v1238_v35  ;;  %v1479_v27 = vadd.f32 %v11457_v61, %v1239_v45  ;;  %v11458_v9 = vld [vmem:[#allocation308_spill] sm:$0xff]  ;;  %v11459_v49 = vld [vmem:[#allocation309_spill] sm:$0xff]  ;;  %v11460_v7 = vld [vmem:[#allocation310_spill] sm:$0xff] }
 0x3c7   : > { %v1480_v12 = vadd.f32 %v11458_v9, %v1240_v52  ;;  %v1481_v13 = vadd.f32 %v11459_v49, %v1241_v24  ;;  %v1482_v25 = vadd.f32 %v11460_v7, %v1242_v46  ;;  %v11461_v21 = vld [vmem:[#allocation311_spill] sm:$0xff]  ;;  %v11463_v43 = vld [vmem:[#allocation326_spill] sm:$0xff]  ;;  %v11464_v31 = vld [vmem:[#allocation312_spill] sm:$0xff] }
 0x3c8   : > { %v1483_v34 = vadd.f32 %v11461_v21, %v1243_v10  ;;  %v11462_v54 = vld [vmem:[#allocation335_spill] sm:$0xff]  ;;  %2451 = vrot.lane.b32.xlu0 %v11463_v43, %s5611_s7  ;;  %v1484_v11 = vadd.f32 %v11464_v31, %v1244_v19  ;;  %v11465_v17 = vld [vmem:[#allocation313_spill] sm:$0xff]  ;;  %v11466_v30 = vld [vmem:[#allocation314_spill] sm:$0xff] }
 0x3c9   : > { %2465 = vrot.lane.b32.xlu1 %v11462_v54, %s5611_s7  ;;  %v1485_v35 = vadd.f32 %v11465_v17, %v1245_v14  ;;  %v1486_v45 = vadd.f32 %v11466_v30, %v1246_v4  ;;  %v11467_v61 = vld [vmem:[#allocation315_spill] sm:$0xff]  ;;  %v11468_v9 = vld [vmem:[#allocation213_spill] sm:$0xff]  ;;  %v11469_v49 = vld [vmem:[#allocation214_spill] sm:$0xff]  ;;  %v8219_v54 = vpop.permute.xlu1 %2105 }
 0x3ca   : > { %v1687_v52 = vadd.f32 %v11467_v61, %v1447_v59  ;;  %v1688_v24 = vadd.f32 %v11468_v9, %v1448_v22  ;;  %v1689_v46 = vadd.f32 %v11469_v49, %v1449_v6  ;;  %v11470_v7 = vld [vmem:[#allocation217_spill] sm:$0xff]  ;;  %v11471_v21 = vld [vmem:[#allocation218_spill] sm:$0xff]  ;;  %11472 = vst [vmem:[#allocation101_spill] sm:$0xff] %v8219_v54  ;;  %v8244_v54 = vpop.permute.xlu0 %2231 }
 0x3cb   : > { %v1690_v10 = vadd.f32 %v11470_v7, %v1450_v37  ;;  %v1691_v36 = vadd.f32 %v11471_v21, %v1451_v44  ;;  %v11474_v43 = vld [vmem:[#allocation221_spill] sm:$0xff]  ;;  %v11475_v31 = vld [vmem:[#allocation222_spill] sm:$0xff]  ;;  %v11481_v44 = vld [vmem:[#allocation327_spill] sm:$0xff]  ;;  %11492 = vst [vmem:[#allocation108_spill] sm:$0xff] %v8244_v54 }
 0x3cc   : > { %v1692_v19 = vadd.f32 %v11474_v43, %v1452_v47  ;;  %v1693_v14 = vadd.f32 %v11475_v31, %v1453_v48  ;;  %v11476_v17 = vld [vmem:[#allocation225_spill] sm:$0xff]  ;;  %v11477_v30 = vld [vmem:[#allocation226_spill] sm:$0xff]  ;;  %v11482_v7 = vld [vmem:[#allocation336_spill] sm:$0xff] }
 0x3cd   : > { %v1694_v4 = vadd.f32 %v11476_v17, %v1454_v15  ;;  %v1695_v59 = vadd.f32 %v11477_v30, %v1455_v16  ;;  %v11478_v61 = vld [vmem:[#allocation229_spill] sm:$0xff]  ;;  %v11479_v9 = vld [vmem:[#allocation230_spill] sm:$0xff]  ;;  %2453 = vrot.lane.b32.xlu1 %v11481_v44, %s5611_s7  ;;  %2467 = vrot.lane.b32.xlu0 %v11482_v7, %s5611_s7  ;;  %v8242_v44 = vpop.permute.xlu1 %2217 }
 0x3ce   : > { %v1696_v22 = vadd.f32 %v11478_v61, %v1456_v51  ;;  %v1697_v6 = vadd.f32 %v11479_v9, %v1457_v32  ;;  %v11480_v49 = vld [vmem:[#allocation233_spill] sm:$0xff]  ;;  %v11483_v21 = vld [vmem:[#allocation234_spill] sm:$0xff]  ;;  %11491 = vst [vmem:[#allocation105_spill] sm:$0xff] %v8242_v44  ;;  %v8267_v44 = vpop.permute.xlu0 %2091 }
 0x3cf   : > { %v1698_v37 = vadd.f32 %v11480_v49, %v1458_v56  ;;  %v1699_v47 = vadd.f32 %v11483_v21, %v1459_v23  ;;  %v11484_v43 = vld [vmem:[#allocation237_spill] sm:$0xff]  ;;  %v11485_v31 = vld [vmem:[#allocation238_spill] sm:$0xff]  ;;  %11511 = vst [vmem:[#allocation112_spill] sm:$0xff] %v8267_v44 }
 0x3d0   : > { %v1700_v48 = vadd.f32 %v11484_v43, %v1460_v57  ;;  %v1701_v15 = vadd.f32 %v11485_v31, %v1461_v2  ;;  %v11486_v17 = vld [vmem:[#allocation241_spill] sm:$0xff]  ;;  %v11487_v30 = vld [vmem:[#allocation242_spill] sm:$0xff] }
 0x3d1   : > { %v1702_v16 = vadd.f32 %v11486_v17, %v1462_v20  ;;  %v1703_v51 = vadd.f32 %v11487_v30, %v1463_v55  ;;  %v11488_v61 = vld [vmem:[#allocation245_spill] sm:$0xff]  ;;  %v11489_v9 = vld [vmem:[#allocation246_spill] sm:$0xff]  ;;  %v11497_v17 = vld [vmem:[#allocation115_spill] sm:$0xff] }
 0x3d2   : > { %v1704_v32 = vadd.f32 %v11488_v61, %v1464_v0  ;;  %v1705_v56 = vadd.f32 %v11489_v9, %v1465_v40  ;;  %v11490_v49 = vld [vmem:[#allocation249_spill] sm:$0xff]  ;;  %v11493_v7 = vld [vmem:[#allocation250_spill] sm:$0xff]  ;;  %v1711_v55 = vadd.f32 %v11497_v17, %v1471_v26  ;;  %v11499_v61 = vld [vmem:[#allocation119_spill] sm:$0xff] }
 0x3d3   : > { %v1706_v29 = vadd.f32 %v11490_v49, %v1466_v42  ;;  %v1707_v23 = vadd.f32 %v11493_v7, %v1467_v63  ;;  %v11494_v21 = vld [vmem:[#allocation253_spill] sm:$0xff]  ;;  %v11495_v43 = vld [vmem:[#allocation254_spill] sm:$0xff]  ;;  %v1713_v40 = vadd.f32 %v11499_v61, %v1473_v8  ;;  %v11501_v9 = vld [vmem:[#allocation99_spill] sm:$0xff] }
 0x3d4   : > { %v1708_v57 = vadd.f32 %v11494_v21, %v1468_v33  ;;  %v1709_v2 = vadd.f32 %v11495_v43, %v1469_v41  ;;  %v11496_v31 = vld [vmem:[#allocation257_spill] sm:$0xff]  ;;  %v11498_v30 = vld [vmem:[#allocation118_spill] sm:$0xff]  ;;  %2111 = vrot.lane.b32.xlu0 %v11501_v9, %s5609_s27  ;;  %v11503_v7 = vld [vmem:[#allocation123_spill] sm:$0xff] }
 0x3d5   : > { %v1710_v20 = vadd.f32 %v11496_v31, %v1470_v18  ;;  %v1712_v0 = vadd.f32 %v11498_v30, %v1472_v50  ;;  %v11500_v42 = vld [vmem:[#allocation337_spill] sm:$0xff]  ;;  %v11502_v49 = vld [vmem:[#allocation122_spill] sm:$0xff]  ;;  %v1715_v33 = vadd.f32 %v11503_v7, %v1475_v5  ;;  %v11505_v43 = vld [vmem:[#allocation127_spill] sm:$0xff] }
 0x3d6   : > { %2469 = vrot.lane.b32.xlu1 %v11500_v42, %s5611_s7  ;;  %v1714_v63 = vadd.f32 %v11502_v49, %v1474_v38  ;;  %v11504_v21 = vld [vmem:[#allocation126_spill] sm:$0xff]  ;;  %v1717_v18 = vadd.f32 %v11505_v43, %v1477_v3  ;;  %v11507_v17 = vld [vmem:[#allocation131_spill] sm:$0xff]  ;;  %v8265_v42 = vpop.permute.xlu1 %2233 }
 0x3d7   : > { %v1716_v41 = vadd.f32 %v11504_v21, %v1476_v58  ;;  %v11506_v31 = vld [vmem:[#allocation130_spill] sm:$0xff]  ;;  %v1719_v50 = vadd.f32 %v11507_v17, %v1479_v27  ;;  %v11509_v61 = vld [vmem:[#allocation135_spill] sm:$0xff]  ;;  %11510 = vst [vmem:[#allocation109_spill] sm:$0xff] %v8265_v42  ;;  %v8290_v42 = vpop.permute.xlu0 %2107 }
 0x3d8   : > { %v1718_v26 = vadd.f32 %v11506_v31, %v1478_v62  ;;  %v11508_v30 = vld [vmem:[#allocation134_spill] sm:$0xff]  ;;  %v1721_v54 = vadd.f32 %v11509_v61, %v1481_v13  ;;  %v11513_v49 = vld [vmem:[#allocation139_spill] sm:$0xff]  ;;  %11530 = vst [vmem:[#allocation42_spill] sm:$0xff] %v8290_v42 }
 0x3d9   : > { %v1720_v8 = vadd.f32 %v11508_v30, %v1480_v12  ;;  %v11512_v9 = vld [vmem:[#allocation138_spill] sm:$0xff]  ;;  %v1723_v5 = vadd.f32 %v11513_v49, %v1483_v34  ;;  %v11515_v21 = vld [vmem:[#allocation143_spill] sm:$0xff] }
 0x3da   : > { %v1722_v38 = vadd.f32 %v11512_v9, %v1482_v25  ;;  %v11514_v7 = vld [vmem:[#allocation142_spill] sm:$0xff]  ;;  %v1725_v3 = vadd.f32 %v11515_v21, %v1485_v35  ;;  %v11517_v31 = vld [vmem:[#allocation147_spill] sm:$0xff] }
 0x3db   : > { %v1724_v58 = vadd.f32 %v11514_v7, %v1484_v11  ;;  %v11516_v43 = vld [vmem:[#allocation146_spill] sm:$0xff]  ;;  %v1847_v27 = vadd.f32 %v11517_v31, %v1687_v52  ;;  %v11520_v30 = vld [vmem:[#allocation103_spill] sm:$0xff] }
 0x3dc   : > { %v1726_v62 = vadd.f32 %v11516_v43, %v1486_v45  ;;  %v11518_v17 = vld [vmem:[#allocation150_spill] sm:$0xff]  ;;  %2115 = vrot.lane.b32.xlu0 %v11520_v30, %s5609_s27  ;;  %v11521_v61 = vld [vmem:[#allocation151_spill] sm:$0xff] }
 0x3dd   : > { %v1848_v12 = vadd.f32 %v11518_v17, %v1688_v24  ;;  %v11519_v13 = vld [vmem:[#allocation102_spill] sm:$0xff]  ;;  %v1849_v25 = vadd.f32 %v11521_v61, %v1689_v46  ;;  %v11523_v49 = vld [vmem:[#allocation155_spill] sm:$0xff] }
 0x3de   : > { %2113 = vrot.lane.b32.xlu1 %v11519_v13, %s5609_s27  ;;  %v11522_v9 = vld [vmem:[#allocation154_spill] sm:$0xff]  ;;  %v1851_v11 = vadd.f32 %v11523_v49, %v1691_v36  ;;  %v11525_v21 = vld [vmem:[#allocation159_spill] sm:$0xff]  ;;  %v8288_v13 = vpop.permute.xlu1 %2093 }
 0x3df   : > { %v1850_v34 = vadd.f32 %v11522_v9, %v1690_v10  ;;  %v11524_v7 = vld [vmem:[#allocation158_spill] sm:$0xff]  ;;  %v1853_v45 = vadd.f32 %v11525_v21, %v1693_v14  ;;  %v11527_v31 = vld [vmem:[#allocation163_spill] sm:$0xff]  ;;  %11529 = vst [vmem:[#allocation35_spill] sm:$0xff] %v8288_v13  ;;  %v8313_v13 = vpop.permute.xlu0 %2219 }
 0x3e0   : > { %v1852_v35 = vadd.f32 %v11524_v7, %v1692_v19  ;;  %v11526_v43 = vld [vmem:[#allocation162_spill] sm:$0xff]  ;;  %v1855_v24 = vadd.f32 %v11527_v31, %v1695_v59  ;;  %v11531_v30 = vld [vmem:[#allocation167_spill] sm:$0xff]  ;;  %11549 = vst [vmem:[#allocation116_spill] sm:$0xff] %v8313_v13 }
 0x3e1   : > { %v1854_v52 = vadd.f32 %v11526_v43, %v1694_v4  ;;  %v11528_v17 = vld [vmem:[#allocation166_spill] sm:$0xff]  ;;  %v1857_v46 = vadd.f32 %v11531_v30, %v1697_v6  ;;  %v11533_v9 = vld [vmem:[#allocation171_spill] sm:$0xff] }
 0x3e2   : > { %v1856_v44 = vadd.f32 %v11528_v17, %v1696_v22  ;;  %v11532_v61 = vld [vmem:[#allocation170_spill] sm:$0xff]  ;;  %v1859_v36 = vadd.f32 %v11533_v9, %v1699_v47  ;;  %v11535_v7 = vld [vmem:[#allocation175_spill] sm:$0xff] }
 0x3e3   : > { %v1858_v10 = vadd.f32 %v11532_v61, %v1698_v37  ;;  %v11534_v49 = vld [vmem:[#allocation174_spill] sm:$0xff]  ;;  %v1861_v14 = vadd.f32 %v11535_v7, %v1701_v15  ;;  %v11537_v43 = vld [vmem:[#allocation179_spill] sm:$0xff] }
 0x3e4   : > { %v1860_v19 = vadd.f32 %v11534_v49, %v1700_v48  ;;  %v11536_v21 = vld [vmem:[#allocation178_spill] sm:$0xff]  ;;  %v1863_v59 = vadd.f32 %v11537_v43, %v1703_v51  ;;  %v11539_v31 = vld [vmem:[#allocation107_spill] sm:$0xff]  ;;  %v11547_v43 = vld [vmem:[#allocation52_spill] sm:$0xff] }
 0x3e5   : > { %v1862_v4 = vadd.f32 %v11536_v21, %v1702_v16  ;;  %v11538_v22 = vld [vmem:[#allocation106_spill] sm:$0xff]  ;;  %2119 = vrot.lane.b32.xlu0 %v11539_v31, %s5609_s27  ;;  %v11541_v30 = vld [vmem:[#allocation183_spill] sm:$0xff]  ;;  %v1871_v42 = vadd.f32 %v11547_v43, %v1711_v55  ;;  %v11550_v31 = vld [vmem:[#allocation53_spill] sm:$0xff] }
 0x3e6   : > { %2117 = vrot.lane.b32.xlu1 %v11538_v22, %s5609_s27  ;;  %v11540_v17 = vld [vmem:[#allocation182_spill] sm:$0xff]  ;;  %v1865_v37 = vadd.f32 %v11541_v30, %v1705_v56  ;;  %v11543_v9 = vld [vmem:[#allocation187_spill] sm:$0xff]  ;;  %v8311_v22 = vpop.permute.xlu1 %2109  ;;  %v11559_v43 = vld [vmem:[#allocation56_spill] sm:$0xff] }
 0x3e7   : > { %v1864_v6 = vadd.f32 %v11540_v17, %v1704_v32  ;;  %v11542_v61 = vld [vmem:[#allocation186_spill] sm:$0xff]  ;;  %v1867_v48 = vadd.f32 %v11543_v9, %v1707_v23  ;;  %v11545_v7 = vld [vmem:[#allocation191_spill] sm:$0xff]  ;;  %11548 = vst [vmem:[#allocation113_spill] sm:$0xff] %v8311_v22  ;;  %v1872_v32 = vadd.f32 %v11550_v31, %v1712_v0  ;;  %v11554_v9 = vld [vmem:[#allocation61_spill] sm:$0xff]  ;;  %v1879_v0 = vadd.f32 %v11559_v43, %v1719_v50  ;;  %v8336_v22 = vpop.permute.xlu0 %2235 }
 0x3e8   : > { %v1866_v47 = vadd.f32 %v11542_v61, %v1706_v29  ;;  %v11544_v49 = vld [vmem:[#allocation190_spill] sm:$0xff]  ;;  %v1869_v16 = vadd.f32 %v11545_v7, %v1709_v2  ;;  %v11552_v30 = vld [vmem:[#allocation55_spill] sm:$0xff]  ;;  %v11553_v61 = vld [vmem:[#allocation60_spill] sm:$0xff]  ;;  %11568 = vst [vmem:[#allocation120_spill] sm:$0xff] %v8336_v22 }
 0x3e9   : > { %v1868_v15 = vadd.f32 %v11544_v49, %v1708_v57  ;;  %v11546_v21 = vld [vmem:[#allocation194_spill] sm:$0xff]  ;;  %v1874_v29 = vadd.f32 %v11552_v30, %v1714_v63  ;;  %v1875_v23 = vadd.f32 %v11553_v61, %v1715_v33  ;;  %v1876_v57 = vadd.f32 %v11554_v9, %v1716_v41  ;;  %v11556_v7 = vld [vmem:[#allocation63_spill] sm:$0xff]  ;;  %v11560_v31 = vld [vmem:[#allocation57_spill] sm:$0xff] }
 0x3ea   : > { %v1870_v51 = vadd.f32 %v11546_v21, %v1710_v20  ;;  %v11551_v17 = vld [vmem:[#allocation54_spill] sm:$0xff]  ;;  %v1878_v20 = vadd.f32 %v11556_v7, %v1718_v26  ;;  %v11558_v21 = vld [vmem:[#allocation111_spill] sm:$0xff]  ;;  %v11562_v30 = vld [vmem:[#allocation65_spill] sm:$0xff] }
 0x3eb   : > { %v1873_v56 = vadd.f32 %v11551_v17, %v1713_v40  ;;  %v11555_v49 = vld [vmem:[#allocation62_spill] sm:$0xff]  ;;  %2123 = vrot.lane.b32.xlu0 %v11558_v21, %s5609_s27  ;;  %v1880_v40 = vadd.f32 %v11560_v31, %v1720_v8  ;;  %v11561_v17 = vld [vmem:[#allocation64_spill] sm:$0xff]  ;;  %v1882_v33 = vadd.f32 %v11562_v30, %v1722_v38  ;;  %v11564_v9 = vld [vmem:[#allocation59_spill] sm:$0xff] }
 0x3ec   : > { %v1877_v2 = vadd.f32 %v11555_v49, %v1717_v18  ;;  %v11557_v55 = vld [vmem:[#allocation110_spill] sm:$0xff]  ;;  %v1881_v63 = vadd.f32 %v11561_v17, %v1721_v54  ;;  %v1884_v18 = vadd.f32 %v11564_v9, %v1724_v58  ;;  %v11566_v7 = vld [vmem:[#allocation67_spill] sm:$0xff]  ;;  %v11569_v21 = vld [vmem:[#allocation68_spill] sm:$0xff] }
 0x3ed   : > { %2121 = vrot.lane.b32.xlu1 %v11557_v55, %s5609_s27  ;;  %v11563_v61 = vld [vmem:[#allocation58_spill] sm:$0xff]  ;;  %v1886_v13 = vadd.f32 %v11566_v7, %v1726_v62  ;;  %v8334_v55 = vpop.permute.xlu1 %2221  ;;  %v2007_v50 = vadd.f32 %v11569_v21, %v1847_v27  ;;  %v11571_v31 = vld [vmem:[#allocation71_spill] sm:$0xff]  ;;  %v11579_v21 = vld [vmem:[#allocation12_spill] sm:$0xff] }
 0x3ee   : > { %v1883_v41 = vadd.f32 %v11563_v61, %v1723_v5  ;;  %v11565_v49 = vld [vmem:[#allocation66_spill] sm:$0xff]  ;;  %11567 = vst [vmem:[#allocation117_spill] sm:$0xff] %v8334_v55  ;;  %v2009_v54 = vadd.f32 %v11571_v31, %v1849_v25  ;;  %v11573_v30 = vld [vmem:[#allocation83_spill] sm:$0xff]  ;;  %v11581_v31 = vld [vmem:[#allocation13_spill] sm:$0xff]  ;;  %v8359_v55 = vpop.permute.xlu0 %2239 }
 0x3ef   : > { %v1885_v26 = vadd.f32 %v11565_v49, %v1725_v3  ;;  %v11570_v43 = vld [vmem:[#allocation70_spill] sm:$0xff]  ;;  %v2011_v5 = vadd.f32 %v11573_v30, %v1851_v11  ;;  %v11575_v9 = vld [vmem:[#allocation87_spill] sm:$0xff]  ;;  %v11577_v49 = vld [vmem:[#allocation44_spill] sm:$0xff]  ;;  %11586 = vst [vmem:[#allocation121_spill] sm:$0xff] %v8359_v55 }
 0x3f0   : > { %v2008_v8 = vadd.f32 %v11570_v43, %v1848_v12  ;;  %v11572_v17 = vld [vmem:[#allocation74_spill] sm:$0xff]  ;;  %v2013_v3 = vadd.f32 %v11575_v9, %v1853_v45  ;;  %2271 = vrot.lane.b32.xlu0 %v11577_v49, %s5610_s25  ;;  %v2015_v12 = vadd.f32 %v11579_v21, %v1855_v24  ;;  %v11583_v30 = vld [vmem:[#allocation20_spill] sm:$0xff]  ;;  %v11587_v49 = vld [vmem:[#allocation23_spill] sm:$0xff] }
 0x3f1   : > { %v2010_v38 = vadd.f32 %v11572_v17, %v1850_v34  ;;  %v11574_v61 = vld [vmem:[#allocation86_spill] sm:$0xff]  ;;  %v2017_v34 = vadd.f32 %v11581_v31, %v1857_v46  ;;  %v11582_v17 = vld [vmem:[#allocation15_spill] sm:$0xff] }
 0x3f2   : > { %v2012_v58 = vadd.f32 %v11574_v61, %v1852_v35  ;;  %v11576_v62 = vld [vmem:[#allocation114_spill] sm:$0xff]  ;;  %v2018_v11 = vadd.f32 %v11582_v17, %v1858_v10  ;;  %v2019_v35 = vadd.f32 %v11583_v30, %v1859_v36  ;;  %v11584_v61 = vld [vmem:[#allocation21_spill] sm:$0xff]  ;;  %v11592_v17 = vld [vmem:[#allocation16_spill] sm:$0xff] }
 0x3f3   : > { %2125 = vrot.lane.b32.xlu1 %v11576_v62, %s5609_s27  ;;  %v11578_v7 = vld [vmem:[#allocation90_spill] sm:$0xff]  ;;  %v2020_v45 = vadd.f32 %v11584_v61, %v1860_v19  ;;  %v8357_v62 = vpop.permute.xlu1 %2237  ;;  %v8367_v36 = vadd.f32 %v11592_v17, %v1867_v48  ;;  %v11593_v19 = vld [vmem:[#allocation17_spill] sm:$0xff] }
 0x3f4   : > { %v2014_v27 = vadd.f32 %v11578_v7, %v1854_v52  ;;  %v11580_v43 = vld [vmem:[#allocation14_spill] sm:$0xff]  ;;  %v2022_v52 = vadd.f32 %v11587_v49, %v1862_v4  ;;  %v11588_v7 = vld [vmem:[#allocation75_spill] sm:$0xff]  ;;  %v8370_v30 = vadd.f32 %v11593_v19, %v1868_v15  ;;  %v11596_v4 = vld [vmem:[#allocation24_spill] sm:$0xff] }
 0x3f5   : > { %v2016_v25 = vadd.f32 %v11580_v43, %v1856_v44  ;;  %v11585_v9 = vld [vmem:[#allocation22_spill] sm:$0xff]  ;;  %v2023_v24 = vadd.f32 %v11588_v7, %v1863_v59  ;;  %v11590_v43 = vld [vmem:[#allocation91_spill] sm:$0xff]  ;;  %v8377_v59 = vadd.f32 %v11596_v4, %v1869_v16 }
 0x3f6   : > { %v2021_v22 = vadd.f32 %v11585_v9, %v1861_v14  ;;  %v11589_v21 = vld [vmem:[#allocation78_spill] sm:$0xff]  ;;  %v2025_v46 = vadd.f32 %v11590_v43, %v1865_v37  ;;  %v11594_v14 = vld [vmem:[#allocation45_spill] sm:$0xff]  ;;  %v11598_v37 = vld [vmem:[#allocation79_spill] sm:$0xff] }
 0x3f7   : > { %v2024_v44 = vadd.f32 %v11589_v21, %v1864_v6  ;;  %v11591_v31 = vld [vmem:[#allocation94_spill] sm:$0xff]  ;;  %2273 = vrot.lane.b32.xlu1 %v11594_v14, %s5610_s25  ;;  %v11597_v6 = vld [vmem:[#allocation25_spill] sm:$0xff]  ;;  %v11600_v7 = vld [vmem:[#allocation95_spill] sm:$0xff]  ;;  %v8388_v55 = vpop.permute.xlu1 %2241 }
 0x3f8   : > { %v2026_v10 = vadd.f32 %v11591_v31, %v1866_v47  ;;  %v11595_v61 = vld [vmem:[#allocation46_spill] sm:$0xff]  ;;  %v8380_v9 = vadd.f32 %v11597_v6, %v1870_v51  ;;  %v2031_v47 = vadd.f32 %v11598_v37, %v1871_v42  ;;  %v2033_v21 = vadd.f32 %v11600_v7, %v1873_v56  ;;  %v11603_v19 = vld [vmem:[#allocation19_spill] sm:$0xff]  ;;  %v11606_v42 = vld [vmem:[#allocation28_spill] sm:$0xff] }
 0x3f9   : > { %2275 = vrot.lane.b32.xlu0 %v11595_v61, %s5610_s25  ;;  %v11599_v49 = vld [vmem:[#allocation82_spill] sm:$0xff]  ;;  %v2036_v14 = vadd.f32 %v11603_v19, %v1876_v57  ;;  %v8390_v61 = vpop.permute.xlu0 %2243  ;;  %v11605_v51 = vld [vmem:[#allocation27_spill] sm:$0xff]  ;;  %v11608_v56 = vld [vmem:[#allocation29_spill] sm:$0xff] }
 0x3fa   : > { %v2032_v48 = vadd.f32 %v11599_v49, %v1872_v32  ;;  %v11601_v15 = vld [vmem:[#allocation98_spill] sm:$0xff]  ;;  %v8396_v6 = vadd.f32 %v11605_v51, %v1878_v20  ;;  %v8399_v32 = vadd.f32 %v11606_v42, %v1879_v0  ;;  %v8402_v37 = vadd.f32 %v11608_v56, %v1880_v40  ;;  %v11612_v57 = vld [vmem:[#allocation31_spill] sm:$0xff]  ;;  %v11614_v7 = vld [vmem:[#allocation36_spill] sm:$0xff] }
 0x3fb   : > { %v2034_v43 = vadd.f32 %v11601_v15, %v1874_v29  ;;  %v11602_v31 = vld [vmem:[#allocation18_spill] sm:$0xff]  ;;  %v8408_v49 = vadd.f32 %v11612_v57, %v1882_v33  ;;  %v8411_v15 = vadd.f32 %v11614_v7, %v1883_v41  ;;  %v11617_v20 = vld [vmem:[#allocation48_spill] sm:$0xff]  ;;  %v11618_v0 = vld [vmem:[#allocation37_spill] sm:$0xff] }
 0x3fc   : > { %v2035_v17 = vadd.f32 %v11602_v31, %v1875_v23  ;;  %v11604_v16 = vld [vmem:[#allocation26_spill] sm:$0xff]  ;;  %11607 = vst [vmem:[#allocation124_spill] sm:$0xff] %v8399_v32  ;;  %11609 = vst [vmem:[#allocation125_spill] sm:$0xff] %v8402_v37  ;;  %v8418_v31 = vadd.f32 %v11618_v0, %v1884_v18  ;;  %v11624_v33 = vld [vmem:[#allocation39_spill] sm:$0xff] }
 0x3fd   : > { %v8393_v4 = vadd.f32 %v11604_v16, %v1877_v2  ;;  %v11610_v29 = vld [vmem:[#allocation30_spill] sm:$0xff]  ;;  %11613 = vst [vmem:[#allocation129_spill] sm:$0xff] %v8408_v49  ;;  %11615 = vst [vmem:[#allocation132_spill] sm:$0xff] %v8411_v15  ;;  %v11616_v2 = vld [vmem:[#allocation47_spill] sm:$0xff]  ;;  %2279 = vrot.lane.b32.xlu0 %v11617_v20, %s5610_s25  ;;  %v2167_v51 = vadd.f32 %v11624_v33, %v2007_v50  ;;  %v8431_v20 = vpop.permute.xlu1 %2245  ;;  %v8433_v18 = vpop.permute.xlu0 %2255 }
 0x3fe   : > { %v8405_v23 = vadd.f32 %v11610_v29, %v1881_v63  ;;  %2277 = vrot.lane.b32.xlu1 %v11616_v2, %s5610_s25  ;;  %11619 = vst [vmem:[#allocation133_spill] sm:$0xff] %v8418_v31  ;;  %v11620_v40 = vld [vmem:[#allocation38_spill] sm:$0xff]  ;;  %v11622_v63 = vld [vmem:[#allocation11_spill] sm:$0xff]  ;;  %v11625_v42 = vld [vmem:[#allocation316_spill] sm:$0xff] }
 0x3ff   : > { %v8421_v19 = vadd.f32 %v11620_v40, %v1885_v26  ;;  %v8424_v16 = vadd.f32 %v11622_v63, %v1886_v13  ;;  %v2168_v41 = vadd.f32 %v11625_v42, %v2008_v8  ;;  %v11626_v56 = vld [vmem:[#allocation317_spill] sm:$0xff]  ;;  %v11627_v57 = vld [vmem:[#allocation318_spill] sm:$0xff]  ;;  %v11628_v2 = vld [vmem:[#allocation319_spill] sm:$0xff] }
 0x400   : > { %11611 = vst [vmem:[#allocation128_spill] sm:$0xff] %v8405_v23  ;;  %v2169_v29 = vadd.f32 %v11626_v56, %v2009_v54  ;;  %v2170_v7 = vadd.f32 %v11627_v57, %v2010_v38  ;;  %v2175_v15 = vadd.f32 %v11628_v2, %v2015_v12  ;;  %v11629_v0 = vld [vmem:[#allocation320_spill] sm:$0xff]  ;;  %v11630_v40 = vld [vmem:[#allocation321_spill] sm:$0xff]  ;;  %v11635_v56 = vld [vmem:[#allocation330_spill] sm:$0xff] }
 0x401   : > { %11621 = vst [vmem:[#allocation136_spill] sm:$0xff] %v8421_v19  ;;  %11623 = vst [vmem:[#allocation137_spill] sm:$0xff] %v8424_v16  ;;  %v2176_v26 = vadd.f32 %v11629_v0, %v2016_v25  ;;  %v2177_v19 = vadd.f32 %v11630_v40, %v2017_v34  ;;  %v11631_v13 = vld [vmem:[#allocation32_spill] sm:$0xff]  ;;  %v11632_v16 = vld [vmem:[#allocation322_spill] sm:$0xff]  ;;  %v2180_v38 = vadd.f32 %v11635_v56, %v2020_v45 }
 0x402   : > { %v2178_v63 = vadd.f32 %v11631_v13, %v2018_v11  ;;  %v2171_v50 = vadd.f32 %v11632_v16, %v2011_v5  ;;  %v11633_v33 = vld [vmem:[#allocation33_spill] sm:$0xff]  ;;  %v11634_v42 = vld [vmem:[#allocation40_spill] sm:$0xff]  ;;  %v11637_v57 = vld [vmem:[#allocation50_spill] sm:$0xff]  ;;  %v8454_v56 = vadd.f32 %v8035_v39, %v2026_v10 }
 0x403   : > { %v2172_v8 = vadd.f32 %v11633_v33, %v2012_v58  ;;  %v2179_v54 = vadd.f32 %v11634_v42, %v2019_v35  ;;  %v11636_v12 = vld [vmem:[#allocation49_spill] sm:$0xff]  ;;  %2283 = vrot.lane.b32.xlu0 %v11637_v57, %s5610_s25  ;;  %v11638_v25 = vld [vmem:[#allocation331_spill] sm:$0xff]  ;;  %v11639_v34 = vld [vmem:[#allocation344_spill] sm:$0xff]  ;;  %v8458_v57 = vpop.permute.xlu0 %2259 }
 0x404   : > { %2281 = vrot.lane.b32.xlu1 %v11636_v12, %s5610_s25  ;;  %v2173_v2 = vadd.f32 %v11638_v25, %v2013_v3  ;;  %v2174_v0 = vadd.f32 %v11639_v34, %v2014_v27  ;;  %v11640_v11 = vld [vmem:[#allocation345_spill] sm:$0xff]  ;;  %v11641_v5 = vld [vmem:[#allocation72_spill] sm:$0xff]  ;;  %v8456_v12 = vpop.permute.xlu1 %2257  ;;  %v8461_v3 = vadd.f32 %v8037_v28, %v2031_v47  ;;  %v8467_v27 = vadd.f32 %v8060_v53, %v2033_v21  ;;  %v11647_v39 = vld [vmem:[#allocation34_spill] sm:$0xff] }
 0x405   : > { %v2181_v40 = vadd.f32 %v11640_v11, %v2021_v22  ;;  %v2182_v16 = vadd.f32 %v11641_v5, %v2022_v52  ;;  %v11642_v58 = vld [vmem:[#allocation73_spill] sm:$0xff]  ;;  %v11644_v45 = vld [vmem:[#allocation80_spill] sm:$0xff]  ;;  %v8464_v22 = vadd.f32 %v8058_v1, %v2032_v48  ;;  %v8470_v52 = vadd.f32 %v8081_v60, %v2034_v43  ;;  %v11649_v34 = vld [vmem:[#allocation51_spill] sm:$0xff] }
 0x406   : > { %v2183_v13 = vadd.f32 %v11642_v58, %v2023_v24  ;;  %v11643_v35 = vld [vmem:[#allocation77_spill] sm:$0xff]  ;;  %v2185_v42 = vadd.f32 %v11644_v45, %v2025_v46  ;;  %v2328_v46 = vadd.f32 %v11647_v39, %v2168_v41  ;;  %v11648_v10 = vld [vmem:[#allocation84_spill] sm:$0xff]  ;;  %v11650_v28 = vld [vmem:[#allocation338_spill] sm:$0xff] }
 0x407   : > { %v2184_v33 = vadd.f32 %v11643_v35, %v2024_v44  ;;  %11645 = vst [vmem:[#allocation140_spill] sm:$0xff] %v8470_v52  ;;  %v11646_v24 = vld [vmem:[#allocation81_spill] sm:$0xff]  ;;  %v2329_v25 = vadd.f32 %v11648_v10, %v2169_v29  ;;  %2471 = vrot.lane.b32.xlu0 %v11650_v28, %s5611_s7  ;;  %v11652_v53 = vld [vmem:[#allocation88_spill] sm:$0xff] }
 0x408   : > { %v2327_v44 = vadd.f32 %v11646_v24, %v2167_v51  ;;  %2285 = vrot.lane.b32.xlu1 %v11649_v34, %s5610_s25  ;;  %v11651_v1 = vld [vmem:[#allocation85_spill] sm:$0xff]  ;;  %v8483_v48 = vadd.f32 %v11652_v53, %v2175_v15  ;;  %v11654_v43 = vld [vmem:[#allocation92_spill] sm:$0xff]  ;;  %v8505_v45 = vpop.permute.xlu1 %2261 }
 0x409   : > { %v8480_v47 = vadd.f32 %v11651_v1, %v2170_v7  ;;  %v11653_v60 = vld [vmem:[#allocation89_spill] sm:$0xff]  ;;  %v8489_v51 = vadd.f32 %v11654_v43, %v2177_v19  ;;  %v11656_v11 = vld [vmem:[#allocation96_spill] sm:$0xff]  ;;  %11659 = vst [vmem:[#allocation141_spill] sm:$0xff] %v8505_v45  ;;  %v10603_v43 = vmov 0.0  }
 0x40a   : > { %v8486_v21 = vadd.f32 %v11653_v60, %v2176_v26  ;;  %v11655_v41 = vld [vmem:[#allocation93_spill] sm:$0xff]  ;;  %v8496_v5 = vadd.f32 %v11656_v11, %v8367_v36  ;;  %v11658_v35 = vld [vmem:[#allocation100_spill] sm:$0xff]  ;;  %v2408_v26 = vpop.permute.xlu0 %2407 }
 0x40b   : > { %v8492_v29 = vadd.f32 %v11655_v41, %v2178_v63  ;;  %v11657_v58 = vld [vmem:[#allocation97_spill] sm:$0xff]  ;;  %v8503_v15 = vadd.f32 %v11658_v35, %v2035_v17  ;;  %v11661_v39 = vld [vmem:[#allocation104_spill] sm:$0xff]  ;;  %v2527_v36 = vadd.f32 %v2408_v26, %v2327_v44 }
 0x40c   : > { %v8500_v7 = vadd.f32 %v11657_v58, %v8370_v30  ;;  %v11660_v24 = vld [vmem:[#allocation101_spill] sm:$0xff]  ;;  %v8511_v63 = vadd.f32 %v11661_v39, %v2171_v50  ;;  %v11663_v28 = vld [vmem:[#allocation108_spill] sm:$0xff] }
 0x40d   : > { %v8508_v19 = vadd.f32 %v11660_v24, %v2036_v14  ;;  %v11662_v10 = vld [vmem:[#allocation105_spill] sm:$0xff]  ;;  %v8517_v1 = vadd.f32 %v11663_v28, %v2179_v54  ;;  %v11665_v17 = vld [vmem:[#allocation112_spill] sm:$0xff]  ;;  %v11666_v14 = vld [vmem:[#allocation339_spill] sm:$0xff]  ;;  %v2608_v58 = vrot.slane %v2527_v36, 3 }
 0x40e   : > { %v8514_v34 = vadd.f32 %v11662_v10, %v2172_v8  ;;  %v11664_v30 = vld [vmem:[#allocation109_spill] sm:$0xff]  ;;  %v8524_v60 = vadd.f32 %v11665_v17, %v8377_v59  ;;  %2473 = vrot.lane.b32.xlu1 %v11666_v14, %s5611_s7  ;;  %v11667_v50 = vld [vmem:[#allocation340_spill] sm:$0xff]  ;;  %v8531_v8 = vrot.slane %v10603_v43, 1  ;;  %v11668_v54 = vld [vmem:[#allocation35_spill] sm:$0xff] }
 0x40f   : > { %v8520_v53 = vadd.f32 %v11664_v30, %v2180_v38  ;;  %2475 = vrot.lane.b32.xlu0 %v11667_v50, %s5611_s7  ;;  %v8535_v44 = vadd.f32 %v11668_v54, %v8380_v9  ;;  %v11669_v38 = vld [vmem:[#allocation42_spill] sm:$0xff]  ;;  %v11670_v59 = vld [vmem:[#allocation113_spill] sm:$0xff]  ;;  %v11671_v35 = vld [vmem:[#allocation116_spill] sm:$0xff]  ;;  %v8555_v9 = vadd.f32 %v8357_v62, %v2182_v16  ;;  %v2412_v30 = vpop.permute.xlu0 %2411 }
 0x410   : > { %v8539_v41 = vadd.f32 %v11669_v38, %v8393_v4  ;;  %v8543_v11 = vadd.f32 %v11670_v59, %v8396_v6  ;;  %v8546_v26 = vadd.f32 %v11671_v35, %v2173_v2  ;;  %v11673_v24 = vld [vmem:[#allocation117_spill] sm:$0xff]  ;;  %v11675_v10 = vld [vmem:[#allocation120_spill] sm:$0xff]  ;;  %v2410_v4 = vpop.permute.xlu1 %2409  ;;  %v2728_v6 = vsel %vm2607_vm2, 0.0, %v2608_v58  ;;  %v11682_v16 = vld [vmem:[#allocation342_spill] sm:$0xff] }
 0x411   : > { %v8549_v39 = vadd.f32 %v11673_v24, %v2174_v0  ;;  %v8552_v28 = vadd.f32 %v11675_v10, %v2181_v40  ;;  %11677 = vst [vmem:[#allocation148_spill] sm:$0xff] %v8555_v9  ;;  %v11678_v17 = vld [vmem:[#allocation121_spill] sm:$0xff]  ;;  %v2528_v2 = vadd.f32 %v2410_v4, %v2328_v46  ;;  %v8561_v36 = vadd.f32 %v2412_v30, %v2329_v25  ;;  %v11688_v37 = vld [vmem:[#allocation76_spill] sm:$0xff] }
 0x412   : > { %11672 = vst [vmem:[#allocation43_spill] sm:$0xff] %v8546_v26  ;;  %v8558_v14 = vadd.f32 %v11678_v17, %v2183_v13  ;;  %v8564_v0 = vadd.f32 %v8388_v55, %v2184_v33  ;;  %v2768_v40 = vmul.f32 0.0010283801, %v2728_v6  ;;  %v2808_v50 = vmul.f32 0.007598758, %v2728_v6  ;;  %v11681_v62 = vld [vmem:[#allocation341_spill] sm:$0xff] }
 0x413   : > { %11674 = vst [vmem:[#allocation144_spill] sm:$0xff] %v8549_v39  ;;  %11676 = vst [vmem:[#allocation145_spill] sm:$0xff] %v8552_v28  ;;  %v3109_v54 = vmul.f32 0.036000773, %v2728_v6  ;;  %2477 = vrot.lane.b32.xlu1 %v11681_v62, %s5611_s7  ;;  %2479 = vrot.lane.b32.xlu0 %v11682_v16, %s5611_s7  ;;  %v8571_v13 = vadd.f32 %v8390_v61, %v2185_v42  ;;  %v8573_v38 = vmul.f32 0.10936069, %v2728_v6 }
 0x414   : > { %11679 = vst [vmem:[#allocation149_spill] sm:$0xff] %v8558_v14  ;;  %11680 = vst [vmem:[#allocation152_spill] sm:$0xff] %v8564_v0  ;;  %v8575_v46 = vmul.f32 0.21300554, %v2728_v6  ;;  %v8577_v25 = vmul.f32 0.26601171, %v2728_v6  ;;  %v2414_v42 = vpop.permute.xlu1 %2413  ;;  %v8600_v62 = vadd.f32 %v8431_v20, %v8454_v56 }
 0x415   : > { %11683 = vst [vmem:[#allocation153_spill] sm:$0xff] %v8571_v13  ;;  %v2929_v55 = vrot.slane %v2808_v50, 1  ;;  %v3230_v33 = vrot.slane %v3109_v54, 2  ;;  %v2609_v59 = vrot.slane %v2528_v2, 3  ;;  %v10602_v35 = vrot.slane %v8561_v36, 3  ;;  %v11684_v50 = vld [vmem:[#allocation343_spill] sm:$0xff] }
 0x416   : > { %v3530_v24 = vrot.slane %v8573_v38, 3  ;;  %v3831_v10 = vrot.slane %v8575_v46, 4  ;;  %v4132_v4 = vrot.slane %v8577_v25, 5  ;;  %v4313_v61 = vrot.slane %v8575_v46, 6  ;;  %v11685_v54 = vld [vmem:[#allocation69_spill] sm:$0xff]  ;;  %11686 = vst [vmem:[#allocation156_spill] sm:$0xff] %v8600_v62 }
 0x417   : > { %v4494_v30 = vrot.slane %v8573_v38, 7  ;;  %v2610_v17 = vsel %vm2607_vm2, %v2608_v58, %v2609_v59  ;;  %v8587_v6 = vsel %vm2607_vm2, %v2609_v59, 0.0  ;;  %v8592_v2 = vsel %vm2607_vm2, 0.0, %v10602_v35  ;;  %2481 = vrot.lane.b32.xlu1 %v11684_v50, %s5611_s7  ;;  %2483 = vrot.lane.b32.xlu0 %v11685_v54, %s5611_s7 }
 0x418   : > { %v8602_v58 = vmul.f32 0.0010283801, %v2610_v17  ;;  %v2809_v16 = vmul.f32 0.007598758, %v2610_v17  ;;  %v8605_v38 = vmul.f32 0.007598758, %v8587_v6  ;;  %v8613_v50 = vadd.f32 %v2414_v42, %v8480_v47 }
 0x419   : > { %v8607_v46 = vmul.f32 0.036000773, %v2610_v17  ;;  %v8610_v25 = vmul.f32 0.036000773, %v8587_v6  ;;  %v3411_v59 = vmul.f32 0.10936069, %v2610_v17 }
 0x41a   : > { %11687 = vst [vmem:[#allocation157_spill] sm:$0xff] %v8602_v58  ;;  %v2930_v54 = vrot.slane %v2809_v16, 1  ;;  %v10604_v20 = vrot.slane %v8605_v38, 1  ;;  %v3412_v56 = vmul.f32 0.10936069, %v8587_v6 }
 0x41b   : > { %v3711_v35 = vmul.f32 0.21300554, %v2610_v17  ;;  %v3231_v43 = vrot.slane %v8607_v46, 2  ;;  %v3233_v31 = vrot.slane %v8610_v25, 2  ;;  %v3531_v49 = vrot.slane %v3411_v59, 3  ;;  %2485 = vrot.lane.b32.xlu1 %v11688_v37, %s5611_s7 }
 0x41c   : > { %v3712_v23 = vmul.f32 0.21300554, %v8587_v6  ;;  %v2931_v32 = vsel %vm2928_vm3, %v2929_v55, %v2930_v54  ;;  %v8626_v47 = vsel %vm2928_vm3, %v2930_v54, %v10604_v20  ;;  %v3533_v42 = vrot.slane %v3412_v56, 3 }
 0x41d   : > { %11689 = vst [vmem:[#allocation160_spill] sm:$0xff] %v8626_v47  ;;  %v3832_v16 = vrot.slane %v3711_v35, 4  ;;  %v3069_v62 = vadd.f32 %v2931_v32, %v2768_v40  ;;  %v3070_v0 = vadd.f32 %v8626_v47, %v8602_v58  ;;  %v3232_v13 = vsel %vm3229_vm4, %v3230_v33, %v3231_v43 }
 0x41e   : > { %v3234_v14 = vsel %vm3229_vm4, %v3231_v43, %v3233_v31  ;;  %v3532_v45 = vsel %vm2607_vm2, %v3530_v24, %v3531_v49  ;;  %v3534_v37 = vsel %vm2607_vm2, %v3531_v49, %v3533_v42  ;;  %v3834_v52 = vrot.slane %v3712_v23, 4 }
 0x41f   : > { %v3833_v55 = vsel %vm3830_vm5, %v3831_v10, %v3832_v16  ;;  %v3370_v9 = vadd.f32 %v3232_v13, %v3069_v62  ;;  %v3371_v54 = vadd.f32 %v3234_v14, %v3070_v0  ;;  %v4012_v20 = vmul.f32 0.26601171, %v2610_v17 }
 0x420   : > { %v4013_v28 = vmul.f32 0.26601171, %v8587_v6  ;;  %v3835_v32 = vsel %vm3830_vm5, %v3832_v16, %v3834_v52  ;;  %v4314_v40 = vrot.slane %v3711_v35, 6  ;;  %v4316_v47 = vrot.slane %v3712_v23, 6  ;;  %v2424_v35 = vpop.permute.xlu0 %2423 }
 0x421   : > { %v4495_v39 = vrot.slane %v3411_v59, 7  ;;  %v3670_v33 = vadd.f32 %v3532_v45, %v3370_v9  ;;  %v3671_v26 = vadd.f32 %v3534_v37, %v3371_v54  ;;  %v4133_v31 = vrot.slane %v4012_v20, 5 }
 0x422   : > { %v4135_v43 = vrot.slane %v4013_v28, 5  ;;  %v4315_v24 = vsel %vm4312_vm6, %v4313_v61, %v4314_v40  ;;  %v4317_v49 = vsel %vm4312_vm6, %v4314_v40, %v4316_v47  ;;  %v4497_v13 = vrot.slane %v3412_v56, 7 }
 0x423   : > { %v4496_v10 = vsel %vm4493_vm7, %v4494_v30, %v4495_v39  ;;  %v3971_v14 = vadd.f32 %v3833_v55, %v3670_v33  ;;  %v3972_v0 = vadd.f32 %v3835_v32, %v3671_v26  ;;  %v4134_v17 = vsel %vm4131_vm8, %v4132_v4, %v4133_v31 }
 0x424   : > { %v4136_v52 = vsel %vm4131_vm8, %v4133_v31, %v4135_v43  ;;  %v8644_v23 = vadd.f32 %v8433_v18, %v8461_v3  ;;  %v8648_v45 = vadd.f32 %v8456_v12, %v8464_v22  ;;  %v4498_v28 = vsel %vm4493_vm7, %v4495_v39, %v4497_v13  ;;  %v2426_v43 = vpop.permute.xlu1 %2425 }
 0x425   : > { %v11690_v9 = vmov 0.0   ;;  %v4272_v30 = vadd.f32 %v4134_v17, %v3971_v14  ;;  %v4273_v26 = vadd.f32 %v4136_v52, %v3972_v0  ;;  %v2770_v4 = vmul.f32 0.0010283801, %v8592_v2 }
 0x426   : > { %v8652_v61 = vrot.slane %v11690_v9, 2  ;;  %v2811_v62 = vmul.f32 0.007598758, %v8592_v2  ;;  %v3112_v59 = vmul.f32 0.036000773, %v8592_v2  ;;  %v2612_v3 = vrot.slane %v8613_v50, 3 }
 0x427   : > { %v8658_v18 = vmul.f32 0.10936069, %v8592_v2  ;;  %v8662_v12 = vadd.f32 %v2424_v35, %v8483_v48  ;;  %v4453_v22 = vadd.f32 %v4315_v24, %v4272_v30  ;;  %v4454_v39 = vadd.f32 %v4317_v49, %v4273_v26 }
 0x428   : > { %v2934_v20 = vrot.slane %v2811_v62, 1  ;;  %v3713_v56 = vmul.f32 0.21300554, %v8592_v2  ;;  %v3235_v47 = vrot.slane %v3112_v59, 2  ;;  %v4014_v16 = vmul.f32 0.26601171, %v8592_v2 }
 0x429   : > { %v3535_v42 = vrot.slane %v8658_v18, 3  ;;  %v4499_v37 = vrot.slane %v8658_v18, 7  ;;  %v4634_v55 = vadd.f32 %v4496_v10, %v4453_v22  ;;  %v4635_v54 = vadd.f32 %v4498_v28, %v4454_v39 }
 0x42a   : > { %v3836_v32 = vrot.slane %v3713_v56, 4  ;;  %v4318_v40 = vrot.slane %v3713_v56, 6  ;;  %v4137_v50 = vrot.slane %v4014_v16, 5  ;;  %v11691_v48 = vrot.slane %v8561_v36, 3 }
 0x42b   : > { %v8672_v31 = vsel %vm2607_vm2, %v2612_v3, 0.0  ;;  %v8676_v24 = vadd.f32 %v4634_v55, %v8607_v46  ;;  %v4675_v2 = vadd.f32 %v4635_v54, %v8610_v25  ;;  %v11693_v13 = vrot.slane %v8605_v38, 1 }
 0x42c   : > { %v2613_v33 = vsel %vm2607_vm2, %v11691_v48, %v2612_v3  ;;  %v2813_v14 = vmul.f32 0.007598758, %v8672_v31  ;;  %v8689_v17 = vmul.f32 0.036000773, %v8672_v31  ;;  %v3415_v25 = vmul.f32 0.10936069, %v8672_v31 }
 0x42d   : > { %v8679_v49 = vmul.f32 0.0010283801, %v2613_v33  ;;  %v2812_v10 = vmul.f32 0.007598758, %v2613_v33  ;;  %v4716_v36 = vsel %vm2928_vm3, %v11693_v13, %v8531_v8  ;;  %v8686_v0 = vmul.f32 0.036000773, %v2613_v33 }
 0x42e   : > { %v8691_v52 = vadd.f32 %v4716_v36, %v4675_v2  ;;  %v3414_v35 = vmul.f32 0.10936069, %v2613_v33  ;;  %v2937_v28 = vrot.slane %v2813_v14, 1  ;;  %v3238_v38 = vrot.slane %v8689_v17, 2 }
 0x42f   : > { %11692 = vst [vmem:[#allocation161_spill] sm:$0xff] %v8679_v49  ;;  %v2935_v46 = vrot.slane %v2812_v10, 1  ;;  %v3236_v9 = vrot.slane %v8686_v0, 2  ;;  %v3714_v30 = vmul.f32 0.21300554, %v2613_v33  ;;  %v3538_v59 = vrot.slane %v3415_v25, 3 }
 0x430   : > { %11694 = vst [vmem:[#allocation164_spill] sm:$0xff] %v8691_v52  ;;  %v3536_v62 = vrot.slane %v3414_v35, 3  ;;  %v3715_v18 = vmul.f32 0.21300554, %v8672_v31  ;;  %v4015_v10 = vmul.f32 0.26601171, %v2613_v33 }
 0x431   : > { %v2936_v26 = vsel %vm2928_vm3, %v2934_v20, %v2935_v46  ;;  %v8699_v3 = vsel %vm2928_vm3, %v2935_v46, %v2937_v28  ;;  %v3237_v39 = vsel %vm3229_vm4, %v3235_v47, %v3236_v9  ;;  %v3239_v56 = vsel %vm3229_vm4, %v3236_v9, %v3238_v38 }
 0x432   : > { %11695 = vst [vmem:[#allocation165_spill] sm:$0xff] %v8699_v3  ;;  %v3071_v22 = vadd.f32 %v2936_v26, %v2770_v4  ;;  %v3072_v16 = vadd.f32 %v8699_v3, %v8679_v49  ;;  %v3537_v55 = vsel %vm2607_vm2, %v3535_v42, %v3536_v62  ;;  %v3539_v54 = vsel %vm2607_vm2, %v3536_v62, %v3538_v59 }
 0x433   : > { %v3837_v20 = vrot.slane %v3714_v30, 4  ;;  %v3839_v2 = vrot.slane %v3715_v18, 4  ;;  %v4016_v13 = vmul.f32 0.26601171, %v8672_v31  ;;  %v4319_v14 = vrot.slane %v3714_v30, 6 }
 0x434   : > { %v3372_v48 = vadd.f32 %v3237_v39, %v3071_v22  ;;  %v3373_v36 = vadd.f32 %v3239_v56, %v3072_v16  ;;  %v4321_v47 = vrot.slane %v3715_v18, 6  ;;  %v4138_v38 = vrot.slane %v4015_v10, 5 }
 0x435   : > { %v3838_v4 = vsel %vm3830_vm5, %v3836_v32, %v3837_v20  ;;  %v3840_v9 = vsel %vm3830_vm5, %v3837_v20, %v3839_v2  ;;  %v4140_v26 = vrot.slane %v4016_v13, 5  ;;  %v4320_v62 = vsel %vm4312_vm6, %v4318_v40, %v4319_v14 }
 0x436   : > { %v3672_v46 = vadd.f32 %v3537_v55, %v3372_v48  ;;  %v3673_v42 = vadd.f32 %v3539_v54, %v3373_v36  ;;  %v4322_v59 = vsel %vm4312_vm6, %v4319_v14, %v4321_v47  ;;  %v4500_v22 = vrot.slane %v3414_v35, 7 }
 0x437   : > { %v4139_v39 = vsel %vm4131_vm8, %v4137_v50, %v4138_v38  ;;  %v4141_v56 = vsel %vm4131_vm8, %v4138_v38, %v4140_v26  ;;  %v4502_v32 = vrot.slane %v3415_v25, 7  ;;  %v8716_v30 = vadd.f32 %v8458_v57, %v8467_v27 }
 0x438   : > { %v3973_v33 = vadd.f32 %v3838_v4, %v3672_v46  ;;  %v3974_v18 = vadd.f32 %v3840_v9, %v3673_v42  ;;  %v4501_v16 = vsel %vm4493_vm7, %v4499_v37, %v4500_v22  ;;  %v2536_v55 = vadd.f32 %v2426_v43, %v8486_v21  ;;  %v2428_v4 = vpop.permute.xlu0 %2427 }
 0x439   : > { %v8721_v40 = vmul.f32 0.0010283801, %v8587_v6  ;;  %v4503_v35 = vsel %vm4493_vm7, %v4500_v22, %v4502_v32  ;;  %v11697_v50 = vrot.slane %v8662_v12, 3  ;;  %v4717_v57 = vsel %vm2928_vm3, %v2937_v28, %v8531_v8 }
 0x43a   : > { %v4274_v54 = vadd.f32 %v4139_v39, %v3973_v33  ;;  %v4275_v25 = vadd.f32 %v4141_v56, %v3974_v18  ;;  %v2621_v36 = vrot.slane %v2536_v55, 3  ;;  %v8750_v56 = vadd.f32 %v2428_v4, %v8489_v51 }
 0x43b   : > { %11696 = vst [vmem:[#allocation168_spill] sm:$0xff] %v8721_v40  ;;  %v2732_v20 = vsel %vm2607_vm2, 0.0, %v11697_v50  ;;  %v11699_v22 = vmov %v11697_v50 }
 0x43c   : > { %v2776_v27 = vmul.f32 0.0010283801, %v2732_v20  ;;  %v2820_v48 = vmul.f32 0.007598758, %v2732_v20  ;;  %v4455_v2 = vadd.f32 %v4320_v62, %v4274_v54  ;;  %v3121_v37 = vmul.f32 0.036000773, %v2732_v20  ;;  %v2430_v62 = vpop.permute.xlu1 %2429 }
 0x43d   : > { %v8729_v10 = vmul.f32 0.10936069, %v2732_v20  ;;  %v8731_v21 = vmul.f32 0.21300554, %v2732_v20  ;;  %v4456_v6 = vadd.f32 %v4322_v59, %v4275_v25  ;;  %v8733_v13 = vmul.f32 0.26601171, %v2732_v20 }
 0x43e   : > { %v2949_v43 = vrot.slane %v2820_v48, 1  ;;  %v4636_v14 = vadd.f32 %v4501_v16, %v4455_v2  ;;  %v3250_v47 = vrot.slane %v3121_v37, 2  ;;  %v2622_v33 = vsel %vm2607_vm2, %v11699_v22, %v2621_v36 }
 0x43f   : > { %v3550_v46 = vrot.slane %v8729_v10, 3  ;;  %v3851_v28 = vrot.slane %v8731_v21, 4  ;;  %v4637_v9 = vadd.f32 %v4503_v35, %v4456_v6  ;;  %v4152_v38 = vrot.slane %v8733_v13, 5 }
 0x440   : > { %v4333_v26 = vrot.slane %v8731_v21, 6  ;;  %v4514_v42 = vrot.slane %v8729_v10, 7  ;;  %v8741_v59 = vadd.f32 %v4636_v14, %v8686_v0  ;;  %v8747_v39 = vsel %vm2607_vm2, %v2621_v36, 0.0  ;;  %v2248_v14 = vpop.permute.xlu0 %2247 }
 0x441   : > { %v4677_v32 = vadd.f32 %v4637_v9, %v8689_v17  ;;  %v8753_v18 = vmul.f32 0.0010283801, %v2622_v33  ;;  %v2821_v16 = vmul.f32 0.007598758, %v2622_v33  ;;  %v8756_v55 = vmul.f32 0.007598758, %v8747_v39 }
 0x442   : > { %11698 = vst [vmem:[#allocation169_spill] sm:$0xff] %v8741_v59  ;;  %v8758_v0 = vmul.f32 0.036000773, %v2622_v33  ;;  %v8761_v12 = vmul.f32 0.036000773, %v8747_v39  ;;  %v8764_v35 = vadd.f32 %v2430_v62, %v8492_v29 }
 0x443   : > { %11700 = vst [vmem:[#allocation172_spill] sm:$0xff] %v8753_v18  ;;  %11701 = vst [vmem:[#allocation173_spill] sm:$0xff] %v8756_v55  ;;  %v3423_v54 = vmul.f32 0.10936069, %v2622_v33  ;;  %v8766_v50 = vadd.f32 %v4717_v57, %v4677_v32  ;;  %v2950_v51 = vrot.slane %v2821_v16, 1  ;;  %v10606_v17 = vrot.slane %v8756_v55, 1 }
 0x444   : > { %v3424_v20 = vmul.f32 0.10936069, %v8747_v39  ;;  %v3251_v25 = vrot.slane %v8758_v0, 2  ;;  %v3253_v48 = vrot.slane %v8761_v12, 2  ;;  %v3723_v37 = vmul.f32 0.21300554, %v2622_v33  ;;  %v2264_v52 = vpop.permute.xlu0 %2263 }
 0x445   : > { %11702 = vst [vmem:[#allocation176_spill] sm:$0xff] %v8766_v50  ;;  %v3551_v2 = vrot.slane %v3423_v54, 3  ;;  %v2951_v10 = vsel %vm2928_vm3, %v2949_v43, %v2950_v51  ;;  %v8776_v29 = vsel %vm2928_vm3, %v2950_v51, %v10606_v17  ;;  %v3724_v21 = vmul.f32 0.21300554, %v8747_v39 }
 0x446   : > { %v3553_v57 = vrot.slane %v3424_v20, 3  ;;  %v3077_v6 = vadd.f32 %v2951_v10, %v2776_v27  ;;  %v3078_v13 = vadd.f32 %v8776_v29, %v8753_v18  ;;  %v3252_v36 = vsel %vm3229_vm4, %v3250_v47, %v3251_v25  ;;  %v2250_v27 = vpop.permute.xlu1 %2249 }
 0x447   : > { %v3254_v4 = vsel %vm3229_vm4, %v3251_v25, %v3253_v48  ;;  %v3552_v9 = vsel %vm2607_vm2, %v3550_v46, %v3551_v2  ;;  %v3852_v62 = vrot.slane %v3723_v37, 4  ;;  %v3854_v22 = vrot.slane %v3724_v21, 4 }
 0x448   : > { %v3554_v43 = vsel %vm2607_vm2, %v3551_v2, %v3553_v57  ;;  %v3378_v32 = vadd.f32 %v3252_v36, %v3077_v6  ;;  %v3379_v16 = vadd.f32 %v3254_v4, %v3078_v13  ;;  %v4024_v51 = vmul.f32 0.26601171, %v2622_v33 }
 0x449   : > { %v4025_v17 = vmul.f32 0.26601171, %v8747_v39  ;;  %v3853_v10 = vsel %vm3830_vm5, %v3851_v28, %v3852_v62  ;;  %v3855_v50 = vsel %vm3830_vm5, %v3852_v62, %v3854_v22  ;;  %v4334_v47 = vrot.slane %v3723_v37, 6 }
 0x44a   : > { %v4336_v59 = vrot.slane %v3724_v21, 6  ;;  %v3678_v25 = vadd.f32 %v3552_v9, %v3378_v32  ;;  %v3679_v48 = vadd.f32 %v3554_v43, %v3379_v16  ;;  %v4153_v3 = vrot.slane %v4024_v51, 5 }
 0x44b   : > { %v4155_v46 = vrot.slane %v4025_v17, 5  ;;  %v4335_v2 = vsel %vm4312_vm6, %v4333_v26, %v4334_v47  ;;  %v4515_v6 = vrot.slane %v3423_v54, 7  ;;  %v4517_v13 = vrot.slane %v3424_v20, 7 }
 0x44c   : > { %v4337_v57 = vsel %vm4312_vm6, %v4334_v47, %v4336_v59  ;;  %v3979_v33 = vadd.f32 %v3853_v10, %v3678_v25  ;;  %v3980_v36 = vadd.f32 %v3855_v50, %v3679_v48  ;;  %v4154_v4 = vsel %vm4131_vm8, %v4152_v38, %v4153_v3  ;;  %v2266_v50 = vpop.permute.xlu1 %2265  ;;  %v2416_v25 = vpop.permute.xlu0 %2415 }
 0x44d   : > { %v4156_v28 = vsel %vm4131_vm8, %v4153_v3, %v4155_v46  ;;  %v4516_v9 = vsel %vm4493_vm7, %v4514_v42, %v4515_v6  ;;  %v4518_v17 = vsel %vm4493_vm7, %v4515_v6, %v4517_v13  ;;  %v2623_v59 = vrot.slane %v8750_v56, 3 }
 0x44e   : > { %v4280_v26 = vadd.f32 %v4154_v4, %v3979_v33  ;;  %v4281_v43 = vadd.f32 %v4156_v28, %v3980_v36  ;;  %v2624_v54 = vrot.slane %v8764_v35, 3  ;;  %v8799_v38 = vmul.f32 0.0010283801, %v8672_v31 }
 0x44f   : > { %v8802_v3 = vadd.f32 %v2248_v14, %v8496_v5  ;;  %v8805_v20 = vadd.f32 %v2250_v27, %v8500_v7  ;;  %v8808_v42 = vadd.f32 %v2264_v52, %v8503_v15  ;;  %v2733_v32 = vsel %vm2607_vm2, 0.0, %v2623_v59 }
 0x450   : > { %11703 = vst [vmem:[#allocation177_spill] sm:$0xff] %v8799_v38  ;;  %v4461_v62 = vadd.f32 %v4335_v2, %v4280_v26  ;;  %v4462_v22 = vadd.f32 %v4337_v57, %v4281_v43  ;;  %v2625_v56 = vsel %vm2607_vm2, %v2623_v59, %v2624_v54  ;;  %v2778_v35 = vmul.f32 0.0010283801, %v2733_v32  ;;  %v2418_v57 = vpop.permute.xlu1 %2417  ;;  %v2432_v21 = vpop.permute.xlu0 %2431 }
 0x451   : > { %v2823_v16 = vmul.f32 0.007598758, %v2733_v32  ;;  %v3124_v51 = vmul.f32 0.036000773, %v2733_v32  ;;  %v8813_v31 = vadd.f32 %v2266_v50, %v8508_v19  ;;  %v3425_v10 = vmul.f32 0.10936069, %v2733_v32 }
 0x452   : > { %v4642_v5 = vadd.f32 %v4516_v9, %v4461_v62  ;;  %v4643_v14 = vadd.f32 %v4518_v17, %v4462_v22  ;;  %v3725_v7 = vmul.f32 0.21300554, %v2733_v32  ;;  %v4026_v15 = vmul.f32 0.26601171, %v2733_v32 }
 0x453   : > { %v2954_v27 = vrot.slane %v2823_v16, 1  ;;  %v3255_v47 = vrot.slane %v3124_v51, 2  ;;  %v8816_v52 = vsel %vm2607_vm2, %v2624_v54, 0.0  ;;  %v3555_v2 = vrot.slane %v3425_v10, 3 }
 0x454   : > { %v8819_v48 = vadd.f32 %v4642_v5, %v8758_v0  ;;  %v8822_v46 = vadd.f32 %v4643_v14, %v8761_v12  ;;  %v3856_v19 = vrot.slane %v3725_v7, 4  ;;  %v4157_v6 = vrot.slane %v4026_v15, 5 }
 0x455   : > { %v4338_v13 = vrot.slane %v3725_v7, 6  ;;  %v4519_v33 = vrot.slane %v3425_v10, 7  ;;  %v8824_v36 = vmul.f32 0.0010283801, %v2625_v56  ;;  %v2824_v4 = vmul.f32 0.007598758, %v2625_v56 }
 0x456   : > { %11704 = vst [vmem:[#allocation180_spill] sm:$0xff] %v8822_v46  ;;  %v8827_v28 = vmul.f32 0.007598758, %v8816_v52  ;;  %v8829_v9 = vmul.f32 0.036000773, %v2625_v56  ;;  %v2531_v0 = vadd.f32 %v2416_v25, %v8511_v63  ;;  %v2532_v43 = vadd.f32 %v2418_v57, %v8514_v34 }
 0x457   : > { %11705 = vst [vmem:[#allocation181_spill] sm:$0xff] %v8824_v36  ;;  %v8833_v17 = vmul.f32 0.036000773, %v8816_v52  ;;  %v3426_v12 = vmul.f32 0.10936069, %v2625_v56  ;;  %v2955_v59 = vrot.slane %v2824_v4, 1 }
 0x458   : > { %11706 = vst [vmem:[#allocation184_spill] sm:$0xff] %v8827_v28  ;;  %v3427_v26 = vmul.f32 0.10936069, %v8816_v52  ;;  %v10608_v54 = vrot.slane %v8827_v28, 1  ;;  %v3256_v50 = vrot.slane %v8829_v9, 2 }
 0x459   : > { %v3726_v62 = vmul.f32 0.21300554, %v2625_v56  ;;  %v3258_v22 = vrot.slane %v8833_v17, 2  ;;  %v3556_v32 = vrot.slane %v3426_v12, 3  ;;  %v3727_v63 = vmul.f32 0.21300554, %v8816_v52 }
 0x45a   : > { %v3558_v16 = vrot.slane %v3427_v26, 3  ;;  %v2956_v51 = vsel %vm2928_vm3, %v2954_v27, %v2955_v59  ;;  %v8845_v5 = vsel %vm2928_vm3, %v2955_v59, %v10608_v54  ;;  %v3257_v34 = vsel %vm3229_vm4, %v3255_v47, %v3256_v50 }
 0x45b   : > { %11707 = vst [vmem:[#allocation185_spill] sm:$0xff] %v8845_v5  ;;  %v3857_v14 = vrot.slane %v3726_v62, 4  ;;  %v3079_v10 = vadd.f32 %v2956_v51, %v2778_v35  ;;  %v3080_v7 = vadd.f32 %v8845_v5, %v8824_v36  ;;  %v3259_v15 = vsel %vm3229_vm4, %v3256_v50, %v3258_v22 }
 0x45c   : > { %v3557_v25 = vsel %vm2607_vm2, %v3555_v2, %v3556_v32  ;;  %v3559_v57 = vsel %vm2607_vm2, %v3556_v32, %v3558_v16  ;;  %v3859_v4 = vrot.slane %v3727_v63, 4  ;;  %v4027_v37 = vmul.f32 0.26601171, %v2625_v56 }
 0x45d   : > { %v3858_v27 = vsel %vm3830_vm5, %v3856_v19, %v3857_v14  ;;  %v3380_v59 = vadd.f32 %v3257_v34, %v3079_v10  ;;  %v3381_v54 = vadd.f32 %v3259_v15, %v3080_v7  ;;  %v4028_v47 = vmul.f32 0.26601171, %v8816_v52  ;;  %v2252_v15 = vpop.permute.xlu0 %2251 }
 0x45e   : > { %v4339_v28 = vrot.slane %v3726_v62, 6  ;;  %v3860_v35 = vsel %vm3830_vm5, %v3857_v14, %v3859_v4  ;;  %v4158_v51 = vrot.slane %v4027_v37, 5  ;;  %v4341_v5 = vrot.slane %v3727_v63, 6  ;;  %v2434_v63 = vpop.permute.xlu1 %2433 }
 0x45f   : > { %v4520_v46 = vrot.slane %v3426_v12, 7  ;;  %v3680_v50 = vadd.f32 %v3557_v25, %v3380_v59  ;;  %v3681_v22 = vadd.f32 %v3559_v57, %v3381_v54  ;;  %v4160_v2 = vrot.slane %v4028_v47, 5 }
 0x460   : > { %v4340_v32 = vsel %vm4312_vm6, %v4338_v13, %v4339_v28  ;;  %v4159_v19 = vsel %vm4131_vm8, %v4157_v6, %v4158_v51  ;;  %v4342_v56 = vsel %vm4312_vm6, %v4339_v28, %v4341_v5  ;;  %v4522_v34 = vrot.slane %v3427_v26, 7 }
 0x461   : > { %v4521_v16 = vsel %vm4493_vm7, %v4519_v33, %v4520_v46  ;;  %v3981_v62 = vadd.f32 %v3858_v27, %v3680_v50  ;;  %v3982_v7 = vadd.f32 %v3860_v35, %v3681_v22  ;;  %v4161_v37 = vsel %vm4131_vm8, %v4158_v51, %v4160_v2 }
 0x462   : > { %v4523_v54 = vsel %vm4493_vm7, %v4520_v46, %v4522_v34  ;;  %v2614_v14 = vrot.slane %v2531_v0, 3  ;;  %v2615_v13 = vrot.slane %v2532_v43, 3  ;;  %v8865_v6 = vmul.f32 0.0010283801, %v8747_v39  ;;  %v2254_v22 = vpop.permute.xlu1 %2253 }
 0x463   : > { %v4282_v28 = vadd.f32 %v4159_v19, %v3981_v62  ;;  %v4283_v33 = vadd.f32 %v4161_v37, %v3982_v7  ;;  %v8868_v26 = vadd.f32 %v2432_v21, %v8517_v1  ;;  %v8876_v46 = vadd.f32 %v2434_v63, %v8520_v53 }
 0x464   : > { %11708 = vst [vmem:[#allocation188_spill] sm:$0xff] %v8865_v6  ;;  %v2730_v5 = vsel %vm2607_vm2, 0.0, %v2614_v14  ;;  %v2616_v25 = vsel %vm2607_vm2, %v2614_v14, %v2615_v13  ;;  %v8873_v57 = vsel %vm2607_vm2, %v2615_v13, 0.0  ;;  %v8881_v1 = vadd.f32 %v2252_v15, %v8524_v60 }
 0x465   : > { %v4463_v0 = vadd.f32 %v4340_v32, %v4282_v28  ;;  %v4464_v43 = vadd.f32 %v4342_v56, %v4283_v33  ;;  %v2772_v27 = vmul.f32 0.0010283801, %v2730_v5  ;;  %v2814_v39 = vmul.f32 0.007598758, %v2730_v5  ;;  %v2268_v56 = vpop.permute.xlu0 %2267 }
 0x466   : > { %v3115_v4 = vmul.f32 0.036000773, %v2730_v5  ;;  %v8878_v59 = vmul.f32 0.10936069, %v2730_v5  ;;  %v3716_v47 = vmul.f32 0.21300554, %v2730_v5 }
 0x467   : > { %v4644_v21 = vadd.f32 %v4521_v16, %v4463_v0  ;;  %v4645_v35 = vadd.f32 %v4523_v54, %v4464_v43  ;;  %v2939_v51 = vrot.slane %v2814_v39, 1  ;;  %v4017_v50 = vmul.f32 0.26601171, %v2730_v5 }
 0x468   : > { %v3240_v2 = vrot.slane %v3115_v4, 2  ;;  %v3540_v53 = vrot.slane %v8878_v59, 3  ;;  %v3841_v19 = vrot.slane %v3716_v47, 4  ;;  %v4323_v32 = vrot.slane %v3716_v47, 6 }
 0x469   : > { %v8885_v34 = vadd.f32 %v4644_v21, %v8829_v9  ;;  %v8888_v62 = vadd.f32 %v4645_v35, %v8833_v17  ;;  %v4142_v7 = vrot.slane %v4017_v50, 5  ;;  %v4504_v60 = vrot.slane %v8878_v59, 7 }
 0x46a   : > { %v8891_v16 = vmul.f32 0.0010283801, %v2616_v25  ;;  %v2815_v37 = vmul.f32 0.007598758, %v2616_v25  ;;  %v2816_v63 = vmul.f32 0.007598758, %v8873_v57  ;;  %v8895_v54 = vadd.f32 %v2254_v22, %v8535_v44 }
 0x46b   : > { %11709 = vst [vmem:[#allocation189_spill] sm:$0xff] %v8885_v34  ;;  %11710 = vst [vmem:[#allocation192_spill] sm:$0xff] %v8888_v62  ;;  %v8897_v14 = vmul.f32 0.036000773, %v2616_v25  ;;  %v8900_v13 = vmul.f32 0.036000773, %v8873_v57  ;;  %v8903_v17 = vadd.f32 %v2268_v56, %v8539_v41  ;;  %v2270_v56 = vpop.permute.xlu1 %2269 }
 0x46c   : > { %11711 = vst [vmem:[#allocation193_spill] sm:$0xff] %v8891_v16  ;;  %v3417_v9 = vmul.f32 0.10936069, %v2616_v25  ;;  %v2940_v15 = vrot.slane %v2815_v37, 1  ;;  %v2942_v28 = vrot.slane %v2816_v63, 1 }
 0x46d   : > { %v3418_v33 = vmul.f32 0.10936069, %v8873_v57  ;;  %v3717_v5 = vmul.f32 0.21300554, %v2616_v25  ;;  %v3241_v0 = vrot.slane %v8897_v14, 2  ;;  %v3243_v43 = vrot.slane %v8900_v13, 2 }
 0x46e   : > { %v3541_v44 = vrot.slane %v3417_v9, 3  ;;  %v3718_v39 = vmul.f32 0.21300554, %v8873_v57  ;;  %v2941_v4 = vsel %vm2928_vm3, %v2939_v51, %v2940_v15  ;;  %v8911_v59 = vsel %vm2928_vm3, %v2940_v15, %v2942_v28 }
 0x46f   : > { %11712 = vst [vmem:[#allocation195_spill] sm:$0xff] %v8911_v59  ;;  %v3543_v47 = vrot.slane %v3418_v33, 3  ;;  %v3842_v41 = vrot.slane %v3717_v5, 4  ;;  %v3073_v21 = vadd.f32 %v2941_v4, %v2772_v27  ;;  %v3074_v35 = vadd.f32 %v8911_v59, %v8891_v16  ;;  %v2420_v4 = vpop.permute.xlu0 %2419 }
 0x470   : > { %v3242_v50 = vsel %vm3229_vm4, %v3240_v2, %v3241_v0  ;;  %v3244_v22 = vsel %vm3229_vm4, %v3241_v0, %v3243_v43  ;;  %v3542_v37 = vsel %vm2607_vm2, %v3540_v53, %v3541_v44  ;;  %v3844_v10 = vrot.slane %v3718_v39, 4 }
 0x471   : > { %v3544_v63 = vsel %vm2607_vm2, %v3541_v44, %v3543_v47  ;;  %v3843_v51 = vsel %vm3830_vm5, %v3841_v19, %v3842_v41  ;;  %v3374_v15 = vadd.f32 %v3242_v50, %v3073_v21  ;;  %v3375_v12 = vadd.f32 %v3244_v22, %v3074_v35 }
 0x472   : > { %v4018_v62 = vmul.f32 0.26601171, %v2616_v25  ;;  %v4019_v27 = vmul.f32 0.26601171, %v8873_v57  ;;  %v3845_v59 = vsel %vm3830_vm5, %v3842_v41, %v3844_v10  ;;  %v4324_v49 = vrot.slane %v3717_v5, 6  ;;  %v2422_v5 = vpop.permute.xlu1 %2421  ;;  %v11714_v41 = vld [vmem:[#allocation43_spill] sm:$0xff] }
 0x473   : > { %v4326_v2 = vrot.slane %v3718_v39, 6  ;;  %v4505_v38 = vrot.slane %v3417_v9, 7  ;;  %v3674_v0 = vadd.f32 %v3542_v37, %v3374_v15  ;;  %v3675_v43 = vadd.f32 %v3544_v63, %v3375_v12 }
 0x474   : > { %v4143_v34 = vrot.slane %v4018_v62, 5  ;;  %v4145_v53 = vrot.slane %v4019_v27, 5  ;;  %v4325_v44 = vsel %vm4312_vm6, %v4323_v32, %v4324_v49  ;;  %v4507_v21 = vrot.slane %v3418_v33, 7 }
 0x475   : > { %v4327_v19 = vsel %vm4312_vm6, %v4324_v49, %v4326_v2  ;;  %v4506_v47 = vsel %vm4493_vm7, %v4504_v60, %v4505_v38  ;;  %v3975_v25 = vadd.f32 %v3843_v51, %v3674_v0  ;;  %v3976_v35 = vadd.f32 %v3845_v59, %v3675_v43  ;;  %v2436_v59 = vpop.permute.xlu0 %2435  ;;  %v11716_v2 = vld [vmem:[#allocation145_spill] sm:$0xff] }
 0x476   : > { %v4144_v50 = vsel %vm4131_vm8, %v4142_v7, %v4143_v34  ;;  %v4146_v10 = vsel %vm4131_vm8, %v4143_v34, %v4145_v53  ;;  %v8930_v62 = vmul.f32 0.0010283801, %v8816_v52  ;;  %v4508_v32 = vsel %vm4493_vm7, %v4505_v38, %v4507_v21  ;;  %v11715_v52 = vld [vmem:[#allocation144_spill] sm:$0xff] }
 0x477   : > { %v4276_v49 = vadd.f32 %v4144_v50, %v3975_v25  ;;  %v4277_v39 = vadd.f32 %v4146_v10, %v3976_v35  ;;  %v2626_v60 = vrot.slane %v8868_v26, 3  ;;  %v2627_v33 = vrot.slane %v8876_v46, 3  ;;  %v2438_v10 = vpop.permute.xlu1 %2437 }
 0x478   : > { %11713 = vst [vmem:[#allocation196_spill] sm:$0xff] %v8930_v62  ;;  %v4718_v34 = vsel %vm2928_vm3, %v2942_v28, %v8531_v8  ;;  %v8938_v7 = vadd.f32 %v2270_v56, %v8543_v11  ;;  %v8941_v22 = vadd.f32 %v2420_v4, %v11714_v41  ;;  %v8944_v37 = vadd.f32 %v2422_v5, %v11715_v52  ;;  %v11721_v52 = vld [vmem:[#allocation148_spill] sm:$0xff] }
 0x479   : > { %v4457_v38 = vadd.f32 %v4325_v44, %v4276_v49  ;;  %v4458_v63 = vadd.f32 %v4327_v19, %v4277_v39  ;;  %v2734_v51 = vsel %vm2607_vm2, 0.0, %v2626_v60  ;;  %v2628_v26 = vsel %vm2607_vm2, %v2626_v60, %v2627_v33 }
 0x47a   : > { %v2780_v46 = vmul.f32 0.0010283801, %v2734_v51  ;;  %v2826_v15 = vmul.f32 0.007598758, %v2734_v51  ;;  %v3127_v27 = vmul.f32 0.036000773, %v2734_v51  ;;  %v8949_v28 = vadd.f32 %v2436_v59, %v11716_v2 }
 0x47b   : > { %v4638_v11 = vadd.f32 %v4506_v47, %v4457_v38  ;;  %v4639_v56 = vadd.f32 %v4508_v32, %v4458_v63  ;;  %v3428_v0 = vmul.f32 0.10936069, %v2734_v51  ;;  %v3728_v4 = vmul.f32 0.21300554, %v2734_v51 }
 0x47c   : > { %v2959_v43 = vrot.slane %v2826_v15, 1  ;;  %v3260_v53 = vrot.slane %v3127_v27, 2  ;;  %v4029_v21 = vmul.f32 0.26601171, %v2734_v51  ;;  %v8952_v44 = vsel %vm2607_vm2, %v2627_v33, 0.0 }
 0x47d   : > { %v8955_v19 = vadd.f32 %v4638_v11, %v8897_v14  ;;  %v4679_v25 = vadd.f32 %v4639_v56, %v8900_v13  ;;  %v3560_v35 = vrot.slane %v3428_v0, 3  ;;  %v3861_v50 = vrot.slane %v3728_v4, 4 }
 0x47e   : > { %v4162_v5 = vrot.slane %v4029_v21, 5  ;;  %v4343_v49 = vrot.slane %v3728_v4, 6  ;;  %v4524_v47 = vrot.slane %v3428_v0, 7  ;;  %v8958_v32 = vmul.f32 0.0010283801, %v2628_v26 }
 0x47f   : > { %11717 = vst [vmem:[#allocation197_spill] sm:$0xff] %v8955_v19  ;;  %v8960_v39 = vadd.f32 %v4718_v34, %v4679_v25  ;;  %v2827_v60 = vmul.f32 0.007598758, %v2628_v26  ;;  %v8963_v59 = vmul.f32 0.007598758, %v8952_v44  ;;  %v8972_v38 = vadd.f32 %v2438_v10, %v11721_v52 }
 0x480   : > { %11718 = vst [vmem:[#allocation198_spill] sm:$0xff] %v8958_v32  ;;  %v8965_v33 = vmul.f32 0.036000773, %v2628_v26  ;;  %v8968_v14 = vmul.f32 0.036000773, %v8952_v44 }
 0x481   : > { %11719 = vst [vmem:[#allocation199_spill] sm:$0xff] %v8960_v39  ;;  %11720 = vst [vmem:[#allocation200_spill] sm:$0xff] %v8963_v59  ;;  %v3429_v13 = vmul.f32 0.10936069, %v2628_v26  ;;  %v3430_v41 = vmul.f32 0.10936069, %v8952_v44 }
 0x482   : > { %v2960_v63 = vrot.slane %v2827_v60, 1  ;;  %v10616_v51 = vrot.slane %v8963_v59, 1  ;;  %v3261_v34 = vrot.slane %v8965_v33, 2  ;;  %v3729_v15 = vmul.f32 0.21300554, %v2628_v26 }
 0x483   : > { %v3263_v27 = vrot.slane %v8968_v14, 2  ;;  %v3561_v2 = vrot.slane %v3429_v13, 3  ;;  %v3563_v11 = vrot.slane %v3430_v41, 3  ;;  %v3730_v56 = vmul.f32 0.21300554, %v8952_v44 }
 0x484   : > { %v2961_v0 = vsel %vm2928_vm3, %v2959_v43, %v2960_v63  ;;  %v8982_v4 = vsel %vm2928_vm3, %v2960_v63, %v10616_v51  ;;  %v3262_v21 = vsel %vm3229_vm4, %v3260_v53, %v3261_v34  ;;  %v3862_v25 = vrot.slane %v3729_v15, 4 }
 0x485   : > { %11722 = vst [vmem:[#allocation201_spill] sm:$0xff] %v8982_v4  ;;  %v3081_v10 = vadd.f32 %v2961_v0, %v2780_v46  ;;  %v3082_v60 = vadd.f32 %v8982_v4, %v8958_v32  ;;  %v3264_v52 = vsel %vm3229_vm4, %v3261_v34, %v3263_v27  ;;  %v3562_v9 = vsel %vm2607_vm2, %v3560_v35, %v3561_v2 }
 0x486   : > { %v3564_v12 = vsel %vm2607_vm2, %v3561_v2, %v3563_v11  ;;  %v3863_v43 = vsel %vm3830_vm5, %v3861_v50, %v3862_v25  ;;  %v3864_v39 = vrot.slane %v3730_v56, 4  ;;  %v4030_v59 = vmul.f32 0.26601171, %v2628_v26 }
 0x487   : > { %v3382_v19 = vadd.f32 %v3262_v21, %v3081_v10  ;;  %v3383_v63 = vadd.f32 %v3264_v52, %v3082_v60  ;;  %v4031_v51 = vmul.f32 0.26601171, %v8952_v44  ;;  %v4344_v53 = vrot.slane %v3729_v15, 6 }
 0x488   : > { %v3865_v46 = vsel %vm3830_vm5, %v3862_v25, %v3864_v39  ;;  %v4163_v0 = vrot.slane %v4030_v59, 5  ;;  %v4346_v55 = vrot.slane %v3730_v56, 6  ;;  %v4525_v4 = vrot.slane %v3429_v13, 7 }
 0x489   : > { %v3682_v18 = vadd.f32 %v3562_v9, %v3382_v19  ;;  %v3683_v34 = vadd.f32 %v3564_v12, %v3383_v63  ;;  %v4165_v27 = vrot.slane %v4031_v51, 5  ;;  %v4345_v35 = vsel %vm4312_vm6, %v4343_v49, %v4344_v53 }
 0x48a   : > { %v4164_v2 = vsel %vm4131_vm8, %v4162_v5, %v4163_v0  ;;  %v4347_v50 = vsel %vm4312_vm6, %v4344_v53, %v4346_v55  ;;  %v4526_v26 = vsel %vm4493_vm7, %v4524_v47, %v4525_v4  ;;  %v4527_v11 = vrot.slane %v3430_v41, 7 }
 0x48b   : > { %v3983_v15 = vadd.f32 %v3863_v43, %v3682_v18  ;;  %v3984_v10 = vadd.f32 %v3865_v46, %v3683_v34  ;;  %v4166_v39 = vsel %vm4131_vm8, %v4163_v0, %v4165_v27  ;;  %v2617_v12 = vrot.slane %v8941_v22, 3 }
 0x48c   : > { %v4528_v9 = vsel %vm4493_vm7, %v4525_v4, %v4527_v11  ;;  %v2618_v19 = vrot.slane %v8944_v37, 3  ;;  %v9004_v5 = vmul.f32 0.0010283801, %v8873_v57  ;;  %v10621_v47 = vrot.slane %v8949_v28, 3 }
 0x48d   : > { %v4284_v55 = vadd.f32 %v4164_v2, %v3983_v15  ;;  %v4285_v49 = vadd.f32 %v4166_v39, %v3984_v10  ;;  %v2731_v18 = vsel %vm2607_vm2, 0.0, %v2617_v12  ;;  %v10620_v51 = vrot.slane %v8972_v38, 3  ;;  %v2440_v2 = vpop.permute.xlu0 %2439  ;;  %v11726_v39 = vld [vmem:[#allocation140_spill] sm:$0xff] }
 0x48e   : > { %11723 = vst [vmem:[#allocation202_spill] sm:$0xff] %v9004_v5  ;;  %v2619_v13 = vsel %vm2607_vm2, %v2617_v12, %v2618_v19  ;;  %v9010_v41 = vsel %vm2607_vm2, %v2618_v19, 0.0  ;;  %v2774_v4 = vmul.f32 0.0010283801, %v2731_v18  ;;  %v2817_v37 = vmul.f32 0.007598758, %v2731_v18 }
 0x48f   : > { %v4465_v56 = vadd.f32 %v4345_v35, %v4284_v55  ;;  %v4466_v22 = vadd.f32 %v4347_v50, %v4285_v49  ;;  %v3118_v25 = vmul.f32 0.036000773, %v2731_v18  ;;  %v3419_v57 = vmul.f32 0.10936069, %v2731_v18  ;;  %v11727_v12 = vld [vmem:[#allocation141_spill] sm:$0xff] }
 0x490   : > { %v3719_v60 = vmul.f32 0.21300554, %v2731_v18  ;;  %v9018_v52 = vsel %vm2607_vm2, %v10621_v47, %v10620_v51  ;;  %v2944_v53 = vrot.slane %v2817_v37, 1  ;;  %v4020_v46 = vmul.f32 0.26601171, %v2731_v18 }
 0x491   : > { %v4646_v43 = vadd.f32 %v4526_v26, %v4465_v56  ;;  %v4647_v63 = vadd.f32 %v4528_v9, %v4466_v22  ;;  %v3245_v0 = vrot.slane %v3118_v25, 2  ;;  %v3545_v34 = vrot.slane %v3419_v57, 3  ;;  %v11729_v56 = vld [vmem:[#allocation149_spill] sm:$0xff] }
 0x492   : > { %v3846_v27 = vrot.slane %v3719_v60, 4  ;;  %v4328_v35 = vrot.slane %v3719_v60, 6  ;;  %v4147_v15 = vrot.slane %v4020_v46, 5  ;;  %v4509_v10 = vrot.slane %v3419_v57, 7 }
 0x493   : > { %v9021_v50 = vadd.f32 %v4646_v43, %v8965_v33  ;;  %v9024_v11 = vadd.f32 %v4647_v63, %v8968_v14  ;;  %v9028_v19 = vadd.f32 %v11727_v12, %v11726_v39  ;;  %v9030_v26 = vmul.f32 0.0010283801, %v2619_v13 }
 0x494   : > { %v2818_v9 = vmul.f32 0.007598758, %v2619_v13  ;;  %v2819_v55 = vmul.f32 0.007598758, %v9010_v41  ;;  %v9033_v49 = vmul.f32 0.036000773, %v2619_v13  ;;  %v9039_v14 = vadd.f32 %v2440_v2, %v11729_v56 }
 0x495   : > { %11724 = vst [vmem:[#allocation203_spill] sm:$0xff] %v9021_v50  ;;  %11725 = vst [vmem:[#allocation204_spill] sm:$0xff] %v9024_v11  ;;  %v9036_v18 = vmul.f32 0.036000773, %v9010_v41  ;;  %v3420_v33 = vmul.f32 0.10936069, %v2619_v13 }
 0x496   : > { %11728 = vst [vmem:[#allocation205_spill] sm:$0xff] %v9030_v26  ;;  %v2945_v22 = vrot.slane %v2818_v9, 1  ;;  %v2947_v37 = vrot.slane %v2819_v55, 1  ;;  %v3421_v25 = vmul.f32 0.10936069, %v9010_v41  ;;  %v3246_v60 = vrot.slane %v9033_v49, 2 }
 0x497   : > { %v3720_v57 = vmul.f32 0.21300554, %v2619_v13  ;;  %v3248_v43 = vrot.slane %v9036_v18, 2  ;;  %v3546_v63 = vrot.slane %v3420_v33, 3  ;;  %v3721_v46 = vmul.f32 0.21300554, %v9010_v41 }
 0x498   : > { %v2946_v39 = vsel %vm2928_vm3, %v2944_v53, %v2945_v22  ;;  %v9047_v12 = vsel %vm2928_vm3, %v2945_v22, %v2947_v37  ;;  %v3548_v21 = vrot.slane %v3421_v25, 3  ;;  %v3247_v55 = vsel %vm3229_vm4, %v3245_v0, %v3246_v60 }
 0x499   : > { %11730 = vst [vmem:[#allocation206_spill] sm:$0xff] %v9047_v12  ;;  %v3847_v2 = vrot.slane %v3720_v57, 4  ;;  %v3075_v56 = vadd.f32 %v2946_v39, %v2774_v4  ;;  %v3076_v9 = vadd.f32 %v9047_v12, %v9030_v26  ;;  %v3249_v59 = vsel %vm3229_vm4, %v3246_v60, %v3248_v43 }
 0x49a   : > { %v3547_v51 = vsel %vm2607_vm2, %v3545_v34, %v3546_v63  ;;  %v3549_v47 = vsel %vm2607_vm2, %v3546_v63, %v3548_v21  ;;  %v3849_v53 = vrot.slane %v3721_v46, 4  ;;  %v4021_v36 = vmul.f32 0.26601171, %v2619_v13 }
 0x49b   : > { %v3848_v11 = vsel %vm3830_vm5, %v3846_v27, %v3847_v2  ;;  %v3376_v50 = vadd.f32 %v3247_v55, %v3075_v56  ;;  %v3377_v22 = vadd.f32 %v3249_v59, %v3076_v9  ;;  %v4022_v62 = vmul.f32 0.26601171, %v9010_v41 }
 0x49c   : > { %v3850_v4 = vsel %vm3830_vm5, %v3847_v2, %v3849_v53  ;;  %v4329_v39 = vrot.slane %v3720_v57, 6  ;;  %v4331_v12 = vrot.slane %v3721_v46, 6  ;;  %v4510_v6 = vrot.slane %v3420_v33, 7 }
 0x49d   : > { %v3676_v0 = vadd.f32 %v3547_v51, %v3376_v50  ;;  %v3677_v58 = vadd.f32 %v3549_v47, %v3377_v22  ;;  %v4148_v60 = vrot.slane %v4021_v36, 5  ;;  %v4150_v43 = vrot.slane %v4022_v62, 5 }
 0x49e   : > { %v4330_v34 = vsel %vm4312_vm6, %v4328_v35, %v4329_v39  ;;  %v4332_v21 = vsel %vm4312_vm6, %v4329_v39, %v4331_v12  ;;  %v4511_v27 = vsel %vm4493_vm7, %v4509_v10, %v4510_v6  ;;  %v4512_v63 = vrot.slane %v3421_v25, 7 }
 0x49f   : > { %v3977_v59 = vadd.f32 %v3848_v11, %v3676_v0  ;;  %v3978_v13 = vadd.f32 %v3850_v4, %v3677_v58  ;;  %v4149_v56 = vsel %vm4131_vm8, %v4147_v15, %v4148_v60  ;;  %v4151_v2 = vsel %vm4131_vm8, %v4148_v60, %v4150_v43  ;;  %v2444_v0 = vpop.permute.xlu0 %2443 }
 0x4a0   : > { %v9066_v36 = vmul.f32 0.0010283801, %v8952_v44  ;;  %v4513_v62 = vsel %vm4493_vm7, %v4510_v6, %v4512_v63  ;;  %v4719_v50 = vsel %vm2928_vm3, %v2947_v37, %v8531_v8  ;;  %v11732_v58 = vrot.slane %v8949_v28, 3 }
 0x4a1   : > { %v4278_v47 = vadd.f32 %v4149_v56, %v3977_v59  ;;  %v4279_v35 = vadd.f32 %v4151_v2, %v3978_v13  ;;  %v11733_v33 = vrot.slane %v8972_v38, 3  ;;  %v10629_v44 = vrot.slane %v9039_v14, 3  ;;  %v2442_v56 = vpop.permute.xlu1 %2441 }
 0x4a2   : > { %11731 = vst [vmem:[#allocation207_spill] sm:$0xff] %v9066_v36  ;;  %v2735_v11 = vsel %vm2607_vm2, 0.0, %v11732_v58  ;;  %v9094_v13 = vmul.f32 0.0010283801, %v9018_v52 }
 0x4a3   : > { %v2782_v15 = vmul.f32 0.0010283801, %v2735_v11  ;;  %v2829_v10 = vmul.f32 0.007598758, %v2735_v11  ;;  %v9077_v25 = vsel %vm2607_vm2, %v11733_v33, 0.0  ;;  %v4459_v46 = vadd.f32 %v4330_v34, %v4278_v47 }
 0x4a4   : > { %v4460_v6 = vadd.f32 %v4332_v21, %v4279_v35  ;;  %v3130_v12 = vmul.f32 0.036000773, %v2735_v11  ;;  %v9080_v9 = vmul.f32 0.10936069, %v2735_v11  ;;  %v3731_v37 = vmul.f32 0.21300554, %v2735_v11 }
 0x4a5   : > { %v2964_v55 = vrot.slane %v2829_v10, 1  ;;  %v4032_v53 = vmul.f32 0.26601171, %v2735_v11  ;;  %v9085_v28 = vsel %vm2607_vm2, 0.0, %v10629_v44  ;;  %v4640_v22 = vadd.f32 %v4511_v27, %v4459_v46  ;;  %11735 = vst [vmem:[#allocation209_spill] sm:$0xff] %v9094_v13  ;;  %v11737_v35 = vld [vmem:[#allocation153_spill] sm:$0xff]  ;;  %v2446_v51 = vpop.permute.xlu1 %2445 }
 0x4a6   : > { %v4641_v38 = vadd.f32 %v4513_v62, %v4460_v6  ;;  %v3265_v4 = vrot.slane %v3130_v12, 2  ;;  %v3565_v39 = vrot.slane %v9080_v9, 3  ;;  %v3866_v60 = vrot.slane %v3731_v37, 4 }
 0x4a7   : > { %v4167_v43 = vrot.slane %v4032_v53, 5  ;;  %v4348_v34 = vrot.slane %v3731_v37, 6  ;;  %v4529_v21 = vrot.slane %v9080_v9, 7  ;;  %v9090_v63 = vadd.f32 %v4640_v22, %v9033_v49 }
 0x4a8   : > { %v4681_v59 = vadd.f32 %v4641_v38, %v9036_v18  ;;  %v2830_v27 = vmul.f32 0.007598758, %v9018_v52  ;;  %v9098_v2 = vmul.f32 0.007598758, %v9077_v25  ;;  %v9101_v62 = vmul.f32 0.036000773, %v9018_v52 }
 0x4a9   : > { %11734 = vst [vmem:[#allocation208_spill] sm:$0xff] %v9090_v63  ;;  %v9104_v47 = vmul.f32 0.036000773, %v9077_v25  ;;  %v9107_v49 = vadd.f32 %v2444_v0, %v11737_v35  ;;  %v3432_v11 = vmul.f32 0.10936069, %v9018_v52 }
 0x4aa   : > { %11736 = vst [vmem:[#allocation210_spill] sm:$0xff] %v9098_v2  ;;  %v9109_v58 = vadd.f32 %v4719_v50, %v4681_v59  ;;  %v2965_v18 = vrot.slane %v2830_v27, 1  ;;  %v3433_v10 = vmul.f32 0.10936069, %v9077_v25  ;;  %v10631_v33 = vrot.slane %v9098_v2, 1 }
 0x4ab   : > { %v3266_v46 = vrot.slane %v9101_v62, 2  ;;  %v3268_v6 = vrot.slane %v9104_v47, 2  ;;  %v3732_v12 = vmul.f32 0.21300554, %v9018_v52  ;;  %v3566_v37 = vrot.slane %v3432_v11, 3 }
 0x4ac   : > { %11738 = vst [vmem:[#allocation211_spill] sm:$0xff] %v9109_v58  ;;  %v2966_v9 = vsel %vm2928_vm3, %v2964_v55, %v2965_v18  ;;  %v3568_v53 = vrot.slane %v3433_v10, 3  ;;  %v3733_v50 = vmul.f32 0.21300554, %v9077_v25  ;;  %v9122_v22 = vsel %vm2928_vm3, %v2965_v18, %v10631_v33 }
 0x4ad   : > { %11739 = vst [vmem:[#allocation212_spill] sm:$0xff] %v9122_v22  ;;  %v3083_v38 = vadd.f32 %v2966_v9, %v2782_v15  ;;  %v3267_v0 = vsel %vm3229_vm4, %v3265_v4, %v3266_v46  ;;  %v3269_v59 = vsel %vm3229_vm4, %v3266_v46, %v3268_v6  ;;  %v3084_v27 = vadd.f32 %v9122_v22, %v9094_v13  ;;  %v2456_v15 = vpop.permute.xlu0 %2455 }
 0x4ae   : > { %v3567_v35 = vsel %vm2607_vm2, %v3565_v39, %v3566_v37  ;;  %v3569_v55 = vsel %vm2607_vm2, %v3566_v37, %v3568_v53  ;;  %v3867_v57 = vrot.slane %v3732_v12, 4  ;;  %v3869_v58 = vrot.slane %v3733_v50, 4 }
 0x4af   : > { %v3384_v44 = vadd.f32 %v3267_v0, %v3083_v38  ;;  %v4033_v2 = vmul.f32 0.26601171, %v9018_v52  ;;  %v4034_v18 = vmul.f32 0.26601171, %v9077_v25  ;;  %v3385_v9 = vadd.f32 %v3269_v59, %v3084_v27 }
 0x4b0   : > { %v3868_v4 = vsel %vm3830_vm5, %v3866_v60, %v3867_v57  ;;  %v4349_v46 = vrot.slane %v3732_v12, 6  ;;  %v4351_v6 = vrot.slane %v3733_v50, 6  ;;  %v3870_v22 = vsel %vm3830_vm5, %v3867_v57, %v3869_v58 }
 0x4b1   : > { %v3684_v33 = vadd.f32 %v3567_v35, %v3384_v44  ;;  %v4168_v39 = vrot.slane %v4033_v2, 5  ;;  %v4170_v63 = vrot.slane %v4034_v18, 5  ;;  %v3685_v37 = vadd.f32 %v3569_v55, %v3385_v9  ;;  %v2458_v2 = vpop.permute.xlu1 %2457  ;;  %v2460_v35 = vpop.permute.xlu0 %2459 }
 0x4b2   : > { %v4350_v53 = vsel %vm4312_vm6, %v4348_v34, %v4349_v46  ;;  %v4352_v38 = vsel %vm4312_vm6, %v4349_v46, %v4351_v6  ;;  %v4530_v0 = vrot.slane %v3432_v11, 7  ;;  %v4532_v27 = vrot.slane %v3433_v10, 7  ;;  %v11740_v11 = vld [vmem:[#allocation152_spill] sm:$0xff] }
 0x4b3   : > { %v3985_v52 = vadd.f32 %v3868_v4, %v3684_v33  ;;  %v4169_v16 = vsel %vm4131_vm8, %v4167_v43, %v4168_v39  ;;  %v4171_v59 = vsel %vm4131_vm8, %v4168_v39, %v4170_v63  ;;  %v3986_v12 = vadd.f32 %v3870_v22, %v3685_v37 }
 0x4b4   : > { %v4531_v57 = vsel %vm4493_vm7, %v4529_v21, %v4530_v0  ;;  %v4533_v34 = vsel %vm4493_vm7, %v4530_v0, %v4532_v27  ;;  %v2832_v50 = vmul.f32 0.007598758, %v9085_v28  ;;  %v2544_v33 = vadd.f32 %v2442_v56, %v11740_v11  ;;  %v11741_v27 = vld [vmem:[#allocation156_spill] sm:$0xff] }
 0x4b5   : > { %v4286_v58 = vadd.f32 %v4169_v16, %v3985_v52  ;;  %v4287_v43 = vadd.f32 %v4171_v59, %v3986_v12  ;;  %v2784_v63 = vmul.f32 0.0010283801, %v9085_v28  ;;  %v3133_v10 = vmul.f32 0.036000773, %v9085_v28 }
 0x4b6   : > { %v9147_v55 = vmul.f32 0.10936069, %v9085_v28  ;;  %v2969_v18 = vrot.slane %v2832_v50, 1  ;;  %v9150_v21 = vmul.f32 0.21300554, %v9085_v28  ;;  %v2633_v52 = vrot.slane %v2544_v33, 3 }
 0x4b7   : > { %v4467_v22 = vadd.f32 %v4350_v53, %v4286_v58  ;;  %v9153_v16 = vmul.f32 0.26601171, %v9085_v28  ;;  %v4468_v9 = vadd.f32 %v4352_v38, %v4287_v43  ;;  %v3270_v4 = vrot.slane %v3133_v10, 2  ;;  %v2462_v38 = vpop.permute.xlu1 %2461 }
 0x4b8   : > { %v3570_v56 = vrot.slane %v9147_v55, 3  ;;  %v4534_v46 = vrot.slane %v9147_v55, 7  ;;  %v3871_v39 = vrot.slane %v9150_v21, 4  ;;  %v4353_v53 = vrot.slane %v9150_v21, 6 }
 0x4b9   : > { %v4648_v6 = vadd.f32 %v4531_v57, %v4467_v22  ;;  %v4649_v0 = vadd.f32 %v4533_v34, %v4468_v9  ;;  %v10634_v59 = vrot.slane %v9107_v49, 3  ;;  %v9162_v28 = vadd.f32 %v2446_v51, %v11741_v27  ;;  %v2448_v34 = vpop.permute.xlu0 %2447 }
 0x4ba   : > { %v9168_v58 = vadd.f32 %v2456_v15, %v8644_v23  ;;  %v9171_v57 = vadd.f32 %v2458_v2, %v8648_v45  ;;  %v9174_v50 = vadd.f32 %v2460_v35, %v8716_v30  ;;  %v11744_v51 = vrot.slane %v9039_v14, 3 }
 0x4bb   : > { %v9165_v12 = vadd.f32 %v4648_v6, %v9101_v62  ;;  %v9177_v11 = vadd.f32 %v4649_v0, %v9104_v47  ;;  %v2756_v62 = vsel %vm2607_vm2, %v2633_v52, 0.0  ;;  %v9186_v23 = vsel %vm2607_vm2, 0.0, %v10634_v59 }
 0x4bc   : > { %v2634_v33 = vsel %vm2607_vm2, %v11744_v51, %v2633_v52  ;;  %v2834_v30 = vmul.f32 0.007598758, %v2756_v62  ;;  %v9191_v2 = vadd.f32 %v2462_v38, %v9028_v19  ;;  %v9195_v35 = vmul.f32 0.036000773, %v2756_v62 }
 0x4bd   : > { %11742 = vst [vmem:[#allocation215_spill] sm:$0xff] %v9165_v12  ;;  %11743 = vst [vmem:[#allocation323_spill] sm:$0xff] %v9177_v11  ;;  %v9188_v45 = vmul.f32 0.0010283801, %v2634_v33  ;;  %v2833_v15 = vmul.f32 0.007598758, %v2634_v33  ;;  %v9198_v43 = vadd.f32 %v2448_v34, %v8802_v3 }
 0x4be   : > { %v9193_v47 = vmul.f32 0.036000773, %v2634_v33  ;;  %v3435_v14 = vmul.f32 0.10936069, %v2634_v33  ;;  %v2972_v55 = vrot.slane %v2834_v30, 1  ;;  %v3273_v6 = vrot.slane %v9195_v35, 2 }
 0x4bf   : > { %v2970_v10 = vrot.slane %v2833_v15, 1  ;;  %v3436_v22 = vmul.f32 0.10936069, %v2756_v62  ;;  %v3735_v21 = vmul.f32 0.21300554, %v2634_v33 }
 0x4c0   : > { %v3271_v9 = vrot.slane %v9193_v47, 2  ;;  %v3571_v0 = vrot.slane %v3435_v14, 3  ;;  %v3736_v52 = vmul.f32 0.21300554, %v2756_v62  ;;  %v4036_v11 = vmul.f32 0.26601171, %v2634_v33 }
 0x4c1   : > { %v2971_v19 = vsel %vm2928_vm3, %v2969_v18, %v2970_v10  ;;  %v9204_v27 = vsel %vm2928_vm3, %v2970_v10, %v2972_v55  ;;  %v3573_v38 = vrot.slane %v3436_v22, 3  ;;  %v3872_v51 = vrot.slane %v3735_v21, 4 }
 0x4c2   : > { %v3085_v60 = vadd.f32 %v2971_v19, %v2784_v63  ;;  %v3086_v3 = vadd.f32 %v9204_v27, %v9188_v45  ;;  %v3272_v34 = vsel %vm3229_vm4, %v3270_v4, %v3271_v9  ;;  %v3274_v15 = vsel %vm3229_vm4, %v3271_v9, %v3273_v6 }
 0x4c3   : > { %v3572_v30 = vsel %vm2607_vm2, %v3570_v56, %v3571_v0  ;;  %v3574_v44 = vsel %vm2607_vm2, %v3571_v0, %v3573_v38  ;;  %v3873_v59 = vsel %vm3830_vm5, %v3871_v39, %v3872_v51  ;;  %v3874_v18 = vrot.slane %v3736_v52, 4 }
 0x4c4   : > { %v3386_v37 = vadd.f32 %v3272_v34, %v3085_v60  ;;  %v3387_v10 = vadd.f32 %v3274_v15, %v3086_v3  ;;  %v4037_v12 = vmul.f32 0.26601171, %v2756_v62  ;;  %v4354_v19 = vrot.slane %v3735_v21, 6 }
 0x4c5   : > { %v3875_v63 = vsel %vm3830_vm5, %v3872_v51, %v3874_v18  ;;  %v4356_v32 = vrot.slane %v3736_v52, 6  ;;  %v4535_v36 = vrot.slane %v3435_v14, 7  ;;  %v4173_v40 = vrot.slane %v4036_v11, 5 }
 0x4c6   : > { %v3686_v5 = vadd.f32 %v3572_v30, %v3386_v37  ;;  %v3687_v4 = vadd.f32 %v3574_v44, %v3387_v10  ;;  %v4175_v9 = vrot.slane %v4037_v12, 5  ;;  %v4355_v56 = vsel %vm4312_vm6, %v4353_v53, %v4354_v19  ;;  %v2450_v10 = vpop.permute.xlu1 %2449 }
 0x4c7   : > { %v4357_v6 = vsel %vm4312_vm6, %v4354_v19, %v4356_v32  ;;  %v4536_v39 = vsel %vm4493_vm7, %v4534_v46, %v4535_v36  ;;  %v4537_v0 = vrot.slane %v3436_v22, 7  ;;  %v11745_v33 = vrot.slane %v9153_v16, 5 }
 0x4c8   : > { %v3987_v60 = vadd.f32 %v3873_v59, %v3686_v5  ;;  %v3988_v38 = vadd.f32 %v3875_v63, %v3687_v4  ;;  %v4176_v21 = vsel %vm4131_vm8, %v4173_v40, %v4175_v9  ;;  %v4724_v44 = vsel %vm2928_vm3, %v2972_v55, %v8531_v8 }
 0x4c9   : > { %v4174_v51 = vsel %vm4131_vm8, %v11745_v33, %v4173_v40  ;;  %v4538_v37 = vsel %vm4493_vm7, %v4535_v36, %v4537_v0  ;;  %v4804_v12 = vmul.f32 0.0010283801, %v2756_v62  ;;  %v4889_v53 = vrot.slane %v9188_v45, 2 }
 0x4ca   : > { %v4288_v32 = vadd.f32 %v4174_v51, %v3987_v60  ;;  %v4289_v11 = vadd.f32 %v4176_v21, %v3988_v38  ;;  %v2786_v46 = vmul.f32 0.0010283801, %v9186_v23  ;;  %v2835_v5 = vmul.f32 0.007598758, %v9186_v23 }
 0x4cb   : > { %v4890_v59 = vrot.slane %v4804_v12, 2  ;;  %v3136_v16 = vmul.f32 0.036000773, %v9186_v23  ;;  %v9229_v14 = vmul.f32 0.10936069, %v9186_v23  ;;  %v2636_v40 = vrot.slane %v9162_v28, 3 }
 0x4cc   : > { %v4469_v36 = vadd.f32 %v4355_v56, %v4288_v32  ;;  %v4470_v22 = vadd.f32 %v4357_v6, %v4289_v11  ;;  %v2974_v55 = vrot.slane %v2835_v5, 1  ;;  %v9233_v62 = vmul.f32 0.21300554, %v9186_v23 }
 0x4cd   : > { %v4891_v45 = vsel %vm3229_vm4, %v4889_v53, %v4890_v59  ;;  %v4892_v52 = vsel %vm3229_vm4, %v4890_v59, %v8652_v61  ;;  %v3275_v3 = vrot.slane %v3136_v16, 2  ;;  %v3575_v34 = vrot.slane %v9229_v14, 3 }
 0x4ce   : > { %v4650_v15 = vadd.f32 %v4536_v39, %v4469_v36  ;;  %v4651_v30 = vadd.f32 %v4538_v37, %v4470_v22  ;;  %v3876_v18 = vrot.slane %v9233_v62, 4  ;;  %v4038_v28 = vmul.f32 0.26601171, %v9186_v23 }
 0x4cf   : > { %v4358_v63 = vrot.slane %v9233_v62, 6  ;;  %v4539_v19 = vrot.slane %v9229_v14, 7  ;;  %v11746_v4 = vrot.slane %v9107_v49, 3  ;;  %v2757_v56 = vsel %vm2607_vm2, %v2636_v40, 0.0 }
 0x4d0   : > { %v4690_v6 = vadd.f32 %v4650_v15, %v9193_v47  ;;  %v4691_v39 = vadd.f32 %v4651_v30, %v9195_v35  ;;  %v4177_v0 = vrot.slane %v4038_v28, 5  ;;  %v2837_v23 = vmul.f32 0.007598758, %v2757_v56 }
 0x4d1   : > { %v2637_v9 = vsel %vm2607_vm2, %v11746_v4, %v2636_v40  ;;  %v9254_v51 = vadd.f32 %v2450_v10, %v8805_v20  ;;  %v9257_v37 = vmul.f32 0.036000773, %v2757_v56  ;;  %v3439_v32 = vmul.f32 0.10936069, %v2757_v56 }
 0x4d2   : > { %v9249_v60 = vmul.f32 0.0010283801, %v2637_v9  ;;  %v2836_v38 = vmul.f32 0.007598758, %v2637_v9  ;;  %v9251_v33 = vmul.f32 0.036000773, %v2637_v9  ;;  %v4772_v49 = vadd.f32 %v4690_v6, %v9204_v27 }
 0x4d3   : > { %v4773_v21 = vadd.f32 %v4724_v44, %v4691_v39  ;;  %v3438_v12 = vmul.f32 0.10936069, %v2637_v9  ;;  %v2977_v47 = vrot.slane %v2837_v23, 1  ;;  %v3278_v59 = vrot.slane %v9257_v37, 2 }
 0x4d4   : > { %v2975_v53 = vrot.slane %v2836_v38, 1  ;;  %v3276_v35 = vrot.slane %v9251_v33, 2  ;;  %v9260_v11 = vadd.f32 %v4891_v45, %v4772_v49  ;;  %v3578_v14 = vrot.slane %v3439_v32, 3 }
 0x4d5   : > { %v9262_v5 = vadd.f32 %v4892_v52, %v4773_v21  ;;  %v3576_v16 = vrot.slane %v3438_v12, 3  ;;  %v3738_v52 = vmul.f32 0.21300554, %v2637_v9  ;;  %v3739_v15 = vmul.f32 0.21300554, %v2757_v56 }
 0x4d6   : > { %v2976_v20 = vsel %vm2928_vm3, %v2974_v55, %v2975_v53  ;;  %v9267_v27 = vsel %vm2928_vm3, %v2975_v53, %v2977_v47  ;;  %v3277_v44 = vsel %vm3229_vm4, %v3275_v3, %v3276_v35  ;;  %v3279_v22 = vsel %vm3229_vm4, %v3276_v35, %v3278_v59 }
 0x4d7   : > { %v3087_v40 = vadd.f32 %v2976_v20, %v2786_v46  ;;  %v3088_v36 = vadd.f32 %v9267_v27, %v9249_v60  ;;  %v3577_v62 = vsel %vm2607_vm2, %v3575_v34, %v3576_v16  ;;  %v3579_v45 = vsel %vm2607_vm2, %v3576_v16, %v3578_v14 }
 0x4d8   : > { %v4039_v30 = vmul.f32 0.26601171, %v2637_v9  ;;  %v4040_v10 = vmul.f32 0.26601171, %v2757_v56  ;;  %v4540_v4 = vrot.slane %v3438_v12, 7  ;;  %v3877_v6 = vrot.slane %v3738_v52, 4 }
 0x4d9   : > { %v3388_v55 = vadd.f32 %v3277_v44, %v3087_v40  ;;  %v3389_v28 = vadd.f32 %v3279_v22, %v3088_v36  ;;  %v3879_v3 = vrot.slane %v3739_v15, 4  ;;  %v4359_v46 = vrot.slane %v3738_v52, 6 }
 0x4da   : > { %v4178_v39 = vrot.slane %v4039_v30, 5  ;;  %v4180_v49 = vrot.slane %v4040_v10, 5  ;;  %v4361_v21 = vrot.slane %v3739_v15, 6  ;;  %v3878_v53 = vsel %vm3830_vm5, %v3876_v18, %v3877_v6 }
 0x4db   : > { %v3688_v38 = vadd.f32 %v3577_v62, %v3388_v55  ;;  %v3689_v23 = vadd.f32 %v3579_v45, %v3389_v28  ;;  %v3880_v34 = vsel %vm3830_vm5, %v3877_v6, %v3879_v3  ;;  %v4360_v9 = vsel %vm4312_vm6, %v4358_v63, %v4359_v46 }
 0x4dc   : > { %v4179_v35 = vsel %vm4131_vm8, %v4177_v0, %v4178_v39  ;;  %v4181_v12 = vsel %vm4131_vm8, %v4178_v39, %v4180_v49  ;;  %v4362_v20 = vsel %vm4312_vm6, %v4359_v46, %v4361_v21  ;;  %v4541_v44 = vsel %vm4493_vm7, %v4539_v19, %v4540_v4 }
 0x4dd   : > { %v3989_v59 = vadd.f32 %v3878_v53, %v3688_v38  ;;  %v3990_v16 = vadd.f32 %v3880_v34, %v3689_v23  ;;  %v4542_v14 = vrot.slane %v3439_v32, 7  ;;  %v4725_v40 = vsel %vm2928_vm3, %v2977_v47, %v8531_v8 }
 0x4de   : > { %v4805_v36 = vmul.f32 0.0010283801, %v2757_v56  ;;  %v4893_v62 = vrot.slane %v9249_v60, 2  ;;  %v2644_v0 = vrot.slane %v9168_v58, 3  ;;  %v2645_v52 = vrot.slane %v9171_v57, 3 }
 0x4df   : > { %v4290_v18 = vadd.f32 %v4179_v35, %v3989_v59  ;;  %v4291_v22 = vadd.f32 %v4181_v12, %v3990_v16  ;;  %v4543_v63 = vsel %vm4493_vm7, %v4540_v4, %v4542_v14  ;;  %v2647_v15 = vrot.slane %v9174_v50, 3 }
 0x4e0   : > { %v4894_v45 = vrot.slane %v4805_v36, 2  ;;  %v2740_v32 = vsel %vm2607_vm2, 0.0, %v2644_v0  ;;  %v10642_v47 = vrot.slane %v9191_v2, 3  ;;  %v2646_v46 = vsel %vm2607_vm2, %v2644_v0, %v2645_v52 }
 0x4e1   : > { %v4471_v30 = vadd.f32 %v4360_v9, %v4290_v18  ;;  %v4472_v19 = vadd.f32 %v4362_v20, %v4291_v22  ;;  %v2792_v55 = vmul.f32 0.0010283801, %v2740_v32  ;;  %v2844_v58 = vmul.f32 0.007598758, %v2740_v32 }
 0x4e2   : > { %v4895_v56 = vsel %vm3229_vm4, %v4893_v62, %v4894_v45  ;;  %v4896_v60 = vsel %vm3229_vm4, %v4894_v45, %v8652_v61  ;;  %v3145_v4 = vmul.f32 0.036000773, %v2740_v32  ;;  %v9294_v6 = vmul.f32 0.10936069, %v2740_v32 }
 0x4e3   : > { %v4652_v28 = vadd.f32 %v4541_v44, %v4471_v30  ;;  %v4653_v10 = vadd.f32 %v4543_v63, %v4472_v19  ;;  %v2989_v57 = vrot.slane %v2844_v58, 1  ;;  %v3746_v3 = vmul.f32 0.21300554, %v2740_v32 }
 0x4e4   : > { %v4047_v39 = vmul.f32 0.26601171, %v2740_v32  ;;  %v3290_v49 = vrot.slane %v3145_v4, 2  ;;  %v3590_v21 = vrot.slane %v9294_v6, 3  ;;  %v4554_v9 = vrot.slane %v9294_v6, 7 }
 0x4e5   : > { %v4692_v38 = vadd.f32 %v4652_v28, %v9251_v33  ;;  %v4693_v23 = vadd.f32 %v4653_v10, %v9257_v37  ;;  %v3891_v53 = vrot.slane %v3746_v3, 4  ;;  %v4373_v35 = vrot.slane %v3746_v3, 6 }
 0x4e6   : > { %v4192_v34 = vrot.slane %v4047_v39, 5  ;;  %v2760_v12 = vsel %vm2607_vm2, %v2645_v52, 0.0  ;;  %v9303_v20 = vmul.f32 0.0010283801, %v2646_v46  ;;  %v2845_v44 = vmul.f32 0.007598758, %v2646_v46 }
 0x4e7   : > { %v4774_v59 = vadd.f32 %v4692_v38, %v9267_v27  ;;  %v4775_v16 = vadd.f32 %v4725_v40, %v4693_v23  ;;  %v2846_v14 = vmul.f32 0.007598758, %v2760_v12  ;;  %v9305_v33 = vmul.f32 0.036000773, %v2646_v46 }
 0x4e8   : > { %v9312_v37 = vsel %vm2607_vm2, %v2647_v15, %v10642_v47  ;;  %v9318_v27 = vmul.f32 0.036000773, %v2760_v12  ;;  %v3447_v40 = vmul.f32 0.10936069, %v2646_v46  ;;  %v2990_v22 = vrot.slane %v2845_v44, 1 }
 0x4e9   : > { %v9314_v36 = vadd.f32 %v4895_v56, %v4774_v59  ;;  %v9316_v18 = vadd.f32 %v4896_v60, %v4775_v16  ;;  %v2992_v62 = vrot.slane %v2846_v14, 1  ;;  %v3291_v0 = vrot.slane %v9305_v33, 2 }
 0x4ea   : > { %v3448_v63 = vmul.f32 0.10936069, %v2760_v12  ;;  %v3293_v45 = vrot.slane %v9318_v27, 2  ;;  %v3591_v52 = vrot.slane %v3447_v40, 3  ;;  %v3747_v30 = vmul.f32 0.21300554, %v2646_v46 }
 0x4eb   : > { %11747 = vst [vmem:[#allocation216_spill] sm:$0xff] %v9314_v36  ;;  %11748 = vst [vmem:[#allocation219_spill] sm:$0xff] %v9316_v18  ;;  %v3748_v19 = vmul.f32 0.21300554, %v2760_v12  ;;  %v2991_v32 = vsel %vm2928_vm3, %v2989_v57, %v2990_v22  ;;  %v9324_v56 = vsel %vm2928_vm3, %v2990_v22, %v2992_v62  ;;  %v3292_v60 = vsel %vm3229_vm4, %v3290_v49, %v3291_v0 }
 0x4ec   : > { %v3593_v58 = vrot.slane %v3448_v63, 3  ;;  %v3093_v28 = vadd.f32 %v2991_v32, %v2792_v55  ;;  %v3094_v10 = vadd.f32 %v9324_v56, %v9303_v20  ;;  %v3294_v4 = vsel %vm3229_vm4, %v3291_v0, %v3293_v45 }
 0x4ed   : > { %v3592_v6 = vsel %vm2607_vm2, %v3590_v21, %v3591_v52  ;;  %v3892_v39 = vrot.slane %v3747_v30, 4  ;;  %v3894_v38 = vrot.slane %v3748_v19, 4  ;;  %v4048_v23 = vmul.f32 0.26601171, %v2646_v46 }
 0x4ee   : > { %v3594_v3 = vsel %vm2607_vm2, %v3591_v52, %v3593_v58  ;;  %v3394_v57 = vadd.f32 %v3292_v60, %v3093_v28  ;;  %v3395_v59 = vadd.f32 %v3294_v4, %v3094_v10  ;;  %v4049_v16 = vmul.f32 0.26601171, %v2760_v12 }
 0x4ef   : > { %v4374_v44 = vrot.slane %v3747_v30, 6  ;;  %v3893_v49 = vsel %vm3830_vm5, %v3891_v53, %v3892_v39  ;;  %v3895_v55 = vsel %vm3830_vm5, %v3892_v39, %v3894_v38  ;;  %v4193_v14 = vrot.slane %v4048_v23, 5 }
 0x4f0   : > { %v4376_v22 = vrot.slane %v3748_v19, 6  ;;  %v3694_v32 = vadd.f32 %v3592_v6, %v3394_v57  ;;  %v3695_v47 = vadd.f32 %v3594_v3, %v3395_v59  ;;  %v4195_v0 = vrot.slane %v4049_v16, 5 }
 0x4f1   : > { %v4375_v21 = vsel %vm4312_vm6, %v4373_v35, %v4374_v44  ;;  %v4194_v45 = vsel %vm4131_vm8, %v4192_v34, %v4193_v14  ;;  %v4555_v46 = vrot.slane %v3447_v40, 7  ;;  %v4557_v60 = vrot.slane %v3448_v63, 7 }
 0x4f2   : > { %v4377_v52 = vsel %vm4312_vm6, %v4374_v44, %v4376_v22  ;;  %v3995_v58 = vadd.f32 %v3893_v49, %v3694_v32  ;;  %v3996_v28 = vadd.f32 %v3895_v55, %v3695_v47  ;;  %v4196_v30 = vsel %vm4131_vm8, %v4193_v14, %v4195_v0 }
 0x4f3   : > { %v4728_v53 = vsel %vm2928_vm3, %v2992_v62, %v8531_v8  ;;  %v4556_v19 = vsel %vm4493_vm7, %v4554_v9, %v4555_v46  ;;  %v4558_v10 = vsel %vm4493_vm7, %v4555_v46, %v4557_v60  ;;  %v4808_v4 = vmul.f32 0.0010283801, %v2760_v12 }
 0x4f4   : > { %v4905_v35 = vrot.slane %v9303_v20, 2  ;;  %v4296_v6 = vadd.f32 %v4194_v45, %v3995_v58  ;;  %v4297_v34 = vadd.f32 %v4196_v30, %v3996_v28  ;;  %v2741_v40 = vsel %vm2607_vm2, 0.0, %v2647_v15 }
 0x4f5   : > { %v11749_v47 = vrot.slane %v9191_v2, 3  ;;  %v4906_v3 = vrot.slane %v4808_v4, 2  ;;  %v2794_v62 = vmul.f32 0.0010283801, %v2741_v40  ;;  %v2847_v39 = vmul.f32 0.007598758, %v2741_v40 }
 0x4f6   : > { %v2638_v9 = vrot.slane %v9198_v43, 3  ;;  %v4477_v38 = vadd.f32 %v4375_v21, %v4296_v6  ;;  %v4478_v12 = vadd.f32 %v4377_v52, %v4297_v34  ;;  %v3148_v23 = vmul.f32 0.036000773, %v2741_v40 }
 0x4f7   : > { %v9349_v63 = vsel %vm2607_vm2, %v11749_v47, 0.0  ;;  %v9352_v20 = vmul.f32 0.10936069, %v2741_v40  ;;  %v4907_v57 = vsel %vm3229_vm4, %v4905_v35, %v4906_v3  ;;  %v4908_v50 = vsel %vm3229_vm4, %v4906_v3, %v8652_v61 }
 0x4f8   : > { %v2994_v15 = vrot.slane %v2847_v39, 1  ;;  %v3749_v2 = vmul.f32 0.21300554, %v2741_v40  ;;  %v4658_v59 = vadd.f32 %v4556_v19, %v4477_v38  ;;  %v4659_v16 = vadd.f32 %v4558_v10, %v4478_v12 }
 0x4f9   : > { %v3295_v44 = vrot.slane %v3148_v23, 2  ;;  %v3595_v49 = vrot.slane %v9352_v20, 3  ;;  %v4050_v14 = vmul.f32 0.26601171, %v2741_v40  ;;  %v4559_v32 = vrot.slane %v9352_v20, 7 }
 0x4fa   : > { %v3896_v55 = vrot.slane %v3749_v2, 4  ;;  %v4378_v22 = vrot.slane %v3749_v2, 6  ;;  %v4698_v0 = vadd.f32 %v4658_v59, %v9305_v33  ;;  %v4699_v21 = vadd.f32 %v4659_v16, %v9318_v27 }
 0x4fb   : > { %v9362_v45 = vmul.f32 0.0010283801, %v9312_v37  ;;  %v2848_v52 = vmul.f32 0.007598758, %v9312_v37  ;;  %v4197_v46 = vrot.slane %v4050_v14, 5  ;;  %v9374_v28 = vsel %vm2607_vm2, 0.0, %v2638_v9 }
 0x4fc   : > { %v9366_v60 = vmul.f32 0.007598758, %v9349_v63  ;;  %v9369_v58 = vmul.f32 0.036000773, %v9312_v37  ;;  %v4780_v33 = vadd.f32 %v4698_v0, %v9324_v56  ;;  %v4781_v27 = vadd.f32 %v4728_v53, %v4699_v21 }
 0x4fd   : > { %v2995_v30 = vrot.slane %v2848_v52, 1  ;;  %v9378_v19 = vmul.f32 0.036000773, %v9349_v63  ;;  %v3450_v35 = vmul.f32 0.10936069, %v9312_v37 }
 0x4fe   : > { %v2997_v10 = vrot.slane %v9366_v60, 1  ;;  %v3296_v4 = vrot.slane %v9369_v58, 2  ;;  %v3451_v6 = vmul.f32 0.10936069, %v9349_v63  ;;  %v9384_v34 = vadd.f32 %v4907_v57, %v4780_v33 }
 0x4ff   : > { %v9386_v40 = vadd.f32 %v4908_v50, %v4781_v27  ;;  %v2996_v47 = vsel %vm2928_vm3, %v2994_v15, %v2995_v30  ;;  %v3298_v56 = vrot.slane %v9378_v19, 2  ;;  %v3596_v38 = vrot.slane %v3450_v35, 3 }
 0x500   : > { %v9391_v53 = vsel %vm2928_vm3, %v2995_v30, %v2997_v10  ;;  %v3095_v3 = vadd.f32 %v2996_v47, %v2794_v62  ;;  %v3297_v39 = vsel %vm3229_vm4, %v3295_v44, %v3296_v4  ;;  %v3598_v20 = vrot.slane %v3451_v6, 3 }
 0x501   : > { %11750 = vst [vmem:[#allocation220_spill] sm:$0xff] %v9386_v40  ;;  %v3096_v12 = vadd.f32 %v9391_v53, %v9362_v45  ;;  %v3299_v23 = vsel %vm3229_vm4, %v3296_v4, %v3298_v56  ;;  %v3750_v57 = vmul.f32 0.21300554, %v9312_v37  ;;  %v3597_v15 = vsel %vm2607_vm2, %v3595_v49, %v3596_v38 }
 0x502   : > { %v3396_v50 = vadd.f32 %v3297_v39, %v3095_v3  ;;  %v3751_v2 = vmul.f32 0.21300554, %v9349_v63  ;;  %v4051_v59 = vmul.f32 0.26601171, %v9312_v37  ;;  %v3599_v62 = vsel %vm2607_vm2, %v3596_v38, %v3598_v20 }
 0x503   : > { %v3397_v16 = vadd.f32 %v3299_v23, %v3096_v12  ;;  %v3897_v44 = vrot.slane %v3750_v57, 4  ;;  %v4052_v14 = vmul.f32 0.26601171, %v9349_v63  ;;  %v4379_v60 = vrot.slane %v3750_v57, 6 }
 0x504   : > { %v3696_v0 = vadd.f32 %v3597_v15, %v3396_v50  ;;  %v3899_v21 = vrot.slane %v3751_v2, 4  ;;  %v4198_v52 = vrot.slane %v4051_v59, 5  ;;  %v4381_v4 = vrot.slane %v3751_v2, 6 }
 0x505   : > { %v3697_v33 = vadd.f32 %v3599_v62, %v3397_v16  ;;  %v3898_v27 = vsel %vm3830_vm5, %v3896_v55, %v3897_v44  ;;  %v4200_v30 = vrot.slane %v4052_v14, 5  ;;  %v4380_v56 = vsel %vm4312_vm6, %v4378_v22, %v4379_v60  ;;  %v2464_v14 = vpop.permute.xlu0 %2463 }
 0x506   : > { %v3900_v49 = vsel %vm3830_vm5, %v3897_v44, %v3899_v21  ;;  %v3997_v47 = vadd.f32 %v3898_v27, %v3696_v0  ;;  %v4199_v37 = vsel %vm4131_vm8, %v4197_v46, %v4198_v52  ;;  %v4382_v38 = vsel %vm4312_vm6, %v4379_v60, %v4381_v4 }
 0x507   : > { %v3998_v3 = vadd.f32 %v3900_v49, %v3697_v33  ;;  %v4201_v39 = vsel %vm4131_vm8, %v4198_v52, %v4200_v30  ;;  %v4560_v12 = vrot.slane %v3450_v35, 7  ;;  %v9410_v23 = vmul.f32 0.0010283801, %v9010_v41  ;;  %v2466_v33 = vpop.permute.xlu1 %2465 }
 0x508   : > { %v4298_v20 = vadd.f32 %v4199_v37, %v3997_v47  ;;  %v4562_v55 = vrot.slane %v3451_v6, 7  ;;  %v4809_v57 = vmul.f32 0.0010283801, %v9349_v63  ;;  %v9414_v50 = vmul.f32 0.0010283801, %v9077_v25 }
 0x509   : > { %11751 = vst [vmem:[#allocation223_spill] sm:$0xff] %v9410_v23  ;;  %v4299_v15 = vadd.f32 %v4201_v39, %v3998_v3  ;;  %v4561_v46 = vsel %vm4493_vm7, %v4559_v32, %v4560_v12  ;;  %v4909_v22 = vrot.slane %v9362_v45, 2  ;;  %v2838_v35 = vmul.f32 0.007598758, %v9374_v28 }
 0x50a   : > { %11752 = vst [vmem:[#allocation224_spill] sm:$0xff] %v9414_v50  ;;  %v4479_v2 = vadd.f32 %v4380_v56, %v4298_v20  ;;  %v4563_v59 = vsel %vm4493_vm7, %v4560_v12, %v4562_v55  ;;  %v4910_v16 = vrot.slane %v4809_v57, 2  ;;  %v3139_v62 = vmul.f32 0.036000773, %v9374_v28 }
 0x50b   : > { %v4480_v41 = vadd.f32 %v4382_v38, %v4299_v15  ;;  %v9422_v6 = vmul.f32 0.10936069, %v9374_v28  ;;  %v9425_v25 = vmul.f32 0.21300554, %v9374_v28  ;;  %v4729_v32 = vsel %vm2928_vm3, %v2997_v10, %v8531_v8 }
 0x50c   : > { %v4660_v63 = vadd.f32 %v4561_v46, %v4479_v2  ;;  %v4911_v45 = vsel %vm3229_vm4, %v4909_v22, %v4910_v16  ;;  %v2788_v44 = vmul.f32 0.0010283801, %v9374_v28  ;;  %v4912_v21 = vsel %vm3229_vm4, %v4910_v16, %v8652_v61 }
 0x50d   : > { %v4661_v0 = vadd.f32 %v4563_v59, %v4480_v41  ;;  %v2979_v52 = vrot.slane %v2838_v35, 1  ;;  %v3280_v60 = vrot.slane %v3139_v62, 2  ;;  %v3580_v30 = vrot.slane %v9422_v6, 3 }
 0x50e   : > { %v4700_v27 = vadd.f32 %v4660_v63, %v9369_v58  ;;  %v3881_v4 = vrot.slane %v9425_v25, 4  ;;  %v9437_v10 = vmul.f32 0.26601171, %v9374_v28  ;;  %v4363_v47 = vrot.slane %v9425_v25, 6 }
 0x50f   : > { %v4701_v49 = vadd.f32 %v4661_v0, %v9378_v19  ;;  %v2639_v37 = vrot.slane %v9254_v51, 3  ;;  %v9443_v56 = vadd.f32 %v2464_v14, %v8808_v42  ;;  %v4544_v39 = vrot.slane %v9422_v6, 7 }
 0x510   : > { %v4782_v3 = vadd.f32 %v4700_v27, %v9391_v53  ;;  %v4182_v58 = vrot.slane %v9437_v10, 5  ;;  %v9449_v38 = vadd.f32 %v2466_v33, %v8813_v31 }
 0x511   : > { %v4783_v28 = vadd.f32 %v4729_v32, %v4701_v49  ;;  %v2640_v19 = vsel %vm2607_vm2, %v2638_v9, %v2639_v37  ;;  %v2758_v12 = vsel %vm2607_vm2, %v2639_v37, 0.0  ;;  %v2650_v51 = vrot.slane %v9443_v56, 3 }
 0x512   : > { %v9456_v42 = vadd.f32 %v4911_v45, %v4782_v3  ;;  %v9458_v20 = vmul.f32 0.0010283801, %v2640_v19  ;;  %v2839_v53 = vmul.f32 0.007598758, %v2640_v19  ;;  %v2840_v55 = vmul.f32 0.007598758, %v2758_v12 }
 0x513   : > { %v9460_v57 = vadd.f32 %v4912_v21, %v4783_v28  ;;  %v9462_v15 = vmul.f32 0.036000773, %v2640_v19  ;;  %v9464_v31 = vmul.f32 0.036000773, %v2758_v12  ;;  %v3441_v46 = vmul.f32 0.10936069, %v2640_v19 }
 0x514   : > { %11753 = vst [vmem:[#allocation227_spill] sm:$0xff] %v9456_v42  ;;  %v2980_v43 = vrot.slane %v2839_v53, 1  ;;  %v2982_v22 = vrot.slane %v2840_v55, 1  ;;  %v3442_v9 = vmul.f32 0.10936069, %v2758_v12 }
 0x515   : > { %11754 = vst [vmem:[#allocation228_spill] sm:$0xff] %v9460_v57  ;;  %v3741_v2 = vmul.f32 0.21300554, %v2640_v19  ;;  %v3281_v59 = vrot.slane %v9462_v15, 2  ;;  %v3283_v16 = vrot.slane %v9464_v31, 2  ;;  %v3581_v35 = vrot.slane %v3441_v46, 3 }
 0x516   : > { %v3742_v41 = vmul.f32 0.21300554, %v2758_v12  ;;  %v2981_v62 = vsel %vm2928_vm3, %v2979_v52, %v2980_v43  ;;  %v9470_v6 = vsel %vm2928_vm3, %v2980_v43, %v2982_v22  ;;  %v3583_v25 = vrot.slane %v3442_v9, 3 }
 0x517   : > { %v3882_v63 = vrot.slane %v3741_v2, 4  ;;  %v3089_v32 = vadd.f32 %v2981_v62, %v2788_v44  ;;  %v3090_v45 = vadd.f32 %v9470_v6, %v9458_v20  ;;  %v3282_v14 = vsel %vm3229_vm4, %v3280_v60, %v3281_v59 }
 0x518   : > { %v3284_v0 = vsel %vm3229_vm4, %v3281_v59, %v3283_v16  ;;  %v3582_v21 = vsel %vm2607_vm2, %v3580_v30, %v3581_v35  ;;  %v3584_v33 = vsel %vm2607_vm2, %v3581_v35, %v3583_v25  ;;  %v3884_v52 = vrot.slane %v3742_v41, 4  ;;  %v2452_v16 = vpop.permute.xlu0 %2451 }
 0x519   : > { %v3883_v27 = vsel %vm3830_vm5, %v3881_v4, %v3882_v63  ;;  %v3390_v10 = vadd.f32 %v3282_v14, %v3089_v32  ;;  %v3391_v49 = vadd.f32 %v3284_v0, %v3090_v45  ;;  %v4042_v37 = vmul.f32 0.26601171, %v2640_v19  ;;  %v9483_v32 = vpop.permute.xlu1 %2453 }
 0x51a   : > { %v4043_v3 = vmul.f32 0.26601171, %v2758_v12  ;;  %v3885_v44 = vsel %vm3830_vm5, %v3882_v63, %v3884_v52  ;;  %v4364_v28 = vrot.slane %v3741_v2, 6  ;;  %v4366_v53 = vrot.slane %v3742_v41, 6 }
 0x51b   : > { %v4545_v55 = vrot.slane %v3441_v46, 7  ;;  %v3690_v43 = vadd.f32 %v3582_v21, %v3390_v10  ;;  %v3691_v60 = vadd.f32 %v3584_v33, %v3391_v49  ;;  %v4183_v62 = vrot.slane %v4042_v37, 5 }
 0x51c   : > { %v4185_v59 = vrot.slane %v4043_v3, 5  ;;  %v4365_v30 = vsel %vm4312_vm6, %v4363_v47, %v4364_v28  ;;  %v4367_v35 = vsel %vm4312_vm6, %v4364_v28, %v4366_v53  ;;  %v4547_v25 = vrot.slane %v3442_v9, 7 }
 0x51d   : > { %v4546_v4 = vsel %vm4493_vm7, %v4544_v39, %v4545_v55  ;;  %v3991_v19 = vadd.f32 %v3883_v27, %v3690_v43  ;;  %v3992_v45 = vadd.f32 %v3885_v44, %v3691_v60  ;;  %v4184_v2 = vsel %vm4131_vm8, %v4182_v58, %v4183_v62  ;;  %v9508_v28 = vpop.permute.xlu1 %2469 }
 0x51e   : > { %v4186_v46 = vsel %vm4131_vm8, %v4183_v62, %v4185_v59  ;;  %v4548_v41 = vsel %vm4493_vm7, %v4545_v55, %v4547_v25  ;;  %v4806_v63 = vmul.f32 0.0010283801, %v2758_v12  ;;  %v4897_v14 = vrot.slane %v9458_v20, 2 }
 0x51f   : > { %v9490_v47 = vadd.f32 %v2452_v16, %v8881_v1  ;;  %v4292_v0 = vadd.f32 %v4184_v2, %v3991_v19  ;;  %v4293_v21 = vadd.f32 %v4186_v46, %v3992_v45  ;;  %v4726_v39 = vsel %vm2928_vm3, %v2982_v22, %v8531_v8  ;;  %v9500_v1 = vpop.permute.xlu0 %2467 }
 0x520   : > { %v2742_v9 = vsel %vm2607_vm2, 0.0, %v2650_v51  ;;  %v4898_v58 = vrot.slane %v4806_v63, 2  ;;  %v2651_v52 = vrot.slane %v9449_v38, 3 }
 0x521   : > { %v2796_v33 = vmul.f32 0.0010283801, %v2742_v9  ;;  %v2850_v27 = vmul.f32 0.007598758, %v2742_v9  ;;  %v4473_v12 = vadd.f32 %v4365_v30, %v4292_v0  ;;  %v4474_v10 = vadd.f32 %v4367_v35, %v4293_v21 }
 0x522   : > { %v3151_v20 = vmul.f32 0.036000773, %v2742_v9  ;;  %v9498_v49 = vmul.f32 0.10936069, %v2742_v9  ;;  %v4899_v37 = vsel %vm3229_vm4, %v4897_v14, %v4898_v58  ;;  %v4900_v22 = vsel %vm3229_vm4, %v4898_v58, %v8652_v61 }
 0x523   : > { %v9505_v3 = vmul.f32 0.21300554, %v2742_v9  ;;  %v10643_v44 = vrot.slane %v9490_v47, 3  ;;  %v4654_v53 = vadd.f32 %v4546_v4, %v4473_v12  ;;  %v4655_v38 = vadd.f32 %v4548_v41, %v4474_v10 }
 0x524   : > { %v2999_v55 = vrot.slane %v2850_v27, 1  ;;  %v3300_v43 = vrot.slane %v3151_v20, 2  ;;  %v3600_v60 = vrot.slane %v9498_v49, 3  ;;  %v4053_v59 = vmul.f32 0.26601171, %v2742_v9  ;;  %v9536_v9 = vpop.permute.xlu1 %2113 }
 0x525   : > { %v3901_v62 = vrot.slane %v9505_v3, 4  ;;  %v4383_v16 = vrot.slane %v9505_v3, 6  ;;  %v4694_v30 = vadd.f32 %v4654_v53, %v9462_v15  ;;  %v4695_v35 = vadd.f32 %v4655_v38, %v9464_v31  ;;  %v9527_v31 = vpop.permute.xlu0 %2111 }
 0x526   : > { %v2652_v25 = vsel %vm2607_vm2, %v2650_v51, %v2651_v52  ;;  %v2762_v4 = vsel %vm2607_vm2, %v2651_v52, 0.0  ;;  %v4202_v19 = vrot.slane %v4053_v59, 5  ;;  %v4564_v45 = vrot.slane %v9498_v49, 7 }
 0x527   : > { %v9520_v2 = vmul.f32 0.0010283801, %v2652_v25  ;;  %v2851_v46 = vmul.f32 0.007598758, %v2652_v25  ;;  %v4776_v41 = vadd.f32 %v4694_v30, %v9470_v6  ;;  %v4777_v63 = vadd.f32 %v4726_v39, %v4695_v35 }
 0x528   : > { %v9523_v14 = vmul.f32 0.007598758, %v2762_v4  ;;  %v9525_v15 = vmul.f32 0.036000773, %v2652_v25  ;;  %v9529_v0 = vmul.f32 0.036000773, %v2762_v4 }
 0x529   : > { %v3000_v56 = vrot.slane %v2851_v46, 1  ;;  %v3453_v51 = vmul.f32 0.10936069, %v2652_v25  ;;  %v9534_v21 = vsel %vm2607_vm2, 0.0, %v10643_v44  ;;  %v9538_v58 = vadd.f32 %v4899_v37, %v4776_v41 }
 0x52a   : > { %v9540_v6 = vadd.f32 %v4900_v22, %v4777_v63  ;;  %v3002_v39 = vrot.slane %v9523_v14, 1  ;;  %v3301_v27 = vrot.slane %v9525_v15, 2  ;;  %v3303_v12 = vrot.slane %v9529_v0, 2  ;;  %v9554_v63 = vpop.permute.xlu0 %2115 }
 0x52b   : > { %11755 = vst [vmem:[#allocation231_spill] sm:$0xff] %v9538_v58  ;;  %v3001_v52 = vsel %vm2928_vm3, %v2999_v55, %v3000_v56  ;;  %v3454_v10 = vmul.f32 0.10936069, %v2762_v4  ;;  %v3601_v20 = vrot.slane %v3453_v51, 3  ;;  %v3753_v37 = vmul.f32 0.21300554, %v2652_v25 }
 0x52c   : > { %11756 = vst [vmem:[#allocation232_spill] sm:$0xff] %v9540_v6  ;;  %v9547_v49 = vsel %vm2928_vm3, %v3000_v56, %v3002_v39  ;;  %v3097_v3 = vadd.f32 %v3001_v52, %v2796_v33  ;;  %v3302_v53 = vsel %vm3229_vm4, %v3300_v43, %v3301_v27  ;;  %v3304_v38 = vsel %vm3229_vm4, %v3301_v27, %v3303_v12  ;;  %v9557_v52 = vpop.permute.xlu1 %2117 }
 0x52d   : > { %v3098_v22 = vadd.f32 %v9547_v49, %v9520_v2  ;;  %v3602_v59 = vsel %vm2607_vm2, %v3600_v60, %v3601_v20  ;;  %v3603_v30 = vrot.slane %v3454_v10, 3  ;;  %v3754_v35 = vmul.f32 0.21300554, %v2762_v4 }
 0x52e   : > { %v3398_v55 = vadd.f32 %v3302_v53, %v3097_v3  ;;  %v3902_v46 = vrot.slane %v3753_v37, 4  ;;  %v4054_v41 = vmul.f32 0.26601171, %v2652_v25  ;;  %v4055_v56 = vmul.f32 0.26601171, %v2762_v4 }
 0x52f   : > { %v3399_v14 = vadd.f32 %v3304_v38, %v3098_v22  ;;  %v3604_v33 = vsel %vm2607_vm2, %v3601_v20, %v3603_v30  ;;  %v4384_v43 = vrot.slane %v3753_v37, 6  ;;  %v3904_v27 = vrot.slane %v3754_v35, 4 }
 0x530   : > { %v3698_v44 = vadd.f32 %v3602_v59, %v3398_v55  ;;  %v3903_v6 = vsel %vm3830_vm5, %v3901_v62, %v3902_v46  ;;  %v4203_v12 = vrot.slane %v4054_v41, 5  ;;  %v4205_v58 = vrot.slane %v4055_v56, 5 }
 0x531   : > { %v3699_v60 = vadd.f32 %v3604_v33, %v3399_v14  ;;  %v4385_v3 = vsel %vm4312_vm6, %v4383_v16, %v4384_v43  ;;  %v4386_v53 = vrot.slane %v3754_v35, 6  ;;  %v3905_v25 = vsel %vm3830_vm5, %v3902_v46, %v3904_v27  ;;  %v9567_v16 = vpop.permute.xlu0 %2119 }
 0x532   : > { %v3999_v57 = vadd.f32 %v3903_v6, %v3698_v44  ;;  %v4204_v22 = vsel %vm4131_vm8, %v4202_v19, %v4203_v12  ;;  %v4565_v20 = vrot.slane %v3453_v51, 7  ;;  %v4206_v37 = vsel %vm4131_vm8, %v4203_v12, %v4205_v58  ;;  %v9573_v58 = vpop.permute.xlu1 %2121 }
 0x533   : > { %v4000_v38 = vadd.f32 %v3905_v25, %v3699_v60  ;;  %v4387_v59 = vsel %vm4312_vm6, %v4384_v43, %v4386_v53  ;;  %v4567_v30 = vrot.slane %v3454_v10, 7  ;;  %v4810_v41 = vmul.f32 0.0010283801, %v2762_v4 }
 0x534   : > { %v4300_v62 = vadd.f32 %v4204_v22, %v3999_v57  ;;  %v4566_v55 = vsel %vm4493_vm7, %v4564_v45, %v4565_v20  ;;  %v4913_v14 = vrot.slane %v9520_v2, 2  ;;  %v2841_v19 = vmul.f32 0.007598758, %v9534_v21 }
 0x535   : > { %v4301_v35 = vadd.f32 %v4206_v37, %v4000_v38  ;;  %v4568_v44 = vsel %vm4493_vm7, %v4565_v20, %v4567_v30  ;;  %v2550_v51 = vadd.f32 %v9483_v32, %v8895_v54  ;;  %v4914_v10 = vrot.slane %v4810_v41, 2  ;;  %v9595_v20 = vpop.permute.xlu0 %2123 }
 0x536   : > { %v4481_v6 = vadd.f32 %v4385_v3, %v4300_v62  ;;  %v3142_v57 = vmul.f32 0.036000773, %v9534_v21  ;;  %v9577_v4 = vmul.f32 0.10936069, %v9534_v21  ;;  %v4730_v2 = vsel %vm2928_vm3, %v3002_v39, %v8531_v8  ;;  %v9604_v30 = vpop.permute.xlu1 %2125 }
 0x537   : > { %v4482_v45 = vadd.f32 %v4387_v59, %v4301_v35  ;;  %v9582_v46 = vmul.f32 0.21300554, %v9534_v21  ;;  %v9585_v33 = vmul.f32 0.26601171, %v9534_v21  ;;  %v4915_v32 = vsel %vm3229_vm4, %v4913_v14, %v4914_v10 }
 0x538   : > { %v4662_v54 = vadd.f32 %v4566_v55, %v4481_v6  ;;  %v2790_v56 = vmul.f32 0.0010283801, %v9534_v21  ;;  %v2984_v43 = vrot.slane %v2841_v19, 1  ;;  %v4916_v12 = vsel %vm3229_vm4, %v4914_v10, %v8652_v61 }
 0x539   : > { %v4663_v27 = vadd.f32 %v4568_v44, %v4482_v45  ;;  %v3285_v60 = vrot.slane %v3142_v57, 2  ;;  %v3585_v3 = vrot.slane %v9577_v4, 3  ;;  %v3886_v53 = vrot.slane %v9582_v46, 4 }
 0x53a   : > { %v4702_v39 = vadd.f32 %v4662_v54, %v9525_v15  ;;  %v2642_v22 = vrot.slane %v2550_v51, 3  ;;  %v4368_v21 = vrot.slane %v9582_v46, 6  ;;  %v4549_v37 = vrot.slane %v9577_v4, 7 }
 0x53b   : > { %v4703_v38 = vadd.f32 %v4663_v27, %v9529_v0  ;;  %v9602_v59 = vadd.f32 %v9500_v1, %v8903_v17  ;;  %v11757_v62 = vrot.slane %v9490_v47, 3  ;;  %v9613_v0 = vadd.f32 %v9508_v28, %v8938_v7 }
 0x53c   : > { %v4784_v15 = vadd.f32 %v4702_v39, %v9547_v49  ;;  %v2759_v41 = vsel %vm2607_vm2, %v2642_v22, 0.0 }
 0x53d   : > { %v2643_v55 = vsel %vm2607_vm2, %v11757_v62, %v2642_v22  ;;  %v4785_v14 = vadd.f32 %v4730_v2, %v4703_v38  ;;  %v9617_v17 = vmul.f32 0.007598758, %v2759_v41  ;;  %v9623_v49 = vmul.f32 0.036000773, %v2759_v41  ;;  %v9630_v2 = vpop.permute.xlu0 %2271 }
 0x53e   : > { %v9615_v35 = vmul.f32 0.0010283801, %v2643_v55  ;;  %v2842_v44 = vmul.f32 0.007598758, %v2643_v55  ;;  %v9619_v1 = vadd.f32 %v4915_v32, %v4784_v15  ;;  %v9621_v19 = vmul.f32 0.036000773, %v2643_v55 }
 0x53f   : > { %v3444_v47 = vmul.f32 0.10936069, %v2643_v55  ;;  %v9625_v51 = vadd.f32 %v4916_v12, %v4785_v14  ;;  %v2987_v10 = vrot.slane %v9617_v17, 1  ;;  %v3445_v7 = vmul.f32 0.10936069, %v2759_v41  ;;  %v9636_v12 = vpop.permute.xlu1 %2273 }
 0x540   : > { %11758 = vst [vmem:[#allocation235_spill] sm:$0xff] %v9619_v1  ;;  %v2985_v6 = vrot.slane %v2842_v44, 1  ;;  %v3286_v28 = vrot.slane %v9621_v19, 2  ;;  %v3288_v57 = vrot.slane %v9623_v49, 2  ;;  %v3744_v45 = vmul.f32 0.21300554, %v2643_v55 }
 0x541   : > { %11759 = vst [vmem:[#allocation236_spill] sm:$0xff] %v9625_v51  ;;  %v3586_v4 = vrot.slane %v3444_v47, 3  ;;  %v3588_v32 = vrot.slane %v3445_v7, 3  ;;  %v3745_v27 = vmul.f32 0.21300554, %v2759_v41 }
 0x542   : > { %v2986_v46 = vsel %vm2928_vm3, %v2984_v43, %v2985_v6  ;;  %v9634_v54 = vsel %vm2928_vm3, %v2985_v6, %v2987_v10  ;;  %v3287_v38 = vsel %vm3229_vm4, %v3285_v60, %v3286_v28  ;;  %v3289_v15 = vsel %vm3229_vm4, %v3286_v28, %v3288_v57  ;;  %v9646_v57 = vpop.permute.xlu0 %2275 }
 0x543   : > { %v3091_v39 = vadd.f32 %v2986_v46, %v2790_v56  ;;  %v3092_v22 = vadd.f32 %v9634_v54, %v9615_v35  ;;  %v3587_v62 = vsel %vm2607_vm2, %v3585_v3, %v3586_v4  ;;  %v3589_v14 = vsel %vm2607_vm2, %v3586_v4, %v3588_v32 }
 0x544   : > { %v3887_v43 = vrot.slane %v3744_v45, 4  ;;  %v3889_v44 = vrot.slane %v3745_v27, 4  ;;  %v4045_v25 = vmul.f32 0.26601171, %v2643_v55  ;;  %v4046_v51 = vmul.f32 0.26601171, %v2759_v41  ;;  %v9650_v55 = vpop.permute.xlu1 %2277 }
 0x545   : > { %v3392_v17 = vadd.f32 %v3287_v38, %v3091_v39  ;;  %v3393_v6 = vadd.f32 %v3289_v15, %v3092_v22  ;;  %v4369_v46 = vrot.slane %v3744_v45, 6  ;;  %v4371_v18 = vrot.slane %v3745_v27, 6 }
 0x546   : > { %v3888_v1 = vsel %vm3830_vm5, %v3886_v53, %v3887_v43  ;;  %v3890_v56 = vsel %vm3830_vm5, %v3887_v43, %v3889_v44  ;;  %v4188_v36 = vrot.slane %v4045_v25, 5  ;;  %v4190_v28 = vrot.slane %v4046_v51, 5 }
 0x547   : > { %v3692_v42 = vadd.f32 %v3587_v62, %v3392_v17  ;;  %v3693_v60 = vadd.f32 %v3589_v14, %v3393_v6  ;;  %v4370_v3 = vsel %vm4312_vm6, %v4368_v21, %v4369_v46  ;;  %v4372_v4 = vsel %vm4312_vm6, %v4369_v46, %v4371_v18 }
 0x548   : > { %v4550_v32 = vrot.slane %v3444_v47, 7  ;;  %v4552_v39 = vrot.slane %v3445_v7, 7  ;;  %v11760_v38 = vrot.slane %v9585_v33, 5  ;;  %v4191_v27 = vsel %vm4131_vm8, %v4188_v36, %v4190_v28 }
 0x549   : > { %v3993_v22 = vadd.f32 %v3888_v1, %v3692_v42  ;;  %v3994_v53 = vadd.f32 %v3890_v56, %v3693_v60  ;;  %v4807_v15 = vmul.f32 0.0010283801, %v2759_v41  ;;  %v4901_v7 = vrot.slane %v9615_v35, 2  ;;  %v9666_v41 = vpop.permute.xlu0 %2279  ;;  %v9671_v56 = vpop.permute.xlu1 %2281 }
 0x54a   : > { %v4189_v45 = vsel %vm4131_vm8, %v11760_v38, %v4188_v36  ;;  %v4551_v51 = vsel %vm4493_vm7, %v4549_v37, %v4550_v32  ;;  %v4553_v21 = vsel %vm4493_vm7, %v4550_v32, %v4552_v39  ;;  %v2653_v42 = vrot.slane %v9602_v59, 3 }
 0x54b   : > { %v4294_v18 = vadd.f32 %v4189_v45, %v3993_v22  ;;  %v4295_v47 = vadd.f32 %v4191_v27, %v3994_v53  ;;  %v4902_v62 = vrot.slane %v4807_v15, 2  ;;  %v2654_v36 = vrot.slane %v9613_v0, 3 }
 0x54c   : > { %v2743_v44 = vsel %vm2607_vm2, 0.0, %v2653_v42  ;;  %v4727_v35 = vsel %vm2928_vm3, %v2987_v10, %v8531_v8 }
 0x54d   : > { %v4475_v43 = vadd.f32 %v4370_v3, %v4294_v18  ;;  %v4476_v37 = vadd.f32 %v4372_v4, %v4295_v47  ;;  %v4903_v59 = vsel %vm3229_vm4, %v4901_v7, %v4902_v62  ;;  %v2798_v17 = vmul.f32 0.0010283801, %v2743_v44 }
 0x54e   : > { %v2853_v6 = vmul.f32 0.007598758, %v2743_v44  ;;  %v3154_v0 = vmul.f32 0.036000773, %v2743_v44  ;;  %v9673_v28 = vmul.f32 0.10936069, %v2743_v44  ;;  %v2655_v39 = vsel %vm2607_vm2, %v2653_v42, %v2654_v36  ;;  %v9684_v42 = vpop.permute.xlu0 %2283 }
 0x54f   : > { %v4656_v46 = vadd.f32 %v4551_v51, %v4475_v43  ;;  %v4657_v60 = vadd.f32 %v4553_v21, %v4476_v37  ;;  %v3755_v4 = vmul.f32 0.21300554, %v2743_v44  ;;  %v4056_v32 = vmul.f32 0.26601171, %v2743_v44  ;;  %v9692_v44 = vpop.permute.xlu1 %2285 }
 0x550   : > { %v3004_v3 = vrot.slane %v2853_v6, 1  ;;  %v3305_v53 = vrot.slane %v3154_v0, 2  ;;  %v3605_v38 = vrot.slane %v9673_v28, 3  ;;  %v4569_v51 = vrot.slane %v9673_v28, 7 }
 0x551   : > { %v4696_v22 = vadd.f32 %v4656_v46, %v9621_v19  ;;  %v4697_v10 = vadd.f32 %v4657_v60, %v9623_v49  ;;  %v3906_v45 = vrot.slane %v3755_v4, 4  ;;  %v4207_v27 = vrot.slane %v4056_v32, 5 }
 0x552   : > { %v4388_v15 = vrot.slane %v3755_v4, 6  ;;  %v2763_v47 = vsel %vm2607_vm2, %v2654_v36, 0.0  ;;  %v9682_v7 = vmul.f32 0.0010283801, %v2655_v39  ;;  %v4904_v19 = vsel %vm3229_vm4, %v4902_v62, %v8652_v61  ;;  %v2472_v14 = vpop.permute.xlu0 %2471 }
 0x553   : > { %v4778_v21 = vadd.f32 %v4696_v22, %v9634_v54  ;;  %v4779_v18 = vadd.f32 %v4727_v35, %v4697_v10  ;;  %v2854_v49 = vmul.f32 0.007598758, %v2655_v39  ;;  %v9688_v43 = vmul.f32 0.007598758, %v2763_v47 }
 0x554   : > { %v9690_v37 = vmul.f32 0.036000773, %v2655_v39  ;;  %v9698_v35 = vmul.f32 0.036000773, %v2763_v47  ;;  %v3456_v36 = vmul.f32 0.10936069, %v2655_v39 }
 0x555   : > { %v9694_v6 = vadd.f32 %v4903_v59, %v4778_v21  ;;  %v9696_v54 = vadd.f32 %v4904_v19, %v4779_v18  ;;  %v3005_v46 = vrot.slane %v2854_v49, 1  ;;  %v3007_v60 = vrot.slane %v9688_v43, 1 }
 0x556   : > { %v3306_v0 = vrot.slane %v9690_v37, 2  ;;  %v3457_v62 = vmul.f32 0.10936069, %v2763_v47  ;;  %v3308_v28 = vrot.slane %v9698_v35, 2  ;;  %v3606_v4 = vrot.slane %v3456_v36, 3 }
 0x557   : > { %11761 = vst [vmem:[#allocation239_spill] sm:$0xff] %v9694_v6  ;;  %11762 = vst [vmem:[#allocation240_spill] sm:$0xff] %v9696_v54  ;;  %v3756_v32 = vmul.f32 0.21300554, %v2655_v39  ;;  %v3757_v22 = vmul.f32 0.21300554, %v2763_v47  ;;  %v3006_v10 = vsel %vm2928_vm3, %v3004_v3, %v3005_v46  ;;  %v9705_v59 = vsel %vm2928_vm3, %v3005_v46, %v3007_v60  ;;  %v2474_v6 = vpop.permute.xlu1 %2473 }
 0x558   : > { %v3307_v21 = vsel %vm3229_vm4, %v3305_v53, %v3306_v0  ;;  %v3608_v18 = vrot.slane %v3457_v62, 3  ;;  %v3099_v19 = vadd.f32 %v3006_v10, %v2798_v17  ;;  %v3100_v49 = vadd.f32 %v9705_v59, %v9682_v7 }
 0x559   : > { %v3309_v43 = vsel %vm3229_vm4, %v3306_v0, %v3308_v28  ;;  %v3607_v33 = vsel %vm2607_vm2, %v3605_v38, %v3606_v4  ;;  %v3907_v1 = vrot.slane %v3756_v32, 4  ;;  %v3909_v54 = vrot.slane %v3757_v22, 4 }
 0x55a   : > { %v3609_v25 = vsel %vm2607_vm2, %v3606_v4, %v3608_v18  ;;  %v4057_v3 = vmul.f32 0.26601171, %v2655_v39  ;;  %v3400_v46 = vadd.f32 %v3307_v21, %v3099_v19  ;;  %v3401_v13 = vadd.f32 %v3309_v43, %v3100_v49 }
 0x55b   : > { %v4058_v50 = vmul.f32 0.26601171, %v2763_v47  ;;  %v4389_v53 = vrot.slane %v3756_v32, 6  ;;  %v3908_v17 = vsel %vm3830_vm5, %v3906_v45, %v3907_v1  ;;  %v3910_v10 = vsel %vm3830_vm5, %v3907_v1, %v3909_v54  ;;  %v11763_v45 = vld [vmem:[#allocation124_spill] sm:$0xff]  ;;  %v2476_v54 = vpop.permute.xlu0 %2475 }
 0x55c   : > { %v4208_v26 = vrot.slane %v4057_v3, 5  ;;  %v4391_v23 = vrot.slane %v3757_v22, 6  ;;  %v3700_v0 = vadd.f32 %v3607_v33, %v3400_v46  ;;  %v3701_v28 = vadd.f32 %v3609_v25, %v3401_v13  ;;  %v11765_v22 = vld [vmem:[#allocation128_spill] sm:$0xff]  ;;  %v11766_v3 = vld [vmem:[#allocation129_spill] sm:$0xff] }
 0x55d   : > { %v4210_v38 = vrot.slane %v4058_v50, 5  ;;  %v4390_v40 = vsel %vm4312_vm6, %v4388_v15, %v4389_v53  ;;  %v4570_v18 = vrot.slane %v3456_v36, 7  ;;  %v4572_v21 = vrot.slane %v3457_v62, 7  ;;  %v11764_v36 = vld [vmem:[#allocation125_spill] sm:$0xff]  ;;  %v11767_v46 = vld [vmem:[#allocation132_spill] sm:$0xff] }
 0x55e   : > { %v4209_v4 = vsel %vm4131_vm8, %v4207_v27, %v4208_v26  ;;  %v4392_v39 = vsel %vm4312_vm6, %v4389_v53, %v4391_v23  ;;  %v4001_v19 = vadd.f32 %v3908_v17, %v3700_v0  ;;  %v4002_v49 = vadd.f32 %v3910_v10, %v3701_v28  ;;  %v2478_v27 = vpop.permute.xlu1 %2477  ;;  %v11768_v53 = vld [vmem:[#allocation133_spill] sm:$0xff] }
 0x55f   : > { %v4211_v32 = vsel %vm4131_vm8, %v4208_v26, %v4210_v38  ;;  %v2199_v1 = vadd.f32 %v9527_v31, %v11763_v45  ;;  %v4571_v33 = vsel %vm4493_vm7, %v4569_v51, %v4570_v18  ;;  %v4573_v13 = vsel %vm4493_vm7, %v4570_v18, %v4572_v21  ;;  %v11770_v38 = vld [vmem:[#allocation137_spill] sm:$0xff] }
 0x560   : > { %v4811_v50 = vmul.f32 0.0010283801, %v2763_v47  ;;  %v4917_v25 = vrot.slane %v9682_v7, 2  ;;  %v4302_v15 = vadd.f32 %v4209_v4, %v4001_v19  ;;  %v4303_v23 = vadd.f32 %v4211_v32, %v4002_v49 }
 0x561   : > { %v2200_v62 = vadd.f32 %v9536_v9, %v11764_v36  ;;  %v2201_v26 = vadd.f32 %v9554_v63, %v11765_v22  ;;  %v2202_v31 = vadd.f32 %v9557_v52, %v11766_v3  ;;  %v2203_v51 = vadd.f32 %v9567_v16, %v11767_v46  ;;  %v11769_v63 = vld [vmem:[#allocation136_spill] sm:$0xff] }
 0x562   : > { %v4918_v43 = vrot.slane %v4811_v50, 2  ;;  %v2204_v47 = vadd.f32 %v9573_v58, %v11768_v53  ;;  %v4483_v7 = vadd.f32 %v4390_v40, %v4302_v15  ;;  %v4484_v17 = vadd.f32 %v4392_v39, %v4303_v23  ;;  %v2480_v39 = vpop.permute.xlu0 %2479 }
 0x563   : > { %v4731_v10 = vsel %vm2928_vm3, %v3007_v60, %v8531_v8  ;;  %v2359_v9 = vadd.f32 %v9630_v2, %v2199_v1  ;;  %v2205_v28 = vadd.f32 %v9595_v20, %v11769_v63  ;;  %v2206_v52 = vadd.f32 %v9604_v30, %v11770_v38  ;;  %v2482_v20 = vpop.permute.xlu1 %2481 }
 0x564   : > { %v4919_v0 = vsel %vm3229_vm4, %v4917_v25, %v4918_v43  ;;  %v2360_v16 = vadd.f32 %v9636_v12, %v2200_v62  ;;  %v4664_v4 = vadd.f32 %v4571_v33, %v4483_v7  ;;  %v4665_v18 = vadd.f32 %v4573_v13, %v4484_v17 }
 0x565   : > { %v2361_v40 = vadd.f32 %v9646_v57, %v2201_v26  ;;  %v2559_v58 = vadd.f32 %v2472_v14, %v2359_v9  ;;  %v4920_v60 = vsel %vm3229_vm4, %v4918_v43, %v8652_v61  ;;  %v2362_v2 = vadd.f32 %v9650_v55, %v2202_v31 }
 0x566   : > { %v2363_v21 = vadd.f32 %v9666_v41, %v2203_v51  ;;  %v2560_v19 = vadd.f32 %v2474_v6, %v2360_v16  ;;  %v4704_v49 = vadd.f32 %v4664_v4, %v9690_v37  ;;  %v4705_v30 = vadd.f32 %v4665_v18, %v9698_v35 }
 0x567   : > { %v2364_v12 = vadd.f32 %v9671_v56, %v2204_v47  ;;  %v2656_v32 = vrot.slane %v2559_v58, 3  ;;  %v2561_v57 = vadd.f32 %v2476_v54, %v2361_v40  ;;  %v2562_v14 = vadd.f32 %v2478_v27, %v2362_v2 }
 0x568   : > { %v2657_v45 = vrot.slane %v2560_v19, 3  ;;  %v9751_v1 = vadd.f32 %v2480_v39, %v2363_v21  ;;  %v4786_v33 = vadd.f32 %v4704_v49, %v9705_v59  ;;  %v4787_v13 = vadd.f32 %v4731_v10, %v4705_v30 }
 0x569   : > { %v2744_v55 = vsel %vm2607_vm2, 0.0, %v2656_v32  ;;  %v9755_v41 = vadd.f32 %v2482_v20, %v2364_v12  ;;  %v9758_v6 = vadd.f32 %v9684_v42, %v2205_v28  ;;  %v9770_v59 = vadd.f32 %v9692_v44, %v2206_v52 }
 0x56a   : > { %v2856_v37 = vmul.f32 0.007598758, %v2744_v55  ;;  %v3157_v35 = vmul.f32 0.036000773, %v2744_v55  ;;  %v2658_v56 = vsel %vm2607_vm2, %v2656_v32, %v2657_v45  ;;  %v9761_v50 = vadd.f32 %v4919_v0, %v4786_v33 }
 0x56b   : > { %v9763_v54 = vadd.f32 %v4920_v60, %v4787_v13  ;;  %v9765_v25 = vmul.f32 0.10936069, %v2744_v55  ;;  %v9767_v27 = vmul.f32 0.21300554, %v2744_v55  ;;  %v2659_v15 = vrot.slane %v2561_v57, 3 }
 0x56c   : > { %11771 = vst [vmem:[#allocation243_spill] sm:$0xff] %v9761_v50  ;;  %v2660_v23 = vrot.slane %v2562_v14, 3  ;;  %v2662_v42 = vrot.slane %v9751_v1, 3  ;;  %v2800_v36 = vmul.f32 0.0010283801, %v2744_v55  ;;  %v2764_v22 = vsel %vm2607_vm2, %v2657_v45, 0.0 }
 0x56d   : > { %11772 = vst [vmem:[#allocation244_spill] sm:$0xff] %v9763_v54  ;;  %v4059_v62 = vmul.f32 0.26601171, %v2744_v55  ;;  %v10654_v26 = vrot.slane %v9755_v41, 3  ;;  %v3009_v43 = vrot.slane %v2856_v37, 1  ;;  %v3310_v3 = vrot.slane %v3157_v35, 2 }
 0x56e   : > { %v3610_v31 = vrot.slane %v9765_v25, 3  ;;  %v9776_v46 = vmul.f32 0.007598758, %v2658_v56  ;;  %v3911_v51 = vrot.slane %v9767_v27, 4  ;;  %v9780_v53 = vmul.f32 0.0010283801, %v2658_v56 }
 0x56f   : > { %v9782_v47 = vmul.f32 0.036000773, %v2658_v56  ;;  %v9786_v10 = vmul.f32 0.10936069, %v2658_v56  ;;  %v9788_v9 = vmul.f32 0.10936069, %v2764_v22  ;;  %v2661_v12 = vsel %vm2607_vm2, %v2659_v15, %v2660_v23 }
 0x570   : > { %v10652_v17 = vrot.slane %v9776_v46, 1  ;;  %v4212_v0 = vrot.slane %v4059_v62, 5  ;;  %v9790_v63 = vmul.f32 0.007598758, %v2764_v22  ;;  %v9793_v38 = vmul.f32 0.21300554, %v2658_v56 }
 0x571   : > { %v10650_v28 = vrot.slane %v9782_v47, 2  ;;  %v9798_v16 = vmul.f32 0.036000773, %v2764_v22  ;;  %v3611_v4 = vrot.slane %v9786_v10, 3  ;;  %v3760_v18 = vmul.f32 0.21300554, %v2764_v22 }
 0x572   : > { %v3011_v52 = vsel %vm2928_vm3, %v3009_v43, %v10652_v17  ;;  %v3613_v58 = vrot.slane %v9788_v9, 3  ;;  %v4060_v39 = vmul.f32 0.26601171, %v2658_v56  ;;  %v2745_v60 = vsel %vm2607_vm2, 0.0, %v2659_v15 }
 0x573   : > { %v3101_v40 = vadd.f32 %v3011_v52, %v2800_v36  ;;  %v3312_v2 = vsel %vm3229_vm4, %v3310_v3, %v10650_v28  ;;  %v3912_v21 = vrot.slane %v9793_v38, 4  ;;  %v3914_v19 = vrot.slane %v3760_v18, 4 }
 0x574   : > { %v4061_v20 = vmul.f32 0.26601171, %v2764_v22  ;;  %v9810_v32 = vsel %vm2607_vm2, %v2660_v23, 0.0  ;;  %v3612_v57 = vsel %vm2607_vm2, %v3610_v31, %v3611_v4  ;;  %v4213_v14 = vrot.slane %v4060_v39, 5 }
 0x575   : > { %v3402_v30 = vadd.f32 %v3312_v2, %v3101_v40  ;;  %v10651_v33 = vrot.slane %v9793_v38, 6  ;;  %v4396_v37 = vrot.slane %v3760_v18, 6  ;;  %v9815_v35 = vmul.f32 0.0010283801, %v2764_v22 }
 0x576   : > { %v4215_v55 = vrot.slane %v4061_v20, 5  ;;  %v9818_v56 = vsel %vm2607_vm2, %v3611_v4, %v3613_v58  ;;  %v3913_v15 = vsel %vm3830_vm5, %v3911_v51, %v3912_v21  ;;  %v9822_v23 = vsel %vm3830_vm5, %v3912_v21, %v3914_v19 }
 0x577   : > { %v3702_v13 = vadd.f32 %v3612_v57, %v3402_v30  ;;  %v2859_v36 = vmul.f32 0.007598758, %v2745_v60  ;;  %v3160_v3 = vmul.f32 0.036000773, %v2745_v60  ;;  %v9825_v31 = vmul.f32 0.10936069, %v2745_v60 }
 0x578   : > { %v4214_v52 = vsel %vm4131_vm8, %v4212_v0, %v4213_v14  ;;  %v9829_v18 = vmul.f32 0.21300554, %v2745_v60  ;;  %v4062_v4 = vmul.f32 0.26601171, %v2745_v60  ;;  %v9832_v40 = vsel %vm4131_vm8, %v4213_v14, %v4215_v55 }
 0x579   : > { %v4003_v62 = vadd.f32 %v3913_v15, %v3702_v13  ;;  %v9837_v51 = vsel %vm4312_vm6, %v10651_v33, %v4396_v37  ;;  %v2802_v39 = vmul.f32 0.0010283801, %v2745_v60  ;;  %v3014_v21 = vrot.slane %v2859_v36, 1 }
 0x57a   : > { %v3315_v0 = vrot.slane %v3160_v3, 2  ;;  %v2746_v19 = vsel %vm2607_vm2, 0.0, %v2662_v42  ;;  %v3615_v20 = vrot.slane %v9825_v31, 3  ;;  %v9847_v57 = vmul.f32 0.007598758, %v2661_v12 }
 0x57b   : > { %v9840_v2 = vadd.f32 %v4214_v52, %v4003_v62  ;;  %v9849_v14 = vmul.f32 0.036000773, %v2661_v12  ;;  %v3916_v13 = vrot.slane %v9829_v18, 4  ;;  %v4217_v55 = vrot.slane %v4062_v4, 5  ;;  %v2484_v52 = vpop.permute.xlu0 %2483 }
 0x57c   : > { %v9852_v60 = vmul.f32 0.10936069, %v2661_v12  ;;  %v9855_v37 = vmul.f32 0.10936069, %v9810_v32  ;;  %v9858_v15 = vmul.f32 0.007598758, %v9810_v32  ;;  %v2664_v30 = vsel %vm2607_vm2, %v2662_v42, %v10654_v26 }
 0x57d   : > { %11773 = vst [vmem:[#allocation324_spill] sm:$0xff] %v9849_v14  ;;  %v10653_v36 = vrot.slane %v9847_v57, 1  ;;  %v10655_v62 = vrot.slane %v9849_v14, 2  ;;  %v9862_v3 = vmul.f32 0.21300554, %v2661_v12  ;;  %v9883_v17 = vadd.f32 %v2484_v52, %v9758_v6 }
 0x57e   : > { %11774 = vst [vmem:[#allocation328_spill] sm:$0xff] %v9855_v37  ;;  %v9866_v22 = vmul.f32 0.036000773, %v9810_v32  ;;  %v3616_v4 = vrot.slane %v9852_v60, 3  ;;  %v3763_v58 = vmul.f32 0.21300554, %v9810_v32 }
 0x57f   : > { %v9870_v7 = vmul.f32 0.0010283801, %v2661_v12  ;;  %v3016_v43 = vsel %vm2928_vm3, %v3014_v21, %v10653_v36  ;;  %v3618_v28 = vrot.slane %v9855_v37, 3  ;;  %v4063_v45 = vmul.f32 0.26601171, %v2661_v12 }
 0x580   : > { %11775 = vst [vmem:[#allocation247_spill] sm:$0xff] %v9866_v22  ;;  %v3103_v44 = vadd.f32 %v3016_v43, %v2802_v39  ;;  %v3917_v33 = vrot.slane %v9862_v3, 4  ;;  %v3317_v21 = vsel %vm3229_vm4, %v3315_v0, %v10655_v62  ;;  %v3919_v36 = vrot.slane %v3763_v58, 4 }
 0x581   : > { %v4064_v12 = vmul.f32 0.26601171, %v9810_v32  ;;  %v3617_v54 = vsel %vm2607_vm2, %v3615_v20, %v3616_v4  ;;  %v4218_v1 = vrot.slane %v4063_v45, 5  ;;  %v9893_v42 = vsel %vm2607_vm2, %v3616_v4, %v3618_v28 }
 0x582   : > { %v3404_v39 = vadd.f32 %v3317_v21, %v3103_v44  ;;  %11776 = vst [vmem:[#allocation248_spill] sm:$0xff] %v9893_v42  ;;  %v10656_v52 = vrot.slane %v9862_v3, 6  ;;  %v4401_v49 = vrot.slane %v3763_v58, 6  ;;  %v3918_v50 = vsel %vm3830_vm5, %v3916_v13, %v3917_v33 }
 0x583   : > { %v4220_v6 = vrot.slane %v4064_v12, 5  ;;  %v9898_v0 = vmul.f32 0.0010283801, %v9810_v32  ;;  %v2862_v62 = vmul.f32 0.007598758, %v2746_v19  ;;  %v9901_v43 = vsel %vm3830_vm5, %v3917_v33, %v3919_v36 }
 0x584   : > { %v3704_v26 = vadd.f32 %v3617_v54, %v3404_v39  ;;  %11778 = vst [vmem:[#allocation252_spill] sm:$0xff] %v9901_v43  ;;  %v3163_v45 = vmul.f32 0.036000773, %v2746_v19  ;;  %v9904_v20 = vmul.f32 0.10936069, %v2746_v19  ;;  %v4219_v4 = vsel %vm4131_vm8, %v4217_v55, %v4218_v1 }
 0x585   : > { %11777 = vst [vmem:[#allocation251_spill] sm:$0xff] %v9898_v0  ;;  %v9908_v54 = vmul.f32 0.21300554, %v2746_v19  ;;  %v9911_v13 = vsel %vm4131_vm8, %v4218_v1, %v4220_v6  ;;  %v9916_v32 = vsel %vm4312_vm6, %v10656_v52, %v4401_v49  ;;  %v2804_v33 = vmul.f32 0.0010283801, %v2746_v19  ;;  %v2486_v52 = vpop.permute.xlu1 %2485 }
 0x586   : > { %11779 = vst [vmem:[#allocation255_spill] sm:$0xff] %v9904_v20  ;;  %v4005_v28 = vadd.f32 %v3918_v50, %v3704_v26  ;;  %11781 = vst [vmem:[#allocation258_spill] sm:$0xff] %v9911_v13  ;;  %v4065_v36 = vmul.f32 0.26601171, %v2746_v19  ;;  %v3019_v12 = vrot.slane %v2862_v62, 1  ;;  %v3320_v50 = vrot.slane %v3163_v45, 2 }
 0x587   : > { %11780 = vst [vmem:[#allocation256_spill] sm:$0xff] %v9908_v54  ;;  %11782 = vst [vmem:[#allocation259_spill] sm:$0xff] %v9916_v32  ;;  %v11783_v26 = vrot.slane %v9755_v41, 3  ;;  %v3620_v39 = vrot.slane %v9904_v20, 3  ;;  %v3921_v1 = vrot.slane %v9908_v54, 4  ;;  %v2566_v6 = vadd.f32 %v2486_v52, %v9770_v59 }
 0x588   : > { %v9925_v58 = vmul.f32 0.007598758, %v2664_v30  ;;  %v9927_v49 = vadd.f32 %v4219_v4, %v4005_v28  ;;  %v9929_v44 = vmul.f32 0.0010283801, %v2664_v30  ;;  %v9931_v19 = vmul.f32 0.036000773, %v2664_v30 }
 0x589   : > { %v2766_v55 = vsel %vm2607_vm2, %v11783_v26, 0.0  ;;  %v9933_v62 = vmul.f32 0.10936069, %v2664_v30  ;;  %v4222_v45 = vrot.slane %v4065_v36, 5  ;;  %v9938_v21 = vmul.f32 0.21300554, %v2664_v30 }
 0x58a   : > { %11784 = vst [vmem:[#allocation260_spill] sm:$0xff] %v9925_v58  ;;  %11785 = vst [vmem:[#allocation261_spill] sm:$0xff] %v9929_v44  ;;  %v10666_v41 = vrot.slane %v9925_v58, 1  ;;  %v9936_v26 = vmul.f32 0.10936069, %v2766_v55  ;;  %v10669_v28 = vrot.slane %v9931_v19, 2 }
 0x58b   : > { %11786 = vst [vmem:[#allocation262_spill] sm:$0xff] %v9931_v19  ;;  %11787 = vst [vmem:[#allocation263_spill] sm:$0xff] %v9933_v62  ;;  %v9941_v20 = vmul.f32 0.007598758, %v2766_v55  ;;  %v3766_v4 = vmul.f32 0.21300554, %v2766_v55 }
 0x58c   : > { %11788 = vst [vmem:[#allocation264_spill] sm:$0xff] %v9936_v26  ;;  %v3021_v44 = vsel %vm2928_vm3, %v3019_v12, %v10666_v41  ;;  %v9947_v32 = vmul.f32 0.036000773, %v2766_v55  ;;  %v3621_v36 = vrot.slane %v9933_v62, 3  ;;  %v4066_v13 = vmul.f32 0.26601171, %v2664_v30 }
 0x58d   : > { %v3105_v43 = vadd.f32 %v3021_v44, %v2804_v33  ;;  %v3623_v37 = vrot.slane %v9936_v26, 3  ;;  %v3922_v42 = vrot.slane %v9938_v21, 4  ;;  %v3322_v54 = vsel %vm3229_vm4, %v3320_v50, %v10669_v28  ;;  %v11815_v62 = vld [vmem:[#allocation172_spill] sm:$0xff] }
 0x58e   : > { %11789 = vst [vmem:[#allocation265_spill] sm:$0xff] %v9947_v32  ;;  %v3924_v0 = vrot.slane %v3766_v4, 4  ;;  %v4067_v58 = vmul.f32 0.26601171, %v2766_v55  ;;  %v4223_v22 = vrot.slane %v4066_v13, 5  ;;  %v10670_v41 = vrot.slane %v9938_v21, 6 }
 0x58f   : > { %v3406_v12 = vadd.f32 %v3322_v54, %v3105_v43  ;;  %v4406_v14 = vrot.slane %v3766_v4, 6  ;;  %v11790_v30 = vrot.slane %v9790_v63, 1  ;;  %v11791_v44 = vrot.slane %v9776_v46, 1 }
 0x590   : > { %v3622_v50 = vsel %vm2607_vm2, %v3620_v39, %v3621_v36  ;;  %v4225_v28 = vrot.slane %v4067_v58, 5  ;;  %v9968_v13 = vsel %vm2607_vm2, %v3621_v36, %v3623_v37  ;;  %v3923_v54 = vsel %vm3830_vm5, %v3921_v1, %v3922_v42 }
 0x591   : > { %v9962_v33 = vsel %vm2928_vm3, %v11791_v44, %v11790_v30  ;;  %11792 = vst [vmem:[#allocation266_spill] sm:$0xff] %v9968_v13  ;;  %v3706_v43 = vadd.f32 %v3622_v50, %v3406_v12  ;;  %v2665_v4 = vrot.slane %v9883_v17, 3  ;;  %v9973_v46 = vsel %vm3830_vm5, %v3922_v42, %v3924_v0 }
 0x592   : > { %11793 = vst [vmem:[#allocation329_spill] sm:$0xff] %v9973_v46  ;;  %v4224_v30 = vsel %vm4131_vm8, %v4222_v45, %v4223_v22  ;;  %v9976_v44 = vmul.f32 0.0010283801, %v2766_v55  ;;  %v2666_v59 = vrot.slane %v2566_v6, 3  ;;  %v9981_v58 = vsel %vm4312_vm6, %v10670_v41, %v4406_v14 }
 0x593   : > { %11795 = vst [vmem:[#allocation267_spill] sm:$0xff] %v9981_v58  ;;  %v2747_v1 = vsel %vm2607_vm2, 0.0, %v2665_v4  ;;  %v9987_v17 = vsel %vm4131_vm8, %v4223_v22, %v4225_v28  ;;  %v11797_v55 = vrot.slane %v9793_v38, 6  ;;  %v11798_v6 = vrot.slane %v9767_v27, 6 }
 0x594   : > { %11794 = vst [vmem:[#allocation332_spill] sm:$0xff] %v9976_v44  ;;  %11796 = vst [vmem:[#allocation268_spill] sm:$0xff] %v9987_v17  ;;  %v2865_v42 = vmul.f32 0.007598758, %v2747_v1  ;;  %v3166_v0 = vmul.f32 0.036000773, %v2747_v1  ;;  %v4007_v36 = vadd.f32 %v3923_v54, %v3706_v43  ;;  %v2667_v50 = vsel %vm2607_vm2, %v2665_v4, %v2666_v59 }
 0x595   : > { %v4395_v45 = vsel %vm4312_vm6, %v11798_v6, %v11797_v55  ;;  %v9994_v14 = vmul.f32 0.10936069, %v2747_v1  ;;  %v9996_v12 = vmul.f32 0.21300554, %v2747_v1  ;;  %v2767_v22 = vsel %vm2607_vm2, %v2666_v59, 0.0 }
 0x596   : > { %v11799_v28 = vrot.slane %v9798_v16, 2  ;;  %v11800_v52 = vrot.slane %v9782_v47, 2  ;;  %v4485_v27 = vadd.f32 %v4395_v45, %v9840_v2  ;;  %v2806_v43 = vmul.f32 0.0010283801, %v2747_v1 }
 0x597   : > { %v3024_v54 = vrot.slane %v2865_v42, 1  ;;  %v3325_v55 = vrot.slane %v3166_v0, 2  ;;  %v4068_v6 = vmul.f32 0.26601171, %v2747_v1  ;;  %v3625_v37 = vrot.slane %v9994_v14, 3 }
 0x598   : > { %v10006_v38 = vsel %vm3229_vm4, %v11800_v52, %v11799_v28  ;;  %v3926_v4 = vrot.slane %v9996_v12, 4  ;;  %v10011_v39 = vmul.f32 0.0010283801, %v2667_v50  ;;  %v10013_v59 = vmul.f32 0.007598758, %v2667_v50 }
 0x599   : > { %v10015_v41 = vadd.f32 %v4224_v30, %v4007_v36  ;;  %v10017_v58 = vmul.f32 0.007598758, %v2767_v22  ;;  %v10019_v52 = vmul.f32 0.036000773, %v2667_v50  ;;  %v10021_v28 = vmul.f32 0.10936069, %v2667_v50 }
 0x59a   : > { %11801 = vst [vmem:[#allocation269_spill] sm:$0xff] %v10011_v39  ;;  %11802 = vst [vmem:[#allocation270_spill] sm:$0xff] %v10013_v59  ;;  %v10682_v2 = vrot.slane %v10013_v59, 1  ;;  %v10024_v42 = vmul.f32 0.10936069, %v2767_v22  ;;  %v11805_v0 = vrot.slane %v9786_v10, 7 }
 0x59b   : > { %11803 = vst [vmem:[#allocation271_spill] sm:$0xff] %v10015_v41  ;;  %v10026_v1 = vmul.f32 0.21300554, %v2667_v50  ;;  %v11806_v45 = vrot.slane %v9765_v25, 7  ;;  %v10033_v30 = vmul.f32 0.036000773, %v2767_v22 }
 0x59c   : > { %11804 = vst [vmem:[#allocation272_spill] sm:$0xff] %v10024_v42  ;;  %v3626_v17 = vrot.slane %v10021_v28, 3  ;;  %v10037_v46 = vmul.f32 0.21300554, %v2767_v22  ;;  %v3026_v13 = vsel %vm2928_vm3, %v3024_v54, %v10682_v2  ;;  %v3628_v26 = vrot.slane %v10024_v42, 3 }
 0x59d   : > { %v4576_v39 = vsel %vm4493_vm7, %v11806_v45, %v11805_v0  ;;  %v3927_v44 = vrot.slane %v10026_v1, 4  ;;  %v10044_v19 = vmul.f32 0.26601171, %v2667_v50  ;;  %v4227_v25 = vrot.slane %v4068_v6, 5 }
 0x59e   : > { %v3107_v0 = vadd.f32 %v3026_v13, %v2806_v43  ;;  %v3929_v45 = vrot.slane %v10037_v46, 4  ;;  %v4666_v32 = vadd.f32 %v4576_v39, %v4485_v27  ;;  %v11807_v59 = vrot.slane %v10019_v52, 2 }
 0x59f   : > { %v3627_v50 = vsel %vm2607_vm2, %v3625_v37, %v3626_v17  ;;  %v10684_v13 = vrot.slane %v10044_v19, 5  ;;  %v10057_v43 = vsel %vm2607_vm2, %v3626_v17, %v3628_v26  ;;  %v3928_v39 = vsel %vm3830_vm5, %v3926_v4, %v3927_v44  ;;  %v11809_v4 = vld [vmem:[#allocation168_spill] sm:$0xff] }
 0x5a0   : > { %v3327_v54 = vsel %vm3229_vm4, %v3325_v55, %v11807_v59  ;;  %v10061_v27 = vsel %vm3830_vm5, %v3927_v44, %v3929_v45  ;;  %v10063_v6 = vmul.f32 0.26601171, %v2767_v22  ;;  %v4409_v55 = vrot.slane %v10026_v1, 6  ;;  %v11811_v45 = vld [vmem:[#allocation157_spill] sm:$0xff] }
 0x5a1   : > { %v3408_v42 = vadd.f32 %v3327_v54, %v3107_v0  ;;  %v10066_v59 = vmul.f32 0.0010283801, %v2767_v22  ;;  %v4706_v0 = vadd.f32 %v4666_v32, %v9782_v47  ;;  %v11808_v54 = vld [vmem:[#allocation160_spill] sm:$0xff]  ;;  %v4764_v17 = vadd.f32 %v8819_v48, %v8776_v29 }
 0x5a2   : > { %v4756_v26 = vadd.f32 %v8676_v24, %v11808_v54  ;;  %v11810_v44 = vrot.slane %v11809_v4, 2  ;;  %v11812_v2 = vrot.slane %v11811_v45, 2  ;;  %v4229_v22 = vsel %vm4131_vm8, %v4227_v25, %v10684_v13  ;;  %v11813_v32 = vld [vmem:[#allocation188_spill] sm:$0xff] }
 0x5a3   : > { %v3708_v41 = vadd.f32 %v3627_v50, %v3408_v42  ;;  %v4788_v47 = vadd.f32 %v4706_v0, %v9962_v33  ;;  %v11814_v37 = vrot.slane %v11813_v32, 2  ;;  %v11816_v24 = vrot.slane %v11815_v62, 2 }
 0x5a4   : > { %v4858_v42 = vsel %vm3229_vm4, %v11812_v2, %v11810_v44  ;;  %v4921_v48 = vrot.slane %v9780_v53, 2  ;;  %v11817_v0 = vrot.slane %v9815_v35, 2 }
 0x5a5   : > { %v4009_v50 = vadd.f32 %v3928_v39, %v3708_v41  ;;  %v4875_v54 = vsel %vm3229_vm4, %v11816_v24, %v11814_v37  ;;  %v4977_v45 = vadd.f32 %v4858_v42, %v4756_v26  ;;  %v3102_v39 = vadd.f32 %v9962_v33, %v9780_v53 }
 0x5a6   : > { %v4985_v36 = vadd.f32 %v4875_v54, %v4764_v17  ;;  %v4923_v62 = vsel %vm3229_vm4, %v4921_v48, %v11817_v0  ;;  %v11818_v17 = vld [vmem:[#allocation173_spill] sm:$0xff]  ;;  %v11820_v54 = vld [vmem:[#allocation180_spill] sm:$0xff] }
 0x5a7   : > { %v10090_v2 = vadd.f32 %v4229_v22, %v4009_v50  ;;  %v5017_v37 = vmul.f32 %v4977_v45, %v4977_v45  ;;  %v5009_v13 = vadd.f32 %v4923_v62, %v4788_v47  ;;  %v5065_v29 = vmul.f32 2.0, %v4977_v45 }
 0x5a8   : > { %v5033_v44 = vmul.f32 %v4985_v36, %v4985_v36  ;;  %v5049_v24 = vmul.f32 %v4985_v36, %v4977_v45  ;;  %v3403_v26 = vadd.f32 %v10006_v38, %v3102_v39  ;;  %v11819_v42 = vrot.slane %v11818_v17, 1 }
 0x5a9   : > { %v5025_v22 = vsub.f32 %v9260_v11, %v5017_v37  ;;  %v5073_v0 = vmul.f32 %v5065_v29, %v4985_v36  ;;  %v11821_v47 = vrot.slane %v9788_v9, 7  ;;  %v11822_v38 = vrot.slane %v9786_v10, 7  ;;  %v11826_v29 = vld [vmem:[#allocation164_spill] sm:$0xff] }
 0x5aa   : > { %v4720_v50 = vsel %vm2928_vm3, %v11819_v42, %v8531_v8  ;;  %v5041_v53 = vsub.f32 %v9384_v34, %v5033_v44  ;;  %v5105_v33 = vadd.f32 %v5033_v44, %v5017_v37  ;;  %v5057_v48 = vsub.f32 %v5009_v13, %v5049_v24 }
 0x5ab   : > { %v4765_v25 = vadd.f32 %v4720_v50, %v11820_v54  ;;  %v3703_v41 = vadd.f32 %v9818_v56, %v3403_v26  ;;  %v4578_v45 = vsel %vm4493_vm7, %v11822_v38, %v11821_v47  ;;  %v11823_v11 = vrot.slane %v9790_v63, 1  ;;  %v11830_v38 = vld [vmem:[#allocation220_spill] sm:$0xff] }
 0x5ac   : > { %v5113_v39 = vadd.f32 0.0001, %v5105_v33  ;;  %v5121_v62 = vadd.f32 %v5041_v53, %v5025_v22  ;;  %v11824_v37 = vrot.slane %v11809_v4, 2  ;;  %v5089_v13 = vmul.f32 2.0, %v5057_v48 }
 0x5ad   : > { %v4732_v34 = vsel %vm2928_vm3, %v11823_v11, %v8531_v8  ;;  %v4004_v56 = vadd.f32 %v9822_v23, %v3703_v41  ;;  %v11825_v10 = vrot.slane %v11813_v32, 2  ;;  %v5081_v24 = vadd.f32 0.0001, %v5073_v0 }
 0x5ae   : > { %v4860_v36 = vsel %vm3229_vm4, %v11824_v37, %v8652_v61  ;;  %v5129_v26 = vadd.f32 0.0009, %v5121_v62  ;;  %v11827_v63 = vrot.slane %v9815_v35, 2  ;;  %v5097_v42 = vadd.f32 0.0009, %v5089_v13  ;;  %v11835_v13 = vld [vmem:[#allocation165_spill] sm:$0xff] }
 0x5af   : > { %v4876_v9 = vsel %vm3229_vm4, %v11825_v10, %v8652_v61  ;;  %v4978_v44 = vadd.f32 %v4860_v36, %v11826_v29  ;;  %v4305_v50 = vadd.f32 %v9832_v40, %v4004_v56  ;;  %v11828_v33 = vrot.slane %v9862_v3, 6  ;;  %v11836_v56 = vld [vmem:[#allocation169_spill] sm:$0xff] }
 0x5b0   : > { %v4924_v17 = vsel %vm3229_vm4, %v11827_v63, %v8652_v61  ;;  %v4986_v4 = vadd.f32 %v4876_v9, %v4765_v25  ;;  %v5145_v41 = vmul.f32 %v5129_v26, %v5113_v39  ;;  %v11829_v54 = vrot.slane %v9829_v18, 6  ;;  %v11839_v26 = vld [vmem:[#allocation177_spill] sm:$0xff] }
 0x5b1   : > { %v5018_v22 = vmul.f32 %v4978_v44, %v4978_v44  ;;  %v5066_v23 = vmul.f32 2.0, %v4978_v44  ;;  %v5137_v0 = vmul.f32 %v5097_v42, %v5081_v24  ;;  %v4486_v35 = vadd.f32 %v9837_v51, %v4305_v50  ;;  %v11843_v50 = vld [vmem:[#allocation196_spill] sm:$0xff] }
 0x5b2   : > { %v5034_v53 = vmul.f32 %v4986_v4, %v4986_v4  ;;  %v5050_v32 = vmul.f32 %v4986_v4, %v4978_v44  ;;  %v4400_v48 = vsel %vm4312_vm6, %v11829_v54, %v11828_v33  ;;  %5449 = vrcp.f32 %v5145_v41  ;;  %v11838_v44 = vld [vmem:[#allocation189_spill] sm:$0xff] }
 0x5b3   : > { %v5026_v47 = vsub.f32 %v9262_v5, %v5018_v22  ;;  %v5074_v25 = vmul.f32 %v5066_v23, %v4986_v4  ;;  %v4487_v39 = vadd.f32 %v4400_v48, %v9927_v49  ;;  %v4667_v11 = vadd.f32 %v4578_v45, %v4486_v35  ;;  %v11837_v45 = vld [vmem:[#allocation185_spill] sm:$0xff]  ;;  %v11847_v48 = vld [vmem:[#allocation324_spill] sm:$0xff] }
 0x5b4   : > { %v5042_v40 = vsub.f32 %v11830_v38, %v5034_v53  ;;  %v5106_v62 = vadd.f32 %v5034_v53, %v5018_v22  ;;  %v11831_v37 = vrot.slane %v9858_v15, 1  ;;  %v11832_v3 = vrot.slane %v9847_v57, 1  ;;  %v11841_v4 = vld [vmem:[#allocation161_spill] sm:$0xff] }
 0x5b5   : > { %v11833_v36 = vrot.slane %v9852_v60, 7  ;;  %v11834_v51 = vrot.slane %v9825_v31, 7  ;;  %v4758_v10 = vadd.f32 %v11836_v56, %v11835_v13  ;;  %v4766_v24 = vadd.f32 %v11838_v44, %v11837_v45  ;;  %v11845_v23 = vld [vmem:[#allocation181_spill] sm:$0xff] }
 0x5b6   : > { %v3018_v18 = vsel %vm2928_vm3, %v11832_v3, %v11831_v37  ;;  %v5114_v9 = vadd.f32 0.0001, %v5106_v62  ;;  %v5122_v29 = vadd.f32 %v5042_v40, %v5026_v47  ;;  %v4707_v57 = vadd.f32 %v4667_v11, %v9798_v16  ;;  %v11848_v40 = vld [vmem:[#allocation247_spill] sm:$0xff] }
 0x5b7   : > { %v4581_v5 = vsel %vm4493_vm7, %v11834_v51, %v11833_v36  ;;  %v11840_v63 = vrot.slane %v11839_v26, 2  ;;  %v11842_v42 = vrot.slane %v11841_v4, 2  ;;  %v11844_v22 = vrot.slane %v11843_v50, 2  ;;  %v11851_v37 = vld [vmem:[#allocation251_spill] sm:$0xff] }
 0x5b8   : > { %v4668_v49 = vadd.f32 %v4581_v5, %v4487_v39  ;;  %v11846_v41 = vrot.slane %v11845_v23, 2  ;;  %v4925_v33 = vrot.slane %v9870_v7, 2  ;;  %v5130_v54 = vadd.f32 0.0009, %v5122_v29  ;;  %v11855_v23 = vld [vmem:[#allocation248_spill] sm:$0xff] }
 0x5b9   : > { %v4863_v31 = vsel %vm3229_vm4, %v11842_v42, %v11840_v63  ;;  %v4789_v16 = vadd.f32 %v4732_v34, %v4707_v57  ;;  %v11849_v62 = vrot.slane %v11848_v40, 2  ;;  %v11850_v39 = vrot.slane %v11847_v48, 2  ;;  %v11854_v63 = vld [vmem:[#allocation227_spill] sm:$0xff] }
 0x5ba   : > { %v4879_v53 = vsel %vm3229_vm4, %v11846_v41, %v11844_v22  ;;  %v4708_v35 = vadd.f32 %v4668_v49, %v11847_v48  ;;  %v4979_v47 = vadd.f32 %v4863_v31, %v4758_v10  ;;  %v11852_v3 = vrot.slane %v11851_v37, 2 }
 0x5bb   : > { %v4987_v38 = vadd.f32 %v4879_v53, %v4766_v24  ;;  %v3319_v11 = vsel %vm3229_vm4, %v11850_v39, %v11849_v62  ;;  %v3104_v51 = vadd.f32 %v3018_v18, %v9870_v7  ;;  %v5146_v5 = vmul.f32 %v5130_v54, %v5114_v9  ;;  %v11853_v24 = vld [vmem:[#allocation216_spill] sm:$0xff] }
 0x5bc   : > { %v4927_v36 = vsel %vm3229_vm4, %v4925_v33, %v11852_v3  ;;  %v4790_v13 = vadd.f32 %v4708_v35, %v3018_v18  ;;  %v5019_v56 = vmul.f32 %v4979_v47, %v4979_v47  ;;  %v5010_v49 = vadd.f32 %v4924_v17, %v4789_v16  ;;  %v5450_v7 = vpop.eup %5449  ;;  %v11856_v33 = vld [vmem:[#allocation328_spill] sm:$0xff] }
 0x5bd   : > { %v5035_v29 = vmul.f32 %v4987_v38, %v4987_v38  ;;  %v5051_v10 = vmul.f32 %v4987_v38, %v4979_v47  ;;  %v5067_v45 = vmul.f32 2.0, %v4979_v47  ;;  %v3405_v34 = vadd.f32 %v3319_v11, %v3104_v51  ;;  %v11859_v62 = vld [vmem:[#allocation184_spill] sm:$0xff] }
 0x5be   : > { %5451 = vrcp.f32 %v5146_v5  ;;  %v5011_v44 = vadd.f32 %v4927_v36, %v4790_v13  ;;  %v5027_v57 = vsub.f32 %v11853_v24, %v5019_v56  ;;  %v5058_v42 = vsub.f32 %v5010_v49, %v5050_v32  ;;  %v11861_v3 = vld [vmem:[#allocation252_spill] sm:$0xff] }
 0x5bf   : > { %v5043_v4 = vsub.f32 %v11854_v63, %v5035_v29  ;;  %v5075_v31 = vmul.f32 %v5067_v45, %v4987_v38  ;;  %v5107_v22 = vadd.f32 %v5035_v29, %v5019_v56  ;;  %v3705_v41 = vadd.f32 %v11855_v23, %v3405_v34  ;;  %v11862_v36 = vld [vmem:[#allocation192_spill] sm:$0xff] }
 0x5c0   : > { %v5082_v9 = vadd.f32 0.0001, %v5074_v25  ;;  %v5059_v18 = vsub.f32 %v5011_v44, %v5051_v10  ;;  %v11857_v17 = vrot.slane %v11856_v33, 7  ;;  %v11858_v54 = vrot.slane %v9852_v60, 7  ;;  %v11864_v10 = vld [vmem:[#allocation258_spill] sm:$0xff] }
 0x5c1   : > { %v5123_v53 = vadd.f32 %v5043_v4, %v5027_v57  ;;  %v5154_v35 = vmul.f32 %v5450_v7, %v5137_v0  ;;  %v5090_v47 = vmul.f32 2.0, %v5058_v42  ;;  %v5115_v16 = vadd.f32 0.0001, %v5107_v22  ;;  %v11867_v4 = vld [vmem:[#allocation176_spill] sm:$0xff]  ;;  %v11868_v22 = vld [vmem:[#allocation259_spill] sm:$0xff] }
 0x5c2   : > { %v4583_v48 = vsel %vm4493_vm7, %v11858_v54, %v11857_v17  ;;  %v11860_v32 = vrot.slane %v11859_v62, 1  ;;  %v5091_v39 = vmul.f32 2.0, %v5059_v18  ;;  %v4006_v25 = vadd.f32 %v11861_v3, %v3705_v41  ;;  %v11871_v54 = vld [vmem:[#allocation260_spill] sm:$0xff] }
 0x5c3   : > { %v5131_v11 = vadd.f32 0.0009, %v5123_v53  ;;  %v5170_v5 = vsel %vm5169_vm9, %v5154_v35, 0.0  ;;  %v5098_v13 = vadd.f32 0.0009, %v5090_v47  ;;  %v11863_v0 = vrot.slane %v11839_v26, 2 }
 0x5c4   : > { %v4721_v38 = vsel %vm2928_vm3, %v11860_v32, %v8531_v8  ;;  %v5083_v60 = vadd.f32 0.0001, %v5075_v31  ;;  %5171 = vadd.xlane.f32.xlu0 %v5170_v5  ;;  %v5099_v29 = vadd.f32 0.0009, %v5091_v39  ;;  %v4307_v45 = vadd.f32 %v11864_v10, %v4006_v25  ;;  %v11874_v62 = vld [vmem:[#allocation256_spill] sm:$0xff]  ;;  %v11877_v39 = vld [vmem:[#allocation197_spill] sm:$0xff] }
 0x5c5   : > { %v4767_v51 = vadd.f32 %v4721_v38, %v11862_v36  ;;  %v4864_v56 = vsel %vm3229_vm4, %v11863_v0, %v8652_v61  ;;  %v5147_v49 = vmul.f32 %v5131_v11, %v5115_v16  ;;  %v11865_v34 = vrot.slane %v11843_v50, 2  ;;  %v11876_v38 = vld [vmem:[#allocation195_spill] sm:$0xff] }
 0x5c6   : > { %v5138_v24 = vmul.f32 %v5098_v13, %v5082_v9  ;;  %v11866_v57 = vrot.slane %v9858_v15, 1  ;;  %v4980_v26 = vadd.f32 %v4864_v56, %v11867_v4  ;;  %v5139_v31 = vmul.f32 %v5099_v29, %v5083_v60  ;;  %v11878_v25 = vld [vmem:[#allocation219_spill] sm:$0xff]  ;;  %v11881_v29 = vld [vmem:[#allocation201_spill] sm:$0xff] }
 0x5c7   : > { %v4880_v44 = vsel %vm3229_vm4, %v11865_v34, %v8652_v61  ;;  %5453 = vrcp.f32 %v5147_v49  ;;  %v4488_v23 = vadd.f32 %v11868_v22, %v4307_v45  ;;  %v11869_v41 = vrot.slane %v11851_v37, 2  ;;  %v11880_v0 = vld [vmem:[#allocation271_spill] sm:$0xff] }
 0x5c8   : > { %v4733_v63 = vsel %vm2928_vm3, %v11866_v57, %v8531_v8  ;;  %v4988_v42 = vadd.f32 %v4880_v44, %v4767_v51  ;;  %v5020_v7 = vmul.f32 %v4980_v26, %v4980_v26  ;;  %v5068_v53 = vmul.f32 2.0, %v4980_v26  ;;  %v5452_v33 = vpop.eup %5451  ;;  %v11879_v51 = vld [vmem:[#allocation228_spill] sm:$0xff]  ;;  %v11883_v34 = vld [vmem:[#allocation263_spill] sm:$0xff] }
 0x5c9   : > { %v4928_v50 = vsel %vm3229_vm4, %v11869_v41, %v8652_v61  ;;  %v4669_v15 = vadd.f32 %v4583_v48, %v4488_v23  ;;  %v11870_v17 = vrot.slane %v9941_v20, 1  ;;  %v11872_v35 = vrot.slane %v11871_v54, 1  ;;  %v11885_v57 = vld [vmem:[#allocation255_spill] sm:$0xff] }
 0x5ca   : > { %v5036_v18 = vmul.f32 %v4988_v42, %v4988_v42  ;;  %v5052_v9 = vmul.f32 %v4988_v42, %v4980_v26  ;;  %v11873_v16 = vrot.slane %v9938_v21, 6  ;;  %v11875_v32 = vrot.slane %v11874_v62, 6  ;;  %v11882_v21 = vld [vmem:[#allocation203_spill] sm:$0xff]  ;;  %v11887_v26 = vld [vmem:[#allocation202_spill] sm:$0xff] }
 0x5cb   : > { %v3023_v47 = vsel %vm2928_vm3, %v11872_v35, %v11870_v17  ;;  %v4760_v11 = vadd.f32 %v11877_v39, %v11876_v38  ;;  %v5156_v3 = vmul.f32 %v5452_v33, %v5138_v24  ;;  %v5028_v36 = vsub.f32 %v11878_v25, %v5020_v7  ;;  %v11896_v39 = vld [vmem:[#allocation265_spill] sm:$0xff]  ;;  %v11898_v25 = vld [vmem:[#allocation262_spill] sm:$0xff] }
 0x5cc   : > { %v4405_v37 = vsel %vm4312_vm6, %v11875_v32, %v11873_v16  ;;  %v5044_v48 = vsub.f32 %v11879_v51, %v5036_v18  ;;  %v5076_v5 = vmul.f32 %v5068_v53, %v4988_v42  ;;  %v4709_v13 = vadd.f32 %v4669_v15, %v11848_v40  ;;  %v11889_v42 = vld [vmem:[#allocation193_spill] sm:$0xff]  ;;  %v11891_v53 = vld [vmem:[#allocation207_spill] sm:$0xff]  ;;  %v11893_v15 = vld [vmem:[#allocation198_spill] sm:$0xff] }
 0x5cd   : > { %v5108_v60 = vadd.f32 %v5036_v18, %v5020_v7  ;;  %v4489_v56 = vadd.f32 %v4405_v37, %v11880_v0  ;;  %v4768_v49 = vadd.f32 %v11882_v21, %v11881_v29  ;;  %v5173_v10 = vsel %vm5169_vm9, %v5156_v3, 0.0  ;;  %v11895_v16 = vld [vmem:[#allocation261_spill] sm:$0xff] }
 0x5ce   : > { %v5124_v45 = vadd.f32 %v5044_v48, %v5028_v36  ;;  %v11884_v44 = vrot.slane %v11883_v34, 7  ;;  %v11886_v24 = vrot.slane %v11885_v57, 7  ;;  %v11888_v22 = vrot.slane %v11887_v26, 2  ;;  %5174 = vadd.xlane.f32.xlu1 %v5173_v10  ;;  %v11902_v57 = vld [vmem:[#allocation231_spill] sm:$0xff] }
 0x5cf   : > { %v11890_v23 = vrot.slane %v11889_v42, 2  ;;  %v4791_v41 = vadd.f32 %v4733_v63, %v4709_v13  ;;  %v5116_v7 = vadd.f32 0.0001, %v5108_v60  ;;  %v11892_v33 = vrot.slane %v11891_v53, 2  ;;  %v11900_v60 = vld [vmem:[#allocation332_spill] sm:$0xff] }
 0x5d0   : > { %v4586_v4 = vsel %vm4493_vm7, %v11886_v24, %v11884_v44  ;;  %v11894_v17 = vrot.slane %v11893_v15, 2  ;;  %v5132_v35 = vadd.f32 0.0009, %v5124_v45  ;;  %v4929_v62 = vrot.slane %v11895_v16, 2 }
 0x5d1   : > { %v4867_v40 = vsel %vm3229_vm4, %v11890_v23, %v11888_v22  ;;  %v4670_v18 = vadd.f32 %v4586_v4, %v4489_v56  ;;  %v5012_v38 = vadd.f32 %v4928_v50, %v4791_v41  ;;  %v11897_v3 = vrot.slane %v11896_v39, 2  ;;  %v11903_v4 = vld [vmem:[#allocation235_spill] sm:$0xff] }
 0x5d2   : > { %v4883_v54 = vsel %vm3229_vm4, %v11894_v17, %v11892_v33  ;;  %v4981_v32 = vadd.f32 %v4867_v40, %v4760_v11  ;;  %v11899_v36 = vrot.slane %v11898_v25, 2  ;;  %v3106_v48 = vadd.f32 %v3023_v47, %v11895_v16  ;;  %v5454_v11 = vpop.eup %5453  ;;  %v11904_v17 = vld [vmem:[#allocation264_spill] sm:$0xff] }
 0x5d3   : > { %v4989_v37 = vadd.f32 %v4883_v54, %v4768_v49  ;;  %v4710_v51 = vadd.f32 %v4670_v18, %v11898_v25  ;;  %v5148_v13 = vmul.f32 %v5132_v35, %v5116_v7  ;;  %v11901_v0 = vrot.slane %v11900_v60, 2  ;;  %v11907_v16 = vld [vmem:[#allocation200_spill] sm:$0xff] }
 0x5d4   : > { %v3324_v63 = vsel %vm3229_vm4, %v11899_v36, %v11897_v3  ;;  %v5021_v29 = vmul.f32 %v4981_v32, %v4981_v32  ;;  %v5060_v49 = vsub.f32 %v5012_v38, %v5052_v9  ;;  %v5069_v45 = vmul.f32 2.0, %v4981_v32  ;;  %v11909_v3 = vld [vmem:[#allocation266_spill] sm:$0xff]  ;;  %v11910_v25 = vld [vmem:[#allocation204_spill] sm:$0xff] }
 0x5d5   : > { %v4931_v56 = vsel %vm3229_vm4, %v4929_v62, %v11901_v0  ;;  %v5037_v21 = vmul.f32 %v4989_v37, %v4989_v37  ;;  %v4792_v50 = vadd.f32 %v4710_v51, %v3023_v47  ;;  %v5053_v10 = vmul.f32 %v4989_v37, %v4981_v32 }
 0x5d6   : > { %v5158_v44 = vmul.f32 %v5454_v11, %v5139_v31  ;;  %5455 = vrcp.f32 %v5148_v13  ;;  %v5029_v24 = vsub.f32 %v11902_v57, %v5021_v29  ;;  %v5092_v42 = vmul.f32 2.0, %v5060_v49  ;;  %v11914_v49 = vld [vmem:[#allocation199_spill] sm:$0xff] }
 0x5d7   : > { %v5045_v22 = vsub.f32 %v11903_v4, %v5037_v21  ;;  %v5013_v23 = vadd.f32 %v4931_v56, %v4792_v50  ;;  %v5077_v40 = vmul.f32 %v5069_v45, %v4989_v37  ;;  %v5109_v41 = vadd.f32 %v5037_v21, %v5021_v29  ;;  %v11912_v56 = vld [vmem:[#allocation329_spill] sm:$0xff]  ;;  %v11917_v4 = vld [vmem:[#allocation268_spill] sm:$0xff] }
 0x5d8   : > { %v5176_v7 = vsel %vm5169_vm9, %v5158_v44, 0.0  ;;  %v5084_v18 = vadd.f32 0.0001, %v5076_v5  ;;  %v3407_v15 = vadd.f32 %v3324_v63, %v3106_v48  ;;  %v5100_v9 = vadd.f32 0.0009, %v5092_v42 }
 0x5d9   : > { %v5125_v33 = vadd.f32 %v5045_v22, %v5029_v24  ;;  %5177 = vadd.xlane.f32.xlu0 %v5176_v7  ;;  %v5061_v47 = vsub.f32 %v5013_v23, %v5053_v10  ;;  %v11905_v54 = vrot.slane %v11904_v17, 7  ;;  %v11906_v31 = vrot.slane %v11883_v34, 7 }
 0x5da   : > { %v11908_v62 = vrot.slane %v11907_v16, 1  ;;  %v5117_v37 = vadd.f32 0.0001, %v5109_v41  ;;  %v3707_v5 = vadd.f32 %v11909_v3, %v3407_v15  ;;  %v5140_v63 = vmul.f32 %v5100_v9, %v5084_v18  ;;  %v11920_v15 = vld [vmem:[#allocation232_spill] sm:$0xff] }
 0x5db   : > { %v4588_v35 = vsel %vm4493_vm7, %v11906_v31, %v11905_v54  ;;  %v5133_v38 = vadd.f32 0.0009, %v5125_v33  ;;  %v5085_v51 = vadd.f32 0.0001, %v5077_v40  ;;  %v5093_v48 = vmul.f32 2.0, %v5061_v47  ;;  %v11919_v33 = vld [vmem:[#allocation267_spill] sm:$0xff] }
 0x5dc   : > { %v4722_v32 = vsel %vm2928_vm3, %v11908_v62, %v8531_v8  ;;  %v11911_v13 = vrot.slane %v11887_v26, 2  ;;  %v4008_v29 = vadd.f32 %v11912_v56, %v3707_v5  ;;  %v11913_v21 = vrot.slane %v11891_v53, 2  ;;  %v11921_v31 = vld [vmem:[#allocation236_spill] sm:$0xff]  ;;  %v11925_v5 = vld [vmem:[#allocation270_spill] sm:$0xff] }
 0x5dd   : > { %v4769_v36 = vadd.f32 %v4722_v32, %v11910_v25  ;;  %v5149_v0 = vmul.f32 %v5133_v38, %v5117_v37  ;;  %v5101_v10 = vadd.f32 0.0009, %v5093_v48  ;;  %v11915_v45 = vrot.slane %v9941_v20, 1  ;;  %v11927_v48 = vld [vmem:[#allocation206_spill] sm:$0xff]  ;;  %v11929_v56 = vld [vmem:[#allocation212_spill] sm:$0xff] }
 0x5de   : > { %v4868_v34 = vsel %vm3229_vm4, %v11911_v13, %v8652_v61  ;;  %v4884_v11 = vsel %vm3229_vm4, %v11913_v21, %v8652_v61  ;;  %v11916_v26 = vrot.slane %v11900_v60, 2  ;;  %v4309_v22 = vadd.f32 %v11917_v4, %v4008_v29  ;;  %v11930_v29 = vld [vmem:[#allocation215_spill] sm:$0xff]  ;;  %v11937_v4 = vld [vmem:[#allocation209_spill] sm:$0xff] }
 0x5df   : > { %v4982_v50 = vadd.f32 %v4868_v34, %v11914_v49  ;;  %v4734_v44 = vsel %vm2928_vm3, %v11915_v45, %v8531_v8  ;;  %v4990_v24 = vadd.f32 %v4884_v11, %v4769_v36  ;;  %5457 = vrcp.f32 %v5149_v0  ;;  %v11931_v11 = vld [vmem:[#allocation223_spill] sm:$0xff] }
 0x5e0   : > { %v4932_v57 = vsel %vm3229_vm4, %v11916_v26, %v8652_v61  ;;  %v5141_v23 = vmul.f32 %v5101_v10, %v5085_v51  ;;  %v11918_v20 = vrot.slane %v9996_v12, 6  ;;  %v5456_v18 = vpop.eup %5455  ;;  %v4490_v60 = vadd.f32 %v11919_v33, %v4309_v22  ;;  %v11935_v26 = vld [vmem:[#allocation224_spill] sm:$0xff] }
 0x5e1   : > { %v5022_v53 = vmul.f32 %v4982_v50, %v4982_v50  ;;  %v5070_v42 = vmul.f32 2.0, %v4982_v50  ;;  %v5038_v40 = vmul.f32 %v4990_v24, %v4990_v24  ;;  %v5054_v41 = vmul.f32 %v4990_v24, %v4982_v50  ;;  %v11933_v50 = vld [vmem:[#allocation205_spill] sm:$0xff] }
 0x5e2   : > { %v4410_v7 = vsel %vm4312_vm6, %v11918_v20, %v4409_v55  ;;  %v5160_v54 = vmul.f32 %v5456_v18, %v5140_v63  ;;  %v11922_v32 = vrot.slane %v10021_v28, 7  ;;  %v11923_v37 = vrot.slane %v9994_v14, 7 }
 0x5e3   : > { %v5030_v9 = vsub.f32 %v11920_v15, %v5022_v53  ;;  %v5078_v47 = vmul.f32 %v5070_v42, %v4990_v24  ;;  %v4491_v17 = vadd.f32 %v4410_v7, %v10090_v2  ;;  %v5046_v16 = vsub.f32 %v11921_v31, %v5038_v40  ;;  %v11928_v2 = vld [vmem:[#allocation208_spill] sm:$0xff] }
 0x5e4   : > { %v5110_v62 = vadd.f32 %v5038_v40, %v5022_v53  ;;  %v4591_v12 = vsel %vm4493_vm7, %v11923_v37, %v11922_v32  ;;  %v4671_v38 = vadd.f32 %v4588_v35, %v4490_v60  ;;  %v11924_v3 = vrot.slane %v10017_v58, 1  ;;  %v11939_v40 = vld [vmem:[#allocation269_spill] sm:$0xff] }
 0x5e5   : > { %v11926_v25 = vrot.slane %v11925_v5, 1  ;;  %v4672_v51 = vadd.f32 %v4591_v12, %v4491_v17  ;;  %v4762_v63 = vadd.f32 %v11928_v2, %v11927_v48  ;;  %v5179_v13 = vsel %vm5169_vm9, %v5160_v54, 0.0 }
 0x5e6   : > { %v5118_v34 = vadd.f32 0.0001, %v5110_v62  ;;  %v5126_v0 = vadd.f32 %v5046_v16, %v5030_v9  ;;  %v4770_v14 = vadd.f32 %v11930_v29, %v11929_v56  ;;  %5180 = vadd.xlane.f32.xlu0 %v5179_v13  ;;  %v4711_v35 = vadd.f32 %v4671_v38, %v11896_v39 }
 0x5e7   : > { %v3028_v36 = vsel %vm2928_vm3, %v11926_v25, %v11924_v3  ;;  %v4712_v21 = vadd.f32 %v4672_v51, %v10019_v52  ;;  %v11932_v49 = vrot.slane %v11931_v11, 2  ;;  %v11934_v10 = vrot.slane %v11933_v50, 2  ;;  %v11944_v51 = vld [vmem:[#allocation243_spill] sm:$0xff] }
 0x5e8   : > { %v11936_v24 = vrot.slane %v11935_v26, 2  ;;  %v11938_v22 = vrot.slane %v11937_v4, 2  ;;  %v5134_v42 = vadd.f32 0.0009, %v5126_v0  ;;  %v4933_v20 = vrot.slane %v11939_v40, 2 }
 0x5e9   : > { %v4871_v45 = vsel %vm3229_vm4, %v11934_v10, %v11932_v49  ;;  %v4793_v39 = vadd.f32 %v4734_v44, %v4711_v35  ;;  %v11940_v33 = vrot.slane %v10033_v30, 2  ;;  %v11941_v60 = vrot.slane %v10019_v52, 2  ;;  %v5458_v37 = vpop.eup %5457  ;;  %v11943_v52 = vld [vmem:[#allocation239_spill] sm:$0xff] }
 0x5ea   : > { %v4887_v53 = vsel %vm3229_vm4, %v11938_v22, %v11936_v24  ;;  %v4983_v7 = vadd.f32 %v4871_v45, %v4762_v63  ;;  %v4794_v9 = vadd.f32 %v4712_v21, %v3028_v36  ;;  %v3108_v17 = vadd.f32 %v3028_v36, %v11939_v40  ;;  %v11948_v24 = vld [vmem:[#allocation323_spill] sm:$0xff] }
 0x5eb   : > { %v4991_v18 = vadd.f32 %v4887_v53, %v4770_v14  ;;  %v3329_v15 = vsel %vm3229_vm4, %v11941_v60, %v11940_v33  ;;  %v5150_v54 = vmul.f32 %v5134_v42, %v5118_v34  ;;  %v11942_v31 = vrot.slane %v10066_v59, 2  ;;  %v11945_v34 = vld [vmem:[#allocation272_spill] sm:$0xff]  ;;  %v11951_v33 = vld [vmem:[#allocation211_spill] sm:$0xff] }
 0x5ec   : > { %v5023_v62 = vmul.f32 %v4983_v7, %v4983_v7  ;;  %v5014_v12 = vadd.f32 %v4932_v57, %v4793_v39  ;;  %v5071_v3 = vmul.f32 2.0, %v4983_v7  ;;  %v5162_v5 = vmul.f32 %v5458_v37, %v5141_v23  ;;  %v11946_v23 = vld [vmem:[#allocation210_spill] sm:$0xff] }
 0x5ed   : > { %v4935_v16 = vsel %vm3229_vm4, %v4933_v20, %v11942_v31  ;;  %v5039_v32 = vmul.f32 %v4991_v18, %v4991_v18  ;;  %v5055_v44 = vmul.f32 %v4991_v18, %v4983_v7  ;;  %5459 = vrcp.f32 %v5150_v54 }
 0x5ee   : > { %v5015_v38 = vadd.f32 %v4935_v16, %v4794_v9  ;;  %v5031_v25 = vsub.f32 %v11943_v52, %v5023_v62  ;;  %v5062_v2 = vsub.f32 %v5014_v12, %v5054_v41  ;;  %v5079_v63 = vmul.f32 %v5071_v3, %v4991_v18 }
 0x5ef   : > { %v5047_v48 = vsub.f32 %v11944_v51, %v5039_v32  ;;  %v5111_v13 = vadd.f32 %v5039_v32, %v5023_v62  ;;  %v4592_v0 = vrot.slane %v11945_v34, 7  ;;  %v5182_v56 = vsel %vm5169_vm9, %v5162_v5, 0.0 }
 0x5f0   : > { %v5063_v36 = vsub.f32 %v5015_v38, %v5055_v44  ;;  %v3409_v14 = vadd.f32 %v3329_v15, %v3108_v17  ;;  %5183 = vadd.xlane.f32.xlu1 %v5182_v56  ;;  %v5086_v57 = vadd.f32 0.0001, %v5078_v47  ;;  %v5094_v35 = vmul.f32 2.0, %v5062_v2 }
 0x5f1   : > { %v5127_v29 = vadd.f32 %v5047_v48, %v5031_v25  ;;  %v11947_v49 = vrot.slane %v11946_v23, 1  ;;  %v5119_v10 = vadd.f32 0.0001, %v5111_v13  ;;  %v5087_v53 = vadd.f32 0.0001, %v5079_v63  ;;  %v11957_v25 = vld [vmem:[#allocation244_spill] sm:$0xff] }
 0x5f2   : > { %v5095_v21 = vmul.f32 2.0, %v5063_v36  ;;  %v3709_v45 = vadd.f32 %v10057_v43, %v3409_v14  ;;  %v5102_v22 = vadd.f32 0.0009, %v5094_v35  ;;  %v11949_v40 = vrot.slane %v11931_v11, 2 }
 0x5f3   : > { %v4723_v50 = vsel %vm2928_vm3, %v11947_v49, %v8531_v8  ;;  %v5135_v41 = vadd.f32 0.0009, %v5127_v29  ;;  %v11950_v18 = vrot.slane %v11935_v26, 2  ;;  %v11952_v60 = vrot.slane %v10063_v6, 5 }
 0x5f4   : > { %v4771_v4 = vadd.f32 %v4723_v50, %v11948_v24  ;;  %v5103_v42 = vadd.f32 0.0009, %v5095_v21  ;;  %v4872_v47 = vsel %vm3229_vm4, %v11949_v40, %v8652_v61  ;;  %v4010_v7 = vadd.f32 %v10061_v27, %v3709_v45 }
 0x5f5   : > { %v5151_v20 = vmul.f32 %v5135_v41, %v5119_v10  ;;  %v4888_v39 = vsel %vm3229_vm4, %v11950_v18, %v8652_v61  ;;  %v4984_v43 = vadd.f32 %v4872_v47, %v11951_v33  ;;  %v11953_v15 = vrot.slane %v10044_v19, 5  ;;  %v11955_v19 = vld [vmem:[#allocation240_spill] sm:$0xff] }
 0x5f6   : > { %v5142_v17 = vmul.f32 %v5102_v22, %v5086_v57  ;;  %v5143_v11 = vmul.f32 %v5103_v42, %v5087_v53  ;;  %v4992_v54 = vadd.f32 %v4888_v39, %v4771_v4  ;;  %v11954_v62 = vrot.slane %v10037_v46, 6 }
 0x5f7   : > { %v4231_v9 = vsel %vm4131_vm8, %v11953_v15, %v11952_v60  ;;  %5461 = vrcp.f32 %v5151_v20  ;;  %v5024_v16 = vmul.f32 %v4984_v43, %v4984_v43  ;;  %v5072_v27 = vmul.f32 2.0, %v4984_v43  ;;  %v5460_v6 = vpop.eup %5459 }
 0x5f8   : > { %v4311_v31 = vadd.f32 %v4231_v9, %v4010_v7  ;;  %v4412_v26 = vsel %vm4312_vm6, %v4409_v55, %v11954_v62  ;;  %v5040_v32 = vmul.f32 %v4992_v54, %v4992_v54  ;;  %v5056_v37 = vmul.f32 %v4992_v54, %v4984_v43 }
 0x5f9   : > { %v5032_v38 = vsub.f32 %v11955_v19, %v5024_v16  ;;  %v5080_v44 = vmul.f32 %v5072_v27, %v4992_v54  ;;  %v5164_v3 = vmul.f32 %v5460_v6, %v5142_v17  ;;  %v11956_v5 = vrot.slane %v10021_v28, 7 }
 0x5fa   : > { %v4492_v12 = vadd.f32 %v4412_v26, %v4311_v31  ;;  %v5048_v51 = vsub.f32 %v11957_v25, %v5040_v32  ;;  %v5112_v48 = vadd.f32 %v5040_v32, %v5024_v16  ;;  %v11958_v36 = vrot.slane %v10017_v58, 1 }
 0x5fb   : > { %v4593_v52 = vsel %vm4493_vm7, %v11956_v5, %v4592_v0  ;;  %v5185_v1 = vsel %vm5169_vm9, %v5164_v3, 0.0  ;;  %v11959_v0 = vrot.slane %v10066_v59, 2  ;;  %v5088_v23 = vadd.f32 0.0001, %v5080_v44 }
 0x5fc   : > { %v4673_v46 = vadd.f32 %v4593_v52, %v4492_v12  ;;  %v5128_v2 = vadd.f32 %v5048_v51, %v5032_v38  ;;  %5186 = vadd.xlane.f32.xlu0 %v5185_v1  ;;  %v4735_v63 = vsel %vm2928_vm3, %v11958_v36, %v8531_v8  ;;  %v5120_v13 = vadd.f32 0.0001, %v5112_v48 }
 0x5fd   : > { %v4936_v56 = vsel %vm3229_vm4, %v11959_v0, %v8652_v61  ;;  %v5202_v61 = vlaneseq }
 0x5fe   : > { %v4713_v55 = vadd.f32 %v4673_v46, %v10033_v30  ;;  %v5136_v34 = vadd.f32 0.0009, %v5128_v2 }
 0x5ff   : > { %v5203_v24 = vand.u32 127, %v5202_v61  ;;  %v5205_v53 = vshrl.u32 %v5202_v61, 7 }
 0x600   : > { %v4795_v28 = vadd.f32 %v4735_v63, %v4713_v55  ;;  %v5152_v29 = vmul.f32 %v5136_v34, %v5120_v13 }
 0x601   : > { %v5462_v14 = vpop.eup %5461  ;;  %v5208_v42 = vadd.s32 4294967288, %v5203_v24  ;;  %v5206_v47 = vsub.s32 %v5203_v24, %v5205_v53 }
 0x602   : > { %v5016_v57 = vadd.f32 %v4936_v56, %v4795_v28  ;;  %v5166_v35 = vmul.f32 %v5462_v14, %v5143_v11  ;;  %5463 = vrcp.f32 %v5152_v29 }
 0x603   : > { %v5211_v20 = vsub.s32 %v5208_v42, %v5205_v53 }
 0x604   : > { %v5064_v21 = vsub.f32 %v5016_v57, %v5056_v37  ;;  %v5188_v30 = vsel %vm5169_vm9, %v5166_v35, 0.0 }
 0x605   : > { %5189 = vadd.xlane.f32.xlu1 %v5188_v30 }
 0x606   : > { %v5096_v58 = vmul.f32 2.0, %v5064_v21 }
 0x608   : > { %v5104_v8 = vadd.f32 0.0009, %v5096_v58 }
 0x60a   : > { %v5144_v49 = vmul.f32 %v5104_v8, %v5088_v23 }
 0x60c   : > { %v5464_v50 = vpop.eup %5463 }
 0x60d   : > { %v5168_v10 = vmul.f32 %v5464_v50, %v5144_v49 }
 0x60f   : > { %v5191_v41 = vsel %vm5169_vm9, %v5168_v10, 0.0 }
 0x610   : > { %5192 = vadd.xlane.f32.xlu0 %v5191_v41 }
 0x651   : > { %v5172_v59 = vpop.xlane.xlu0 %5171 }
 0x652   : > { %v5207_v43 = vrot.slane %v5172_v59, %v5206_v47 }
 0x65b   : > { %v5175_v22 = vpop.xlane.xlu1 %5174 }
 0x65c   : > { %v5212_v33 = vrot.slane %v5175_v22, %v5211_v20 }
 0x65e   : > { %v5214_v31 = vsel %vm5213_vm10, %v5212_v33, %v5207_v43 }
 0x666   : > { %v5178_v45 = vpop.xlane.xlu0 %5177 }
 0x667   : > { %v5218_v60 = vrot.slane %v5178_v45, %v5206_v47 }
 0x673   : > { %v5181_v4 = vpop.xlane.xlu0 %5180 }
 0x674   : > { %v5222_v18 = vrot.slane %v5181_v4, %v5211_v20 }
 0x676   : > { %v5223_v17 = vsel %vm5213_vm10, %v5222_v18, %v5218_v60 }
 0x677   : > { %v5243_v62 = vsel %vm5242_vm11, %v5223_v17, %v5214_v31 }
 0x67d   : > { %v5184_v40 = vpop.xlane.xlu1 %5183 }
 0x67e   : > { %v5227_v15 = vrot.slane %v5184_v40, %v5206_v47 }
 0x689   : > { %v5187_v7 = vpop.xlane.xlu0 %5186 }
 0x68a   : > { %v5231_v39 = vrot.slane %v5187_v7, %v5211_v20 }
 0x68c   : > { %v5232_v11 = vsel %vm5213_vm10, %v5231_v39, %v5227_v15 }
 0x68d   : > { %v5245_v32 = vsel %vm5244_vm12, %v5232_v11, %v5243_v62 }
 0x692   : > { %v5190_v9 = vpop.xlane.xlu1 %5189 }
 0x693   : > { %v5236_v16 = vrot.slane %v5190_v9, %v5206_v47 }
 0x69d   : > { %v5193_v54 = vpop.xlane.xlu0 %5192 }
 0x69e   : > { %v5240_v27 = vrot.slane %v5193_v54, %v5211_v20 }
 0x6a0   : > { %v5241_v26 = vsel %vm5213_vm10, %v5240_v27, %v5236_v16 }
 0x6a1   : > { %v5247_v37 = vsel %vm5246_vm13, %v5241_v26, %v5245_v32 }
 0x6a2   : > { %v5250_v6 = vsel %vm5249_vm14, %v5247_v37, 0.0 }
 0x6a3   : > { %5251 = vadd.xlane.f32.xlu1 %v5250_v6 }
 0x730   : > { %v5252_v12 = vpop.xlane.xlu1 %5251 }
 0x731   : > { %v5257_v19 = vrot.slane %v5252_v12, %v5206_v47 }
 0x733   : > { %5260 = vst.msk [vmem:[%s202_s16] sm:$0x1] %vm5259_vm15, %v5257_v19 }
 0x734   : > { %5538 = shalt.err (!%p5535_p11)
}
 0x735   : > { %s5539_s30 = scalar_lea.hbm %s10387_s23, 16  ;;  %s5543_s28 = scalar_lea.hbm %s10433_s2, 32 }
 0x736   : > { %p5540_p3 = scmp.ne.s32.totalorder %s10387_s23, %s5539_s30  ;;  %p5544_p2 = scmp.lt.u32.totalorder %s10387_s23, %s10433_s2 }
 0x737   : > { %p5545_p4 = scmp.lt.u32.totalorder %s5543_s28, %s5539_s30  ;;  %p5547_p13 = scmp.lt.u32.totalorder %s5539_s30, %s10387_s23 }
 0x738   : > { %p5541_p8 = pnand %p5540_p3, %p11960_p1 }
 0x739   : > { %p5546_p6 = por %p5545_p4, %p5544_p2 }
 0x73a   : > { %p5542_p0 = pneg %p5541_p8 }
 0x73b   : > { %p5548_p12 = por %p5547_p13, %p5546_p6 }
 0x73d   : > { %p5549_p10 = pnand %p5548_p12, %p5542_p0 }
 0x73f   : > { %5552 = shalt.err (!%p5549_p10)
}
 0x740   : > { %5388 = dma.vmem_to_hbm [thread:$0]  (%p11960_p1), %s10389_s4, 16, %s10387_s23, %s5262_s29  }
 0x741 PF: > { %s5286_s27 = sand.u32 1, %s5583_s9   ;;  %p11961_p5 = scmp.ne.s32.totalorder %s10688_s22, 0 }
 0x742   : > { %p11962_p7 = scmp.ge.s32.totalorder %s5595_s12, 2  ;;  %s5287_s25 = scalar_lea.sflag [#allocation4], %s5286_s27 }
 0x744   : > { %p5398_p9 = pnand %p11962_p7, %p11961_p5 }
 0x746   : > { %5578 = dma.done.wait (!%p5398_p9), %s5287_s25, 16  }
 0x747   : > { %5580 = vsyncadd (!%p5398_p9), %s5287_s25, 4294967280  ;;  %p18_p11 = scmp.ge.s32.totalorder %s5654_s15, 4   ;;  %s11963_s9 = smov %s5587_s10 }
 0x748   : > { %s11964_s10 = smov %s5591_s11  ;;  %s11965_s11 = smov %s5666_s18 }
 0x749   : > { %s11966_s12 = smov %s5654_s15  ;;  %20 = sbr.rel (!%p18_p11) target bundleno = 7 (0x7), region = 86 }
 0x750   :  { %5291 = vsyncpa [#allocation3], 1 }
 0x751   :  { %5293 = vsyncpa [#allocation3 + $0x1], 1 }
 0x752   :  { %5294 = vsyncpa [#allocation6], 1 }
 0x753   :  { %5296 = vsyncpa [#allocation6 + $0x1], 1 }
 0x754   :  { %5297 = vsyncpa [#allocation4], 1 }
 0x755   :  { %5299 = vsyncpa [#allocation4 + $0x1], 1 }

</bundles_post_ra>
